<compile_context>
chip_gen: v6e
topology: v6e:2x2x1
jax: 0.10.0
libtpu: 0.0.40
codegen_flags: <defaults>
</compile_context>

<pallas_src>
import jax
import jax.numpy as jnp
from jax.experimental import pallas as pl
from jax.experimental.pallas import tpu as pltpu

# ---------------- model dimensions (fixed by the PyTorch module) -------------
L_INPUT = 241
KER = 3
STRIDE = 2
C_CONV = 64
L1 = 120                      # conv1 output length: (241-3)//2 + 1
L1H = 60                      # conv1 even / odd output-phase length
L2 = 59                       # conv2 output length: (120-3)//2 + 1
FLAT = L2 * C_CONV            # 3776
HID = 512
LATENT = 128
DEC_CH = 128
DEC_L = 32
DEC_FLAT = DEC_CH * DEC_L     # 4096
DC1_CH = DEC_CH // 2          # 64
DC2_CH = DEC_CH // 4          # 32
L_DC1 = 2 * DEC_L - 3         # 61
L_DC2 = 2 * L_DC1 - 3         # 119
L_DC3 = 2 * L_DC2 - 3         # 235
ADJ_IN = 235
ADJ_OUT = 241


def _vmem(n):
    return [pl.BlockSpec(memory_space=pltpu.MemorySpace.VMEM) for _ in range(n)]


# =============================================================================
# Kernel 1: conv1 + ReLU + conv2 + ReLU (encoder convolutions, fused)
# =============================================================================
def _encoder_conv_kernel(p_ref, w1_ref, b1_ref, w2_ref, b2_ref, o_ref):
    """p_ref : (B*120, 3) f32  conv1 im2col patches; per batch the rows are
               ordered [60 even output positions | 60 odd output positions].
       w1_ref: (3, 64)     bf16  conv1 taps (k, C_out)        [C_in == 1]
       w2_ref: (3, 64, 64) bf16  conv2 taps (k, C_in, C_out)
       o_ref : (B, 59, 64) f32   conv2 output, (position, channel) layout."""
    B = o_ref.shape[0]
    h1 = jnp.dot(p_ref[...].astype(jnp.bfloat16), w1_ref[...],
                 preferred_element_type=jnp.float32) + b1_ref[...]
    h1 = jnp.maximum(h1, 0.0).astype(jnp.bfloat16)            # (B*120, 64)
    w2_0, w2_1, w2_2 = w2_ref[0], w2_ref[1], w2_ref[2]
    for b in range(B):                                        # B == 2, unrolled
        he = h1[b * L1: b * L1 + L1H]                         # even conv1 positions
        ho = h1[b * L1 + L1H: (b + 1) * L1]                   # odd  conv1 positions
        # conv2 output t uses conv1 positions 2t, 2t+1, 2t+2:
        acc = jnp.dot(he[0:L2], w2_0, preferred_element_type=jnp.float32)
        acc = acc + jnp.dot(ho[0:L2], w2_1, preferred_element_type=jnp.float32)
        acc = acc + jnp.dot(he[1:L2 + 1], w2_2, preferred_element_type=jnp.float32)
        o_ref[b] = jnp.maximum(acc + b2_ref[...], 0.0)


def encoder_conv(patches, w1, b1, w2, b2):
    rows = patches.shape[0]
    B = rows // L1
    cost = pl.CostEstimate(
        flops=2 * rows * KER * C_CONV + 2 * B * L2 * (C_CONV * KER) * C_CONV,
        transcendentals=0,
        bytes_accessed=patches.size * 4 + (w1.size + w2.size) * 2
        + (b1.size + b2.size) * 4 + B * L2 * C_CONV * 4)
    return pl.pallas_call(
        _encoder_conv_kernel,
        out_shape=jax.ShapeDtypeStruct((B, L2, C_CONV), jnp.float32),
        in_specs=_vmem(5),
        out_specs=pl.BlockSpec(memory_space=pltpu.MemorySpace.VMEM),
        cost_estimate=cost,
    )(patches, w1, b1, w2, b2)


# =============================================================================
# Kernel 2: linear1 -> en_fc1 / en_fc2 -> reparameterize -> de_fc1 (fused FC)
# =============================================================================
def _fc_chain_kernel(h_ref, eps_ref, wl_ref, bl_ref, we1_ref, be1_ref,
                     we2_ref, be2_ref, wd_ref, bd_ref,
                     d_ref, mean_ref, logvar_ref):
    h = h_ref[...].astype(jnp.bfloat16)                                   # (B, 3776)
    h1 = jnp.dot(h, wl_ref[...], preferred_element_type=jnp.float32) + bl_ref[...]
    h1 = jnp.maximum(h1, 0.0)                                             # (B, 512)
    h1b = h1.astype(jnp.bfloat16)
    mean = jnp.dot(h1b, we1_ref[...], preferred_element_type=jnp.float32) + be1_ref[...]
    logvar = jnp.dot(h1b, we2_ref[...], preferred_element_type=jnp.float32) + be2_ref[...]
    z = mean + eps_ref[...] * jnp.exp(0.5 * logvar)                       # reparameterize
    d = jnp.dot(z.astype(jnp.bfloat16), wd_ref[...],
                preferred_element_type=jnp.float32) + bd_ref[...]
    d_ref[...] = jnp.maximum(d, 0.0)                                      # (B, 4096)
    mean_ref[...] = mean
    logvar_ref[...] = logvar


def fc_chain(h, eps, wl, bl, we1, be1, we2, be2, wd, bd):
    B = h.shape[0]
    cost = pl.CostEstimate(
        flops=2 * B * (FLAT * HID + 2 * HID * LATENT + LATENT * DEC_FLAT),
        transcendentals=B * LATENT,
        bytes_accessed=(h.size + eps.size) * 4
        + (wl.size + we1.size + we2.size + wd.size) * 2
        + (bl.size + be1.size + be2.size + bd.size) * 4
        + B * (DEC_FLAT + 2 * LATENT) * 4)
    return pl.pallas_call(
        _fc_chain_kernel,
        out_shape=(jax.ShapeDtypeStruct((B, DEC_FLAT), jnp.float32),
                   jax.ShapeDtypeStruct((B, LATENT), jnp.float32),
                   jax.ShapeDtypeStruct((B, LATENT), jnp.float32)),
        in_specs=_vmem(10),
        out_specs=(pl.BlockSpec(memory_space=pltpu.MemorySpace.VMEM),
                   pl.BlockSpec(memory_space=pltpu.MemorySpace.VMEM),
                   pl.BlockSpec(memory_space=pltpu.MemorySpace.VMEM)),
        cost_estimate=cost,
    )(h, eps, wl, bl, we1, be1, we2, be2, wd, bd)


# =============================================================================
# Kernel 3: ConvTranspose1d #1 + #2 (k=3, stride=2, padding=2), polyphase
# =============================================================================
def _deconv12_kernel(y_ref, w1_ref, b1_ref, w2_ref, b2_ref, o_ref):
    """y_ref : (B, 32, 128) f32   de_fc1 output, (position, channel)
       w1_ref: (3, 128, 64) bf16  dc1 taps (j, C_in, C_out)
       w2_ref: (3, 64, 32)  bf16  dc2 taps
       o_ref : (B, 119, 32) f32   dc2 output, positions phase-blocked:
               rows [ 0: 30) -> true position 4u
               rows [30: 60) -> 4u+1
               rows [60: 90) -> 4u+2
               rows [90:119) -> 4u+3                                      """
    B = o_ref.shape[0]
    for b in range(B):
        y = y_ref[b].astype(jnp.bfloat16)                                 # (32, 128)
        # dc1 polyphase:  a[2s] = y[s+1]W0 + y[s]W2 + b   (s = 0..30)
        #                 a[2s+1] = y[s+1]W1 + b          (s = 0..29)
        a_e = (jnp.dot(y[1:DEC_L], w1_ref[0], preferred_element_type=jnp.float32)
               + jnp.dot(y[0:DEC_L - 1], w1_ref[2], preferred_element_type=jnp.float32)
               + b1_ref[...])                                             # (31, 64)
        a_o = (jnp.dot(y[1:DEC_L - 1], w1_ref[1], preferred_element_type=jnp.float32)
               + b1_ref[...])                                             # (30, 64)
        ae = a_e.astype(jnp.bfloat16)
        ao = a_o.astype(jnp.bfloat16)
        # dc2 polyphase on a[2u]=a_e[u], a[2u+1]=a_o[u]:
        #   p=4u   : a_o[u]   V0 + a_e[u] V2
        #   p=4u+1 : a_o[u]   V1
        #   p=4u+2 : a_e[u+1] V0 + a_o[u] V2
        #   p=4u+3 : a_e[u+1] V1
        b_ee = (jnp.dot(ao, w2_ref[0], preferred_element_type=jnp.float32)
                + jnp.dot(ae[0:30], w2_ref[2], preferred_element_type=jnp.float32)
                + b2_ref[...])                                            # (30, 32)
        b_oe = jnp.dot(ao, w2_ref[1], preferred_element_type=jnp.float32) + b2_ref[...]
        b_eo = (jnp.dot(ae[1:31], w2_ref[0], preferred_element_type=jnp.float32)
                + jnp.dot(ao, w2_ref[2], preferred_element_type=jnp.float32)
                + b2_ref[...])                                            # (30, 32)
        b_oo = (jnp.dot(ae[1:30], w2_ref[1], preferred_element_type=jnp.float32)
                + b2_ref[...])                                            # (29, 32)
        o_ref[b, 0:30, :] = b_ee
        o_ref[b, 30:60, :] = b_oe
        o_ref[b, 60:90, :] = b_eo
        o_ref[b, 90:119, :] = b_oo


def deconv12(y, w1, b1, w2, b2):
    B = y.shape[0]
    macs = B * (92 * DEC_CH * DC1_CH + 179 * DC1_CH * DC2_CH)
    cost = pl.CostEstimate(
        flops=2 * macs, transcendentals=0,
        bytes_accessed=y.size * 4 + (w1.size + w2.size) * 2
        + (b1.size + b2.size) * 4 + B * L_DC2 * DC2_CH * 4)
    return pl.pallas_call(
        _deconv12_kernel,
        out_shape=jax.ShapeDtypeStruct((B, L_DC2, DC2_CH), jnp.float32),
        in_specs=_vmem(5),
        out_specs=pl.BlockSpec(memory_space=pltpu.MemorySpace.VMEM),
        cost_estimate=cost,
    )(y, w1, b1, w2, b2)


# =============================================================================
# Kernel 4: ConvTranspose1d #3 folded into adjust Linear(235 -> 241) + ReLU
# =============================================================================
def _deconv3_adjust_kernel(x_ref, m_ref, bias_ref, o_ref):
    x = x_ref[...].astype(jnp.bfloat16)                                   # (B, 3808)
    acc = jnp.dot(x, m_ref[...], preferred_element_type=jnp.float32) + bias_ref[...]
    o_ref[...] = jnp.maximum(acc, 0.0)


def deconv3_adjust(xf, m, bias):
    B = xf.shape[0]
    cost = pl.CostEstimate(
        flops=2 * B * m.shape[0] * m.shape[1], transcendentals=0,
        bytes_accessed=xf.size * 4 + m.size * 2 + bias.size * 4 + B * ADJ_OUT * 4)
    return pl.pallas_call(
        _deconv3_adjust_kernel,
        out_shape=jax.ShapeDtypeStruct((B, ADJ_OUT), jnp.float32),
        in_specs=_vmem(3),
        out_specs=pl.BlockSpec(memory_space=pltpu.MemorySpace.VMEM),
        cost_estimate=cost,
    )(xf, m, bias)


# =============================================================================
# Parameters
# =============================================================================
def init_params(key):
    """Synthetic parameters in the original PyTorch layouts."""
    ks = jax.random.split(key, 20)
    s = 0.05

    def n(i, shape):
        return s * jax.random.normal(ks[i], shape, dtype=jnp.float32)

    p = {}
    p["conv1_w"] = n(0, (C_CONV, 1, KER));       p["conv1_b"] = n(1, (C_CONV,))
    p["conv2_w"] = n(2, (C_CONV, C_CONV, KER));  p["conv2_b"] = n(3, (C_CONV,))
    p["lin1_w"] = n(4, (HID, C_CONV * L2));      p["lin1_b"] = n(5, (HID,))
    p["enfc1_w"] = n(6, (LATENT, HID));          p["enfc1_b"] = n(7, (LATENT,))
    p["enfc2_w"] = n(8, (LATENT, HID));          p["enfc2_b"] = n(9, (LATENT,))
    p["defc1_w"] = n(10, (DEC_FLAT, LATENT));    p["defc1_b"] = n(11, (DEC_FLAT,))
    p["dc1_w"] = n(12, (DEC_CH, DC1_CH, KER));   p["dc1_b"] = n(13, (DC1_CH,))
    p["dc2_w"] = n(14, (DC1_CH, DC2_CH, KER));   p["dc2_b"] = n(15, (DC2_CH,))
    p["dc3_w"] = n(16, (DC2_CH, 1, KER));        p["dc3_b"] = n(17, (1,))
    p["adj_w"] = n(18, (ADJ_OUT, ADJ_IN));       p["adj_b"] = n(19, (ADJ_OUT,))
    return p


def _compose_dc3_adjust(dc3_w, dc3_b, adj_w, adj_b):
    """Fold ConvTranspose1d(32,1,3,stride=2,pad=2) into Linear(235,241).

    Returns M (119*32, 241) with rows ordered to match _deconv12_kernel's
    phase-blocked output layout, and the effective bias (1, 241)."""
    t = jnp.arange(L_DC2)
    m = jnp.zeros((L_DC2, DC2_CH, ADJ_OUT), jnp.float32)
    for j in range(KER):
        p3 = 2 * t + j - 2                       # dc3 output position hit by tap j
        valid = (p3 >= 0) & (p3 < L_DC3)
        cols = jnp.where(valid[None, :],
                         adj_w[:, jnp.clip(p3, 0, L_DC3 - 1)], 0.0)       # (241, 119)
        m = m + cols.T[:, None, :] * dc3_w[:, 0, j][None, :, None]
    bias_eff = adj_b + dc3_b[0] * jnp.sum(adj_w, axis=1)                  # (241,)
    perm = jnp.concatenate([4 * jnp.arange(30),
                            4 * jnp.arange(30) + 1,
                            4 * jnp.arange(30) + 2,
                            4 * jnp.arange(29) + 3])
    m = m[perm].reshape(L_DC2 * DC2_CH, ADJ_OUT)
    return m, bias_eff.reshape(1, ADJ_OUT)


def prepare_params(p):
    """One-time layout permutations, dc3/adjust composition and bf16 casts.

    Runs once outside the jitted forward, so no transposes or weight copies
    are materialized per step."""
    bf = jnp.bfloat16
    q = {}
    # conv1 (64,1,3) -> taps (3, 64)
    q["c1_w"] = jnp.transpose(p["conv1_w"][:, 0, :], (1, 0)).astype(bf)
    q["c1_b"] = p["conv1_b"].reshape(1, C_CONV)
    # conv2 (64,64,3) -> taps (3, C_in, C_out)
    q["c2_w"] = jnp.transpose(p["conv2_w"], (2, 1, 0)).astype(bf)
    q["c2_b"] = p["conv2_b"].reshape(1, C_CONV)
    # linear1: PyTorch (512, 64*59), flatten index c*59+t  ->  rows t*64+c
    q["l1_w"] = (p["lin1_w"].reshape(HID, C_CONV, L2)
                 .transpose(2, 1, 0).reshape(FLAT, HID).astype(bf))
    q["l1_b"] = p["lin1_b"].reshape(1, HID)
    q["e1_w"] = p["enfc1_w"].T.astype(bf)
    q["e1_b"] = p["enfc1_b"].reshape(1, LATENT)
    q["e2_w"] = p["enfc2_w"].T.astype(bf)
    q["e2_b"] = p["enfc2_b"].reshape(1, LATENT)
    # de_fc1: PyTorch output index c*32+l  ->  column l*128+c (channels-last)
    q["d1_w"] = (p["defc1_w"].reshape(DEC_CH, DEC_L, LATENT)
                 .transpose(2, 1, 0).reshape(LATENT, DEC_FLAT).astype(bf))
    q["d1_b"] = p["defc1_b"].reshape(DEC_CH, DEC_L).T.reshape(1, DEC_FLAT)
    # ConvTranspose1d weights (C_in, C_out, k) -> (k, C_in, C_out)
    q["dc1_w"] = jnp.transpose(p["dc1_w"], (2, 0, 1)).astype(bf)
    q["dc1_b"] = p["dc1_b"].reshape(1, DC1_CH)
    q["dc2_w"] = jnp.transpose(p["dc2_w"], (2, 0, 1)).astype(bf)
    q["dc2_b"] = p["dc2_b"].reshape(1, DC2_CH)
    # dc3 composed with the adjust linear (lane-dense N=241 output)
    m, beff = _compose_dc3_adjust(p["dc3_w"], p["dc3_b"], p["adj_w"], p["adj_b"])
    q["m_w"] = m.astype(bf)
    q["m_b"] = beff
    return q


# =============================================================================
# Forward pass
# =============================================================================
def mmvae_forward(prep, x, eps):
    """x: (B, 1, 241), eps: (B, 128) -> (recon (B,1,241), mean, logvar)."""
    B = x.shape[0]
    x2 = x[:, 0, :]
    # conv1 im2col via static strided slices (no gather, no scatter).
    # Even conv1 output t=2s reads x[4s+j]; odd t=2s+1 reads x[4s+2+j].
    pe = jnp.stack([x2[:, j:j + 4 * L1H - 3:4] for j in range(KER)], axis=-1)
    po = jnp.stack([x2[:, j + 2:j + 2 + 4 * L1H - 3:4] for j in range(KER)], axis=-1)
    patches = jnp.concatenate([pe, po], axis=1).reshape(B * L1, KER)

    h2 = encoder_conv(patches, prep["c1_w"], prep["c1_b"], prep["c2_w"], prep["c2_b"])
    d, mean, logvar = fc_chain(h2.reshape(B, FLAT), eps,
                               prep["l1_w"], prep["l1_b"],
                               prep["e1_w"], prep["e1_b"],
                               prep["e2_w"], prep["e2_b"],
                               prep["d1_w"], prep["d1_b"])
    bperm = deconv12(d.reshape(B, DEC_L, DEC_CH),
                     prep["dc1_w"], prep["dc1_b"], prep["dc2_w"], prep["dc2_b"])
    out = deconv3_adjust(bperm.reshape(B, L_DC2 * DC2_CH), prep["m_w"], prep["m_b"])
    return out.reshape(B, 1, ADJ_OUT), mean, logvar


# =============================================================================
# Pure-JAX f32 reference (mirrors the PyTorch module op-for-op)
# =============================================================================
def _reference_forward(p, x, eps):
    B = x.shape[0]

    def conv1d(x, w, b, stride, relu):
        Bc, c_in, L = x.shape
        c_out, _, k = w.shape
        L_out = (L - k) // stride + 1
        idx = jnp.arange(L_out)[:, None] * stride + jnp.arange(k)[None, :]
        patches = jnp.transpose(x[:, :, idx], (0, 2, 1, 3)).reshape(Bc * L_out, c_in * k)
        out = patches @ w.reshape(c_out, c_in * k).T + b
        if relu:
            out = jnp.maximum(out, 0.0)
        return jnp.transpose(out.reshape(Bc, L_out, c_out), (0, 2, 1))

    def conv_transpose1d(x, w, b, stride, padding):
        Bc, c_in, L = x.shape
        L_up = (L - 1) * stride + 1
        x_up = jnp.zeros((Bc, c_in, L_up), x.dtype).at[:, :, ::stride].set(x)
        pad = w.shape[2] - 1 - padding
        x_pad = jnp.pad(x_up, ((0, 0), (0, 0), (pad, pad)))
        w_conv = jnp.transpose(jnp.flip(w, axis=-1), (1, 0, 2))
        return conv1d(x_pad, w_conv, b, stride=1, relu=False)

    h = conv1d(x, p["conv1_w"], p["conv1_b"], 2, True)
    h = conv1d(h, p["conv2_w"], p["conv2_b"], 2, True)
    h = h.reshape(B, -1)
    h = jnp.maximum(h @ p["lin1_w"].T + p["lin1_b"], 0.0)
    mean = h @ p["enfc1_w"].T + p["enfc1_b"]
    logvar = h @ p["enfc2_w"].T + p["enfc2_b"]
    z = mean + eps * jnp.exp(0.5 * logvar)
    d = jnp.maximum(z @ p["defc1_w"].T + p["defc1_b"], 0.0)
    d = d.reshape(B, DEC_CH, DEC_L)
    d = conv_transpose1d(d, p["dc1_w"], p["dc1_b"], 2, 2)
    d = conv_transpose1d(d, p["dc2_w"], p["dc2_b"], 2, 2)
    d = conv_transpose1d(d, p["dc3_w"], p["dc3_b"], 2, 2)
    out = jnp.maximum(d.reshape(B, ADJ_IN) @ p["adj_w"].T + p["adj_b"], 0.0)
    return out.reshape(B, 1, ADJ_OUT), mean, logvar


# =============================================================================
if __name__ == "__main__":
    key = jax.random.PRNGKey(0)
    k_params, k_x, k_eps = jax.random.split(key, 3)

    raw = init_params(k_params)
    prep = prepare_params(raw)          # one-time: transposes / composition / bf16

    B = 2
    x = jax.random.normal(k_x, (B, 1, L_INPUT), dtype=jnp.float32)
    eps = jax.random.normal(k_eps, (B, LATENT), dtype=jnp.float32)

    out, mean, logvar = jax.jit(mmvae_forward)(prep, x, eps)
    jax.block_until_ready((out, mean, logvar))

    assert out.shape == (B, 1, ADJ_OUT), out.shape
    assert mean.shape == (B, LATENT)
    assert logvar.shape == (B, LATENT)

    # correctness check against a pure-JAX f32 reference (bf16 tolerance)
    out_r, mean_r, logvar_r = jax.jit(_reference_forward)(raw, x, eps)
    err_out = float(jnp.max(jnp.abs(out - out_r)))
    err_mean = float(jnp.max(jnp.abs(mean - mean_r)))
    err_lv = float(jnp.max(jnp.abs(logvar - logvar_r)))
    assert err_out < 5e-2 and err_mean < 2e-2 and err_lv < 2e-2, (err_out, err_mean, err_lv)

    print("KERNEL_OK")
</pallas_src>

<mosaic_0001>
module attributes {stable_mosaic.version = 11 : i64} {
  func.func @_fc_chain_kernel(%arg0: memref<2x3776xf32, #tpu.memory_space<vmem>>, %arg1: memref<2x128xf32, #tpu.memory_space<vmem>>, %arg2: memref<3776x512xbf16, #tpu.memory_space<vmem>>, %arg3: memref<1x512xf32, #tpu.memory_space<vmem>>, %arg4: memref<512x128xbf16, #tpu.memory_space<vmem>>, %arg5: memref<1x128xf32, #tpu.memory_space<vmem>>, %arg6: memref<512x128xbf16, #tpu.memory_space<vmem>>, %arg7: memref<1x128xf32, #tpu.memory_space<vmem>>, %arg8: memref<128x4096xbf16, #tpu.memory_space<vmem>>, %arg9: memref<1x4096xf32, #tpu.memory_space<vmem>>, %arg10: memref<2x4096xf32, #tpu.memory_space<vmem>>, %arg11: memref<2x128xf32, #tpu.memory_space<vmem>>, %arg12: memref<2x128xf32, #tpu.memory_space<vmem>>) attributes {dimension_semantics = [], scalar_prefetch = 0 : i64, scratch_operands = 0 : i64, tpu.core_type = #tpu.core_type<tc>} {
    %c0 = arith.constant 0 : index
    %c0_0 = arith.constant 0 : index
    %0 = vector.load %arg0[%c0, %c0_0] : memref<2x3776xf32, #tpu.memory_space<vmem>>, vector<2x3776xf32>
    %1 = arith.truncf %0 : vector<2x3776xf32> to vector<2x3776xbf16>
    %c0_1 = arith.constant 0 : index
    %c0_2 = arith.constant 0 : index
    %2 = vector.load %arg2[%c0_1, %c0_2] : memref<3776x512xbf16, #tpu.memory_space<vmem>>, vector<3776x512xbf16>
    %cst = arith.constant dense<0.000000e+00> : vector<2x512xf32>
    %3 = tpu.matmul %1, %2, %cst {dimension_numbers = #tpu.dot_dimension_numbers<[1], [0], [0], [1], [0, 0, 1, 1], [], []>} : vector<2x3776xbf16>, vector<3776x512xbf16>, vector<2x512xf32> -> vector<2x512xf32>
    %c0_3 = arith.constant 0 : index
    %c0_4 = arith.constant 0 : index
    %4 = vector.load %arg3[%c0_3, %c0_4] : memref<1x512xf32, #tpu.memory_space<vmem>>, vector<1x512xf32>
    %5 = vector.broadcast %4 : vector<1x512xf32> to vector<2x512xf32>
    %6 = arith.addf %3, %5 : vector<2x512xf32>
    %cst_5 = arith.constant 0.000000e+00 : f32
    %7 = vector.broadcast %cst_5 : f32 to vector<2x512xf32>
    %8 = arith.maximumf %6, %7 : vector<2x512xf32>
    %9 = arith.truncf %8 : vector<2x512xf32> to vector<2x512xbf16>
    %c0_6 = arith.constant 0 : index
    %c0_7 = arith.constant 0 : index
    %10 = vector.load %arg4[%c0_6, %c0_7] : memref<512x128xbf16, #tpu.memory_space<vmem>>, vector<512x128xbf16>
    %cst_8 = arith.constant dense<0.000000e+00> : vector<2x128xf32>
    %11 = tpu.matmul %9, %10, %cst_8 {dimension_numbers = #tpu.dot_dimension_numbers<[1], [0], [0], [1], [0, 0, 1, 1], [], []>} : vector<2x512xbf16>, vector<512x128xbf16>, vector<2x128xf32> -> vector<2x128xf32>
    %c0_9 = arith.constant 0 : index
    %c0_10 = arith.constant 0 : index
    %12 = vector.load %arg5[%c0_9, %c0_10] : memref<1x128xf32, #tpu.memory_space<vmem>>, vector<1x128xf32>
    %13 = vector.broadcast %12 : vector<1x128xf32> to vector<2x128xf32>
    %14 = arith.addf %11, %13 : vector<2x128xf32>
    %c0_11 = arith.constant 0 : index
    %c0_12 = arith.constant 0 : index
    %15 = vector.load %arg6[%c0_11, %c0_12] : memref<512x128xbf16, #tpu.memory_space<vmem>>, vector<512x128xbf16>
    %cst_13 = arith.constant dense<0.000000e+00> : vector<2x128xf32>
    %16 = tpu.matmul %9, %15, %cst_13 {dimension_numbers = #tpu.dot_dimension_numbers<[1], [0], [0], [1], [0, 0, 1, 1], [], []>} : vector<2x512xbf16>, vector<512x128xbf16>, vector<2x128xf32> -> vector<2x128xf32>
    %c0_14 = arith.constant 0 : index
    %c0_15 = arith.constant 0 : index
    %17 = vector.load %arg7[%c0_14, %c0_15] : memref<1x128xf32, #tpu.memory_space<vmem>>, vector<1x128xf32>
    %18 = vector.broadcast %17 : vector<1x128xf32> to vector<2x128xf32>
    %19 = arith.addf %16, %18 : vector<2x128xf32>
    %c0_16 = arith.constant 0 : index
    %c0_17 = arith.constant 0 : index
    %20 = vector.load %arg1[%c0_16, %c0_17] : memref<2x128xf32, #tpu.memory_space<vmem>>, vector<2x128xf32>
    %cst_18 = arith.constant 5.000000e-01 : f32
    %21 = vector.broadcast %cst_18 : f32 to vector<2x128xf32>
    %22 = arith.mulf %21, %19 : vector<2x128xf32>
    %23 = math.exp %22 : vector<2x128xf32>
    %24 = arith.mulf %20, %23 : vector<2x128xf32>
    %25 = arith.addf %14, %24 : vector<2x128xf32>
    %26 = arith.truncf %25 : vector<2x128xf32> to vector<2x128xbf16>
    %c0_19 = arith.constant 0 : index
    %c0_20 = arith.constant 0 : index
    %27 = vector.load %arg8[%c0_19, %c0_20] : memref<128x4096xbf16, #tpu.memory_space<vmem>>, vector<128x4096xbf16>
    %cst_21 = arith.constant dense<0.000000e+00> : vector<2x4096xf32>
    %28 = tpu.matmul %26, %27, %cst_21 {dimension_numbers = #tpu.dot_dimension_numbers<[1], [0], [0], [1], [0, 0, 1, 1], [], []>} : vector<2x128xbf16>, vector<128x4096xbf16>, vector<2x4096xf32> -> vector<2x4096xf32>
    %c0_22 = arith.constant 0 : index
    %c0_23 = arith.constant 0 : index
    %29 = vector.load %arg9[%c0_22, %c0_23] : memref<1x4096xf32, #tpu.memory_space<vmem>>, vector<1x4096xf32>
    %30 = vector.broadcast %29 : vector<1x4096xf32> to vector<2x4096xf32>
    %31 = arith.addf %28, %30 : vector<2x4096xf32>
    %cst_24 = arith.constant 0.000000e+00 : f32
    %32 = vector.broadcast %cst_24 : f32 to vector<2x4096xf32>
    %33 = arith.maximumf %31, %32 : vector<2x4096xf32>
    %c0_25 = arith.constant 0 : index
    %c0_26 = arith.constant 0 : index
    %34 = vector.load %arg10[%c0_25, %c0_26] : memref<2x4096xf32, #tpu.memory_space<vmem>>, vector<2x4096xf32>
    tpu.vector_store %arg10[%c0_25, %c0_26], %33 {strides = array<i32>} : memref<2x4096xf32, #tpu.memory_space<vmem>>, vector<2x4096xf32>,
    %c0_27 = arith.constant 0 : index
    %c0_28 = arith.constant 0 : index
    %35 = vector.load %arg11[%c0_27, %c0_28] : memref<2x128xf32, #tpu.memory_space<vmem>>, vector<2x128xf32>
    tpu.vector_store %arg11[%c0_27, %c0_28], %14 {strides = array<i32>} : memref<2x128xf32, #tpu.memory_space<vmem>>, vector<2x128xf32>,
    %c0_29 = arith.constant 0 : index
    %c0_30 = arith.constant 0 : index
    %36 = vector.load %arg12[%c0_29, %c0_30] : memref<2x128xf32, #tpu.memory_space<vmem>>, vector<2x128xf32>
    tpu.vector_store %arg12[%c0_29, %c0_30], %19 {strides = array<i32>} : memref<2x128xf32, #tpu.memory_space<vmem>>, vector<2x128xf32>,
    return
  }
}

module attributes {stable_mosaic.version = 11 : i64} {
  func.func @_deconv12_kernel(%arg0: memref<2x32x128xf32, #tpu.memory_space<vmem>>, %arg1: memref<3x128x64xbf16, #tpu.memory_space<vmem>>, %arg2: memref<1x64xf32, #tpu.memory_space<vmem>>, %arg3: memref<3x64x32xbf16, #tpu.memory_space<vmem>>, %arg4: memref<1x32xf32, #tpu.memory_space<vmem>>, %arg5: memref<2x119x32xf32, #tpu.memory_space<vmem>>) attributes {dimension_semantics = [], scalar_prefetch = 0 : i64, scratch_operands = 0 : i64, tpu.core_type = #tpu.core_type<tc>} {
    %c0 = arith.constant 0 : index
    %c0_0 = arith.constant 0 : index
    %c0_1 = arith.constant 0 : index
    %0 = vector.load %arg0[%c0, %c0_0, %c0_1] : memref<2x32x128xf32, #tpu.memory_space<vmem>>, vector<1x32x128xf32>
    %1 = vector.shape_cast %0 : vector<1x32x128xf32> to vector<32x128xf32>
    %2 = arith.truncf %1 : vector<32x128xf32> to vector<32x128xbf16>
    %3 = vector.extract_strided_slice %2 {offsets = [1, 0], sizes = [31, 128], strides = [1, 1]} : vector<32x128xbf16> to vector<31x128xbf16>
    %c0_2 = arith.constant 0 : index
    %c0_3 = arith.constant 0 : index
    %c0_4 = arith.constant 0 : index
    %4 = vector.load %arg1[%c0_2, %c0_3, %c0_4] : memref<3x128x64xbf16, #tpu.memory_space<vmem>>, vector<1x128x64xbf16>
    %5 = vector.shape_cast %4 : vector<1x128x64xbf16> to vector<128x64xbf16>
    %cst = arith.constant dense<0.000000e+00> : vector<31x64xf32>
    %6 = tpu.matmul %3, %5, %cst {dimension_numbers = #tpu.dot_dimension_numbers<[1], [0], [0], [1], [0, 0, 1, 1], [], []>} : vector<31x128xbf16>, vector<128x64xbf16>, vector<31x64xf32> -> vector<31x64xf32>
    %7 = vector.extract_strided_slice %2 {offsets = [0, 0], sizes = [31, 128], strides = [1, 1]} : vector<32x128xbf16> to vector<31x128xbf16>
    %c2 = arith.constant 2 : index
    %c0_5 = arith.constant 0 : index
    %c0_6 = arith.constant 0 : index
    %8 = vector.load %arg1[%c2, %c0_5, %c0_6] : memref<3x128x64xbf16, #tpu.memory_space<vmem>>, vector<1x128x64xbf16>
    %9 = vector.shape_cast %8 : vector<1x128x64xbf16> to vector<128x64xbf16>
    %cst_7 = arith.constant dense<0.000000e+00> : vector<31x64xf32>
    %10 = tpu.matmul %7, %9, %cst_7 {dimension_numbers = #tpu.dot_dimension_numbers<[1], [0], [0], [1], [0, 0, 1, 1], [], []>} : vector<31x128xbf16>, vector<128x64xbf16>, vector<31x64xf32> -> vector<31x64xf32>
    %11 = arith.addf %6, %10 : vector<31x64xf32>
    %c0_8 = arith.constant 0 : index
    %c0_9 = arith.constant 0 : index
    %12 = vector.load %arg2[%c0_8, %c0_9] : memref<1x64xf32, #tpu.memory_space<vmem>>, vector<1x64xf32>
    %13 = vector.broadcast %12 : vector<1x64xf32> to vector<31x64xf32>
    %14 = arith.addf %11, %13 : vector<31x64xf32>
    %15 = vector.extract_strided_slice %2 {offsets = [1, 0], sizes = [30, 128], strides = [1, 1]} : vector<32x128xbf16> to vector<30x128xbf16>
    %c1 = arith.constant 1 : index
    %c0_10 = arith.constant 0 : index
    %c0_11 = arith.constant 0 : index
    %16 = vector.load %arg1[%c1, %c0_10, %c0_11] : memref<3x128x64xbf16, #tpu.memory_space<vmem>>, vector<1x128x64xbf16>
    %17 = vector.shape_cast %16 : vector<1x128x64xbf16> to vector<128x64xbf16>
    %cst_12 = arith.constant dense<0.000000e+00> : vector<30x64xf32>
    %18 = tpu.matmul %15, %17, %cst_12 {dimension_numbers = #tpu.dot_dimension_numbers<[1], [0], [0], [1], [0, 0, 1, 1], [], []>} : vector<30x128xbf16>, vector<128x64xbf16>, vector<30x64xf32> -> vector<30x64xf32>
    %c0_13 = arith.constant 0 : index
    %c0_14 = arith.constant 0 : index
    %19 = vector.load %arg2[%c0_13, %c0_14] : memref<1x64xf32, #tpu.memory_space<vmem>>, vector<1x64xf32>
    %20 = vector.broadcast %19 : vector<1x64xf32> to vector<30x64xf32>
    %21 = arith.addf %18, %20 : vector<30x64xf32>
    %22 = arith.truncf %14 : vector<31x64xf32> to vector<31x64xbf16>
    %23 = arith.truncf %21 : vector<30x64xf32> to vector<30x64xbf16>
    %c0_15 = arith.constant 0 : index
    %c0_16 = arith.constant 0 : index
    %c0_17 = arith.constant 0 : index
    %24 = vector.load %arg3[%c0_15, %c0_16, %c0_17] : memref<3x64x32xbf16, #tpu.memory_space<vmem>>, vector<1x64x32xbf16>
    %25 = vector.shape_cast %24 : vector<1x64x32xbf16> to vector<64x32xbf16>
    %cst_18 = arith.constant dense<0.000000e+00> : vector<30x32xf32>
    %26 = tpu.matmul %23, %25, %cst_18 {dimension_numbers = #tpu.dot_dimension_numbers<[1], [0], [0], [1], [0, 0, 1, 1], [], []>} : vector<30x64xbf16>, vector<64x32xbf16>, vector<30x32xf32> -> vector<30x32xf32>
    %27 = vector.extract_strided_slice %22 {offsets = [0, 0], sizes = [30, 64], strides = [1, 1]} : vector<31x64xbf16> to vector<30x64xbf16>
    %c2_19 = arith.constant 2 : index
    %c0_20 = arith.constant 0 : index
    %c0_21 = arith.constant 0 : index
    %28 = vector.load %arg3[%c2_19, %c0_20, %c0_21] : memref<3x64x32xbf16, #tpu.memory_space<vmem>>, vector<1x64x32xbf16>
    %29 = vector.shape_cast %28 : vector<1x64x32xbf16> to vector<64x32xbf16>
    %cst_22 = arith.constant dense<0.000000e+00> : vector<30x32xf32>
    %30 = tpu.matmul %27, %29, %cst_22 {dimension_numbers = #tpu.dot_dimension_numbers<[1], [0], [0], [1], [0, 0, 1, 1], [], []>} : vector<30x64xbf16>, vector<64x32xbf16>, vector<30x32xf32> -> vector<30x32xf32>
    %31 = arith.addf %26, %30 : vector<30x32xf32>
    %c0_23 = arith.constant 0 : index
    %c0_24 = arith.constant 0 : index
    %32 = vector.load %arg4[%c0_23, %c0_24] : memref<1x32xf32, #tpu.memory_space<vmem>>, vector<1x32xf32>
    %33 = vector.broadcast %32 : vector<1x32xf32> to vector<30x32xf32>
    %34 = arith.addf %31, %33 : vector<30x32xf32>
    %c1_25 = arith.constant 1 : index
    %c0_26 = arith.constant 0 : index
    %c0_27 = arith.constant 0 : index
    %35 = vector.load %arg3[%c1_25, %c0_26, %c0_27] : memref<3x64x32xbf16, #tpu.memory_space<vmem>>, vector<1x64x32xbf16>
    %36 = vector.shape_cast %35 : vector<1x64x32xbf16> to vector<64x32xbf16>
    %cst_28 = arith.constant dense<0.000000e+00> : vector<30x32xf32>
    %37 = tpu.matmul %23, %36, %cst_28 {dimension_numbers = #tpu.dot_dimension_numbers<[1], [0], [0], [1], [0, 0, 1, 1], [], []>} : vector<30x64xbf16>, vector<64x32xbf16>, vector<30x32xf32> -> vector<30x32xf32>
    %c0_29 = arith.constant 0 : index
    %c0_30 = arith.constant 0 : index
    %38 = vector.load %arg4[%c0_29, %c0_30] : memref<1x32xf32, #tpu.memory_space<vmem>>, vector<1x32xf32>
    %39 = vector.broadcast %38 : vector<1x32xf32> to vector<30x32xf32>
    %40 = arith.addf %37, %39 : vector<30x32xf32>
    %41 = vector.extract_strided_slice %22 {offsets = [1, 0], sizes = [30, 64], strides = [1, 1]} : vector<31x64xbf16> to vector<30x64xbf16>
    %c0_31 = arith.constant 0 : index
    %c0_32 = arith.constant 0 : index
    %c0_33 = arith.constant 0 : index
    %42 = vector.load %arg3[%c0_31, %c0_32, %c0_33] : memref<3x64x32xbf16, #tpu.memory_space<vmem>>, vector<1x64x32xbf16>
    %43 = vector.shape_cast %42 : vector<1x64x32xbf16> to vector<64x32xbf16>
    %cst_34 = arith.constant dense<0.000000e+00> : vector<30x32xf32>
    %44 = tpu.matmul %41, %43, %cst_34 {dimension_numbers = #tpu.dot_dimension_numbers<[1], [0], [0], [1], [0, 0, 1, 1], [], []>} : vector<30x64xbf16>, vector<64x32xbf16>, vector<30x32xf32> -> vector<30x32xf32>
    %c2_35 = arith.constant 2 : index
    %c0_36 = arith.constant 0 : index
    %c0_37 = arith.constant 0 : index
    %45 = vector.load %arg3[%c2_35, %c0_36, %c0_37] : memref<3x64x32xbf16, #tpu.memory_space<vmem>>, vector<1x64x32xbf16>
    %46 = vector.shape_cast %45 : vector<1x64x32xbf16> to vector<64x32xbf16>
    %cst_38 = arith.constant dense<0.000000e+00> : vector<30x32xf32>
    %47 = tpu.matmul %23, %46, %cst_38 {dimension_numbers = #tpu.dot_dimension_numbers<[1], [0], [0], [1], [0, 0, 1, 1], [], []>} : vector<30x64xbf16>, vector<64x32xbf16>, vector<30x32xf32> -> vector<30x32xf32>
    %48 = arith.addf %44, %47 : vector<30x32xf32>
    %c0_39 = arith.constant 0 : index
    %c0_40 = arith.constant 0 : index
    %49 = vector.load %arg4[%c0_39, %c0_40] : memref<1x32xf32, #tpu.memory_space<vmem>>, vector<1x32xf32>
    %50 = vector.broadcast %49 : vector<1x32xf32> to vector<30x32xf32>
    %51 = arith.addf %48, %50 : vector<30x32xf32>
    %52 = vector.extract_strided_slice %22 {offsets = [1, 0], sizes = [29, 64], strides = [1, 1]} : vector<31x64xbf16> to vector<29x64xbf16>
    %c1_41 = arith.constant 1 : index
    %c0_42 = arith.constant 0 : index
    %c0_43 = arith.constant 0 : index
    %53 = vector.load %arg3[%c1_41, %c0_42, %c0_43] : memref<3x64x32xbf16, #tpu.memory_space<vmem>>, vector<1x64x32xbf16>
    %54 = vector.shape_cast %53 : vector<1x64x32xbf16> to vector<64x32xbf16>
    %cst_44 = arith.constant dense<0.000000e+00> : vector<29x32xf32>
    %55 = tpu.matmul %52, %54, %cst_44 {dimension_numbers = #tpu.dot_dimension_numbers<[1], [0], [0], [1], [0, 0, 1, 1], [], []>} : vector<29x64xbf16>, vector<64x32xbf16>, vector<29x32xf32> -> vector<29x32xf32>
    %c0_45 = arith.constant 0 : index
    %c0_46 = arith.constant 0 : index
    %56 = vector.load %arg4[%c0_45, %c0_46] : memref<1x32xf32, #tpu.memory_space<vmem>>, vector<1x32xf32>
    %57 = vector.broadcast %56 : vector<1x32xf32> to vector<29x32xf32>
    %58 = arith.addf %55, %57 : vector<29x32xf32>
    %c0_47 = arith.constant 0 : index
    %c0_48 = arith.constant 0 : index
    %c0_49 = arith.constant 0 : index
    %59 = vector.load %arg5[%c0_47, %c0_48, %c0_49] : memref<2x119x32xf32, #tpu.memory_space<vmem>>, vector<1x30x32xf32>
    %60 = vector.shape_cast %59 : vector<1x30x32xf32> to vector<30x32xf32>
    %61 = vector.shape_cast %34 : vector<30x32xf32> to vector<1x30x32xf32>
    tpu.vector_store %arg5[%c0_47, %c0_48, %c0_49], %61 {strides = array<i32>} : memref<2x119x32xf32, #tpu.memory_space<vmem>>, vector<1x30x32xf32>,
    %c0_50 = arith.constant 0 : index
    %c30 = arith.constant 30 : index
    %c0_51 = arith.constant 0 : index
    %62 = vector.load %arg5[%c0_50, %c30, %c0_51] : memref<2x119x32xf32, #tpu.memory_space<vmem>>, vector<1x30x32xf32>
    %63 = vector.shape_cast %62 : vector<1x30x32xf32> to vector<30x32xf32>
    %64 = vector.shape_cast %40 : vector<30x32xf32> to vector<1x30x32xf32>
    tpu.vector_store %arg5[%c0_50, %c30, %c0_51], %64 {strides = array<i32>} : memref<2x119x32xf32, #tpu.memory_space<vmem>>, vector<1x30x32xf32>,
    %c0_52 = arith.constant 0 : index
    %c60 = arith.constant 60 : index
    %c0_53 = arith.constant 0 : index
    %65 = vector.load %arg5[%c0_52, %c60, %c0_53] : memref<2x119x32xf32, #tpu.memory_space<vmem>>, vector<1x30x32xf32>
    %66 = vector.shape_cast %65 : vector<1x30x32xf32> to vector<30x32xf32>
    %67 = vector.shape_cast %51 : vector<30x32xf32> to vector<1x30x32xf32>
    tpu.vector_store %arg5[%c0_52, %c60, %c0_53], %67 {strides = array<i32>} : memref<2x119x32xf32, #tpu.memory_space<vmem>>, vector<1x30x32xf32>,
    %c0_54 = arith.constant 0 : index
    %c90 = arith.constant 90 : index
    %c0_55 = arith.constant 0 : index
    %68 = vector.load %arg5[%c0_54, %c90, %c0_55] : memref<2x119x32xf32, #tpu.memory_space<vmem>>, vector<1x29x32xf32>
    %69 = vector.shape_cast %68 : vector<1x29x32xf32> to vector<29x32xf32>
    %70 = vector.shape_cast %58 : vector<29x32xf32> to vector<1x29x32xf32>
    tpu.vector_store %arg5[%c0_54, %c90, %c0_55], %70 {strides = array<i32>} : memref<2x119x32xf32, #tpu.memory_space<vmem>>, vector<1x29x32xf32>,
    %c1_56 = arith.constant 1 : index
    %c0_57 = arith.constant 0 : index
    %c0_58 = arith.constant 0 : index
    %71 = vector.load %arg0[%c1_56, %c0_57, %c0_58] : memref<2x32x128xf32, #tpu.memory_space<vmem>>, vector<1x32x128xf32>
    %72 = vector.shape_cast %71 : vector<1x32x128xf32> to vector<32x128xf32>
    %73 = arith.truncf %72 : vector<32x128xf32> to vector<32x128xbf16>
    %74 = vector.extract_strided_slice %73 {offsets = [1, 0], sizes = [31, 128], strides = [1, 1]} : vector<32x128xbf16> to vector<31x128xbf16>
    %c0_59 = arith.constant 0 : index
    %c0_60 = arith.constant 0 : index
    %c0_61 = arith.constant 0 : index
    %75 = vector.load %arg1[%c0_59, %c0_60, %c0_61] : memref<3x128x64xbf16, #tpu.memory_space<vmem>>, vector<1x128x64xbf16>
    %76 = vector.shape_cast %75 : vector<1x128x64xbf16> to vector<128x64xbf16>
    %cst_62 = arith.constant dense<0.000000e+00> : vector<31x64xf32>
    %77 = tpu.matmul %74, %76, %cst_62 {dimension_numbers = #tpu.dot_dimension_numbers<[1], [0], [0], [1], [0, 0, 1, 1], [], []>} : vector<31x128xbf16>, vector<128x64xbf16>, vector<31x64xf32> -> vector<31x64xf32>
    %78 = vector.extract_strided_slice %73 {offsets = [0, 0], sizes = [31, 128], strides = [1, 1]} : vector<32x128xbf16> to vector<31x128xbf16>
    %c2_63 = arith.constant 2 : index
    %c0_64 = arith.constant 0 : index
    %c0_65 = arith.constant 0 : index
    %79 = vector.load %arg1[%c2_63, %c0_64, %c0_65] : memref<3x128x64xbf16, #tpu.memory_space<vmem>>, vector<1x128x64xbf16>
    %80 = vector.shape_cast %79 : vector<1x128x64xbf16> to vector<128x64xbf16>
    %cst_66 = arith.constant dense<0.000000e+00> : vector<31x64xf32>
    %81 = tpu.matmul %78, %80, %cst_66 {dimension_numbers = #tpu.dot_dimension_numbers<[1], [0], [0], [1], [0, 0, 1, 1], [], []>} : vector<31x128xbf16>, vector<128x64xbf16>, vector<31x64xf32> -> vector<31x64xf32>
    %82 = arith.addf %77, %81 : vector<31x64xf32>
    %c0_67 = arith.constant 0 : index
    %c0_68 = arith.constant 0 : index
    %83 = vector.load %arg2[%c0_67, %c0_68] : memref<1x64xf32, #tpu.memory_space<vmem>>, vector<1x64xf32>
    %84 = vector.broadcast %83 : vector<1x64xf32> to vector<31x64xf32>
    %85 = arith.addf %82, %84 : vector<31x64xf32>
    %86 = vector.extract_strided_slice %73 {offsets = [1, 0], sizes = [30, 128], strides = [1, 1]} : vector<32x128xbf16> to vector<30x128xbf16>
    %c1_69 = arith.constant 1 : index
    %c0_70 = arith.constant 0 : index
    %c0_71 = arith.constant 0 : index
    %87 = vector.load %arg1[%c1_69, %c0_70, %c0_71] : memref<3x128x64xbf16, #tpu.memory_space<vmem>>, vector<1x128x64xbf16>
    %88 = vector.shape_cast %87 : vector<1x128x64xbf16> to vector<128x64xbf16>
    %cst_72 = arith.constant dense<0.000000e+00> : vector<30x64xf32>
    %89 = tpu.matmul %86, %88, %cst_72 {dimension_numbers = #tpu.dot_dimension_numbers<[1], [0], [0], [1], [0, 0, 1, 1], [], []>} : vector<30x128xbf16>, vector<128x64xbf16>, vector<30x64xf32> -> vector<30x64xf32>
    %c0_73 = arith.constant 0 : index
    %c0_74 = arith.constant 0 : index
    %90 = vector.load %arg2[%c0_73, %c0_74] : memref<1x64xf32, #tpu.memory_space<vmem>>, vector<1x64xf32>
    %91 = vector.broadcast %90 : vector<1x64xf32> to vector<30x64xf32>
    %92 = arith.addf %89, %91 : vector<30x64xf32>
    %93 = arith.truncf %85 : vector<31x64xf32> to vector<31x64xbf16>
    %94 = arith.truncf %92 : vector<30x64xf32> to vector<30x64xbf16>
    %c0_75 = arith.constant 0 : index
    %c0_76 = arith.constant 0 : index
    %c0_77 = arith.constant 0 : index
    %95 = vector.load %arg3[%c0_75, %c0_76, %c0_77] : memref<3x64x32xbf16, #tpu.memory_space<vmem>>, vector<1x64x32xbf16>
    %96 = vector.shape_cast %95 : vector<1x64x32xbf16> to vector<64x32xbf16>
    %cst_78 = arith.constant dense<0.000000e+00> : vector<30x32xf32>
    %97 = tpu.matmul %94, %96, %cst_78 {dimension_numbers = #tpu.dot_dimension_numbers<[1], [0], [0], [1], [0, 0, 1, 1], [], []>} : vector<30x64xbf16>, vector<64x32xbf16>, vector<30x32xf32> -> vector<30x32xf32>
    %98 = vector.extract_strided_slice %93 {offsets = [0, 0], sizes = [30, 64], strides = [1, 1]} : vector<31x64xbf16> to vector<30x64xbf16>
    %c2_79 = arith.constant 2 : index
    %c0_80 = arith.constant 0 : index
    %c0_81 = arith.constant 0 : index
    %99 = vector.load %arg3[%c2_79, %c0_80, %c0_81] : memref<3x64x32xbf16, #tpu.memory_space<vmem>>, vector<1x64x32xbf16>
    %100 = vector.shape_cast %99 : vector<1x64x32xbf16> to vector<64x32xbf16>
    %cst_82 = arith.constant dense<0.000000e+00> : vector<30x32xf32>
    %101 = tpu.matmul %98, %100, %cst_82 {dimension_numbers = #tpu.dot_dimension_numbers<[1], [0], [0], [1], [0, 0, 1, 1], [], []>} : vector<30x64xbf16>, vector<64x32xbf16>, vector<30x32xf32> -> vector<30x32xf32>
    %102 = arith.addf %97, %101 : vector<30x32xf32>
    %c0_83 = arith.constant 0 : index
    %c0_84 = arith.constant 0 : index
    %103 = vector.load %arg4[%c0_83, %c0_84] : memref<1x32xf32, #tpu.memory_space<vmem>>, vector<1x32xf32>
    %104 = vector.broadcast %103 : vector<1x32xf32> to vector<30x32xf32>
    %105 = arith.addf %102, %104 : vector<30x32xf32>
    %c1_85 = arith.constant 1 : index
    %c0_86 = arith.constant 0 : index
    %c0_87 = arith.constant 0 : index
    %106 = vector.load %arg3[%c1_85, %c0_86, %c0_87] : memref<3x64x32xbf16, #tpu.memory_space<vmem>>, vector<1x64x32xbf16>
    %107 = vector.shape_cast %106 : vector<1x64x32xbf16> to vector<64x32xbf16>
    %cst_88 = arith.constant dense<0.000000e+00> : vector<30x32xf32>
    %108 = tpu.matmul %94, %107, %cst_88 {dimension_numbers = #tpu.dot_dimension_numbers<[1], [0], [0], [1], [0, 0, 1, 1], [], []>} : vector<30x64xbf16>, vector<64x32xbf16>, vector<30x32xf32> -> vector<30x32xf32>
    %c0_89 = arith.constant 0 : index
    %c0_90 = arith.constant 0 : index
    %109 = vector.load %arg4[%c0_89, %c0_90] : memref<1x32xf32, #tpu.memory_space<vmem>>, vector<1x32xf32>
    %110 = vector.broadcast %109 : vector<1x32xf32> to vector<30x32xf32>
    %111 = arith.addf %108, %110 : vector<30x32xf32>
    %112 = vector.extract_strided_slice %93 {offsets = [1, 0], sizes = [30, 64], strides = [1, 1]} : vector<31x64xbf16> to vector<30x64xbf16>
    %c0_91 = arith.constant 0 : index
    %c0_92 = arith.constant 0 : index
    %c0_93 = arith.constant 0 : index
    %113 = vector.load %arg3[%c0_91, %c0_92, %c0_93] : memref<3x64x32xbf16, #tpu.memory_space<vmem>>, vector<1x64x32xbf16>
    %114 = vector.shape_cast %113 : vector<1x64x32xbf16> to vector<64x32xbf16>
    %cst_94 = arith.constant dense<0.000000e+00> : vector<30x32xf32>
    %115 = tpu.matmul %112, %114, %cst_94 {dimension_numbers = #tpu.dot_dimension_numbers<[1], [0], [0], [1], [0, 0, 1, 1], [], []>} : vector<30x64xbf16>, vector<64x32xbf16>, vector<30x32xf32> -> vector<30x32xf32>
    %c2_95 = arith.constant 2 : index
    %c0_96 = arith.constant 0 : index
    %c0_97 = arith.constant 0 : index
    %116 = vector.load %arg3[%c2_95, %c0_96, %c0_97] : memref<3x64x32xbf16, #tpu.memory_space<vmem>>, vector<1x64x32xbf16>
    %117 = vector.shape_cast %116 : vector<1x64x32xbf16> to vector<64x32xbf16>
    %cst_98 = arith.constant dense<0.000000e+00> : vector<30x32xf32>
    %118 = tpu.matmul %94, %117, %cst_98 {dimension_numbers = #tpu.dot_dimension_numbers<[1], [0], [0], [1], [0, 0, 1, 1], [], []>} : vector<30x64xbf16>, vector<64x32xbf16>, vector<30x32xf32> -> vector<30x32xf32>
    %119 = arith.addf %115, %118 : vector<30x32xf32>
    %c0_99 = arith.constant 0 : index
    %c0_100 = arith.constant 0 : index
    %120 = vector.load %arg4[%c0_99, %c0_100] : memref<1x32xf32, #tpu.memory_space<vmem>>, vector<1x32xf32>
    %121 = vector.broadcast %120 : vector<1x32xf32> to vector<30x32xf32>
    %122 = arith.addf %119, %121 : vector<30x32xf32>
    %123 = vector.extract_strided_slice %93 {offsets = [1, 0], sizes = [29, 64], strides = [1, 1]} : vector<31x64xbf16> to vector<29x64xbf16>
    %c1_101 = arith.constant 1 : index
    %c0_102 = arith.constant 0 : index
    %c0_103 = arith.constant 0 : index
    %124 = vector.load %arg3[%c1_101, %c0_102, %c0_103] : memref<3x64x32xbf16, #tpu.memory_space<vmem>>, vector<1x64x32xbf16>
    %125 = vector.shape_cast %124 : vector<1x64x32xbf16> to vector<64x32xbf16>
    %cst_104 = arith.constant dense<0.000000e+00> : vector<29x32xf32>
    %126 = tpu.matmul %123, %125, %cst_104 {dimension_numbers = #tpu.dot_dimension_numbers<[1], [0], [0], [1], [0, 0, 1, 1], [], []>} : vector<29x64xbf16>, vector<64x32xbf16>, vector<29x32xf32> -> vector<29x32xf32>
    %c0_105 = arith.constant 0 : index
    %c0_106 = arith.constant 0 : index
    %127 = vector.load %arg4[%c0_105, %c0_106] : memref<1x32xf32, #tpu.memory_space<vmem>>, vector<1x32xf32>
    %128 = vector.broadcast %127 : vector<1x32xf32> to vector<29x32xf32>
    %129 = arith.addf %126, %128 : vector<29x32xf32>
    %c1_107 = arith.constant 1 : index
    %c0_108 = arith.constant 0 : index
    %c0_109 = arith.constant 0 : index
    %130 = vector.load %arg5[%c1_107, %c0_108, %c0_109] : memref<2x119x32xf32, #tpu.memory_space<vmem>>, vector<1x30x32xf32>
    %131 = vector.shape_cast %130 : vector<1x30x32xf32> to vector<30x32xf32>
    %132 = vector.shape_cast %105 : vector<30x32xf32> to vector<1x30x32xf32>
    tpu.vector_store %arg5[%c1_107, %c0_108, %c0_109], %132 {strides = array<i32>} : memref<2x119x32xf32, #tpu.memory_space<vmem>>, vector<1x30x32xf32>,
    %c1_110 = arith.constant 1 : index
    %c30_111 = arith.constant 30 : index
    %c0_112 = arith.constant 0 : index
    %133 = vector.load %arg5[%c1_110, %c30_111, %c0_112] : memref<2x119x32xf32, #tpu.memory_space<vmem>>, vector<1x30x32xf32>
    %134 = vector.shape_cast %133 : vector<1x30x32xf32> to vector<30x32xf32>
    %135 = vector.shape_cast %111 : vector<30x32xf32> to vector<1x30x32xf32>
    tpu.vector_store %arg5[%c1_110, %c30_111, %c0_112], %135 {strides = array<i32>} : memref<2x119x32xf32, #tpu.memory_space<vmem>>, vector<1x30x32xf32>,
    %c1_113 = arith.constant 1 : index
    %c60_114 = arith.constant 60 : index
    %c0_115 = arith.constant 0 : index
    %136 = vector.load %arg5[%c1_113, %c60_114, %c0_115] : memref<2x119x32xf32, #tpu.memory_space<vmem>>, vector<1x30x32xf32>
    %137 = vector.shape_cast %136 : vector<1x30x32xf32> to vector<30x32xf32>
    %138 = vector.shape_cast %122 : vector<30x32xf32> to vector<1x30x32xf32>
    tpu.vector_store %arg5[%c1_113, %c60_114, %c0_115], %138 {strides = array<i32>} : memref<2x119x32xf32, #tpu.memory_space<vmem>>, vector<1x30x32xf32>,
    %c1_116 = arith.constant 1 : index
    %c90_117 = arith.constant 90 : index
    %c0_118 = arith.constant 0 : index
    %139 = vector.load %arg5[%c1_116, %c90_117, %c0_118] : memref<2x119x32xf32, #tpu.memory_space<vmem>>, vector<1x29x32xf32>
    %140 = vector.shape_cast %139 : vector<1x29x32xf32> to vector<29x32xf32>
    %141 = vector.shape_cast %129 : vector<29x32xf32> to vector<1x29x32xf32>
    tpu.vector_store %arg5[%c1_116, %c90_117, %c0_118], %141 {strides = array<i32>} : memref<2x119x32xf32, #tpu.memory_space<vmem>>, vector<1x29x32xf32>,
    return
  }
}

module attributes {stable_mosaic.version = 11 : i64} {
  func.func @_encoder_conv_kernel(%arg0: memref<240x3xf32, #tpu.memory_space<vmem>>, %arg1: memref<3x64xbf16, #tpu.memory_space<vmem>>, %arg2: memref<1x64xf32, #tpu.memory_space<vmem>>, %arg3: memref<3x64x64xbf16, #tpu.memory_space<vmem>>, %arg4: memref<1x64xf32, #tpu.memory_space<vmem>>, %arg5: memref<2x59x64xf32, #tpu.memory_space<vmem>>) attributes {dimension_semantics = [], scalar_prefetch = 0 : i64, scratch_operands = 0 : i64, tpu.core_type = #tpu.core_type<tc>} {
    %c0 = arith.constant 0 : index
    %c0_0 = arith.constant 0 : index
    %0 = vector.load %arg0[%c0, %c0_0] : memref<240x3xf32, #tpu.memory_space<vmem>>, vector<240x3xf32>
    %1 = arith.truncf %0 : vector<240x3xf32> to vector<240x3xbf16>
    %c0_1 = arith.constant 0 : index
    %c0_2 = arith.constant 0 : index
    %2 = vector.load %arg1[%c0_1, %c0_2] : memref<3x64xbf16, #tpu.memory_space<vmem>>, vector<3x64xbf16>
    %cst = arith.constant dense<0.000000e+00> : vector<240x64xf32>
    %3 = tpu.matmul %1, %2, %cst {dimension_numbers = #tpu.dot_dimension_numbers<[1], [0], [0], [1], [0, 0, 1, 1], [], []>} : vector<240x3xbf16>, vector<3x64xbf16>, vector<240x64xf32> -> vector<240x64xf32>
    %c0_3 = arith.constant 0 : index
    %c0_4 = arith.constant 0 : index
    %4 = vector.load %arg2[%c0_3, %c0_4] : memref<1x64xf32, #tpu.memory_space<vmem>>, vector<1x64xf32>
    %5 = vector.broadcast %4 : vector<1x64xf32> to vector<240x64xf32>
    %6 = arith.addf %3, %5 : vector<240x64xf32>
    %cst_5 = arith.constant 0.000000e+00 : f32
    %7 = vector.broadcast %cst_5 : f32 to vector<240x64xf32>
    %8 = arith.maximumf %6, %7 : vector<240x64xf32>
    %9 = arith.truncf %8 : vector<240x64xf32> to vector<240x64xbf16>
    %c0_6 = arith.constant 0 : index
    %c0_7 = arith.constant 0 : index
    %c0_8 = arith.constant 0 : index
    %10 = vector.load %arg3[%c0_6, %c0_7, %c0_8] : memref<3x64x64xbf16, #tpu.memory_space<vmem>>, vector<1x64x64xbf16>
    %11 = vector.shape_cast %10 : vector<1x64x64xbf16> to vector<64x64xbf16>
    %c1 = arith.constant 1 : index
    %c0_9 = arith.constant 0 : index
    %c0_10 = arith.constant 0 : index
    %12 = vector.load %arg3[%c1, %c0_9, %c0_10] : memref<3x64x64xbf16, #tpu.memory_space<vmem>>, vector<1x64x64xbf16>
    %13 = vector.shape_cast %12 : vector<1x64x64xbf16> to vector<64x64xbf16>
    %c2 = arith.constant 2 : index
    %c0_11 = arith.constant 0 : index
    %c0_12 = arith.constant 0 : index
    %14 = vector.load %arg3[%c2, %c0_11, %c0_12] : memref<3x64x64xbf16, #tpu.memory_space<vmem>>, vector<1x64x64xbf16>
    %15 = vector.shape_cast %14 : vector<1x64x64xbf16> to vector<64x64xbf16>
    %16 = vector.extract_strided_slice %9 {offsets = [0, 0], sizes = [60, 64], strides = [1, 1]} : vector<240x64xbf16> to vector<60x64xbf16>
    %17 = vector.extract_strided_slice %9 {offsets = [60, 0], sizes = [60, 64], strides = [1, 1]} : vector<240x64xbf16> to vector<60x64xbf16>
    %18 = vector.extract_strided_slice %16 {offsets = [0, 0], sizes = [59, 64], strides = [1, 1]} : vector<60x64xbf16> to vector<59x64xbf16>
    %cst_13 = arith.constant dense<0.000000e+00> : vector<59x64xf32>
    %19 = tpu.matmul %18, %11, %cst_13 {dimension_numbers = #tpu.dot_dimension_numbers<[1], [0], [0], [1], [0, 0, 1, 1], [], []>} : vector<59x64xbf16>, vector<64x64xbf16>, vector<59x64xf32> -> vector<59x64xf32>
    %20 = vector.extract_strided_slice %17 {offsets = [0, 0], sizes = [59, 64], strides = [1, 1]} : vector<60x64xbf16> to vector<59x64xbf16>
    %cst_14 = arith.constant dense<0.000000e+00> : vector<59x64xf32>
    %21 = tpu.matmul %20, %13, %cst_14 {dimension_numbers = #tpu.dot_dimension_numbers<[1], [0], [0], [1], [0, 0, 1, 1], [], []>} : vector<59x64xbf16>, vector<64x64xbf16>, vector<59x64xf32> -> vector<59x64xf32>
    %22 = arith.addf %19, %21 : vector<59x64xf32>
    %23 = vector.extract_strided_slice %16 {offsets = [1, 0], sizes = [59, 64], strides = [1, 1]} : vector<60x64xbf16> to vector<59x64xbf16>
    %cst_15 = arith.constant dense<0.000000e+00> : vector<59x64xf32>
    %24 = tpu.matmul %23, %15, %cst_15 {dimension_numbers = #tpu.dot_dimension_numbers<[1], [0], [0], [1], [0, 0, 1, 1], [], []>} : vector<59x64xbf16>, vector<64x64xbf16>, vector<59x64xf32> -> vector<59x64xf32>
    %25 = arith.addf %22, %24 : vector<59x64xf32>
    %c0_16 = arith.constant 0 : index
    %c0_17 = arith.constant 0 : index
    %26 = vector.load %arg4[%c0_16, %c0_17] : memref<1x64xf32, #tpu.memory_space<vmem>>, vector<1x64xf32>
    %27 = vector.broadcast %26 : vector<1x64xf32> to vector<59x64xf32>
    %28 = arith.addf %25, %27 : vector<59x64xf32>
    %cst_18 = arith.constant 0.000000e+00 : f32
    %29 = vector.broadcast %cst_18 : f32 to vector<59x64xf32>
    %30 = arith.maximumf %28, %29 : vector<59x64xf32>
    %c0_19 = arith.constant 0 : index
    %c0_20 = arith.constant 0 : index
    %c0_21 = arith.constant 0 : index
    %31 = vector.load %arg5[%c0_19, %c0_20, %c0_21] : memref<2x59x64xf32, #tpu.memory_space<vmem>>, vector<1x59x64xf32>
    %32 = vector.shape_cast %31 : vector<1x59x64xf32> to vector<59x64xf32>
    %33 = vector.shape_cast %30 : vector<59x64xf32> to vector<1x59x64xf32>
    tpu.vector_store %arg5[%c0_19, %c0_20, %c0_21], %33 {strides = array<i32>} : memref<2x59x64xf32, #tpu.memory_space<vmem>>, vector<1x59x64xf32>,
    %34 = vector.extract_strided_slice %9 {offsets = [120, 0], sizes = [60, 64], strides = [1, 1]} : vector<240x64xbf16> to vector<60x64xbf16>
    %35 = vector.extract_strided_slice %9 {offsets = [180, 0], sizes = [60, 64], strides = [1, 1]} : vector<240x64xbf16> to vector<60x64xbf16>
    %36 = vector.extract_strided_slice %34 {offsets = [0, 0], sizes = [59, 64], strides = [1, 1]} : vector<60x64xbf16> to vector<59x64xbf16>
    %cst_22 = arith.constant dense<0.000000e+00> : vector<59x64xf32>
    %37 = tpu.matmul %36, %11, %cst_22 {dimension_numbers = #tpu.dot_dimension_numbers<[1], [0], [0], [1], [0, 0, 1, 1], [], []>} : vector<59x64xbf16>, vector<64x64xbf16>, vector<59x64xf32> -> vector<59x64xf32>
    %38 = vector.extract_strided_slice %35 {offsets = [0, 0], sizes = [59, 64], strides = [1, 1]} : vector<60x64xbf16> to vector<59x64xbf16>
    %cst_23 = arith.constant dense<0.000000e+00> : vector<59x64xf32>
    %39 = tpu.matmul %38, %13, %cst_23 {dimension_numbers = #tpu.dot_dimension_numbers<[1], [0], [0], [1], [0, 0, 1, 1], [], []>} : vector<59x64xbf16>, vector<64x64xbf16>, vector<59x64xf32> -> vector<59x64xf32>
    %40 = arith.addf %37, %39 : vector<59x64xf32>
    %41 = vector.extract_strided_slice %34 {offsets = [1, 0], sizes = [59, 64], strides = [1, 1]} : vector<60x64xbf16> to vector<59x64xbf16>
    %cst_24 = arith.constant dense<0.000000e+00> : vector<59x64xf32>
    %42 = tpu.matmul %41, %15, %cst_24 {dimension_numbers = #tpu.dot_dimension_numbers<[1], [0], [0], [1], [0, 0, 1, 1], [], []>} : vector<59x64xbf16>, vector<64x64xbf16>, vector<59x64xf32> -> vector<59x64xf32>
    %43 = arith.addf %40, %42 : vector<59x64xf32>
    %c0_25 = arith.constant 0 : index
    %c0_26 = arith.constant 0 : index
    %44 = vector.load %arg4[%c0_25, %c0_26] : memref<1x64xf32, #tpu.memory_space<vmem>>, vector<1x64xf32>
    %45 = vector.broadcast %44 : vector<1x64xf32> to vector<59x64xf32>
    %46 = arith.addf %43, %45 : vector<59x64xf32>
    %cst_27 = arith.constant 0.000000e+00 : f32
    %47 = vector.broadcast %cst_27 : f32 to vector<59x64xf32>
    %48 = arith.maximumf %46, %47 : vector<59x64xf32>
    %c1_28 = arith.constant 1 : index
    %c0_29 = arith.constant 0 : index
    %c0_30 = arith.constant 0 : index
    %49 = vector.load %arg5[%c1_28, %c0_29, %c0_30] : memref<2x59x64xf32, #tpu.memory_space<vmem>>, vector<1x59x64xf32>
    %50 = vector.shape_cast %49 : vector<1x59x64xf32> to vector<59x64xf32>
    %51 = vector.shape_cast %48 : vector<59x64xf32> to vector<1x59x64xf32>
    tpu.vector_store %arg5[%c1_28, %c0_29, %c0_30], %51 {strides = array<i32>} : memref<2x59x64xf32, #tpu.memory_space<vmem>>, vector<1x59x64xf32>,
    return
  }
}

module attributes {stable_mosaic.version = 11 : i64} {
  func.func @_deconv3_adjust_kernel(%arg0: memref<2x3808xf32, #tpu.memory_space<vmem>>, %arg1: memref<3808x241xbf16, #tpu.memory_space<vmem>>, %arg2: memref<1x241xf32, #tpu.memory_space<vmem>>, %arg3: memref<2x241xf32, #tpu.memory_space<vmem>>) attributes {dimension_semantics = [], scalar_prefetch = 0 : i64, scratch_operands = 0 : i64, tpu.core_type = #tpu.core_type<tc>} {
    %c0 = arith.constant 0 : index
    %c0_0 = arith.constant 0 : index
    %0 = vector.load %arg0[%c0, %c0_0] : memref<2x3808xf32, #tpu.memory_space<vmem>>, vector<2x3808xf32>
    %1 = arith.truncf %0 : vector<2x3808xf32> to vector<2x3808xbf16>
    %c0_1 = arith.constant 0 : index
    %c0_2 = arith.constant 0 : index
    %2 = vector.load %arg1[%c0_1, %c0_2] : memref<3808x241xbf16, #tpu.memory_space<vmem>>, vector<3808x241xbf16>
    %cst = arith.constant dense<0.000000e+00> : vector<2x241xf32>
    %3 = tpu.matmul %1, %2, %cst {dimension_numbers = #tpu.dot_dimension_numbers<[1], [0], [0], [1], [0, 0, 1, 1], [], []>} : vector<2x3808xbf16>, vector<3808x241xbf16>, vector<2x241xf32> -> vector<2x241xf32>
    %c0_3 = arith.constant 0 : index
    %c0_4 = arith.constant 0 : index
    %4 = vector.load %arg2[%c0_3, %c0_4] : memref<1x241xf32, #tpu.memory_space<vmem>>, vector<1x241xf32>
    %5 = vector.broadcast %4 : vector<1x241xf32> to vector<2x241xf32>
    %6 = arith.addf %3, %5 : vector<2x241xf32>
    %cst_5 = arith.constant 0.000000e+00 : f32
    %7 = vector.broadcast %cst_5 : f32 to vector<2x241xf32>
    %8 = arith.maximumf %6, %7 : vector<2x241xf32>
    %c0_6 = arith.constant 0 : index
    %c0_7 = arith.constant 0 : index
    %9 = vector.load %arg3[%c0_6, %c0_7] : memref<2x241xf32, #tpu.memory_space<vmem>>, vector<2x241xf32>
    tpu.vector_store %arg3[%c0_6, %c0_7], %8 {strides = array<i32>} : memref<2x241xf32, #tpu.memory_space<vmem>>, vector<2x241xf32>,
    return
  }
}

</mosaic_0001>

<bundles_post_ra>
// kernel: mmvae_forward.4
= control target key start
LH: loop header
LB: loop body
LE: loop exit
PB: predicated region body
PF: predicated region fallthrough
CT: control target
= control target key end

     0   :  { %10 = vsyncpa [#allocation3], 0  ;;  %s1996_s0 = inlined_call_operand.vmem [shape: f32[240,3], index: 0, kind: input, shape index: {}]   ;;  %s1997_s1 = inlined_call_operand.hbm [shape: bf16[3,64], index: 1, kind: input, shape index: {}]   ;;  %s1998_s2 = inlined_call_operand.hbm [shape: f32[1,64], index: 2, kind: input, shape index: {}]   ;;  %s1999_s3 = inlined_call_operand.hbm [shape: bf16[3,64,64], index: 3, kind: input, shape index: {}]   ;;  %s2000_s4 = inlined_call_operand.hbm [shape: f32[1,64], index: 4, kind: input, shape index: {}]   ;;  %s2001_s5 = inlined_call_operand.vmem [shape: f32[2,59,64], index: 5, kind: output, shape index: {}]  }
   0x1   :  { %11 = vsyncpa [#allocation5], 0 }
   0x2   :  { %12 = vsyncpa [#allocation8], 0  ;;  %s1526_s18 = smov [#allocation4]   ;;  %s1527_s20 = smov [#allocation2]  }
   0x3   :  { %s31_s19 = sshll.u32 %s1526_s18, 4  ;;  %s21_s21 = sshll.u32 %s1527_s20, 4  ;;  %s32_s19 = int_to_ptr.vmem [resolvable:$true] %s31_s19  ;;  %s22_s21 = int_to_ptr.vmem [resolvable:$true] %s21_s21 }
   0x4   :  { %s1448_s22 = scalar_lea.vmem %s32_s19, 16  ;;  %s1452_s23 = scalar_lea.vmem %s32_s19, 32 }
   0x5   :  { %p1449_p0 = scmp.ne.s32.totalorder %s32_s19, %s1448_s22  ;;  %p1453_p1 = scmp.lt.s32.totalorder %s32_s19, %s32_s19 }
   0x6   :  { %p1454_p2 = scmp.lt.s32.totalorder %s1452_s23, %s1448_s22 }
   0x8   :  { %p1455_p3 = por %p1454_p2, %p1453_p1 }
   0xa   :  { %p1456_p4 = pnand %p1455_p3, %p1449_p0 }
   0xc   :  { %1459 = shalt.err (!%p1456_p4)
}
   0xd   :  { %34 = dma.hbm_to_vmem [thread:$0]  %s1998_s2, 16, %s32_s19, [#allocation5]  }
   0xe   :  { %s1468_s26 = scalar_lea.vmem %s22_s21, 32  ;;  %p1473_p6 = scmp.lt.s32.totalorder %s22_s21, %s22_s21 }
   0xf   :  { %p1469_p5 = scmp.ne.s32.totalorder %s22_s21, %s1468_s26  ;;  %p1474_p7 = scmp.lt.s32.totalorder %s1468_s26, %s1468_s26 }
  0x11   :  { %p1475_p8 = por %p1474_p7, %p1473_p6 }
  0x13   :  { %p1476_p9 = pnand %p1475_p8, %p1469_p5 }
  0x15   :  { %1479 = shalt.err (!%p1476_p9)
}
  0x16   :  { %24 = dma.hbm_to_vmem [thread:$0]  %s1997_s1, 32, %s22_s21, [#allocation3]  }
  0x17   :  { %s1528_s29 = smov [#allocation6]  }
  0x18   :  { %s40_s30 = sshll.u32 %s1528_s29, 4  ;;  %s41_s30 = int_to_ptr.vmem [resolvable:$true] %s40_s30 }
  0x19   :  { %s1488_s6 = scalar_lea.vmem %s41_s30, 1536  ;;  %p1493_p11 = scmp.lt.s32.totalorder %s41_s30, %s41_s30 }
  0x1a   :  { %p1489_p10 = scmp.ne.s32.totalorder %s41_s30, %s1488_s6  ;;  %p1494_p12 = scmp.lt.s32.totalorder %s1488_s6, %s1488_s6 }
  0x1c   :  { %p1495_p13 = por %p1494_p12, %p1493_p11 }
  0x1e   :  { %p1496_p0 = pnand %p1495_p13, %p1489_p10 }
  0x20   :  { %1499 = shalt.err (!%p1496_p0)
}
  0x21   :  { %s1529_s2 = smov 64   ;;  %s1530_s7 = smov 4  }
  0x22   :  { %46 = dma.hbm_to_vmem [thread:$0]  %s1999_s3, 1536, %s41_s30, [#allocation5], %s1529_s2, %s1529_s2, %s1530_s7  }
  0x23   :  { %s1531_s10 = smov [#allocation7]  }
  0x24   :  { %s53_s11 = sshll.u32 %s1531_s10, 4  ;;  %s54_s11 = int_to_ptr.vmem [resolvable:$true] %s53_s11 }
  0x25   :  { %s1508_s1 = scalar_lea.vmem %s54_s11, 16  ;;  %s1512_s12 = scalar_lea.vmem %s54_s11, 32 }
  0x26   :  { %p1509_p1 = scmp.ne.s32.totalorder %s54_s11, %s1508_s1  ;;  %p1513_p2 = scmp.lt.s32.totalorder %s54_s11, %s54_s11 }
  0x27   :  { %p1514_p3 = scmp.lt.s32.totalorder %s1512_s12, %s1508_s1 }
  0x29   :  { %p1515_p4 = por %p1514_p3, %p1513_p2 }
  0x2b   :  { %p1516_p5 = pnand %p1515_p4, %p1509_p1 }
  0x2d   :  { %1519 = shalt.err (!%p1516_p5)
}
  0x2e   :  { %56 = dma.hbm_to_vmem [thread:$0]  %s2000_s4, 16, %s54_s11, [#allocation8]  }
  0x2f   :  { %1520 = dma.done.wait [#allocation3], 32  }
  0x30   :  { %1521 = vsyncadd [#allocation3], 4294967264 }
  0x31   :  { %1522 = dma.done.wait [#allocation5], 1552  }
  0x32   :  { %1523 = vsyncadd [#allocation5], 4294965744 }
  0x33   :  { %1524 = dma.done.wait [#allocation8], 16  }
  0x34   :  { %1525 = vsyncadd [#allocation8], 4294967280  ;;  %vm169_vm0 = vcmask 1040384   ;;  %v1532_v0 = vmov 0.0   ;;  %vm170_vm1 = vcmask 1041408   ;;  %v1533_v1 = vmov 65535  }
  0x35   :  { %1261 = vmatprep.subr.bf16.mxu0 %v1532_v0  ;;  %v171_v2 = vsel %vm169_vm0, 4294967295, %v1533_v1  ;;  %vm1534_vm2 = vmmov 0   ;;  %v115_v4 = vld [vmem:[#allocation2] sm:$0x3]  ;;  %v71_v6 = vld [vmem:[%s1996_s0 + $0x8] sm:$0xff]  ;;  %vm123_vm3 = vcmask 23552  }
  0x36   :  { %1263 = vmatprep.mubr.msk.bf16.mxu0 %vm1534_vm2, %v1532_v0  ;;  %v172_v3 = vsel %vm170_vm1, %v171_v2, 0  ;;  %v70_v5 = vld [vmem:[%s1996_s0] sm:$0xff]  ;;  %v72_v9 = vld [vmem:[%s1996_s0 + $0x10] sm:$0xff]  ;;  %v73_v10 = vld [vmem:[%s1996_s0 + $0x18] sm:$0xff]  ;;  %vm439_vm4 = vcmask 523264   ;;  %vm791_vm6 = vcmask 1045504  }
  0x37   :  { %v174_v7 = vand.u32 %v172_v3, %v115_v4  ;;  %v100_v8 = vpack.c.bf16 %v71_v6, %v70_v5  ;;  %v101_v11 = vpack.c.bf16 %v73_v10, %v72_v9  ;;  %v74_v12 = vld [vmem:[%s1996_s0 + $0x20] sm:$0xff]  ;;  %v75_v13 = vld [vmem:[%s1996_s0 + $0x28] sm:$0xff]  ;;  %v76_v15 = vld [vmem:[%s1996_s0 + $0x30] sm:$0xff]  ;;  %vm618_vm5 = vsmask.f32 7424 }
  0x38   :  { %v102_v14 = vpack.c.bf16 %v75_v13, %v74_v12  ;;  %v77_v16 = vld [vmem:[%s1996_s0 + $0x38] sm:$0xff]  ;;  %v78_v18 = vld [vmem:[%s1996_s0 + $0x40] sm:$0xff]  ;;  %v79_v19 = vld [vmem:[%s1996_s0 + $0x48] sm:$0xff]  ;;  %vm879_vm7 = vcmask 1043456   ;;  %vm966_vm8 = vsmask.f32 3328 }
  0x39   :  { %1262 = vmatpush3.bf16.msra.mxu0 %v174_v7  ;;  %v103_v17 = vpack.c.bf16 %v77_v16, %v76_v15  ;;  %v104_v20 = vpack.c.bf16 %v79_v19, %v78_v18  ;;  %v80_v21 = vld [vmem:[%s1996_s0 + $0x50] sm:$0xff]  ;;  %v81_v22 = vld [vmem:[%s1996_s0 + $0x58] sm:$0xff]  ;;  %v82_v24 = vld [vmem:[%s1996_s0 + $0x60] sm:$0xff]  ;;  %vm785_vm9 = vcmask 518144  }
  0x3a   :  { %v105_v23 = vpack.c.bf16 %v81_v22, %v80_v21  ;;  %v83_v25 = vld [vmem:[%s1996_s0 + $0x68] sm:$0xff]  ;;  %v84_v27 = vld [vmem:[%s1996_s0 + $0x70] sm:$0xff]  ;;  %v85_v28 = vld [vmem:[%s1996_s0 + $0x78] sm:$0xff] }
  0x3b   :  { %v106_v26 = vpack.c.bf16 %v83_v25, %v82_v24  ;;  %v107_v29 = vpack.c.bf16 %v85_v28, %v84_v27  ;;  %v86_v30 = vld [vmem:[%s1996_s0 + $0x80] sm:$0xff]  ;;  %v87_v31 = vld [vmem:[%s1996_s0 + $0x88] sm:$0xff]  ;;  %v88_v33 = vld [vmem:[%s1996_s0 + $0x90] sm:$0xff] }
  0x3c   :  { %1264 = vmatmul.mubr.msk.bf16.vlgmr.msra.gmra.mxu0 %vm123_vm3, %v100_v8  ;;  %v108_v32 = vpack.c.bf16 %v87_v31, %v86_v30  ;;  %v89_v34 = vld [vmem:[%s1996_s0 + $0x98] sm:$0xff]  ;;  %v90_v36 = vld [vmem:[%s1996_s0 + $0xa0] sm:$0xff]  ;;  %v91_v37 = vld [vmem:[%s1996_s0 + $0xa8] sm:$0xff] }
  0x3d   :  { %1267 = vmatprep.mubr.msk.bf16.mxu0 %vm1534_vm2, %v1532_v0  ;;  %v109_v35 = vpack.c.bf16 %v89_v34, %v88_v33  ;;  %v110_v38 = vpack.c.bf16 %v91_v37, %v90_v36  ;;  %v92_v39 = vld [vmem:[%s1996_s0 + $0xb0] sm:$0xff]  ;;  %v93_v40 = vld [vmem:[%s1996_s0 + $0xb8] sm:$0xff]  ;;  %v94_v42 = vld [vmem:[%s1996_s0 + $0xc0] sm:$0xff] }
  0x3e   :  { %v111_v41 = vpack.c.bf16 %v93_v40, %v92_v39  ;;  %v95_v43 = vld [vmem:[%s1996_s0 + $0xc8] sm:$0xff]  ;;  %v96_v45 = vld [vmem:[%s1996_s0 + $0xd0] sm:$0xff]  ;;  %v97_v46 = vld [vmem:[%s1996_s0 + $0xd8] sm:$0xff] }
  0x3f   :  { %v112_v44 = vpack.c.bf16 %v95_v43, %v94_v42  ;;  %v113_v47 = vpack.c.bf16 %v97_v46, %v96_v45  ;;  %v1704_v48 = vld [vmem:[#allocation6 + $0x38] sm:$0xff]   ;;  %v1709_v49 = vld [vmem:[#allocation6 + $0x30] sm:$0xff]   ;;  %v99_v51 = vld [vmem:[%s1996_s0 + $0xe8] sm:$0xff] }
  0x40   :  { %1323 = vmatprep.subr.bf16.mxu1 %v1704_v48  ;;  %v98_v50 = vld [vmem:[%s1996_s0 + $0xe0] sm:$0xff]  ;;  %v1721_v53 = vld [vmem:[#allocation6 + $0x28] sm:$0xff]   ;;  %v1759_v40 = vld [vmem:[#allocation6 + $0x10] sm:$0xff]  }
  0x41   :  { %1324 = vmatpush3.bf16.msra.mxu1 %v1704_v48  ;;  %v114_v52 = vpack.c.bf16 %v99_v51, %v98_v50  ;;  %v1726_v54 = vld [vmem:[#allocation6 + $0x20] sm:$0xff]   ;;  %v1730_v55 = vld [vmem:[#allocation6 + $0x18] sm:$0xff]  }
  0x42   :  { %1325 = vmatprep.subr.bf16.mxu1 %v1709_v49  ;;  %v1745_v7 = vld [vmem:[#allocation4] ss:$0 sm:$0xff] }
  0x44   :  { %1268 = vmatmul.mubr.msk.bf16.gmra.mxu0 %vm123_vm3, %v101_v11 }
  0x45   :  { %1271 = vmatprep.mubr.msk.bf16.mxu0 %vm1534_vm2, %v1532_v0  ;;  %1326 = vmatpush3.bf16.msra.mxu1 %v1709_v49 }
  0x46   :  { %1327 = vmatprep.subr.bf16.mxu1 %v1721_v53 }
  0x49   :  { %1328 = vmatpush3.bf16.msra.mxu1 %v1721_v53 }
  0x4a   :  { %1329 = vmatprep.subr.bf16.mxu1 %v1726_v54 }
  0x4c   :  { %1272 = vmatmul.mubr.msk.bf16.gmra.mxu0 %vm123_vm3, %v102_v14 }
  0x4d   :  { %1275 = vmatprep.mubr.msk.bf16.mxu0 %vm1534_vm2, %v1532_v0  ;;  %1330 = vmatpush3.bf16.msra.mxu1 %v1726_v54 }
  0x4e   :  { %1339 = vmatprep.subr.bf16.mxu1 %v1730_v55 }
  0x54   :  { %1276 = vmatmul.mubr.msk.bf16.gmra.mxu0 %vm123_vm3, %v103_v17 }
  0x55   :  { %1279 = vmatprep.mubr.msk.bf16.mxu0 %vm1534_vm2, %v1532_v0 }
  0x5c   :  { %1280 = vmatmul.mubr.msk.bf16.gmra.mxu0 %vm123_vm3, %v104_v20 }
  0x5d   :  { %1283 = vmatprep.mubr.msk.bf16.mxu0 %vm1534_vm2, %v1532_v0 }
  0x64   :  { %1284 = vmatmul.mubr.msk.bf16.gmra.mxu0 %vm123_vm3, %v105_v23 }
  0x65   :  { %1287 = vmatprep.mubr.msk.bf16.mxu0 %vm1534_vm2, %v1532_v0 }
  0x6c   :  { %1288 = vmatmul.mubr.msk.bf16.gmra.mxu0 %vm123_vm3, %v106_v26 }
  0x6d   :  { %1291 = vmatprep.mubr.msk.bf16.mxu0 %vm1534_vm2, %v1532_v0 }
  0x74   :  { %1292 = vmatmul.mubr.msk.bf16.gmra.mxu0 %vm123_vm3, %v107_v29 }
  0x75   :  { %1295 = vmatprep.mubr.msk.bf16.mxu0 %vm1534_vm2, %v1532_v0 }
  0x7c   :  { %1296 = vmatmul.mubr.msk.bf16.gmra.mxu0 %vm123_vm3, %v108_v32 }
  0x7d   :  { %1299 = vmatprep.mubr.msk.bf16.mxu0 %vm1534_vm2, %v1532_v0 }
  0x84   :  { %1300 = vmatmul.mubr.msk.bf16.gmra.mxu0 %vm123_vm3, %v109_v35 }
  0x85   :  { %1303 = vmatprep.mubr.msk.bf16.mxu0 %vm1534_vm2, %v1532_v0 }
  0x8c   :  { %1304 = vmatmul.mubr.msk.bf16.gmra.mxu0 %vm123_vm3, %v110_v38 }
  0x8d   :  { %1307 = vmatprep.mubr.msk.bf16.mxu0 %vm1534_vm2, %v1532_v0 }
  0x94   :  { %1308 = vmatmul.mubr.msk.bf16.gmra.mxu0 %vm123_vm3, %v111_v41 }
  0x95   :  { %1311 = vmatprep.mubr.msk.bf16.mxu0 %vm1534_vm2, %v1532_v0 }
  0x9c   :  { %1312 = vmatmul.mubr.msk.bf16.gmra.mxu0 %vm123_vm3, %v112_v44 }
  0x9d   :  { %1315 = vmatprep.mubr.msk.bf16.mxu0 %vm1534_vm2, %v1532_v0 }
  0xa4   :  { %1316 = vmatmul.mubr.msk.bf16.gmra.mxu0 %vm123_vm3, %v113_v47  ;;  %v1766_v47 = vld [vmem:[#allocation6 + $0x8] sm:$0xff]  }
  0xa5   :  { %1319 = vmatprep.mubr.msk.bf16.mxu0 %vm1534_vm2, %v1532_v0 }
  0xac   :  { %1320 = vmatmul.mubr.msk.bf16.gmra.mxu0 %vm123_vm3, %v114_v52 }
  0xfc   :  { %v1733_v56 = vpop.f32.mrf.mxu0 }
  0xfe   :  { %v1265_v57 = vpop.f32.mrf.mxu0 }
 0x100   :  { %v1735_v58 = vpop.f32.mrf.mxu0 }
 0x102   :  { %v1266_v59 = vpop.f32.mrf.mxu0 }
 0x104   :  { %v1737_v60 = vpop.f32.mrf.mxu0 }
 0x106   :  { %v1269_v61 = vpop.f32.mrf.mxu0 }
 0x107   :  { %v1771_v61 = vld [vmem:[#allocation6] sm:$0xff]  }
 0x108   :  { %v1739_v62 = vpop.f32.mrf.mxu0 }
 0x10a   :  { %v1270_v63 = vpop.f32.mrf.mxu0 }
 0x10b   :  { %v214_v63 = vadd.f32 %v1745_v7, %v1735_v58 }
 0x10c   :  { %v1741_v0 = vpop.f32.mrf.mxu0 }
 0x10d   :  { %v330_v58 = vmax.f32 %v214_v63, 0.0 }
 0x10e   :  { %v1273_v1 = vpop.f32.mrf.mxu0 }
 0x110   :  { %v1743_v2 = vpop.f32.mrf.mxu0 }
 0x112   :  { %v1274_v3 = vpop.f32.mrf.mxu0 }
 0x114   :  { %v234_v4 = vpop.f32.mrf.mxu0 }
 0x115   :  { %v235_v11 = vadd.f32 %v1745_v7, %v234_v4 }
 0x116   :  { %v1277_v5 = vpop.f32.mrf.mxu0 }
 0x117   :  { %v335_v16 = vmax.f32 %v235_v11, 0.0  ;;  %v211_v5 = vadd.f32 %v1745_v7, %v1733_v56 }
 0x118   :  { %v237_v6 = vpop.f32.mrf.mxu0 }
 0x119   :  { %v238_v9 = vadd.f32 %v1745_v7, %v237_v6 }
 0x11a   :  { %v1278_v8 = vpop.f32.mrf.mxu0 }
 0x11b   :  { %v336_v13 = vmax.f32 %v238_v9, 0.0 }
 0x11c   :  { %v242_v10 = vpop.f32.mrf.mxu0 }
 0x11d   :  { %v243_v14 = vadd.f32 %v1745_v7, %v242_v10  ;;  %v1751_v19 = vpack.c.bf16 %v336_v13, %v335_v16  ;;  %v1784_v10 = vld [vmem:[#allocation6 + $0x58] sm:$0xff]  }
 0x11e   :  { %v1281_v12 = vpop.f32.mrf.mxu0 }
 0x11f   :  { %v337_v20 = vmax.f32 %v243_v14, 0.0  ;;  %v406_v27 = vrot.slane %v1751_v19, 6  ;;  %v222_v12 = vadd.f32 %v1745_v7, %v1739_v62  ;;  %v329_v14 = vmax.f32 %v211_v5, 0.0 }
 0x120   :  { %v245_v15 = vpop.f32.mrf.mxu0 }
 0x121   :  { %v246_v17 = vadd.f32 %v1745_v7, %v245_v15  ;;  %v219_v15 = vadd.f32 %v1745_v7, %v1737_v60  ;;  %v332_v62 = vmax.f32 %v222_v12, 0.0 }
 0x122   :  { %v1282_v18 = vpop.f32.mrf.mxu0 }
 0x123   :  { %v338_v21 = vmax.f32 %v246_v17, 0.0  ;;  %v359_v17 = vpack.c.bf16 %v330_v58, %v329_v14  ;;  %v230_v18 = vadd.f32 %v1745_v7, %v1743_v2  ;;  %v331_v60 = vmax.f32 %v219_v15, 0.0 }
 0x124   :  { %v250_v22 = vpop.f32.mrf.mxu0  ;;  %v643_v14 = vshrl.u32 %v1751_v19, 16 }
 0x125   :  { %v363_v23 = vpack.c.bf16 %v338_v21, %v337_v20  ;;  %v251_v26 = vadd.f32 %v1745_v7, %v250_v22  ;;  %v227_v22 = vadd.f32 %v1745_v7, %v1741_v0 }
 0x126   :  { %v1285_v24 = vpop.f32.mrf.mxu0 }
 0x127   :  { %v407_v25 = vrot.slane %v363_v23, 6  ;;  %v339_v32 = vmax.f32 %v251_v26, 0.0  ;;  %v334_v24 = vmax.f32 %v230_v18, 0.0 }
 0x128   :  { %v253_v28 = vpop.f32.mrf.mxu0 }
 0x129   :  { %v254_v29 = vadd.f32 %v1745_v7, %v253_v28  ;;  %v408_v30 = vsel %vm170_vm1, %v406_v27, %v407_v25  ;;  %v333_v27 = vmax.f32 %v227_v22, 0.0  ;;  %v621_v28 = vshll.u32 %v359_v17, 16 }
 0x12a   :  { %v1286_v31 = vpop.f32.mrf.mxu0  ;;  %1331 = vmatprep.mubr.msk.bf16.mxu1 %vm439_vm4, %v408_v30 }
 0x12b   :  { %v340_v33 = vmax.f32 %v254_v29, 0.0  ;;  %v1808_v29 = vld [vmem:[#allocation6 + $0x50] sm:$0xff]   ;;  %v361_v30 = vpack.c.bf16 %v334_v24, %v333_v27  ;;  %v623_v0 = vrot.slane %v621_v28, 1 }
 0x12c   :  { %v258_v34 = vpop.f32.mrf.mxu0 }
 0x12d   :  { %v364_v35 = vpack.c.bf16 %v340_v33, %v339_v32  ;;  %v259_v38 = vadd.f32 %v1745_v7, %v258_v34  ;;  %v1816_v34 = vld [vmem:[#allocation6 + $0x48] sm:$0xff]  }
 0x12e   :  { %v1289_v36 = vpop.f32.mrf.mxu0 }
 0x12f   :  { %v409_v37 = vrot.slane %v364_v35, 6  ;;  %v341_v44 = vmax.f32 %v259_v38, 0.0  ;;  %v619_v35 = vshrl.u32 %v359_v17, 16  ;;  %v632_v38 = vshll.u32 %v361_v30, 16 }
 0x130   :  { %v261_v39 = vpop.f32.mrf.mxu0 }
 0x131   :  { %v262_v41 = vadd.f32 %v1745_v7, %v261_v39  ;;  %v410_v42 = vsel %vm170_vm1, %v407_v25, %v409_v37  ;;  %v360_v25 = vpack.c.bf16 %v332_v62, %v331_v60 }
 0x132   :  { %v1290_v43 = vpop.f32.mrf.mxu0  ;;  %1332 = vmatmul.mubr.msk.bf16.vlgmr.msra.gmra.mxu1 %vm439_vm4, %v410_v42  ;;  %v1822_v42 = vld [vmem:[#allocation6 + $0x40] sm:$0xff]  }
 0x133   :  { %v342_v45 = vmax.f32 %v262_v41, 0.0  ;;  %1340 = vmatpush3.bf16.msra.mxu1 %v1730_v55  ;;  %v625_v31 = vshll.u32 %v360_v25, 16  ;;  %v624_v41 = vor.u32 %v623_v0, %v619_v35 }
 0x134   :  { %v266_v46 = vpop.f32.mrf.mxu0  ;;  %1341 = vmatprep.subr.bf16.mxu1 %v1759_v40 }
 0x135   :  { %v365_v50 = vpack.c.bf16 %v342_v45, %v341_v44  ;;  %v267_v57 = vadd.f32 %v1745_v7, %v266_v46  ;;  %v639_v45 = vshll.u32 %v1751_v19, 16  ;;  %v634_v46 = vrot.slane %v632_v38, 1 }
 0x136   :  { %v1293_v51 = vpop.f32.mrf.mxu0 }
 0x137   :  { %v411_v52 = vrot.slane %v365_v50, 6  ;;  %1342 = vmatpush3.bf16.msra.mxu1 %v1759_v40  ;;  %v343_v6 = vmax.f32 %v267_v57, 0.0  ;;  %v629_v51 = vshrl.u32 %v360_v25, 16 }
 0x138   :  { %v269_v59 = vpop.f32.mrf.mxu0  ;;  %1343 = vmatprep.subr.bf16.mxu1 %v1766_v47 }
 0x139   :  { %v270_v1 = vadd.f32 %v1745_v7, %v269_v59  ;;  %v412_v3 = vsel %vm170_vm1, %v409_v37, %v411_v52  ;;  %v627_v37 = vrot.slane %v625_v31, 1  ;;  %v641_v59 = vrot.slane %v639_v45, 1 }
 0x13a   :  { %v1294_v4 = vpop.f32.mrf.mxu0  ;;  %1335 = vmatprep.mubr.msk.bf16.mxu1 %vm439_vm4, %v412_v3 }
 0x13b   :  { %v344_v8 = vmax.f32 %v270_v1, 0.0  ;;  %1344 = vmatpush3.bf16.msra.mxu1 %v1766_v47  ;;  %v628_v44 = vsel %vm618_vm5, %v624_v41, %v627_v37  ;;  %v631_v63 = vor.u32 %v629_v51, %v627_v37  ;;  %v645_v18 = vor.u32 %v643_v14, %v641_v59 }
 0x13c   :  { %v1781_v9 = vpop.f32.mrf.mxu0  ;;  %1345 = vmatprep.subr.bf16.mxu1 %v1771_v61 }
 0x13d   :  { %v1786_v11 = vpack.c.bf16 %v344_v8, %v343_v6  ;;  %v635_v4 = vsel %vm618_vm5, %v631_v63, %v634_v46  ;;  %v275_v37 = vadd.f32 %v1745_v7, %v1781_v9 }
 0x13e   :  { %v1297_v13 = vpop.f32.mrf.mxu0 }
 0x13f   :  { %v413_v56 = vrot.slane %v1786_v11, 6  ;;  %1346 = vmatpush3.bf16.msra.mxu1 %v1771_v61 }
 0x140   :  { %v1794_v16 = vpop.f32.mrf.mxu0  ;;  %1355 = vmatprep.subr.bf16.mxu1 %v1784_v10 }
 0x141   :  { %v414_v20 = vsel %vm170_vm1, %v411_v52, %v413_v56  ;;  %v636_v52 = vshrl.u32 %v361_v30, 16 }
 0x142   :  { %v1298_v21 = vpop.f32.mrf.mxu0  ;;  %1336 = vmatmul.mubr.msk.bf16.gmra.mxu1 %vm439_vm4, %v414_v20 }
 0x143   :  { %1347 = vmatprep.mubr.msk.bf16.mxu1 %vm439_vm4, %v359_v17  ;;  %v638_v3 = vor.u32 %v636_v52, %v634_v46  ;;  %v345_v46 = vmax.f32 %v275_v37, 0.0 }
 0x144   :  { %v1804_v23 = vpop.f32.mrf.mxu0 }
 0x145   :  { %v642_v6 = vsel %vm618_vm5, %v638_v3, %v641_v59 }
 0x146   :  { %v1301_v26 = vpop.f32.mrf.mxu0 }
 0x148   :  { %v1806_v2 = vpop.f32.mrf.mxu0 }
 0x14a   :  { %v1302_v32 = vpop.f32.mrf.mxu0  ;;  %1348 = vmatmul.mubr.msk.bf16.vlgmr.msra.gmra.mxu1 %vm439_vm4, %v360_v25 }
 0x14b   :  { %1351 = vmatprep.mubr.msk.bf16.mxu1 %vm439_vm4, %v361_v30  ;;  %1356 = vmatpush3.bf16.msra.mxu1 %v1784_v10  ;;  %v278_v32 = vadd.f32 %v1745_v7, %v1794_v16  ;;  %v286_v16 = vadd.f32 %v1745_v7, %v1806_v2 }
 0x14c   :  { %v1813_v33 = vpop.f32.mrf.mxu0  ;;  %1357 = vmatprep.subr.bf16.mxu1 %v1808_v29 }
 0x14d   :  { %v346_v41 = vmax.f32 %v278_v32, 0.0  ;;  %v291_v3 = vadd.f32 %v1745_v7, %v1813_v33 }
 0x14e   :  { %v1305_v36 = vpop.f32.mrf.mxu0 }
 0x14f   :  { %1358 = vmatpush3.bf16.msra.mxu1 %v1808_v29 }
 0x150   :  { %v1819_v39 = vpop.f32.mrf.mxu0  ;;  %1359 = vmatprep.subr.bf16.mxu1 %v1816_v34 }
 0x151   :  { %v294_v9 = vadd.f32 %v1745_v7, %v1819_v39 }
 0x152   :  { %v1306_v43 = vpop.f32.mrf.mxu0  ;;  %1352 = vmatmul.mubr.msk.bf16.gmra.mxu1 %vm439_vm4, %v1751_v19 }
 0x153   :  { %1360 = vmatpush3.bf16.msra.mxu1 %v1816_v34  ;;  %1363 = vmatprep.mubr.msk.bf16.mxu1 %vm439_vm4, %v628_v44 }
 0x154   :  { %v298_v50 = vpop.f32.mrf.mxu0  ;;  %1361 = vmatprep.subr.bf16.mxu1 %v1822_v42 }
 0x155   :  { %v299_v12 = vadd.f32 %v1745_v7, %v298_v50 }
 0x156   :  { %v1309_v57 = vpop.f32.mrf.mxu0 }
 0x157   :  { %1362 = vmatpush3.bf16.msra.mxu1 %v1822_v42  ;;  %v351_v20 = vmax.f32 %v299_v12, 0.0  ;;  %v367_v57 = vpack.c.bf16 %v346_v41, %v345_v46 }
 0x158   :  { %v301_v1 = vpop.f32.mrf.mxu0  ;;  %1371 = vmatprep.subr.bf16.mxu1 %v1704_v48 }
 0x159   :  { %v302_v8 = vadd.f32 %v1745_v7, %v301_v1  ;;  %v283_v1 = vadd.f32 %v1745_v7, %v1804_v23  ;;  %v880_v23 = vrot.slane %v1786_v11, 4  ;;  %v979_v14 = vshll.u32 %v367_v57, 16 }
 0x15a   :  { %v1310_v5 = vpop.f32.mrf.mxu0  ;;  %1364 = vmatmul.mubr.msk.bf16.vlgmr.msra.gmra.mxu1 %vm439_vm4, %v635_v4  ;;  %v348_v4 = vmax.f32 %v286_v16, 0.0 }
 0x15b   :  { %1367 = vmatprep.mubr.msk.bf16.mxu1 %vm439_vm4, %v642_v6  ;;  %1372 = vmatpush3.bf16.msra.mxu1 %v1704_v48  ;;  %v352_v56 = vmax.f32 %v302_v8, 0.0  ;;  %v881_v5 = vrot.slane %v367_v57, 4  ;;  %v350_v6 = vmax.f32 %v294_v9, 0.0  ;;  %v347_v39 = vmax.f32 %v283_v1, 0.0 }
 0x15c   :  { %v306_v58 = vpop.f32.mrf.mxu0  ;;  %1373 = vmatprep.subr.bf16.mxu1 %v1709_v49 }
 0x15d   :  { %v307_v15 = vadd.f32 %v1745_v7, %v306_v58  ;;  %v1847_v21 = vpack.c.bf16 %v352_v56, %v351_v20  ;;  %v368_v12 = vpack.c.bf16 %v348_v4, %v347_v39  ;;  %v882_v33 = vsel %vm879_vm7, %v880_v23, %v881_v5  ;;  %v1914_v4 = vld [vmem:[#allocation7] ss:$0 sm:$0xff] }
 0x15e   :  { %v1313_v13 = vpop.f32.mrf.mxu0 }
 0x15f   :  { %1374 = vmatpush3.bf16.msra.mxu1 %v1709_v49  ;;  %v353_v22 = vmax.f32 %v307_v15, 0.0  ;;  %v792_v27 = vrot.slane %v1847_v21, 2  ;;  %v976_v13 = vshrl.u32 %v367_v57, 16  ;;  %v968_v15 = vshrl.u32 %v1786_v11, 16 }
 0x160   :  { %v309_v17 = vpop.f32.mrf.mxu0  ;;  %1375 = vmatprep.subr.bf16.mxu1 %v1721_v53  ;;  %v1006_v32 = vshll.u32 %v1847_v21, 16 }
 0x161   :  { %v310_v48 = vadd.f32 %v1745_v7, %v309_v17  ;;  %v971_v17 = vshll.u32 %v1786_v11, 16  ;;  %v978_v20 = vrot.slane %v976_v13, 4  ;;  %v887_v11 = vrot.slane %v1847_v21, 4 }
 0x162   :  { %v1314_v62 = vpop.f32.mrf.mxu0  ;;  %1368 = vmatmul.mubr.msk.bf16.gmra.mxu1 %vm439_vm4, %v645_v18  ;;  %v1008_v37 = vrot.slane %v1006_v32, 5 }
 0x163   :  { %v354_v60 = vmax.f32 %v310_v48, 0.0  ;;  %1376 = vmatpush3.bf16.msra.mxu1 %v1721_v53  ;;  %v973_v62 = vrot.slane %v971_v17, 5 }
 0x164   :  { %v314_v19 = vpop.f32.mrf.mxu0  ;;  %1377 = vmatprep.subr.bf16.mxu1 %v1726_v54 }
 0x165   :  { %v371_v49 = vpack.c.bf16 %v354_v60, %v353_v22  ;;  %v315_v26 = vadd.f32 %v1745_v7, %v314_v19  ;;  %v985_v22 = vshrl.u32 %v368_v12, 16  ;;  %v988_v60 = vshll.u32 %v368_v12, 16 }
 0x166   :  { %v1317_v24 = vpop.f32.mrf.mxu0 }
 0x167   :  { %v793_v25 = vrot.slane %v371_v49, 2  ;;  %1378 = vmatpush3.bf16.msra.mxu1 %v1726_v54  ;;  %v355_v0 = vmax.f32 %v315_v26, 0.0  ;;  %v990_v26 = vrot.slane %v988_v60, 5 }
 0x168   :  { %v317_v28 = vpop.f32.mrf.mxu0  ;;  %1387 = vmatprep.subr.bf16.mxu1 %v1730_v55 }
 0x169   :  { %v318_v30 = vadd.f32 %v1745_v7, %v317_v28  ;;  %v794_v53 = vsel %vm791_vm6, %v792_v27, %v793_v25 }
 0x16a   :  { %v1318_v31 = vpop.f32.mrf.mxu0  ;;  %1379 = vmatprep.mubr.msk.bf16.mxu1 %vm439_vm4, %v794_v53 }
 0x16b   :  { %v356_v35 = vmax.f32 %v318_v30, 0.0  ;;  %v1003_v31 = vshrl.u32 %v1847_v21, 16 }
 0x16c   :  { %v322_v36 = vpop.f32.mrf.mxu0 }
 0x16d   :  { %v372_v54 = vpack.c.bf16 %v356_v35, %v355_v0  ;;  %v323_v44 = vadd.f32 %v1745_v7, %v322_v36  ;;  %v1005_v36 = vrot.slane %v1003_v31, 4 }
 0x16e   :  { %v1321_v38 = vpop.f32.mrf.mxu0 }
 0x16f   :  { %v795_v43 = vrot.slane %v372_v54, 2  ;;  %v357_v59 = vmax.f32 %v323_v44, 0.0  ;;  %v1009_v54 = vor.u32 %v1008_v37, %v1005_v36 }
 0x170   :  { %v325_v45 = vpop.f32.mrf.mxu0 }
 0x171   :  { %v796_v50 = vsel %vm791_vm6, %v793_v25, %v795_v43  ;;  %v326_v51 = vadd.f32 %v1745_v7, %v325_v45 }
 0x172   :  { %v1322_v52 = vpop.f32.mrf.mxu0  ;;  %1380 = vmatmul.mubr.msk.bf16.vlgmr.msra.gmra.mxu1 %vm439_vm4, %v796_v50 }
 0x173   :  { %v358_v63 = vmax.f32 %v326_v51, 0.0  ;;  %1388 = vmatpush3.bf16.msra.mxu1 %v1730_v55  ;;  %v349_v55 = vmax.f32 %v291_v3, 0.0 }
 0x174   :  { %1389 = vmatprep.subr.bf16.mxu1 %v1759_v40 }
 0x175   :  { %v373_v2 = vpack.c.bf16 %v358_v63, %v357_v59  ;;  %v369_v7 = vpack.c.bf16 %v350_v6, %v349_v55 }
 0x177   :  { %v797_v8 = vrot.slane %v373_v2, 2  ;;  %1390 = vmatpush3.bf16.msra.mxu1 %v1759_v40  ;;  %v883_v40 = vrot.slane %v368_v12, 4  ;;  %v885_v56 = vrot.slane %v369_v7, 4  ;;  %v994_v19 = vshrl.u32 %v369_v7, 16 }
 0x178   :  { %1391 = vmatprep.subr.bf16.mxu1 %v1766_v47  ;;  %v997_v49 = vshll.u32 %v369_v7, 16 }
 0x179   :  { %v798_v58 = vsel %vm791_vm6, %v795_v43, %v797_v8  ;;  %v884_v18 = vsel %vm879_vm7, %v881_v5, %v883_v40  ;;  %v886_v48 = vsel %vm879_vm7, %v883_v40, %v885_v56  ;;  %v888_v27 = vsel %vm879_vm7, %v885_v56, %v887_v11 }
 0x17a   :  { %1383 = vmatprep.mubr.msk.bf16.mxu1 %vm439_vm4, %v798_v58  ;;  %v996_v28 = vrot.slane %v994_v19, 4  ;;  %v999_v30 = vrot.slane %v997_v49, 5 }
 0x17b   :  { %1384 = vmatmul.mubr.msk.bf16.gmra.mxu1 %vm439_vm4, %v797_v8 }
 0x17c   :  { %1392 = vmatpush3.bf16.msra.mxu1 %v1766_v47  ;;  %1395 = vmatprep.mubr.msk.bf16.mxu1 %vm439_vm4, %v882_v33  ;;  %v981_v47 = vrot.slane %v979_v14, 5  ;;  %v1000_v0 = vor.u32 %v999_v30, %v996_v28 }
 0x17d   :  { %1393 = vmatprep.subr.bf16.mxu1 %v1771_v61 }
 0x17e   :  { %v982_v24 = vor.u32 %v981_v47, %v978_v20  ;;  %v1010_v38 = vsel %vm966_vm8, %v1000_v0, %v1009_v54 }
 0x180   :  { %1394 = vmatpush3.bf16.msra.mxu1 %v1771_v61  ;;  %v970_v61 = vrot.slane %v968_v15, 4 }
 0x181   :  { %1403 = vmatprep.subr.bf16.mxu1 %v1784_v10 }
 0x182   :  { %v974_v25 = vor.u32 %v973_v62, %v970_v61 }
 0x183   :  { %1396 = vmatmul.mubr.msk.bf16.vlgmr.msra.gmra.mxu1 %vm439_vm4, %v884_v18 }
 0x184   :  { %1404 = vmatpush3.bf16.msra.mxu1 %v1784_v10  ;;  %1399 = vmatprep.mubr.msk.bf16.mxu1 %vm439_vm4, %v886_v48  ;;  %v987_v10 = vrot.slane %v985_v22, 4  ;;  %v983_v53 = vsel %vm966_vm8, %v974_v25, %v982_v24 }
 0x185   :  { %1405 = vmatprep.subr.bf16.mxu1 %v1808_v29 }
 0x188   :  { %1406 = vmatpush3.bf16.msra.mxu1 %v1808_v29  ;;  %v991_v29 = vor.u32 %v990_v26, %v987_v10 }
 0x189   :  { %1407 = vmatprep.subr.bf16.mxu1 %v1816_v34 }
 0x18a   :  { %v992_v35 = vsel %vm966_vm8, %v982_v24, %v991_v29 }
 0x18b   :  { %1400 = vmatmul.mubr.msk.bf16.gmra.mxu1 %vm439_vm4, %v888_v27 }
 0x18c   :  { %1408 = vmatpush3.bf16.msra.mxu1 %v1816_v34  ;;  %1411 = vmatprep.mubr.msk.bf16.mxu1 %vm439_vm4, %v983_v53  ;;  %v1001_v34 = vsel %vm966_vm8, %v991_v29, %v1000_v0 }
 0x18d   :  { %1409 = vmatprep.subr.bf16.mxu1 %v1822_v42 }
 0x190   :  { %1410 = vmatpush3.bf16.msra.mxu1 %v1822_v42 }
 0x193   :  { %1412 = vmatmul.mubr.msk.bf16.vlgmr.msra.gmra.mxu1 %vm439_vm4, %v992_v35 }
 0x194   :  { %1415 = vmatprep.mubr.msk.bf16.mxu1 %vm439_vm4, %v1001_v34 }
 0x19b   :  { %1416 = vmatmul.mubr.msk.bf16.gmra.mxu1 %vm439_vm4, %v1010_v38 }
 0x1f2   :  { %v1333_v41 = vpop.f32.mrf.mxu1 }
 0x1f4   :  { %v486_v21 = vpop.f32.mrf.mxu1 }
 0x1f6   :  { %v1334_v43 = vpop.f32.mrf.mxu1 }
 0x1f8   :  { %v489_v44 = vpop.f32.mrf.mxu1 }
 0x202   :  { %v1337_v42 = vpop.f32.mrf.mxu1 }
 0x204   :  { %v502_v45 = vpop.f32.mrf.mxu1 }
 0x206   :  { %v1338_v46 = vpop.f32.mrf.mxu1 }
 0x208   :  { %v505_v50 = vpop.f32.mrf.mxu1 }
 0x20a   :  { %v1349_v51 = vpop.f32.mrf.mxu1 }
 0x20b   :  { %v596_v3 = vadd.f32 %v1349_v51, %v1333_v41 }
 0x20c   :  { %v587_v16 = vpop.f32.mrf.mxu1 }
 0x20d   :  { %v588_v5 = vadd.f32 %v587_v16, %v486_v21 }
 0x20e   :  { %v1350_v52 = vpop.f32.mrf.mxu1 }
 0x20f   :  { %v599_v39 = vadd.f32 %v1350_v52, %v1334_v43 }
 0x210   :  { %v590_v57 = vpop.f32.mrf.mxu1 }
 0x211   :  { %v591_v12 = vadd.f32 %v590_v57, %v489_v44 }
 0x212   :  { %v1353_v9 = vpop.f32.mrf.mxu1 }
 0x213   :  { %v612_v14 = vadd.f32 %v1353_v9, %v1337_v42 }
 0x214   :  { %v603_v59 = vpop.f32.mrf.mxu1 }
 0x215   :  { %v604_v20 = vadd.f32 %v603_v59, %v502_v45 }
 0x216   :  { %v1354_v63 = vpop.f32.mrf.mxu1 }
 0x217   :  { %v615_v22 = vadd.f32 %v1354_v63, %v1338_v46 }
 0x218   :  { %v606_v1 = vpop.f32.mrf.mxu1 }
 0x219   :  { %v607_v24 = vadd.f32 %v606_v1, %v505_v50 }
 0x21a   :  { %v1365_v2 = vpop.f32.mrf.mxu1 }
 0x21b   :  { %v749_v6 = vadd.f32 %v1365_v2, %v596_v3 }
 0x21c   :  { %v716_v8 = vpop.f32.mrf.mxu1 }
 0x21d   :  { %v764_v55 = vadd.f32 %v1914_v4, %v749_v6  ;;  %v747_v58 = vadd.f32 %v716_v8, %v588_v5 }
 0x21e   :  { %v1366_v23 = vpop.f32.mrf.mxu1 }
 0x21f   :  { %v772_v7 = vmax.f32 %v764_v55, 0.0  ;;  %v762_v33 = vadd.f32 %v1914_v4, %v747_v58  ;;  %v750_v40 = vadd.f32 %v1366_v23, %v599_v39 }
 0x220   :  { %v719_v13 = vpop.f32.mrf.mxu1 }
 0x221   :  { %780 = vst.msk [vmem:[%s2001_s5 + $0x10] sm:$0xff] %vm439_vm4, %v772_v7  ;;  %v770_v56 = vmax.f32 %v762_v33, 0.0  ;;  %v765_v15 = vadd.f32 %v1914_v4, %v750_v40  ;;  %v748_v17 = vadd.f32 %v719_v13, %v591_v12 }
 0x222   :  { %v1369_v18 = vpop.f32.mrf.mxu1 }
 0x223   :  { %778 = vst.msk [vmem:[%s2001_s5] sm:$0xff] %vm439_vm4, %v770_v56  ;;  %v773_v47 = vmax.f32 %v765_v15, 0.0  ;;  %v763_v48 = vadd.f32 %v1914_v4, %v748_v17  ;;  %v753_v61 = vadd.f32 %v1369_v18, %v612_v14 }
 0x224   :  { %v732_v62 = vpop.f32.mrf.mxu1 }
 0x225   :  { %781 = vst.msk [vmem:[%s2001_s5 + $0x18] sm:$0xff] %vm439_vm4, %v773_v47  ;;  %v771_v60 = vmax.f32 %v763_v48, 0.0  ;;  %v768_v11 = vadd.f32 %v1914_v4, %v753_v61  ;;  %v751_v19 = vadd.f32 %v732_v62, %v604_v20 }
 0x226   :  { %v1370_v49 = vpop.f32.mrf.mxu1 }
 0x227   :  { %779 = vst.msk [vmem:[%s2001_s5 + $0x8] sm:$0xff] %vm439_vm4, %v771_v60  ;;  %v776_v25 = vmax.f32 %v768_v11, 0.0  ;;  %v766_v10 = vadd.f32 %v1914_v4, %v751_v19  ;;  %v754_v26 = vadd.f32 %v1370_v49, %v615_v22 }
 0x228   :  { %v735_v27 = vpop.f32.mrf.mxu1 }
 0x229   :  { %784 = vst.msk [vmem:[%s2001_s5 + $0x30] sm:$0xff] %vm439_vm4, %v776_v25  ;;  %v774_v28 = vmax.f32 %v766_v10, 0.0  ;;  %v769_v30 = vadd.f32 %v1914_v4, %v754_v26  ;;  %v752_v53 = vadd.f32 %v735_v27, %v607_v24 }
 0x22b   :  { %782 = vst.msk [vmem:[%s2001_s5 + $0x20] sm:$0xff] %vm439_vm4, %v774_v28  ;;  %v777_v29 = vmax.f32 %v769_v30, 0.0  ;;  %v767_v31 = vadd.f32 %v1914_v4, %v752_v53 }
 0x22d   :  { %786 = vst.msk [vmem:[%s2001_s5 + $0x38] sm:$0x7] %vm785_vm9, %v777_v29  ;;  %v775_v32 = vmax.f32 %v767_v31, 0.0 }
 0x22f   :  { %783 = vst.msk [vmem:[%s2001_s5 + $0x28] sm:$0xff] %vm439_vm4, %v775_v32 }
 0x232   :  { %v1381_v0 = vpop.f32.mrf.mxu1 }
 0x234   :  { %v845_v35 = vpop.f32.mrf.mxu1 }
 0x236   :  { %v1382_v36 = vpop.f32.mrf.mxu1 }
 0x238   :  { %v848_v37 = vpop.f32.mrf.mxu1 }
 0x23b   :  { %v1385_v34 = vpop.f32.mrf.mxu1 }
 0x23d   :  { %v861_v54 = vpop.f32.mrf.mxu1 }
 0x23f   :  { %v1386_v38 = vpop.f32.mrf.mxu1 }
 0x241   :  { %v864_v41 = vpop.f32.mrf.mxu1 }
 0x243   :  { %v1397_v21 = vpop.f32.mrf.mxu1 }
 0x244   :  { %v944_v16 = vadd.f32 %v1397_v21, %v1381_v0 }
 0x245   :  { %v935_v43 = vpop.f32.mrf.mxu1 }
 0x246   :  { %v936_v57 = vadd.f32 %v935_v43, %v845_v35 }
 0x247   :  { %v1398_v44 = vpop.f32.mrf.mxu1 }
 0x248   :  { %v947_v63 = vadd.f32 %v1398_v44, %v1382_v36 }
 0x249   :  { %v938_v42 = vpop.f32.mrf.mxu1 }
 0x24a   :  { %v939_v5 = vadd.f32 %v938_v42, %v848_v37 }
 0x24b   :  { %v1401_v45 = vpop.f32.mrf.mxu1 }
 0x24c   :  { %v960_v58 = vadd.f32 %v1401_v45, %v1385_v34 }
 0x24d   :  { %v951_v46 = vpop.f32.mrf.mxu1 }
 0x24e   :  { %v952_v40 = vadd.f32 %v951_v46, %v861_v54 }
 0x24f   :  { %v1402_v50 = vpop.f32.mrf.mxu1 }
 0x250   :  { %v963_v17 = vadd.f32 %v1402_v50, %v1386_v38 }
 0x251   :  { %v954_v51 = vpop.f32.mrf.mxu1 }
 0x252   :  { %v955_v61 = vadd.f32 %v954_v51, %v864_v41 }
 0x253   :  { %v1413_v52 = vpop.f32.mrf.mxu1 }
 0x254   :  { %v1090_v9 = vadd.f32 %v1413_v52, %v944_v16 }
 0x255   :  { %v1057_v59 = vpop.f32.mrf.mxu1 }
 0x256   :  { %v1105_v1 = vadd.f32 %v1914_v4, %v1090_v9  ;;  %v1088_v3 = vadd.f32 %v1057_v59, %v936_v57 }
 0x257   :  { %v1414_v2 = vpop.f32.mrf.mxu1 }
 0x258   :  { %v1113_v6 = vmax.f32 %v1105_v1, 0.0  ;;  %v1103_v8 = vadd.f32 %v1914_v4, %v1088_v3  ;;  %v1091_v39 = vadd.f32 %v1414_v2, %v947_v63 }
 0x259   :  { %v1060_v55 = vpop.f32.mrf.mxu1 }
 0x25a   :  { %1191 = vst.msk [vmem:[%s2001_s5 + $0x50] sm:$0xff] %vm439_vm4, %v1113_v6  ;;  %v1111_v23 = vmax.f32 %v1103_v8, 0.0  ;;  %v1106_v12 = vadd.f32 %v1914_v4, %v1091_v39  ;;  %v1089_v7 = vadd.f32 %v1060_v55, %v939_v5 }
 0x25b   :  { %v1417_v33 = vpop.f32.mrf.mxu1 }
 0x25c   :  { %1189 = vst.msk [vmem:[%s2001_s5 + $0x40] sm:$0xff] %vm439_vm4, %v1111_v23  ;;  %v1114_v13 = vmax.f32 %v1106_v12, 0.0  ;;  %v1104_v14 = vadd.f32 %v1914_v4, %v1089_v7  ;;  %v1094_v56 = vadd.f32 %v1417_v33, %v960_v58 }
 0x25d   :  { %v1073_v15 = vpop.f32.mrf.mxu1 }
 0x25e   :  { %1192 = vst.msk [vmem:[%s2001_s5 + $0x58] sm:$0xff] %vm439_vm4, %v1114_v13  ;;  %v1112_v18 = vmax.f32 %v1104_v14, 0.0  ;;  %v1109_v20 = vadd.f32 %v1914_v4, %v1094_v56  ;;  %v1092_v47 = vadd.f32 %v1073_v15, %v952_v40 }
 0x25f   :  { %v1418_v48 = vpop.f32.mrf.mxu1 }
 0x260   :  { %1190 = vst.msk [vmem:[%s2001_s5 + $0x48] sm:$0xff] %vm439_vm4, %v1112_v18  ;;  %v1117_v62 = vmax.f32 %v1109_v20, 0.0  ;;  %v1107_v22 = vadd.f32 %v1914_v4, %v1092_v47  ;;  %v1095_v60 = vadd.f32 %v1418_v48, %v963_v17 }
 0x261   :  { %v1076_v11 = vpop.f32.mrf.mxu1 }
 0x262   :  { %1195 = vst.msk [vmem:[%s2001_s5 + $0x70] sm:$0xff] %vm439_vm4, %v1117_v62  ;;  %v1115_v19 = vmax.f32 %v1107_v22, 0.0  ;;  %v1110_v49 = vadd.f32 %v1914_v4, %v1095_v60  ;;  %v1093_v24 = vadd.f32 %v1076_v11, %v955_v61 }
 0x264   :  { %1193 = vst.msk [vmem:[%s2001_s5 + $0x60] sm:$0xff] %vm439_vm4, %v1115_v19  ;;  %v1118_v25 = vmax.f32 %v1110_v49, 0.0  ;;  %v1108_v10 = vadd.f32 %v1914_v4, %v1093_v24 }
 0x266   :  { %1196 = vst.msk [vmem:[%s2001_s5 + $0x78] sm:$0x7] %vm785_vm9, %v1118_v25  ;;  %v1116_v26 = vmax.f32 %v1108_v10, 0.0 }
 0x268   :  { %1194 = vst.msk [vmem:[%s2001_s5 + $0x68] sm:$0xff] %vm439_vm4, %v1116_v26 }
 0x269   :  { %1132 = vsyncpa [#allocation3], 1 }
 0x26a   :  { %1133 = vsyncpa [#allocation5], 1 }
 0x26b   :  { %1134 = vsyncpa [#allocation8], 1 }

// kernel: mmvae_forward.6
= control target key start
LH: loop header
LB: loop body
LE: loop exit
PB: predicated region body
PF: predicated region fallthrough
CT: control target
= control target key end

     0   :  { %vm157_vm0 = vsmask.f32 7424  ;;  %vm442_vm1 = vcmask 523264   ;;  %vm840_vm2 = vcmask 261120   ;;  %vm844_vm3 = vcmask 259072   ;;  %s2975_s1 = inlined_call_operand.vmem [shape: bf16[3,128,64], index: 1, kind: input, shape index: {}]   ;;  %s2976_s0 = inlined_call_operand.vmem [shape: f32[2,32,128], index: 0, kind: input, shape index: {}]   ;;  %s2977_s3 = inlined_call_operand.vmem [shape: bf16[3,64,32], index: 3, kind: input, shape index: {}]   ;;  %s2978_s2 = inlined_call_operand.vmem [shape: f32[1,64], index: 2, kind: input, shape index: {}]   ;;  %s2979_s4 = inlined_call_operand.vmem [shape: f32[1,32], index: 4, kind: input, shape index: {}]   ;;  %s2980_s5 = inlined_call_operand.vmem [shape: f32[2,119,32], index: 5, kind: output, shape index: {}]  }
   0x1   :  { %v2306_v0 = vld [vmem:[%s2975_s1 + $0xb8] sm:$0xff]   ;;  %v2308_v2 = vld [vmem:[%s2975_s1 + $0xb0] sm:$0xff]   ;;  %v2310_v4 = vld [vmem:[%s2975_s1 + $0xa8] sm:$0xff]   ;;  %vm857_vm4 = vcmask 258048  }
   0x2   :  { %v2307_v1 = vld [vmem:[%s2975_s1 + $0x38] sm:$0xff]   ;;  %2042 = vmatprep.subr.bf16.mxu0 %v2306_v0  ;;  %v2309_v3 = vld [vmem:[%s2975_s1 + $0x30] sm:$0xff]   ;;  %v2311_v5 = vld [vmem:[%s2975_s1 + $0x28] sm:$0xff]  }
   0x3   :  { %2062 = vmatprep.subr.bf16.mxu1 %v2307_v1  ;;  %2043 = vmatpush3.bf16.msra.mxu0 %v2306_v0  ;;  %v2312_v6 = vld [vmem:[%s2975_s1 + $0xa0] sm:$0xff]   ;;  %v2314_v8 = vld [vmem:[%s2975_s1 + $0x98] sm:$0xff]   ;;  %v2316_v10 = vld [vmem:[%s2975_s1 + $0x90] sm:$0xff]  }
   0x4   :  { %2063 = vmatpush3.bf16.msra.mxu1 %v2307_v1  ;;  %2044 = vmatprep.subr.bf16.mxu0 %v2308_v2  ;;  %v2313_v7 = vld [vmem:[%s2975_s1 + $0x20] sm:$0xff]   ;;  %v2315_v9 = vld [vmem:[%s2975_s1 + $0x18] sm:$0xff]   ;;  %v2317_v11 = vld [vmem:[%s2975_s1 + $0x10] sm:$0xff]  }
   0x5   :  { %2064 = vmatprep.subr.bf16.mxu1 %v2309_v3  ;;  %v21_v12 = vld [vmem:[%s2976_s0] sm:$0xff]  ;;  %v22_v13 = vld [vmem:[%s2976_s0 + $0x8] sm:$0xff]  ;;  %v23_v14 = vld [vmem:[%s2976_s0 + $0x10] sm:$0xff] }
   0x6   :  { %v25_v15 = vpack.c.bf16 %v22_v13, %v21_v12  ;;  %v24_v16 = vld [vmem:[%s2976_s0 + $0x18] sm:$0xff]  ;;  %v2318_v20 = vld [vmem:[%s2975_s1 + $0x88] sm:$0xff]   ;;  %v2320_v26 = vld [vmem:[%s2975_s1 + $0x80] sm:$0xff]  }
   0x7   :  { %2045 = vmatpush3.bf16.msra.mxu0 %v2308_v2  ;;  %v26_v17 = vpack.c.bf16 %v24_v16, %v23_v14  ;;  %v2319_v22 = vld [vmem:[%s2975_s1 + $0x8] sm:$0xff]   ;;  %v2321_v27 = vld [vmem:[%s2975_s1] sm:$0xff]   ;;  %v2322_v30 = vld [vmem:[%s2975_s1 + $0x78] sm:$0xff]  }
   0x8   :  { %2065 = vmatpush3.bf16.msra.mxu1 %v2309_v3  ;;  %2046 = vmatprep.subr.bf16.mxu0 %v2310_v4  ;;  %v159_v18 = vshrl.u32 %v25_v15, 16  ;;  %v161_v19 = vshll.u32 %v25_v15, 16  ;;  %v2475_v31 = vld [vmem:[%s2977_s3 + $0x58] sm:$0xff]   ;;  %v2323_v32 = vld [vmem:[%s2975_s1 + $0x70] sm:$0xff]   ;;  %v2324_v34 = vld [vmem:[%s2975_s1 + $0x68] sm:$0xff]  }
   0x9   :  { %2066 = vmatprep.subr.bf16.mxu1 %v2311_v5  ;;  %2058 = vmatprep.mubr.bf16.mxu0 %v25_v15  ;;  %v166_v21 = vshll.u32 %v26_v17, 16  ;;  %v170_v29 = vshrl.u32 %v26_v17, 16  ;;  %v2325_v35 = vld [vmem:[%s2975_s1 + $0x60] sm:$0xff]   ;;  %v2326_v36 = vld [vmem:[%s2975_s1 + $0x58] sm:$0xff]   ;;  %v2327_v37 = vld [vmem:[%s2975_s1 + $0x50] sm:$0xff]  }
   0xa   :  { %v163_v23 = vrot.slane %v161_v19, 1  ;;  %v2328_v38 = vld [vmem:[%s2975_s1 + $0x48] sm:$0xff]   ;;  %v2329_v39 = vld [vmem:[%s2975_s1 + $0x40] sm:$0xff]   ;;  %v2503_v40 = vld [vmem:[%s2977_s3 + $0x50] sm:$0xff]  }
   0xb   :  { %2047 = vmatpush3.bf16.msra.mxu0 %v2310_v4  ;;  %v168_v24 = vrot.slane %v166_v21, 1  ;;  %v2510_v41 = vld [vmem:[%s2977_s3 + $0x48] sm:$0xff]   ;;  %v2517_v42 = vld [vmem:[%s2977_s3 + $0x40] sm:$0xff]   ;;  %v2524_v43 = vld [vmem:[%s2977_s3 + $0x18] sm:$0xff]  }
   0xc   :  { %2067 = vmatpush3.bf16.msra.mxu1 %v2311_v5  ;;  %2048 = vmatprep.subr.bf16.mxu0 %v2312_v6  ;;  %v164_v25 = vor.u32 %v163_v23, %v159_v18  ;;  %v2529_v44 = vld [vmem:[%s2977_s3 + $0x38] sm:$0xff]   ;;  %v2534_v45 = vld [vmem:[%s2977_s3 + $0x30] sm:$0xff]   ;;  %v2544_v46 = vld [vmem:[%s2977_s3 + $0x28] sm:$0xff]  }
   0xd   :  { %2068 = vmatprep.subr.bf16.mxu1 %v2313_v7  ;;  %v172_v33 = vor.u32 %v170_v29, %v168_v24  ;;  %v2551_v47 = vld [vmem:[%s2977_s3 + $0x20] sm:$0xff]   ;;  %v2336_v3 = vld [vmem:[%s2977_s3 + $0x10] sm:$0xff]   ;;  %v2338_v4 = vld [vmem:[%s2977_s3 + $0x8] sm:$0xff]  }
   0xe   :  { %v169_v28 = vsel %vm157_vm0, %v164_v25, %v168_v24  ;;  %v2559_v58 = vld [vmem:[%s2978_s2] ss:$0 sm:$0xff]  ;;  %v2342_v23 = vld [vmem:[%s2975_s1 + $0xb8] sm:$0xff]  }
   0xf   :  { %2049 = vmatpush3.bf16.msra.mxu0 %v2312_v6  ;;  %2078 = vmatprep.mubr.bf16.mxu1 %v169_v28  ;;  %v2340_v5 = vld [vmem:[%s2977_s3] sm:$0xff]  }
  0x10   :  { %2069 = vmatpush3.bf16.msra.mxu1 %v2313_v7  ;;  %2050 = vmatprep.subr.bf16.mxu0 %v2314_v8  ;;  %v1792_v25 = vld [vmem:[%s2976_s0 + $0x20] sm:$0xff] }
  0x11   :  { %2070 = vmatprep.subr.bf16.mxu1 %v2315_v9 }
  0x13   :  { %2051 = vmatpush3.bf16.msra.mxu0 %v2314_v8 }
  0x14   :  { %2071 = vmatpush3.bf16.msra.mxu1 %v2315_v9  ;;  %2052 = vmatprep.subr.bf16.mxu0 %v2316_v10 }
  0x15   :  { %2072 = vmatprep.subr.bf16.mxu1 %v2317_v11 }
  0x17   :  { %2053 = vmatpush3.bf16.msra.mxu0 %v2316_v10 }
  0x18   :  { %2073 = vmatpush3.bf16.msra.mxu1 %v2317_v11  ;;  %2054 = vmatprep.subr.bf16.mxu0 %v2318_v20 }
  0x19   :  { %2074 = vmatprep.subr.bf16.mxu1 %v2319_v22 }
  0x1b   :  { %2055 = vmatpush3.bf16.msra.mxu0 %v2318_v20 }
  0x1c   :  { %2075 = vmatpush3.bf16.msra.mxu1 %v2319_v22  ;;  %2056 = vmatprep.subr.bf16.mxu0 %v2320_v26 }
  0x1d   :  { %2076 = vmatprep.subr.bf16.mxu1 %v2321_v27 }
  0x1f   :  { %2057 = vmatpush3.bf16.msra.mxu0 %v2320_v26  ;;  %v1793_v26 = vld [vmem:[%s2976_s0 + $0x28] sm:$0xff] }
  0x20   :  { %2077 = vmatpush3.bf16.msra.mxu1 %v2321_v27  ;;  %2082 = vmatprep.subr.bf16.mxu0 %v2322_v30  ;;  %v864_v29 = vpack.c.bf16 %v1793_v26, %v1792_v25 }
  0x21   :  { %2102 = vmatprep.subr.bf16.mxu1 %v2475_v31 }
  0x22   :  { %2059 = vmatmul.mubr.bf16.vlgmr.msra.gmra.mxu0 %v26_v17 }
  0x23   :  { %2079 = vmatmul.mubr.bf16.vlgmr.msra.gmra.mxu1 %v172_v33  ;;  %2083 = vmatpush3.bf16.msra.mxu0 %v2322_v30  ;;  %v1794_v30 = vld [vmem:[%s2976_s0 + $0x30] sm:$0xff] }
  0x24   :  { %2084 = vmatprep.subr.bf16.mxu0 %v2323_v32  ;;  %2098 = vmatprep.mubr.bf16.mxu0 %v169_v28  ;;  %v2343_v28 = vld [vmem:[%s2975_s1 + $0xb0] sm:$0xff]  }
  0x25   :  { %2103 = vmatpush3.bf16.msra.mxu1 %v2475_v31 }
  0x26   :  { %2104 = vmatprep.subr.bf16.mxu1 %v2503_v40 }
  0x27   :  { %2085 = vmatpush3.bf16.msra.mxu0 %v2323_v32  ;;  %v998_v32 = vshll.u32 %v864_v29, 16 }
  0x28   :  { %2086 = vmatprep.subr.bf16.mxu0 %v2324_v34 }
  0x29   :  { %2105 = vmatpush3.bf16.msra.mxu1 %v2503_v40 }
  0x2a   :  { %2106 = vmatprep.subr.bf16.mxu1 %v2510_v41 }
  0x2b   :  { %2087 = vmatpush3.bf16.msra.mxu0 %v2324_v34 }
  0x2c   :  { %2088 = vmatprep.subr.bf16.mxu0 %v2325_v35 }
  0x2d   :  { %2107 = vmatpush3.bf16.msra.mxu1 %v2510_v41 }
  0x2e   :  { %2108 = vmatprep.subr.bf16.mxu1 %v2517_v42 }
  0x2f   :  { %2089 = vmatpush3.bf16.msra.mxu0 %v2325_v35  ;;  %v996_v35 = vshrl.u32 %v864_v29, 16 }
  0x30   :  { %2090 = vmatprep.subr.bf16.mxu0 %v2326_v36 }
  0x31   :  { %2109 = vmatpush3.bf16.msra.mxu1 %v2517_v42 }
  0x32   :  { %2114 = vmatprep.subr.bf16.mxu1 %v2524_v43 }
  0x33   :  { %2091 = vmatpush3.bf16.msra.mxu0 %v2326_v36  ;;  %v1000_v36 = vrot.slane %v998_v32, 1 }
  0x34   :  { %2092 = vmatprep.subr.bf16.mxu0 %v2327_v37 }
  0x37   :  { %2093 = vmatpush3.bf16.msra.mxu0 %v2327_v37 }
  0x38   :  { %2094 = vmatprep.subr.bf16.mxu0 %v2328_v38 }
  0x3b   :  { %2095 = vmatpush3.bf16.msra.mxu0 %v2328_v38  ;;  %v2345_v38 = vld [vmem:[%s2975_s1 + $0xa0] sm:$0xff]  }
  0x3c   :  { %2096 = vmatprep.subr.bf16.mxu0 %v2329_v39 }
  0x3f   :  { %2097 = vmatpush3.bf16.msra.mxu0 %v2329_v39  ;;  %v2347_v39 = vld [vmem:[%s2975_s1 + $0x38] sm:$0xff]  }
  0x40   :  { %2126 = vmatprep.subr.bf16.mxu0 %v2529_v44 }
  0x42   :  { %2099 = vmatmul.mubr.bf16.vlgmr.msra.gmra.mxu0 %v172_v33  ;;  %v2344_v33 = vld [vmem:[%s2975_s1 + $0xa8] sm:$0xff]  }
  0x43   :  { %2127 = vmatpush3.bf16.msra.mxu0 %v2529_v44 }
  0x44   :  { %2128 = vmatprep.subr.bf16.mxu0 %v2534_v45 }
  0x47   :  { %2129 = vmatpush3.bf16.msra.mxu0 %v2534_v45 }
  0x48   :  { %2130 = vmatprep.subr.bf16.mxu0 %v2544_v46 }
  0x4b   :  { %2131 = vmatpush3.bf16.msra.mxu0 %v2544_v46 }
  0x4c   :  { %2132 = vmatprep.subr.bf16.mxu0 %v2551_v47 }
  0x4f   :  { %2133 = vmatpush3.bf16.msra.mxu0 %v2551_v47 }
  0x50   :  { %2150 = vmatprep.subr.bf16.mxu0 %v2524_v43 }
  0xe2   :  { %v2060_v48 = vpop.f32.mrf.mxu0 }
  0xe3   :  { %v2080_v49 = vpop.f32.mrf.mxu1 }
  0xe4   :  { %v142_v50 = vpop.f32.mrf.mxu0  ;;  %v266_v57 = vadd.f32 %v2080_v49, %v2060_v48  ;;  %v2353_v48 = vld [vmem:[%s2975_s1 + $0x20] sm:$0xff]  }
  0xe5   :  { %v257_v51 = vpop.f32.mrf.mxu1  ;;  %v2352_v49 = vld [vmem:[%s2975_s1 + $0x80] sm:$0xff]  }
  0xe6   :  { %v2061_v52 = vpop.f32.mrf.mxu0  ;;  %v258_v54 = vadd.f32 %v257_v51, %v142_v50  ;;  %v281_v0 = vadd.f32 %v2559_v58, %v266_v57  ;;  %v2354_v50 = vld [vmem:[%s2975_s1 + $0x18] sm:$0xff]   ;;  %v2361_v57 = vld [vmem:[%s2975_s1 + $0x60] sm:$0xff]  }
  0xe7   :  { %v2081_v53 = vpop.f32.mrf.mxu1  ;;  %v2355_v51 = vld [vmem:[%s2975_s1 + $0x78] sm:$0xff]  }
  0xe8   :  { %v269_v55 = vadd.f32 %v2081_v53, %v2061_v52  ;;  %v145_v56 = vpop.f32.mrf.mxu0  ;;  %v279_v62 = vadd.f32 %v2559_v58, %v258_v54  ;;  %v2356_v52 = vld [vmem:[%s2975_s1 + $0x10] sm:$0xff]   ;;  %v2358_v54 = vld [vmem:[%s2975_s1 + $0x8] sm:$0xff]  }
  0xe9   :  { %v260_v59 = vpop.f32.mrf.mxu1  ;;  %v2357_v53 = vld [vmem:[%s2975_s1 + $0x70] sm:$0xff]  }
  0xea   :  { %v261_v60 = vadd.f32 %v260_v59, %v145_v56  ;;  %v282_v61 = vadd.f32 %v2559_v58, %v269_v55  ;;  %v2359_v55 = vld [vmem:[%s2975_s1 + $0x68] sm:$0xff]   ;;  %v2360_v56 = vld [vmem:[%s2975_s1] sm:$0xff]  }
  0xec   :  { %v280_v63 = vadd.f32 %v2559_v58, %v261_v60  ;;  %v398_v2 = vpack.c.bf16 %v282_v61, %v281_v0  ;;  %v2362_v60 = vld [vmem:[%s2975_s1 + $0x58] sm:$0xff]   ;;  %v2365_v0 = vld [vmem:[%s2975_s1 + $0x40] sm:$0xff]  }
  0xee   :  { %v397_v1 = vpack.c.bf16 %v280_v63, %v279_v62  ;;  %v725_v16 = vshll.u32 %v398_v2, 16  ;;  %v729_v24 = vshrl.u32 %v398_v2, 16  ;;  %v2363_v62 = vld [vmem:[%s2975_s1 + $0x50] sm:$0xff]   ;;  %v2364_v63 = vld [vmem:[%s2975_s1 + $0x48] sm:$0xff]  }
  0xf0   :  { %2110 = vmatprep.mubr.msk.bf16.mxu1 %vm442_vm1, %v397_v1  ;;  %v721_v7 = vshll.u32 %v397_v1, 16  ;;  %v719_v13 = vshrl.u32 %v397_v1, 16  ;;  %v727_v21 = vrot.slane %v725_v16, 1  ;;  %v2702_v1 = vld [vmem:[%s2977_s3 + $0x58] sm:$0xff]  }
  0xf1   :  { %2111 = vmatmul.mubr.msk.bf16.vlgmr.msra.gmra.mxu1 %vm442_vm1, %v398_v2  ;;  %v2709_v2 = vld [vmem:[%s2977_s3 + $0x50] sm:$0xff]  }
  0xf2   :  { %2115 = vmatpush3.bf16.msra.mxu1 %v2524_v43  ;;  %v723_v10 = vrot.slane %v721_v7, 1  ;;  %v731_v27 = vor.u32 %v729_v24, %v727_v21  ;;  %v2743_v7 = vld [vmem:[%s2977_s3 + $0x30] sm:$0xff]  }
  0xf3   :  { %2116 = vmatprep.subr.bf16.mxu1 %v2336_v3 }
  0xf4   :  { %v724_v19 = vor.u32 %v723_v10, %v719_v13 }
  0xf6   :  { %2117 = vmatpush3.bf16.msra.mxu1 %v2336_v3  ;;  %v728_v22 = vsel %vm157_vm0, %v724_v19, %v727_v21 }
  0xf7   :  { %2118 = vmatprep.subr.bf16.mxu1 %v2338_v4 }
  0xfa   :  { %2119 = vmatpush3.bf16.msra.mxu1 %v2338_v4 }
  0xfb   :  { %2120 = vmatprep.subr.bf16.mxu1 %v2340_v5 }
  0xfe   :  { %2121 = vmatpush3.bf16.msra.mxu1 %v2340_v5 }
  0xff   :  { %2138 = vmatprep.subr.bf16.mxu1 %v2475_v31 }
 0x102   :  { %v2100_v6 = vpop.f32.mrf.mxu0 }
 0x103   :  { %v391_v17 = vadd.f32 %v2100_v6, %v2559_v58  ;;  %v2736_v6 = vld [vmem:[%s2977_s3 + $0x18] sm:$0xff]  }
 0x104   :  { %v382_v8 = vpop.f32.mrf.mxu0 }
 0x105   :  { %v383_v14 = vadd.f32 %v2559_v58, %v382_v8  ;;  %v2750_v8 = vld [vmem:[%s2977_s3 + $0x28] sm:$0xff]  }
 0x106   :  { %v2101_v9 = vpop.f32.mrf.mxu0 }
 0x107   :  { %v394_v11 = vadd.f32 %v2101_v9, %v2559_v58  ;;  %v2757_v9 = vld [vmem:[%s2977_s3 + $0x20] sm:$0xff]  }
 0x108   :  { %v385_v12 = vpop.f32.mrf.mxu0 }
 0x109   :  { %v386_v15 = vadd.f32 %v2559_v58, %v385_v12  ;;  %v400_v20 = vpack.c.bf16 %v394_v11, %v391_v17 }
 0x10b   :  { %v399_v18 = vpack.c.bf16 %v386_v15, %v383_v14  ;;  %v2765_v14 = vld [vmem:[%s2979_s4] ss:$0 sm:$0xff] }
 0x10d   :  { %2122 = vmatprep.mubr.msk.bf16.mxu1 %vm442_vm1, %v399_v18  ;;  %2134 = vmatprep.mubr.msk.bf16.mxu0 %vm442_vm1, %v399_v18 }
 0x10e   :  { %2123 = vmatmul.mubr.msk.bf16.vlgmr.msra.gmra.mxu1 %vm442_vm1, %v400_v20  ;;  %2135 = vmatmul.mubr.msk.bf16.vlgmr.msra.gmra.mxu0 %vm442_vm1, %v400_v20 }
 0x10f   :  { %2139 = vmatpush3.bf16.msra.mxu1 %v2475_v31  ;;  %2151 = vmatpush3.bf16.msra.mxu0 %v2524_v43  ;;  %v1795_v31 = vld [vmem:[%s2976_s0 + $0x38] sm:$0xff]  ;;  %v2349_v43 = vld [vmem:[%s2975_s1 + $0x30] sm:$0xff]  }
 0x110   :  { %2146 = vmatprep.mubr.msk.bf16.mxu1 %vm442_vm1, %v399_v18  ;;  %2158 = vmatprep.mubr.msk.bf16.mxu0 %vm442_vm1, %v728_v22  ;;  %v2624_v34 = vpack.c.bf16 %v1795_v31, %v1794_v30 }
 0x111   :  { %2140 = vmatprep.subr.bf16.mxu1 %v2503_v40  ;;  %2152 = vmatprep.subr.bf16.mxu0 %v2336_v3 }
 0x112   :  { %v1003_v37 = vshll.u32 %v2624_v34, 16  ;;  %v1007_v59 = vshrl.u32 %v2624_v34, 16 }
 0x113   :  { %2141 = vmatpush3.bf16.msra.mxu1 %v2503_v40  ;;  %2153 = vmatpush3.bf16.msra.mxu0 %v2336_v3  ;;  %v1001_v40 = vor.u32 %v1000_v36, %v996_v35  ;;  %v2716_v3 = vld [vmem:[%s2977_s3 + $0x48] sm:$0xff]  }
 0x114   :  { %2142 = vmatprep.subr.bf16.mxu1 %v2510_v41  ;;  %2154 = vmatprep.subr.bf16.mxu0 %v2338_v4 }
 0x117   :  { %2143 = vmatpush3.bf16.msra.mxu1 %v2510_v41  ;;  %2155 = vmatpush3.bf16.msra.mxu0 %v2338_v4  ;;  %v1005_v41 = vrot.slane %v1003_v37, 1  ;;  %v2723_v4 = vld [vmem:[%s2977_s3 + $0x40] sm:$0xff]  }
 0x118   :  { %2144 = vmatprep.subr.bf16.mxu1 %v2517_v42  ;;  %2156 = vmatprep.subr.bf16.mxu0 %v2340_v5 }
 0x119   :  { %v1009_v61 = vor.u32 %v1007_v59, %v1005_v41 }
 0x11b   :  { %2145 = vmatpush3.bf16.msra.mxu1 %v2517_v42  ;;  %2157 = vmatpush3.bf16.msra.mxu0 %v2340_v5  ;;  %v2346_v42 = vld [vmem:[%s2975_s1 + $0x98] sm:$0xff]  }
 0x11c   :  { %2162 = vmatprep.subr.bf16.mxu1 %v2529_v44  ;;  %2174 = vmatprep.subr.bf16.mxu0 %v2342_v23  ;;  %v2729_v5 = vld [vmem:[%s2977_s3 + $0x38] sm:$0xff]  }
 0x11e   :  { %2147 = vmatmul.mubr.msk.bf16.vlgmr.msra.gmra.mxu1 %vm442_vm1, %v400_v20  ;;  %2159 = vmatmul.mubr.msk.bf16.vlgmr.msra.gmra.mxu0 %vm442_vm1, %v731_v27 }
 0x11f   :  { %2163 = vmatpush3.bf16.msra.mxu1 %v2529_v44  ;;  %2170 = vmatprep.mubr.msk.bf16.mxu1 %vm442_vm1, %v728_v22  ;;  %v1006_v44 = vsel %vm157_vm0, %v1001_v40, %v1005_v41 }
 0x120   :  { %2175 = vmatpush3.bf16.msra.mxu0 %v2342_v23  ;;  %2164 = vmatprep.subr.bf16.mxu1 %v2534_v45 }
 0x121   :  { %2176 = vmatprep.subr.bf16.mxu0 %v2343_v28  ;;  %2190 = vmatprep.mubr.bf16.mxu0 %v864_v29 }
 0x123   :  { %2165 = vmatpush3.bf16.msra.mxu1 %v2534_v45  ;;  %v2348_v45 = vld [vmem:[%s2975_s1 + $0x90] sm:$0xff]  }
 0x124   :  { %2177 = vmatpush3.bf16.msra.mxu0 %v2343_v28  ;;  %2166 = vmatprep.subr.bf16.mxu1 %v2544_v46 }
 0x125   :  { %2178 = vmatprep.subr.bf16.mxu0 %v2344_v33 }
 0x127   :  { %2167 = vmatpush3.bf16.msra.mxu1 %v2544_v46  ;;  %v2351_v46 = vld [vmem:[%s2975_s1 + $0x28] sm:$0xff]  }
 0x128   :  { %2179 = vmatpush3.bf16.msra.mxu0 %v2344_v33  ;;  %2168 = vmatprep.subr.bf16.mxu1 %v2551_v47 }
 0x129   :  { %2180 = vmatprep.subr.bf16.mxu0 %v2345_v38 }
 0x12b   :  { %2169 = vmatpush3.bf16.msra.mxu1 %v2551_v47  ;;  %v2350_v47 = vld [vmem:[%s2975_s1 + $0x88] sm:$0xff]  }
 0x12c   :  { %2181 = vmatpush3.bf16.msra.mxu0 %v2345_v38  ;;  %2194 = vmatprep.subr.bf16.mxu1 %v2347_v39 }
 0x12d   :  { %2182 = vmatprep.subr.bf16.mxu0 %v2346_v42 }
 0x12e   :  { %2171 = vmatmul.mubr.msk.bf16.vlgmr.msra.gmra.mxu1 %vm442_vm1, %v731_v27 }
 0x12f   :  { %2195 = vmatpush3.bf16.msra.mxu1 %v2347_v39  ;;  %2210 = vmatprep.mubr.bf16.mxu1 %v1006_v44 }
 0x130   :  { %2183 = vmatpush3.bf16.msra.mxu0 %v2346_v42  ;;  %2196 = vmatprep.subr.bf16.mxu1 %v2349_v43 }
 0x131   :  { %2184 = vmatprep.subr.bf16.mxu0 %v2348_v45 }
 0x133   :  { %2197 = vmatpush3.bf16.msra.mxu1 %v2349_v43 }
 0x134   :  { %2185 = vmatpush3.bf16.msra.mxu0 %v2348_v45  ;;  %2198 = vmatprep.subr.bf16.mxu1 %v2351_v46 }
 0x135   :  { %2186 = vmatprep.subr.bf16.mxu0 %v2350_v47 }
 0x137   :  { %2199 = vmatpush3.bf16.msra.mxu1 %v2351_v46 }
 0x138   :  { %2187 = vmatpush3.bf16.msra.mxu0 %v2350_v47  ;;  %2200 = vmatprep.subr.bf16.mxu1 %v2353_v48 }
 0x139   :  { %2188 = vmatprep.subr.bf16.mxu0 %v2352_v49 }
 0x13b   :  { %2201 = vmatpush3.bf16.msra.mxu1 %v2353_v48 }
 0x13c   :  { %2189 = vmatpush3.bf16.msra.mxu0 %v2352_v49  ;;  %2202 = vmatprep.subr.bf16.mxu1 %v2354_v50 }
 0x13d   :  { %2214 = vmatprep.subr.bf16.mxu0 %v2355_v51 }
 0x13f   :  { %2191 = vmatmul.mubr.bf16.vlgmr.msra.gmra.mxu0 %v2624_v34  ;;  %2203 = vmatpush3.bf16.msra.mxu1 %v2354_v50 }
 0x140   :  { %2215 = vmatpush3.bf16.msra.mxu0 %v2355_v51  ;;  %2204 = vmatprep.subr.bf16.mxu1 %v2356_v52 }
 0x141   :  { %2216 = vmatprep.subr.bf16.mxu0 %v2357_v53  ;;  %2230 = vmatprep.mubr.bf16.mxu0 %v1006_v44 }
 0x143   :  { %2205 = vmatpush3.bf16.msra.mxu1 %v2356_v52 }
 0x144   :  { %2217 = vmatpush3.bf16.msra.mxu0 %v2357_v53  ;;  %2206 = vmatprep.subr.bf16.mxu1 %v2358_v54 }
 0x145   :  { %2218 = vmatprep.subr.bf16.mxu0 %v2359_v55 }
 0x147   :  { %2207 = vmatpush3.bf16.msra.mxu1 %v2358_v54 }
 0x148   :  { %2219 = vmatpush3.bf16.msra.mxu0 %v2359_v55  ;;  %2208 = vmatprep.subr.bf16.mxu1 %v2360_v56 }
 0x149   :  { %2220 = vmatprep.subr.bf16.mxu0 %v2361_v57 }
 0x14b   :  { %2209 = vmatpush3.bf16.msra.mxu1 %v2360_v56 }
 0x14c   :  { %2221 = vmatpush3.bf16.msra.mxu0 %v2361_v57  ;;  %2234 = vmatprep.subr.bf16.mxu1 %v2702_v1 }
 0x14d   :  { %2222 = vmatprep.subr.bf16.mxu0 %v2362_v60 }
 0x14e   :  { %2211 = vmatmul.mubr.bf16.vlgmr.msra.gmra.mxu1 %v1009_v61 }
 0x14f   :  { %2235 = vmatpush3.bf16.msra.mxu1 %v2702_v1 }
 0x150   :  { %2223 = vmatpush3.bf16.msra.mxu0 %v2362_v60  ;;  %2236 = vmatprep.subr.bf16.mxu1 %v2709_v2 }
 0x151   :  { %2224 = vmatprep.subr.bf16.mxu0 %v2363_v62 }
 0x153   :  { %2237 = vmatpush3.bf16.msra.mxu1 %v2709_v2 }
 0x154   :  { %2225 = vmatpush3.bf16.msra.mxu0 %v2363_v62  ;;  %2238 = vmatprep.subr.bf16.mxu1 %v2716_v3 }
 0x155   :  { %2226 = vmatprep.subr.bf16.mxu0 %v2364_v63 }
 0x157   :  { %2239 = vmatpush3.bf16.msra.mxu1 %v2716_v3 }
 0x158   :  { %2227 = vmatpush3.bf16.msra.mxu0 %v2364_v63  ;;  %2240 = vmatprep.subr.bf16.mxu1 %v2723_v4 }
 0x159   :  { %2228 = vmatprep.subr.bf16.mxu0 %v2365_v0 }
 0x15b   :  { %2241 = vmatpush3.bf16.msra.mxu1 %v2723_v4 }
 0x15c   :  { %2229 = vmatpush3.bf16.msra.mxu0 %v2365_v0  ;;  %2246 = vmatprep.subr.bf16.mxu1 %v2736_v6 }
 0x15d   :  { %2258 = vmatprep.subr.bf16.mxu0 %v2729_v5 }
 0x15f   :  { %2231 = vmatmul.mubr.bf16.vlgmr.msra.gmra.mxu0 %v1009_v61 }
 0x160   :  { %2259 = vmatpush3.bf16.msra.mxu0 %v2729_v5 }
 0x161   :  { %2260 = vmatprep.subr.bf16.mxu0 %v2743_v7 }
 0x164   :  { %2261 = vmatpush3.bf16.msra.mxu0 %v2743_v7 }
 0x165   :  { %2262 = vmatprep.subr.bf16.mxu0 %v2750_v8 }
 0x168   :  { %2263 = vmatpush3.bf16.msra.mxu0 %v2750_v8 }
 0x169   :  { %2264 = vmatprep.subr.bf16.mxu0 %v2757_v9 }
 0x16c   :  { %2265 = vmatpush3.bf16.msra.mxu0 %v2757_v9 }
 0x16d   :  { %2282 = vmatprep.subr.bf16.mxu0 %v2736_v6 }
 0x1b1   :  { %v2112_v10 = vpop.f32.mrf.mxu1 }
 0x1b3   :  { %v483_v11 = vpop.f32.mrf.mxu1 }
 0x1b5   :  { %v2113_v12 = vpop.f32.mrf.mxu1 }
 0x1b7   :  { %v486_v13 = vpop.f32.mrf.mxu1 }
 0x1ce   :  { %v2124_v15 = vpop.f32.mrf.mxu1  ;;  %v2136_v16 = vpop.f32.mrf.mxu0 }
 0x1cf   :  { %v571_v17 = vadd.f32 %v2124_v15, %v2112_v10  ;;  %v664_v18 = vadd.f32 %v2136_v16, %v2765_v14 }
 0x1d0   :  { %v562_v19 = vpop.f32.mrf.mxu1  ;;  %v655_v20 = vpop.f32.mrf.mxu0 }
 0x1d1   :  { %v586_v21 = vadd.f32 %v2765_v14, %v571_v17  ;;  %848 = vst.msk [vmem:[%s2980_s5 + $0x2e] sm:$0xff] %vm840_vm2, %v664_v18  ;;  %v563_v22 = vadd.f32 %v562_v19, %v483_v11  ;;  %v656_v23 = vadd.f32 %v2765_v14, %v655_v20 }
 0x1d2   :  { %v2125_v24 = vpop.f32.mrf.mxu1  ;;  %v2137_v25 = vpop.f32.mrf.mxu0 }
 0x1d3   :  { %843 = vst.msk [vmem:[%s2980_s5 + $0x10] sm:$0xff] %vm840_vm2, %v586_v21  ;;  %v584_v26 = vadd.f32 %v2765_v14, %v563_v22  ;;  %846 = vst.msk [vmem:[%s2980_s5 + $0x1e] sm:$0xff] %vm840_vm2, %v656_v23  ;;  %v574_v27 = vadd.f32 %v2125_v24, %v2113_v12  ;;  %v667_v28 = vadd.f32 %v2137_v25, %v2765_v14  ;;  %v2373_v24 = vld [vmem:[%s2977_s3 + $0x10] sm:$0xff]   ;;  %v2375_v25 = vld [vmem:[%s2977_s3 + $0x8] sm:$0xff]  }
 0x1d4   :  { %v565_v29 = vpop.f32.mrf.mxu1  ;;  %v658_v30 = vpop.f32.mrf.mxu0 }
 0x1d5   :  { %841 = vst.msk [vmem:[%s2980_s5] sm:$0xff] %vm840_vm2, %v584_v26  ;;  %v587_v31 = vadd.f32 %v2765_v14, %v574_v27  ;;  %v566_v32 = vadd.f32 %v565_v29, %v486_v13  ;;  %v659_v33 = vadd.f32 %v2765_v14, %v658_v30  ;;  %v2377_v29 = vld [vmem:[%s2977_s3] sm:$0xff]  }
 0x1d6   :  { %849 = vst.msk [vmem:[%s2980_s5 + $0x36] sm:$0x3f] %vm844_vm3, %v667_v28 }
 0x1d7   :  { %845 = vst.msk [vmem:[%s2980_s5 + $0x18] sm:$0x3f] %vm844_vm3, %v587_v31  ;;  %v585_v34 = vadd.f32 %v2765_v14, %v566_v32 }
 0x1d8   :  { %847 = vst.msk [vmem:[%s2980_s5 + $0x26] sm:$0xff] %vm840_vm2, %v659_v33 }
 0x1d9   :  { %842 = vst.msk [vmem:[%s2980_s5 + $0x8] sm:$0xff] %vm840_vm2, %v585_v34 }
 0x1de   :  { %v2148_v35 = vpop.f32.mrf.mxu1  ;;  %v2160_v36 = vpop.f32.mrf.mxu0 }
 0x1df   :  { %v781_v37 = vadd.f32 %v2160_v36, %v2148_v35 }
 0x1e0   :  { %v704_v38 = vpop.f32.mrf.mxu1  ;;  %v772_v39 = vpop.f32.mrf.mxu0 }
 0x1e1   :  { %v789_v40 = vadd.f32 %v2765_v14, %v781_v37  ;;  %v773_v41 = vadd.f32 %v772_v39, %v704_v38 }
 0x1e2   :  { %v2149_v42 = vpop.f32.mrf.mxu1  ;;  %v2161_v43 = vpop.f32.mrf.mxu0 }
 0x1e3   :  { %852 = vst.msk [vmem:[%s2980_s5 + $0x4c] sm:$0xff] %vm840_vm2, %v789_v40  ;;  %v787_v44 = vadd.f32 %v2765_v14, %v773_v41  ;;  %v784_v45 = vadd.f32 %v2161_v43, %v2149_v42 }
 0x1e4   :  { %v707_v46 = vpop.f32.mrf.mxu1  ;;  %v775_v47 = vpop.f32.mrf.mxu0 }
 0x1e5   :  { %850 = vst.msk [vmem:[%s2980_s5 + $0x3c] sm:$0xff] %vm840_vm2, %v787_v44  ;;  %v790_v48 = vadd.f32 %v2765_v14, %v784_v45  ;;  %v776_v49 = vadd.f32 %v775_v47, %v707_v46 }
 0x1e7   :  { %853 = vst.msk [vmem:[%s2980_s5 + $0x54] sm:$0x3f] %vm844_vm3, %v790_v48  ;;  %v788_v50 = vadd.f32 %v2765_v14, %v776_v49 }
 0x1e9   :  { %851 = vst.msk [vmem:[%s2980_s5 + $0x44] sm:$0xff] %vm840_vm2, %v788_v50 }
 0x1ee   :  { %v2172_v51 = vpop.f32.mrf.mxu1 }
 0x1ef   :  { %v834_v52 = vadd.f32 %v2172_v51, %v2765_v14 }
 0x1f0   :  { %v825_v53 = vpop.f32.mrf.mxu1 }
 0x1f1   :  { %856 = vst.msk [vmem:[%s2980_s5 + $0x6a] sm:$0xff] %vm840_vm2, %v834_v52  ;;  %v826_v54 = vadd.f32 %v2765_v14, %v825_v53 }
 0x1f2   :  { %v2173_v55 = vpop.f32.mrf.mxu1 }
 0x1f3   :  { %854 = vst.msk [vmem:[%s2980_s5 + $0x5a] sm:$0xff] %vm840_vm2, %v826_v54  ;;  %v837_v56 = vadd.f32 %v2173_v55, %v2765_v14 }
 0x1f4   :  { %v828_v57 = vpop.f32.mrf.mxu1 }
 0x1f5   :  { %858 = vst.msk [vmem:[%s2980_s5 + $0x72] sm:$0x1f] %vm857_vm4, %v837_v56  ;;  %v829_v59 = vadd.f32 %v2765_v14, %v828_v57 }
 0x1f7   :  { %855 = vst.msk [vmem:[%s2980_s5 + $0x62] sm:$0xff] %vm840_vm2, %v829_v59 }
 0x1ff   :  { %v2192_v60 = vpop.f32.mrf.mxu0 }
 0x201   :  { %v980_v61 = vpop.f32.mrf.mxu0 }
 0x203   :  { %v2193_v63 = vpop.f32.mrf.mxu0 }
 0x205   :  { %v983_v13 = vpop.f32.mrf.mxu0 }
 0x20e   :  { %v2212_v62 = vpop.f32.mrf.mxu1 }
 0x20f   :  { %v1103_v15 = vadd.f32 %v2212_v62, %v2192_v60 }
 0x210   :  { %v1094_v0 = vpop.f32.mrf.mxu1 }
 0x211   :  { %v1095_v11 = vadd.f32 %v1094_v0, %v980_v61  ;;  %v1118_v21 = vadd.f32 %v2559_v58, %v1103_v15 }
 0x212   :  { %v2213_v10 = vpop.f32.mrf.mxu1 }
 0x213   :  { %v1106_v12 = vadd.f32 %v2213_v10, %v2193_v63  ;;  %v1116_v19 = vadd.f32 %v2559_v58, %v1095_v11 }
 0x214   :  { %v1097_v16 = vpop.f32.mrf.mxu1 }
 0x215   :  { %v1098_v17 = vadd.f32 %v1097_v16, %v983_v13  ;;  %v1119_v18 = vadd.f32 %v2559_v58, %v1106_v12 }
 0x217   :  { %v1117_v20 = vadd.f32 %v2559_v58, %v1098_v17  ;;  %v1234_v23 = vpack.c.bf16 %v1119_v18, %v1118_v21 }
 0x219   :  { %v1233_v22 = vpack.c.bf16 %v1117_v20, %v1116_v19  ;;  %v1558_v37 = vshll.u32 %v1234_v23, 16 }
 0x21b   :  { %2242 = vmatprep.mubr.msk.bf16.mxu1 %vm442_vm1, %v1233_v22  ;;  %v1554_v27 = vshll.u32 %v1233_v22, 16  ;;  %v1552_v34 = vshrl.u32 %v1233_v22, 16  ;;  %v1560_v42 = vrot.slane %v1558_v37, 1 }
 0x21c   :  { %2243 = vmatmul.mubr.msk.bf16.vlgmr.msra.gmra.mxu1 %vm442_vm1, %v1234_v23 }
 0x21d   :  { %2247 = vmatpush3.bf16.msra.mxu1 %v2736_v6  ;;  %v1556_v31 = vrot.slane %v1554_v27, 1 }
 0x21e   :  { %2248 = vmatprep.subr.bf16.mxu1 %v2373_v24 }
 0x21f   :  { %v2232_v26 = vpop.f32.mrf.mxu0  ;;  %v1557_v40 = vor.u32 %v1556_v31, %v1552_v34 }
 0x220   :  { %v1227_v38 = vadd.f32 %v2232_v26, %v2559_v58 }
 0x221   :  { %v1218_v28 = vpop.f32.mrf.mxu0  ;;  %2249 = vmatpush3.bf16.msra.mxu1 %v2373_v24  ;;  %v1561_v43 = vsel %vm157_vm0, %v1557_v40, %v1560_v42 }
 0x222   :  { %2250 = vmatprep.subr.bf16.mxu1 %v2375_v25  ;;  %v1219_v35 = vadd.f32 %v2559_v58, %v1218_v28 }
 0x223   :  { %v2233_v30 = vpop.f32.mrf.mxu0 }
 0x224   :  { %v1230_v32 = vadd.f32 %v2233_v30, %v2559_v58 }
 0x225   :  { %v1221_v33 = vpop.f32.mrf.mxu0  ;;  %2251 = vmatpush3.bf16.msra.mxu1 %v2375_v25 }
 0x226   :  { %v1222_v36 = vadd.f32 %v2559_v58, %v1221_v33  ;;  %2252 = vmatprep.subr.bf16.mxu1 %v2377_v29  ;;  %v1236_v41 = vpack.c.bf16 %v1230_v32, %v1227_v38  ;;  %v1562_v58 = vshrl.u32 %v1234_v23, 16 }
 0x228   :  { %v1235_v39 = vpack.c.bf16 %v1222_v36, %v1219_v35 }
 0x229   :  { %2253 = vmatpush3.bf16.msra.mxu1 %v2377_v29 }
 0x22a   :  { %2254 = vmatprep.mubr.msk.bf16.mxu1 %vm442_vm1, %v1235_v39  ;;  %2266 = vmatprep.mubr.msk.bf16.mxu0 %vm442_vm1, %v1235_v39 }
 0x22b   :  { %2267 = vmatmul.mubr.msk.bf16.vlgmr.msra.gmra.mxu0 %vm442_vm1, %v1236_v41  ;;  %2270 = vmatprep.subr.bf16.mxu1 %v2702_v1 }
 0x22c   :  { %2283 = vmatpush3.bf16.msra.mxu0 %v2736_v6  ;;  %2255 = vmatmul.mubr.msk.bf16.vlgmr.msra.gmra.mxu1 %vm442_vm1, %v1236_v41 }
 0x22d   :  { %2290 = vmatprep.mubr.msk.bf16.mxu0 %vm442_vm1, %v1561_v43  ;;  %2271 = vmatpush3.bf16.msra.mxu1 %v2702_v1  ;;  %v1564_v1 = vor.u32 %v1562_v58, %v1560_v42 }
 0x22e   :  { %2278 = vmatprep.mubr.msk.bf16.mxu1 %vm442_vm1, %v1235_v39  ;;  %2284 = vmatprep.subr.bf16.mxu0 %v2373_v24 }
 0x22f   :  { %2272 = vmatprep.subr.bf16.mxu1 %v2709_v2 }
 0x230   :  { %2285 = vmatpush3.bf16.msra.mxu0 %v2373_v24 }
 0x231   :  { %2273 = vmatpush3.bf16.msra.mxu1 %v2709_v2  ;;  %2286 = vmatprep.subr.bf16.mxu0 %v2375_v25 }
 0x232   :  { %2274 = vmatprep.subr.bf16.mxu1 %v2716_v3 }
 0x234   :  { %2287 = vmatpush3.bf16.msra.mxu0 %v2375_v25 }
 0x235   :  { %2275 = vmatpush3.bf16.msra.mxu1 %v2716_v3  ;;  %2288 = vmatprep.subr.bf16.mxu0 %v2377_v29 }
 0x236   :  { %2276 = vmatprep.subr.bf16.mxu1 %v2723_v4 }
 0x238   :  { %2289 = vmatpush3.bf16.msra.mxu0 %v2377_v29 }
 0x239   :  { %2277 = vmatpush3.bf16.msra.mxu1 %v2723_v4 }
 0x23a   :  { %2294 = vmatprep.subr.bf16.mxu1 %v2729_v5 }
 0x23b   :  { %2291 = vmatmul.mubr.msk.bf16.vlgmr.msra.gmra.mxu0 %vm442_vm1, %v1564_v1 }
 0x23c   :  { %2279 = vmatmul.mubr.msk.bf16.vlgmr.msra.gmra.mxu1 %vm442_vm1, %v1236_v41 }
 0x23d   :  { %2295 = vmatpush3.bf16.msra.mxu1 %v2729_v5  ;;  %2302 = vmatprep.mubr.msk.bf16.mxu1 %vm442_vm1, %v1561_v43 }
 0x23e   :  { %2296 = vmatprep.subr.bf16.mxu1 %v2743_v7 }
 0x241   :  { %2297 = vmatpush3.bf16.msra.mxu1 %v2743_v7 }
 0x242   :  { %2298 = vmatprep.subr.bf16.mxu1 %v2750_v8 }
 0x245   :  { %2299 = vmatpush3.bf16.msra.mxu1 %v2750_v8 }
 0x246   :  { %2300 = vmatprep.subr.bf16.mxu1 %v2757_v9 }
 0x249   :  { %2301 = vmatpush3.bf16.msra.mxu1 %v2757_v9 }
 0x24c   :  { %2303 = vmatmul.mubr.msk.bf16.vlgmr.msra.gmra.mxu1 %vm442_vm1, %v1564_v1 }
 0x2dc   :  { %v2244_v2 = vpop.f32.mrf.mxu1 }
 0x2de   :  { %v1317_v3 = vpop.f32.mrf.mxu1 }
 0x2e0   :  { %v2245_v4 = vpop.f32.mrf.mxu1 }
 0x2e2   :  { %v1320_v5 = vpop.f32.mrf.mxu1 }
 0x2eb   :  { %v2268_v6 = vpop.f32.mrf.mxu0 }
 0x2ec   :  { %v1497_v44 = vadd.f32 %v2268_v6, %v2765_v14  ;;  %v2256_v45 = vpop.f32.mrf.mxu1 }
 0x2ed   :  { %v1405_v46 = vadd.f32 %v2256_v45, %v2244_v2  ;;  %v1488_v7 = vpop.f32.mrf.mxu0 }
 0x2ee   :  { %1900 = vst.msk [vmem:[%s2980_s5 + $0xa6] sm:$0xff] %vm840_vm2, %v1497_v44  ;;  %v1489_v8 = vadd.f32 %v2765_v14, %v1488_v7  ;;  %v1396_v9 = vpop.f32.mrf.mxu1 }
 0x2ef   :  { %v1420_v47 = vadd.f32 %v2765_v14, %v1405_v46  ;;  %v1397_v48 = vadd.f32 %v1396_v9, %v1317_v3  ;;  %v2269_v49 = vpop.f32.mrf.mxu0 }
 0x2f0   :  { %1898 = vst.msk [vmem:[%s2980_s5 + $0x96] sm:$0xff] %vm840_vm2, %v1489_v8  ;;  %v1500_v50 = vadd.f32 %v2269_v49, %v2765_v14  ;;  %v2257_v51 = vpop.f32.mrf.mxu1 }
 0x2f1   :  { %1896 = vst.msk [vmem:[%s2980_s5 + $0x88] sm:$0xff] %vm840_vm2, %v1420_v47  ;;  %v1418_v52 = vadd.f32 %v2765_v14, %v1397_v48  ;;  %v1408_v53 = vadd.f32 %v2257_v51, %v2245_v4  ;;  %v1491_v54 = vpop.f32.mrf.mxu0 }
 0x2f2   :  { %1901 = vst.msk [vmem:[%s2980_s5 + $0xae] sm:$0x3f] %vm844_vm3, %v1500_v50  ;;  %v1492_v55 = vadd.f32 %v2765_v14, %v1491_v54  ;;  %v1399_v56 = vpop.f32.mrf.mxu1 }
 0x2f3   :  { %1894 = vst.msk [vmem:[%s2980_s5 + $0x78] sm:$0xff] %vm840_vm2, %v1418_v52  ;;  %v1421_v57 = vadd.f32 %v2765_v14, %v1408_v53  ;;  %v1400_v59 = vadd.f32 %v1399_v56, %v1320_v5 }
 0x2f4   :  { %1899 = vst.msk [vmem:[%s2980_s5 + $0x9e] sm:$0xff] %vm840_vm2, %v1492_v55 }
 0x2f5   :  { %1897 = vst.msk [vmem:[%s2980_s5 + $0x90] sm:$0x3f] %vm844_vm3, %v1421_v57  ;;  %v1419_v60 = vadd.f32 %v2765_v14, %v1400_v59 }
 0x2f7   :  { %1895 = vst.msk [vmem:[%s2980_s5 + $0x80] sm:$0xff] %vm840_vm2, %v1419_v60 }
 0x2fb   :  { %v2292_v61 = vpop.f32.mrf.mxu0 }
 0x2fc   :  { %v2280_v62 = vpop.f32.mrf.mxu1 }
 0x2fd   :  { %v1614_v63 = vadd.f32 %v2292_v61, %v2280_v62  ;;  %v1605_v0 = vpop.f32.mrf.mxu0 }
 0x2fe   :  { %v1537_v10 = vpop.f32.mrf.mxu1 }
 0x2ff   :  { %v1622_v11 = vadd.f32 %v2765_v14, %v1614_v63  ;;  %v1606_v12 = vadd.f32 %v1605_v0, %v1537_v10  ;;  %v2293_v13 = vpop.f32.mrf.mxu0 }
 0x300   :  { %v2281_v15 = vpop.f32.mrf.mxu1 }
 0x301   :  { %1904 = vst.msk [vmem:[%s2980_s5 + $0xc4] sm:$0xff] %vm840_vm2, %v1622_v11  ;;  %v1620_v16 = vadd.f32 %v2765_v14, %v1606_v12  ;;  %v1617_v17 = vadd.f32 %v2293_v13, %v2281_v15  ;;  %v1608_v18 = vpop.f32.mrf.mxu0 }
 0x302   :  { %v1540_v19 = vpop.f32.mrf.mxu1 }
 0x303   :  { %1902 = vst.msk [vmem:[%s2980_s5 + $0xb4] sm:$0xff] %vm840_vm2, %v1620_v16  ;;  %v1623_v20 = vadd.f32 %v2765_v14, %v1617_v17  ;;  %v1609_v21 = vadd.f32 %v1608_v18, %v1540_v19 }
 0x305   :  { %1905 = vst.msk [vmem:[%s2980_s5 + $0xcc] sm:$0x3f] %vm844_vm3, %v1623_v20  ;;  %v1621_v22 = vadd.f32 %v2765_v14, %v1609_v21 }
 0x307   :  { %1903 = vst.msk [vmem:[%s2980_s5 + $0xbc] sm:$0xff] %vm840_vm2, %v1621_v22 }
 0x30c   :  { %v2304_v23 = vpop.f32.mrf.mxu1 }
 0x30d   :  { %v1667_v24 = vadd.f32 %v2304_v23, %v2765_v14 }
 0x30e   :  { %v1658_v25 = vpop.f32.mrf.mxu1 }
 0x30f   :  { %1908 = vst.msk [vmem:[%s2980_s5 + $0xe2] sm:$0xff] %vm840_vm2, %v1667_v24  ;;  %v1659_v26 = vadd.f32 %v2765_v14, %v1658_v25 }
 0x310   :  { %v2305_v27 = vpop.f32.mrf.mxu1 }
 0x311   :  { %1906 = vst.msk [vmem:[%s2980_s5 + $0xd2] sm:$0xff] %vm840_vm2, %v1659_v26  ;;  %v1670_v28 = vadd.f32 %v2305_v27, %v2765_v14 }
 0x312   :  { %v1661_v29 = vpop.f32.mrf.mxu1 }
 0x313   :  { %1909 = vst.msk [vmem:[%s2980_s5 + $0xea] sm:$0x1f] %vm857_vm4, %v1670_v28  ;;  %v1662_v30 = vadd.f32 %v2765_v14, %v1661_v29 }
 0x315   :  { %1907 = vst.msk [vmem:[%s2980_s5 + $0xda] sm:$0xff] %vm840_vm2, %v1662_v30 }

// kernel: mmvae_forward.7
= control target key start
LH: loop header
LB: loop body
LE: loop exit
PB: predicated region body
PF: predicated region fallthrough
CT: control target
= control target key end

     0   :  { %v4926_v35 = vmov 1983009808   ;;  %v35_v37 = vlaneseq  ;;  %vm3086_vm0 = vcmask 785408   ;;  %vm3718_vm1 = vcmask 1041408   ;;  %s6523_s1 = inlined_call_operand.vmem [shape: bf16[3808,241], index: 1, kind: input, shape index: {}]   ;;  %s6524_s0 = inlined_call_operand.vmem [shape: f32[2,3808], index: 0, kind: input, shape index: {}]   ;;  %s6525_s2 = inlined_call_operand.vmem [shape: f32[1,241], index: 2, kind: input, shape index: {}]   ;;  %s6526_s3 = inlined_call_operand.vmem [shape: f32[2,241], index: 3, kind: output, shape index: {}]  }
   0x1   :  { %v4205_v0 = vld [vmem:[%s6523_s1 + $0x74] ss:$8 sps:$4 sm:$0xff]   ;;  %v4207_v1 = vld [vmem:[%s6523_s1 + $0x70] ss:$8 sps:$4 sm:$0xff]   ;;  %v4211_v4 = vld [vmem:[%s6523_s1 + $0x64] ss:$8 sps:$4 sm:$0xff]   ;;  %v33_v36 = vunpack.c.l.s4 %v4926_v35 }
   0x2   :  { %3090 = vmatprep.subr.bf16.mxu0 %v4205_v0  ;;  %v4208_v2 = vld [vmem:[%s6523_s1 + $0x174] ss:$8 sps:$4 sm:$0xff]   ;;  %v4210_v3 = vld [vmem:[%s6523_s1 + $0x170] ss:$8 sps:$4 sm:$0xff]   ;;  %v4213_v5 = vld [vmem:[%s6523_s1 + $0x60] ss:$8 sps:$4 sm:$0xff]  }
   0x3   :  { %3091 = vmatpush1.bf16.msra.mxu0 %v4207_v1  ;;  %3131 = vmatprep.subr.bf16.mxu1 %v4208_v2  ;;  %v4214_v6 = vld [vmem:[%s6523_s1 + $0x164] ss:$8 sps:$4 sm:$0xff]   ;;  %v4216_v7 = vld [vmem:[%s6523_s1 + $0x160] ss:$8 sps:$4 sm:$0xff]   ;;  %v4217_v8 = vld [vmem:[%s6523_s1 + $0x54] ss:$8 sps:$4 sm:$0xff]   ;;  %v34_v42 = vunpack.c.0.s8 %v33_v36 }
   0x4   :  { %3132 = vmatpush1.bf16.msra.mxu1 %v4210_v3  ;;  %3092 = vmatprep.subr.bf16.mxu0 %v4211_v4  ;;  %v4219_v9 = vld [vmem:[%s6523_s1 + $0x50] ss:$8 sps:$4 sm:$0xff]   ;;  %v4220_v10 = vld [vmem:[%s6523_s1 + $0x154] ss:$8 sps:$4 sm:$0xff]   ;;  %v4223_v11 = vld [vmem:[%s6523_s1 + $0x44] ss:$8 sps:$4 sm:$0xff]  }
   0x5   :  { %3133 = vmatprep.subr.bf16.mxu1 %v4214_v6  ;;  %v4222_v12 = vld [vmem:[%s6523_s1 + $0x150] ss:$8 sps:$4 sm:$0xff]   ;;  %v4226_v13 = vld [vmem:[%s6523_s1 + $0x144] ss:$8 sps:$4 sm:$0xff]   ;;  %v4225_v14 = vld [vmem:[%s6523_s1 + $0x40] ss:$8 sps:$4 sm:$0xff]  }
   0x6   :  { %v4229_v15 = vld [vmem:[%s6523_s1 + $0x34] ss:$8 sps:$4 sm:$0xff]   ;;  %v4228_v16 = vld [vmem:[%s6523_s1 + $0x140] ss:$8 sps:$4 sm:$0xff]   ;;  %v4231_v18 = vld [vmem:[%s6523_s1 + $0x30] ss:$8 sps:$4 sm:$0xff]  }
   0x7   :  { %3093 = vmatpush1.bf16.msra.mxu0 %v4213_v5  ;;  %v4232_v17 = vld [vmem:[%s6523_s1 + $0x134] ss:$8 sps:$4 sm:$0xff]   ;;  %v4235_v19 = vld [vmem:[%s6523_s1 + $0x24] ss:$8 sps:$4 sm:$0xff]   ;;  %v4234_v20 = vld [vmem:[%s6523_s1 + $0x130] ss:$8 sps:$4 sm:$0xff]  }
   0x8   :  { %3094 = vmatprep.subr.bf16.mxu0 %v4217_v8  ;;  %3134 = vmatpush1.bf16.msra.mxu1 %v4216_v7  ;;  %v4238_v21 = vld [vmem:[%s6523_s1 + $0x124] ss:$8 sps:$4 sm:$0xff]   ;;  %v4237_v22 = vld [vmem:[%s6523_s1 + $0x20] ss:$8 sps:$4 sm:$0xff]   ;;  %v4241_v23 = vld [vmem:[%s6523_s1 + $0x14] ss:$8 sps:$4 sm:$0xff]  }
   0x9   :  { %3135 = vmatprep.subr.bf16.mxu1 %v4220_v10  ;;  %v4240_v24 = vld [vmem:[%s6523_s1 + $0x120] ss:$8 sps:$4 sm:$0xff]   ;;  %v4244_v25 = vld [vmem:[%s6523_s1 + $0x114] ss:$8 sps:$4 sm:$0xff]   ;;  %v4243_v26 = vld [vmem:[%s6523_s1 + $0x10] ss:$8 sps:$4 sm:$0xff]  }
   0xa   :  { %v4247_v27 = vld [vmem:[%s6523_s1 + $0x4] ss:$8 sps:$4 sm:$0xff]   ;;  %v4246_v28 = vld [vmem:[%s6523_s1 + $0x110] ss:$8 sps:$4 sm:$0xff]   ;;  %v4249_v30 = vld [vmem:[%s6523_s1] ss:$8 sps:$4 sm:$0xff]  }
   0xb   :  { %3095 = vmatpush1.bf16.msra.mxu0 %v4219_v9  ;;  %v4250_v29 = vld [vmem:[%s6523_s1 + $0x104] ss:$8 sps:$4 sm:$0xff]   ;;  %v4253_v31 = vld [vmem:[%s6523_s1 + $0xf4] ss:$8 sps:$4 sm:$0xff]   ;;  %v4252_v32 = vld [vmem:[%s6523_s1 + $0x100] ss:$8 sps:$4 sm:$0xff]  }
   0xc   :  { %3096 = vmatprep.subr.bf16.mxu0 %v4223_v11  ;;  %3136 = vmatpush1.bf16.msra.mxu1 %v4222_v12  ;;  %v4256_v33 = vld [vmem:[%s6523_s1 + $0x1f4] ss:$8 sps:$4 sm:$0xff]   ;;  %v4255_v34 = vld [vmem:[%s6523_s1 + $0xf0] ss:$8 sps:$4 sm:$0xff]   ;;  %v4259_v38 = vld [vmem:[%s6523_s1 + $0xe4] ss:$8 sps:$4 sm:$0xff]  }
   0xd   :  { %3137 = vmatprep.subr.bf16.mxu1 %v4226_v13  ;;  %v4258_v39 = vld [vmem:[%s6523_s1 + $0x1f0] ss:$8 sps:$4 sm:$0xff]   ;;  %v4262_v40 = vld [vmem:[%s6523_s1 + $0x1e4] ss:$8 sps:$4 sm:$0xff]   ;;  %v4261_v41 = vld [vmem:[%s6523_s1 + $0xe0] ss:$8 sps:$4 sm:$0xff]  }
   0xe   :  { %v5064_v43 = vshrl.u32 %v35_v37, 7  ;;  %v4265_v44 = vld [vmem:[%s6523_s1 + $0xd4] ss:$8 sps:$4 sm:$0xff]   ;;  %v4264_v45 = vld [vmem:[%s6523_s1 + $0x1e0] ss:$8 sps:$4 sm:$0xff]   ;;  %vm3719_vm2 = vcmask 920578  }
   0xf   :  { %3097 = vmatpush1.bf16.msra.mxu0 %v4225_v14  ;;  %v4268_v46 = vld [vmem:[%s6523_s1 + $0x1d4] ss:$8 sps:$4 sm:$0xff]   ;;  %v4267_v47 = vld [vmem:[%s6523_s1 + $0xd0] ss:$8 sps:$4 sm:$0xff]   ;;  %v4271_v49 = vld [vmem:[%s6523_s1 + $0xc4] ss:$8 sps:$4 sm:$0xff]  }
  0x10   :  { %3098 = vmatprep.subr.bf16.mxu0 %v4229_v15  ;;  %3138 = vmatpush1.bf16.msra.mxu1 %v4228_v16  ;;  %v5079_v48 = vsub.s32 %v34_v42, %v5064_v43  ;;  %v4270_v50 = vld [vmem:[%s6523_s1 + $0x1d0] ss:$8 sps:$4 sm:$0xff]   ;;  %v4274_v51 = vld [vmem:[%s6523_s1 + $0x1c4] ss:$8 sps:$4 sm:$0xff]   ;;  %v4273_v53 = vld [vmem:[%s6523_s1 + $0xc0] ss:$8 sps:$4 sm:$0xff]  }
  0x11   :  { %3139 = vmatprep.subr.bf16.mxu1 %v4232_v17  ;;  %v15_v52 = vld [vmem:[%s6524_s0] sm:$0xff]  ;;  %v4277_v56 = vld [vmem:[%s6523_s1 + $0xb4] ss:$8 sps:$4 sm:$0xff]   ;;  %v4279_v61 = vld [vmem:[%s6523_s1 + $0xb0] ss:$8 sps:$4 sm:$0xff]  }
  0x12   :  { %v38_v54 = vrot.slane %v15_v52, %v5079_v48  ;;  %v31_v55 = vcombine.high %v15_v52, %v15_v52  ;;  %v4276_v57 = vld [vmem:[%s6523_s1 + $0x1c0] ss:$8 sps:$4 sm:$0xff]   ;;  %v4280_v60 = vld [vmem:[%s6523_s1 + $0x1b4] ss:$8 sps:$4 sm:$0xff]   ;;  %v4283_v0 = vld [vmem:[%s6523_s1 + $0xa4] ss:$8 sps:$4 sm:$0xff]  }
  0x13   :  { %3099 = vmatpush1.bf16.msra.mxu0 %v4231_v18  ;;  %v4282_v1 = vld [vmem:[%s6523_s1 + $0x1b0] ss:$8 sps:$4 sm:$0xff]   ;;  %v4286_v3 = vld [vmem:[%s6523_s1 + $0x1a4] ss:$8 sps:$4 sm:$0xff]   ;;  %v4285_v4 = vld [vmem:[%s6523_s1 + $0xa0] ss:$8 sps:$4 sm:$0xff]  }
  0x14   :  { %3100 = vmatprep.subr.bf16.mxu0 %v4235_v19  ;;  %3140 = vmatpush1.bf16.msra.mxu1 %v4234_v20  ;;  %v46_v58 = vcombine.high %v38_v54, %v38_v54  ;;  %v45_v59 = vrot.slane %v31_v55, %v5079_v48  ;;  %v4289_v5 = vld [vmem:[%s6523_s1 + $0x94] ss:$8 sps:$4 sm:$0xff]   ;;  %v4288_v6 = vld [vmem:[%s6523_s1 + $0x1a0] ss:$8 sps:$4 sm:$0xff]   ;;  %v4291_v8 = vld [vmem:[%s6523_s1 + $0x90] ss:$8 sps:$4 sm:$0xff]   ;;  %v188_v15 = vpack.c.bf16 %v38_v54, %v38_v54 }
  0x15   :  { %3141 = vmatprep.subr.bf16.mxu1 %v4238_v21  ;;  %v4292_v7 = vld [vmem:[%s6523_s1 + $0x194] ss:$8 sps:$4 sm:$0xff]   ;;  %v4295_v9 = vld [vmem:[%s6523_s1 + $0x84] ss:$8 sps:$4 sm:$0xff]   ;;  %v4294_v10 = vld [vmem:[%s6523_s1 + $0x190] ss:$8 sps:$4 sm:$0xff]  }
  0x16   :  { %v189_v62 = vpack.c.bf16 %v46_v58, %v46_v58  ;;  %v47_v63 = vcombine.high %v45_v59, %v45_v59  ;;  %v4298_v11 = vld [vmem:[%s6523_s1 + $0x184] ss:$8 sps:$4 sm:$0xff]   ;;  %v4297_v12 = vld [vmem:[%s6523_s1 + $0x80] ss:$8 sps:$4 sm:$0xff]   ;;  %v4303_v13 = vld [vmem:[%s6523_s1 + $0x274] ss:$8 sps:$4 sm:$0xff]   ;;  %v190_v18 = vpack.c.bf16 %v45_v59, %v45_v59 }
  0x17   :  { %3101 = vmatpush1.bf16.msra.mxu0 %v4237_v22  ;;  %v4300_v14 = vld [vmem:[%s6523_s1 + $0x180] ss:$8 sps:$4 sm:$0xff]   ;;  %v4307_v16 = vld [vmem:[%s6523_s1 + $0x374] ss:$8 sps:$4 sm:$0xff]   ;;  %v4301_v17 = vld [vmem:[%s6523_s1 + $0x270] ss:$8 sps:$4 sm:$0xff]  }
  0x18   :  { %3102 = vmatprep.subr.bf16.mxu0 %v4241_v23  ;;  %3142 = vmatpush1.bf16.msra.mxu1 %v4240_v24  ;;  %v191_v2 = vpack.c.bf16 %v47_v63, %v47_v63  ;;  %v4310_v19 = vld [vmem:[%s6523_s1 + $0x264] ss:$8 sps:$4 sm:$0xff]   ;;  %v4305_v20 = vld [vmem:[%s6523_s1 + $0x370] ss:$8 sps:$4 sm:$0xff]   ;;  %v4308_v22 = vld [vmem:[%s6523_s1 + $0x260] ss:$8 sps:$4 sm:$0xff]  }
  0x19   :  { %3143 = vmatprep.subr.bf16.mxu1 %v4244_v25  ;;  %3122 = vmatprep.mubr.bf16.mxu0 %v189_v62  ;;  %v4313_v21 = vld [vmem:[%s6523_s1 + $0x364] ss:$8 sps:$4 sm:$0xff]   ;;  %v4316_v23 = vld [vmem:[%s6523_s1 + $0x254] ss:$8 sps:$4 sm:$0xff]   ;;  %v4311_v24 = vld [vmem:[%s6523_s1 + $0x360] ss:$8 sps:$4 sm:$0xff]  }
  0x1a   :  { %3163 = vmatprep.mubr.bf16.mxu1 %v191_v2  ;;  %v4319_v25 = vld [vmem:[%s6523_s1 + $0x354] ss:$8 sps:$4 sm:$0xff]   ;;  %v4334_v35 = vld [vmem:[%s6523_s1 + $0x224] ss:$8 sps:$4 sm:$0xff]   ;;  %v4329_v36 = vld [vmem:[%s6523_s1 + $0x330] ss:$8 sps:$4 sm:$0xff]  }
  0x1b   :  { %3103 = vmatpush1.bf16.msra.mxu0 %v4243_v26  ;;  %v4314_v26 = vld [vmem:[%s6523_s1 + $0x250] ss:$8 sps:$4 sm:$0xff]   ;;  %v4337_v37 = vld [vmem:[%s6523_s1 + $0x324] ss:$8 sps:$4 sm:$0xff]   ;;  %v4343_v42 = vld [vmem:[%s6523_s1 + $0x314] ss:$8 sps:$4 sm:$0xff]  }
  0x1c   :  { %3104 = vmatprep.subr.bf16.mxu0 %v4247_v27  ;;  %3144 = vmatpush1.bf16.msra.mxu1 %v4246_v28  ;;  %v4322_v27 = vld [vmem:[%s6523_s1 + $0x244] ss:$8 sps:$4 sm:$0xff]   ;;  %v4317_v28 = vld [vmem:[%s6523_s1 + $0x350] ss:$8 sps:$4 sm:$0xff]   ;;  %v4344_v55 = vld [vmem:[%s6523_s1 + $0x200] ss:$8 sps:$4 sm:$0xff]  }
  0x1d   :  { %3145 = vmatprep.subr.bf16.mxu1 %v4250_v29  ;;  %v4325_v29 = vld [vmem:[%s6523_s1 + $0x344] ss:$8 sps:$4 sm:$0xff]   ;;  %v4347_v58 = vld [vmem:[%s6523_s1 + $0x300] ss:$8 sps:$4 sm:$0xff]   ;;  %v4355_v59 = vld [vmem:[%s6523_s1 + $0x3f4] ss:$8 sps:$4 sm:$0xff]  }
  0x1e   :  { %v4349_v52 = vld [vmem:[%s6523_s1 + $0x304] ss:$8 sps:$4 sm:$0xff]   ;;  %v4353_v62 = vld [vmem:[%s6523_s1 + $0x3f0] ss:$8 sps:$4 sm:$0xff]   ;;  %v4359_v2 = vld [vmem:[%s6523_s1 + $0x3e0] ss:$8 sps:$4 sm:$0xff]  }
  0x1f   :  { %3105 = vmatpush1.bf16.msra.mxu0 %v4249_v30  ;;  %v4320_v30 = vld [vmem:[%s6523_s1 + $0x240] ss:$8 sps:$4 sm:$0xff]   ;;  %v4361_v63 = vld [vmem:[%s6523_s1 + $0x3e4] ss:$8 sps:$4 sm:$0xff]   ;;  %vm3720_vm3 = vmor %vm3719_vm2, %vm3718_vm1 }
  0x20   :  { %3106 = vmatprep.subr.bf16.mxu0 %v4253_v31  ;;  %3146 = vmatpush1.bf16.msra.mxu1 %v4252_v32  ;;  %v4328_v31 = vld [vmem:[%s6523_s1 + $0x234] ss:$8 sps:$4 sm:$0xff]   ;;  %v4323_v32 = vld [vmem:[%s6523_s1 + $0x340] ss:$8 sps:$4 sm:$0xff]  }
  0x21   :  { %3147 = vmatprep.subr.bf16.mxu1 %v4256_v33  ;;  %v4331_v33 = vld [vmem:[%s6523_s1 + $0x334] ss:$8 sps:$4 sm:$0xff]  }
  0x23   :  { %3107 = vmatpush2.bf16.msra.mxu0 %v4255_v34  ;;  %v4326_v34 = vld [vmem:[%s6523_s1 + $0x230] ss:$8 sps:$4 sm:$0xff]  }
  0x24   :  { %3108 = vmatprep.subr.bf16.mxu0 %v4259_v38  ;;  %3148 = vmatpush2.bf16.msra.mxu1 %v4258_v39  ;;  %v4332_v38 = vld [vmem:[%s6523_s1 + $0x220] ss:$8 sps:$4 sm:$0xff]   ;;  %v4340_v39 = vld [vmem:[%s6523_s1 + $0x214] ss:$8 sps:$4 sm:$0xff]  }
  0x25   :  { %3149 = vmatprep.subr.bf16.mxu1 %v4262_v40  ;;  %v4335_v40 = vld [vmem:[%s6523_s1 + $0x320] ss:$8 sps:$4 sm:$0xff]  }
  0x27   :  { %3109 = vmatpush2.bf16.msra.mxu0 %v4261_v41  ;;  %v16_v41 = vld [vmem:[%s6524_s0 + $0x8] sm:$0xff] }
  0x28   :  { %3110 = vmatprep.subr.bf16.mxu0 %v4265_v44  ;;  %3150 = vmatpush2.bf16.msra.mxu1 %v4264_v45  ;;  %v5231_v44 = vrot.slane %v16_v41, %v5079_v48  ;;  %v48_v45 = vcombine.high %v16_v41, %v16_v41  ;;  %v4408_v41 = vld [vmem:[%s6523_s1 + $0x560] ss:$8 sps:$4 sm:$0xff]  }
  0x29   :  { %3151 = vmatprep.subr.bf16.mxu1 %v4268_v46  ;;  %v4338_v46 = vld [vmem:[%s6523_s1 + $0x210] ss:$8 sps:$4 sm:$0xff]  }
  0x2b   :  { %3111 = vmatpush2.bf16.msra.mxu0 %v4267_v47  ;;  %v4346_v47 = vld [vmem:[%s6523_s1 + $0x204] ss:$8 sps:$4 sm:$0xff]  }
  0x2c   :  { %3112 = vmatprep.subr.bf16.mxu0 %v4271_v49  ;;  %3152 = vmatpush2.bf16.msra.mxu1 %v4270_v50  ;;  %v63_v49 = vcombine.high %v5231_v44, %v5231_v44  ;;  %v5242_v50 = vrot.slane %v48_v45, %v5079_v48  ;;  %v4416_v45 = vld [vmem:[%s6523_s1 + $0x554] ss:$8 sps:$4 sm:$0xff]  }
  0x2d   :  { %3153 = vmatprep.subr.bf16.mxu1 %v4274_v51  ;;  %v4341_v51 = vld [vmem:[%s6523_s1 + $0x310] ss:$8 sps:$4 sm:$0xff]  }
  0x2e   :  { %v64_v54 = vcombine.high %v5242_v50, %v5242_v50 }
  0x2f   :  { %3113 = vmatpush2.bf16.msra.mxu0 %v4273_v53  ;;  %v193_v53 = vpack.c.bf16 %v63_v49, %v63_v49  ;;  %v4419_v49 = vld [vmem:[%s6523_s1 + $0x444] ss:$8 sps:$4 sm:$0xff]  }
  0x30   :  { %3114 = vmatprep.subr.bf16.mxu0 %v4277_v56  ;;  %3154 = vmatpush2.bf16.msra.mxu1 %v4276_v57  ;;  %v4352_v56 = vld [vmem:[%s6523_s1 + $0x2f4] ss:$8 sps:$4 sm:$0xff]   ;;  %v195_v57 = vpack.c.bf16 %v64_v54, %v64_v54  ;;  %v4420_v54 = vld [vmem:[%s6523_s1 + $0x540] ss:$8 sps:$4 sm:$0xff]  }
  0x31   :  { %3155 = vmatprep.subr.bf16.mxu1 %v4280_v60  ;;  %v4350_v60 = vld [vmem:[%s6523_s1 + $0x2f0] ss:$8 sps:$4 sm:$0xff]  }
  0x33   :  { %3115 = vmatpush2.bf16.msra.mxu0 %v4279_v61  ;;  %v4358_v61 = vld [vmem:[%s6523_s1 + $0x2e4] ss:$8 sps:$4 sm:$0xff]  }
  0x34   :  { %3116 = vmatprep.subr.bf16.mxu0 %v4283_v0  ;;  %3156 = vmatpush2.bf16.msra.mxu1 %v4282_v1  ;;  %v4356_v0 = vld [vmem:[%s6523_s1 + $0x2e0] ss:$8 sps:$4 sm:$0xff]   ;;  %v4364_v1 = vld [vmem:[%s6523_s1 + $0x2d4] ss:$8 sps:$4 sm:$0xff]  }
  0x35   :  { %3157 = vmatprep.subr.bf16.mxu1 %v4286_v3  ;;  %v4367_v3 = vld [vmem:[%s6523_s1 + $0x3d4] ss:$8 sps:$4 sm:$0xff]  }
  0x37   :  { %3117 = vmatpush2.bf16.msra.mxu0 %v4285_v4  ;;  %v4362_v4 = vld [vmem:[%s6523_s1 + $0x2d0] ss:$8 sps:$4 sm:$0xff]  }
  0x38   :  { %3118 = vmatprep.subr.bf16.mxu0 %v4289_v5  ;;  %3158 = vmatpush2.bf16.msra.mxu1 %v4288_v6  ;;  %v4370_v5 = vld [vmem:[%s6523_s1 + $0x2c4] ss:$8 sps:$4 sm:$0xff]   ;;  %v4365_v6 = vld [vmem:[%s6523_s1 + $0x3d0] ss:$8 sps:$4 sm:$0xff]  }
  0x39   :  { %3159 = vmatprep.subr.bf16.mxu1 %v4292_v7  ;;  %v4373_v7 = vld [vmem:[%s6523_s1 + $0x3c4] ss:$8 sps:$4 sm:$0xff]  }
  0x3b   :  { %3119 = vmatpush2.bf16.msra.mxu0 %v4291_v8  ;;  %v4368_v8 = vld [vmem:[%s6523_s1 + $0x2c0] ss:$8 sps:$4 sm:$0xff]  }
  0x3c   :  { %3120 = vmatprep.subr.bf16.mxu0 %v4295_v9  ;;  %3160 = vmatpush2.bf16.msra.mxu1 %v4294_v10  ;;  %v4376_v9 = vld [vmem:[%s6523_s1 + $0x2b4] ss:$8 sps:$4 sm:$0xff]   ;;  %v4371_v10 = vld [vmem:[%s6523_s1 + $0x3c0] ss:$8 sps:$4 sm:$0xff]  }
  0x3d   :  { %3161 = vmatprep.subr.bf16.mxu1 %v4298_v11  ;;  %v4379_v11 = vld [vmem:[%s6523_s1 + $0x3b4] ss:$8 sps:$4 sm:$0xff]  }
  0x3f   :  { %3121 = vmatpush2.bf16.msra.mxu0 %v4297_v12  ;;  %v4374_v12 = vld [vmem:[%s6523_s1 + $0x2b0] ss:$8 sps:$4 sm:$0xff]  }
  0x40   :  { %3172 = vmatprep.subr.bf16.mxu0 %v4303_v13  ;;  %3162 = vmatpush2.bf16.msra.mxu1 %v4300_v14  ;;  %v4382_v13 = vld [vmem:[%s6523_s1 + $0x2a4] ss:$8 sps:$4 sm:$0xff]   ;;  %v4377_v14 = vld [vmem:[%s6523_s1 + $0x3b0] ss:$8 sps:$4 sm:$0xff]  }
  0x41   :  { %3213 = vmatprep.subr.bf16.mxu1 %v4307_v16  ;;  %v4380_v16 = vld [vmem:[%s6523_s1 + $0x2a0] ss:$8 sps:$4 sm:$0xff]  }
  0x42   :  { %3123 = vmatmul.mubr.bf16.vlgmr.msra.gmra.mxu0 %v188_v15  ;;  %v4385_v15 = vld [vmem:[%s6523_s1 + $0x3a4] ss:$8 sps:$4 sm:$0xff]  }
  0x43   :  { %3173 = vmatpush1.bf16.msra.mxu0 %v4301_v17  ;;  %3164 = vmatmul.mubr.bf16.vlgmr.msra.gmra.mxu1 %v190_v18  ;;  %v4388_v17 = vld [vmem:[%s6523_s1 + $0x294] ss:$8 sps:$4 sm:$0xff]   ;;  %v4383_v18 = vld [vmem:[%s6523_s1 + $0x3a0] ss:$8 sps:$4 sm:$0xff]  }
  0x44   :  { %3174 = vmatprep.subr.bf16.mxu0 %v4310_v19  ;;  %3214 = vmatpush1.bf16.msra.mxu1 %v4305_v20  ;;  %v4391_v19 = vld [vmem:[%s6523_s1 + $0x394] ss:$8 sps:$4 sm:$0xff]   ;;  %v4386_v20 = vld [vmem:[%s6523_s1 + $0x290] ss:$8 sps:$4 sm:$0xff]  }
  0x45   :  { %3215 = vmatprep.subr.bf16.mxu1 %v4313_v21  ;;  %3204 = vmatprep.mubr.bf16.mxu0 %v193_v53  ;;  %v4394_v21 = vld [vmem:[%s6523_s1 + $0x284] ss:$8 sps:$4 sm:$0xff]   ;;  %v4425_v53 = vld [vmem:[%s6523_s1 + $0x434] ss:$8 sps:$4 sm:$0xff]  }
  0x46   :  { %3245 = vmatprep.mubr.bf16.mxu1 %v195_v57  ;;  %v4431_v57 = vld [vmem:[%s6523_s1 + $0x424] ss:$8 sps:$4 sm:$0xff]  }
  0x47   :  { %3175 = vmatpush1.bf16.msra.mxu0 %v4308_v22  ;;  %v4389_v22 = vld [vmem:[%s6523_s1 + $0x390] ss:$8 sps:$4 sm:$0xff]  }
  0x48   :  { %3176 = vmatprep.subr.bf16.mxu0 %v4316_v23  ;;  %3216 = vmatpush1.bf16.msra.mxu1 %v4311_v24  ;;  %v4397_v23 = vld [vmem:[%s6523_s1 + $0x384] ss:$8 sps:$4 sm:$0xff]   ;;  %v4392_v24 = vld [vmem:[%s6523_s1 + $0x280] ss:$8 sps:$4 sm:$0xff]  }
  0x49   :  { %3217 = vmatprep.subr.bf16.mxu1 %v4319_v25  ;;  %v4400_v25 = vld [vmem:[%s6523_s1 + $0x474] ss:$8 sps:$4 sm:$0xff]  }
  0x4b   :  { %3177 = vmatpush1.bf16.msra.mxu0 %v4314_v26  ;;  %v4395_v26 = vld [vmem:[%s6523_s1 + $0x380] ss:$8 sps:$4 sm:$0xff]  }
  0x4c   :  { %3178 = vmatprep.subr.bf16.mxu0 %v4322_v27  ;;  %3218 = vmatpush1.bf16.msra.mxu1 %v4317_v28  ;;  %v192_v27 = vpack.c.bf16 %v5231_v44, %v5231_v44  ;;  %v4404_v28 = vld [vmem:[%s6523_s1 + $0x574] ss:$8 sps:$4 sm:$0xff]  }
  0x4d   :  { %3219 = vmatprep.subr.bf16.mxu1 %v4325_v29  ;;  %v4398_v29 = vld [vmem:[%s6523_s1 + $0x470] ss:$8 sps:$4 sm:$0xff]  }
  0x4f   :  { %3179 = vmatpush1.bf16.msra.mxu0 %v4320_v30  ;;  %v194_v30 = vpack.c.bf16 %v5242_v50, %v5242_v50  ;;  %v4414_v50 = vld [vmem:[%s6523_s1 + $0x550] ss:$8 sps:$4 sm:$0xff]  }
  0x50   :  { %3180 = vmatprep.subr.bf16.mxu0 %v4328_v31  ;;  %3220 = vmatpush1.bf16.msra.mxu1 %v4323_v32  ;;  %v4407_v31 = vld [vmem:[%s6523_s1 + $0x464] ss:$8 sps:$4 sm:$0xff]   ;;  %v17_v32 = vld [vmem:[%s6524_s0 + $0x10] sm:$0xff] }
  0x51   :  { %3221 = vmatprep.subr.bf16.mxu1 %v4331_v33  ;;  %v4402_v33 = vld [vmem:[%s6523_s1 + $0x570] ss:$8 sps:$4 sm:$0xff]  }
  0x53   :  { %3181 = vmatpush1.bf16.msra.mxu0 %v4326_v34  ;;  %v5377_v34 = vrot.slane %v17_v32, %v5079_v48 }
  0x54   :  { %3182 = vmatprep.subr.bf16.mxu0 %v4334_v35  ;;  %3222 = vmatpush1.bf16.msra.mxu1 %v4329_v36  ;;  %v65_v35 = vcombine.high %v17_v32, %v17_v32  ;;  %v4410_v36 = vld [vmem:[%s6523_s1 + $0x564] ss:$8 sps:$4 sm:$0xff]  }
  0x55   :  { %3223 = vmatprep.subr.bf16.mxu1 %v4337_v37  ;;  %v4405_v37 = vld [vmem:[%s6523_s1 + $0x460] ss:$8 sps:$4 sm:$0xff]  }
  0x57   :  { %3183 = vmatpush1.bf16.msra.mxu0 %v4332_v38  ;;  %v80_v38 = vcombine.high %v5377_v34, %v5377_v34 }
  0x58   :  { %3184 = vmatprep.subr.bf16.mxu0 %v4340_v39  ;;  %3224 = vmatpush1.bf16.msra.mxu1 %v4335_v40  ;;  %v5388_v39 = vrot.slane %v65_v35, %v5079_v48  ;;  %v4413_v40 = vld [vmem:[%s6523_s1 + $0x454] ss:$8 sps:$4 sm:$0xff]   ;;  %v4483_v35 = vld [vmem:[%s6523_s1 + $0x490] ss:$8 sps:$4 sm:$0xff]  }
  0x59   :  { %3225 = vmatprep.subr.bf16.mxu1 %v4343_v42  ;;  %v197_v42 = vpack.c.bf16 %v80_v38, %v80_v38  ;;  %v4486_v38 = vld [vmem:[%s6523_s1 + $0x590] ss:$8 sps:$4 sm:$0xff]  }
  0x5a   :  { %v81_v44 = vcombine.high %v5388_v39, %v5388_v39 }
  0x5b   :  { %3185 = vmatpush1.bf16.msra.mxu0 %v4338_v46  ;;  %v4411_v46 = vld [vmem:[%s6523_s1 + $0x450] ss:$8 sps:$4 sm:$0xff]  }
  0x5c   :  { %3186 = vmatprep.subr.bf16.mxu0 %v4346_v47  ;;  %3226 = vmatpush1.bf16.msra.mxu1 %v4341_v51  ;;  %v199_v47 = vpack.c.bf16 %v81_v44, %v81_v44  ;;  %v4422_v51 = vld [vmem:[%s6523_s1 + $0x544] ss:$8 sps:$4 sm:$0xff]  }
  0x5d   :  { %3227 = vmatprep.subr.bf16.mxu1 %v4349_v52  ;;  %v4417_v52 = vld [vmem:[%s6523_s1 + $0x440] ss:$8 sps:$4 sm:$0xff]  }
  0x5f   :  { %3187 = vmatpush1.bf16.msra.mxu0 %v4344_v55  ;;  %v4428_v55 = vld [vmem:[%s6523_s1 + $0x534] ss:$8 sps:$4 sm:$0xff]  }
  0x60   :  { %3188 = vmatprep.subr.bf16.mxu0 %v4352_v56  ;;  %3228 = vmatpush1.bf16.msra.mxu1 %v4347_v58  ;;  %v4423_v56 = vld [vmem:[%s6523_s1 + $0x430] ss:$8 sps:$4 sm:$0xff]  }
  0x61   :  { %3229 = vmatprep.subr.bf16.mxu1 %v4355_v59  ;;  %v4426_v58 = vld [vmem:[%s6523_s1 + $0x530] ss:$8 sps:$4 sm:$0xff]   ;;  %v4434_v59 = vld [vmem:[%s6523_s1 + $0x524] ss:$8 sps:$4 sm:$0xff]  }
  0x63   :  { %3189 = vmatpush2.bf16.msra.mxu0 %v4350_v60  ;;  %v4429_v60 = vld [vmem:[%s6523_s1 + $0x420] ss:$8 sps:$4 sm:$0xff]  }
  0x64   :  { %3190 = vmatprep.subr.bf16.mxu0 %v4358_v61  ;;  %3230 = vmatpush2.bf16.msra.mxu1 %v4353_v62  ;;  %v4437_v61 = vld [vmem:[%s6523_s1 + $0x414] ss:$8 sps:$4 sm:$0xff]   ;;  %v4432_v62 = vld [vmem:[%s6523_s1 + $0x520] ss:$8 sps:$4 sm:$0xff]  }
  0x65   :  { %3231 = vmatprep.subr.bf16.mxu1 %v4361_v63  ;;  %v4440_v63 = vld [vmem:[%s6523_s1 + $0x514] ss:$8 sps:$4 sm:$0xff]  }
  0x67   :  { %3191 = vmatpush2.bf16.msra.mxu0 %v4356_v0  ;;  %v4435_v0 = vld [vmem:[%s6523_s1 + $0x410] ss:$8 sps:$4 sm:$0xff]  }
  0x68   :  { %3192 = vmatprep.subr.bf16.mxu0 %v4364_v1  ;;  %3232 = vmatpush2.bf16.msra.mxu1 %v4359_v2  ;;  %v4443_v1 = vld [vmem:[%s6523_s1 + $0x404] ss:$8 sps:$4 sm:$0xff]   ;;  %v4438_v2 = vld [vmem:[%s6523_s1 + $0x510] ss:$8 sps:$4 sm:$0xff]  }
  0x69   :  { %3233 = vmatprep.subr.bf16.mxu1 %v4367_v3  ;;  %v4446_v3 = vld [vmem:[%s6523_s1 + $0x504] ss:$8 sps:$4 sm:$0xff]  }
  0x6b   :  { %3193 = vmatpush2.bf16.msra.mxu0 %v4362_v4  ;;  %v4441_v4 = vld [vmem:[%s6523_s1 + $0x400] ss:$8 sps:$4 sm:$0xff]  }
  0x6c   :  { %3194 = vmatprep.subr.bf16.mxu0 %v4370_v5  ;;  %3234 = vmatpush2.bf16.msra.mxu1 %v4365_v6  ;;  %v4449_v5 = vld [vmem:[%s6523_s1 + $0x4f4] ss:$8 sps:$4 sm:$0xff]   ;;  %v4444_v6 = vld [vmem:[%s6523_s1 + $0x500] ss:$8 sps:$4 sm:$0xff]  }
  0x6d   :  { %3235 = vmatprep.subr.bf16.mxu1 %v4373_v7  ;;  %v4452_v7 = vld [vmem:[%s6523_s1 + $0x5f4] ss:$8 sps:$4 sm:$0xff]  }
  0x6f   :  { %3195 = vmatpush2.bf16.msra.mxu0 %v4368_v8  ;;  %v4447_v8 = vld [vmem:[%s6523_s1 + $0x4f0] ss:$8 sps:$4 sm:$0xff]  }
  0x70   :  { %3196 = vmatprep.subr.bf16.mxu0 %v4376_v9  ;;  %3236 = vmatpush2.bf16.msra.mxu1 %v4371_v10  ;;  %v4455_v9 = vld [vmem:[%s6523_s1 + $0x4e4] ss:$8 sps:$4 sm:$0xff]   ;;  %v4450_v10 = vld [vmem:[%s6523_s1 + $0x5f0] ss:$8 sps:$4 sm:$0xff]  }
  0x71   :  { %3237 = vmatprep.subr.bf16.mxu1 %v4379_v11  ;;  %v4458_v11 = vld [vmem:[%s6523_s1 + $0x5e4] ss:$8 sps:$4 sm:$0xff]  }
  0x73   :  { %3197 = vmatpush2.bf16.msra.mxu0 %v4374_v12  ;;  %v4453_v12 = vld [vmem:[%s6523_s1 + $0x4e0] ss:$8 sps:$4 sm:$0xff]  }
  0x74   :  { %3198 = vmatprep.subr.bf16.mxu0 %v4382_v13  ;;  %3238 = vmatpush2.bf16.msra.mxu1 %v4377_v14  ;;  %v4461_v13 = vld [vmem:[%s6523_s1 + $0x4d4] ss:$8 sps:$4 sm:$0xff]   ;;  %v4456_v14 = vld [vmem:[%s6523_s1 + $0x5e0] ss:$8 sps:$4 sm:$0xff]  }
  0x75   :  { %3239 = vmatprep.subr.bf16.mxu1 %v4385_v15  ;;  %v4464_v15 = vld [vmem:[%s6523_s1 + $0x5d4] ss:$8 sps:$4 sm:$0xff]  }
  0x77   :  { %3199 = vmatpush2.bf16.msra.mxu0 %v4380_v16  ;;  %v4459_v16 = vld [vmem:[%s6523_s1 + $0x4d0] ss:$8 sps:$4 sm:$0xff]  }
  0x78   :  { %3200 = vmatprep.subr.bf16.mxu0 %v4388_v17  ;;  %3240 = vmatpush2.bf16.msra.mxu1 %v4383_v18  ;;  %v4467_v17 = vld [vmem:[%s6523_s1 + $0x4c4] ss:$8 sps:$4 sm:$0xff]   ;;  %v4462_v18 = vld [vmem:[%s6523_s1 + $0x5d0] ss:$8 sps:$4 sm:$0xff]  }
  0x79   :  { %3241 = vmatprep.subr.bf16.mxu1 %v4391_v19  ;;  %v4470_v19 = vld [vmem:[%s6523_s1 + $0x5c4] ss:$8 sps:$4 sm:$0xff]  }
  0x7b   :  { %3201 = vmatpush2.bf16.msra.mxu0 %v4386_v20  ;;  %v4465_v20 = vld [vmem:[%s6523_s1 + $0x4c0] ss:$8 sps:$4 sm:$0xff]  }
  0x7c   :  { %3202 = vmatprep.subr.bf16.mxu0 %v4394_v21  ;;  %3242 = vmatpush2.bf16.msra.mxu1 %v4389_v22  ;;  %v4473_v21 = vld [vmem:[%s6523_s1 + $0x4b4] ss:$8 sps:$4 sm:$0xff]   ;;  %v4468_v22 = vld [vmem:[%s6523_s1 + $0x5c0] ss:$8 sps:$4 sm:$0xff]  }
  0x7d   :  { %3243 = vmatprep.subr.bf16.mxu1 %v4397_v23  ;;  %v4476_v23 = vld [vmem:[%s6523_s1 + $0x5b4] ss:$8 sps:$4 sm:$0xff]  }
  0x7f   :  { %3203 = vmatpush2.bf16.msra.mxu0 %v4392_v24  ;;  %v4471_v24 = vld [vmem:[%s6523_s1 + $0x4b0] ss:$8 sps:$4 sm:$0xff]  }
  0x80   :  { %3254 = vmatprep.subr.bf16.mxu0 %v4400_v25  ;;  %3244 = vmatpush2.bf16.msra.mxu1 %v4395_v26  ;;  %v4479_v25 = vld [vmem:[%s6523_s1 + $0x4a4] ss:$8 sps:$4 sm:$0xff]   ;;  %v4474_v26 = vld [vmem:[%s6523_s1 + $0x5b0] ss:$8 sps:$4 sm:$0xff]  }
  0x81   :  { %3295 = vmatprep.subr.bf16.mxu1 %v4404_v28  ;;  %v18_v28 = vld [vmem:[%s6524_s0 + $0x18] sm:$0xff] }
  0x82   :  { %3205 = vmatmul.mubr.bf16.vlgmr.msra.gmra.mxu0 %v192_v27  ;;  %v4482_v27 = vld [vmem:[%s6523_s1 + $0x5a4] ss:$8 sps:$4 sm:$0xff]   ;;  %v82_v32 = vcombine.high %v18_v28, %v18_v28 }
  0x83   :  { %3255 = vmatpush1.bf16.msra.mxu0 %v4398_v29  ;;  %3246 = vmatmul.mubr.bf16.vlgmr.msra.gmra.mxu1 %v194_v30  ;;  %v4477_v29 = vld [vmem:[%s6523_s1 + $0x4a0] ss:$8 sps:$4 sm:$0xff]   ;;  %v4485_v30 = vld [vmem:[%s6523_s1 + $0x494] ss:$8 sps:$4 sm:$0xff]  }
  0x84   :  { %3256 = vmatprep.subr.bf16.mxu0 %v4407_v31  ;;  %3296 = vmatpush1.bf16.msra.mxu1 %v4402_v33  ;;  %v4480_v31 = vld [vmem:[%s6523_s1 + $0x5a0] ss:$8 sps:$4 sm:$0xff]   ;;  %v4488_v33 = vld [vmem:[%s6523_s1 + $0x594] ss:$8 sps:$4 sm:$0xff]  }
  0x85   :  { %3297 = vmatprep.subr.bf16.mxu1 %v4410_v36  ;;  %3286 = vmatprep.mubr.bf16.mxu0 %v197_v42  ;;  %v5552_v36 = vrot.slane %v18_v28, %v5079_v48  ;;  %v4489_v42 = vld [vmem:[%s6523_s1 + $0x480] ss:$8 sps:$4 sm:$0xff]   ;;  %v4556_v28 = vld [vmem:[%s6523_s1 + $0x6d0] ss:$8 sps:$4 sm:$0xff]  }
  0x86   :  { %3327 = vmatprep.mubr.bf16.mxu1 %v199_v47 }
  0x87   :  { %3257 = vmatpush1.bf16.msra.mxu0 %v4405_v37  ;;  %v4491_v37 = vld [vmem:[%s6523_s1 + $0x484] ss:$8 sps:$4 sm:$0xff]   ;;  %v97_v44 = vcombine.high %v5552_v36, %v5552_v36 }
  0x88   :  { %3258 = vmatprep.subr.bf16.mxu0 %v4413_v40  ;;  %3298 = vmatpush1.bf16.msra.mxu1 %v4408_v41  ;;  %v5561_v40 = vrot.slane %v82_v32, %v5079_v48  ;;  %v4494_v41 = vld [vmem:[%s6523_s1 + $0x584] ss:$8 sps:$4 sm:$0xff]   ;;  %v4562_v32 = vld [vmem:[%s6523_s1 + $0x6c0] ss:$8 sps:$4 sm:$0xff]  }
  0x89   :  { %3299 = vmatprep.subr.bf16.mxu1 %v4416_v45  ;;  %v4497_v45 = vld [vmem:[%s6523_s1 + $0x674] ss:$8 sps:$4 sm:$0xff]  }
  0x8a   :  { %v98_v47 = vcombine.high %v5561_v40, %v5561_v40 }
  0x8b   :  { %3259 = vmatpush1.bf16.msra.mxu0 %v4411_v46  ;;  %v4492_v46 = vld [vmem:[%s6523_s1 + $0x580] ss:$8 sps:$4 sm:$0xff]  }
  0x8c   :  { %3260 = vmatprep.subr.bf16.mxu0 %v4419_v49  ;;  %3300 = vmatpush1.bf16.msra.mxu1 %v4414_v50  ;;  %v196_v49 = vpack.c.bf16 %v5377_v34, %v5377_v34  ;;  %v4501_v50 = vld [vmem:[%s6523_s1 + $0x774] ss:$8 sps:$4 sm:$0xff]   ;;  %v4499_v34 = vld [vmem:[%s6523_s1 + $0x770] ss:$8 sps:$4 sm:$0xff]  }
  0x8d   :  { %3301 = vmatprep.subr.bf16.mxu1 %v4422_v51  ;;  %v4495_v51 = vld [vmem:[%s6523_s1 + $0x670] ss:$8 sps:$4 sm:$0xff]  }
  0x8f   :  { %3261 = vmatpush1.bf16.msra.mxu0 %v4417_v52  ;;  %v201_v52 = vpack.c.bf16 %v97_v44, %v97_v44  ;;  %v4579_v44 = vld [vmem:[%s6523_s1 + $0x7a4] ss:$8 sps:$4 sm:$0xff]  }
  0x90   :  { %3262 = vmatprep.subr.bf16.mxu0 %v4425_v53  ;;  %3302 = vmatpush1.bf16.msra.mxu1 %v4420_v54  ;;  %v198_v53 = vpack.c.bf16 %v5388_v39, %v5388_v39  ;;  %v4504_v54 = vld [vmem:[%s6523_s1 + $0x664] ss:$8 sps:$4 sm:$0xff]   ;;  %v4502_v39 = vld [vmem:[%s6523_s1 + $0x660] ss:$8 sps:$4 sm:$0xff]  }
  0x91   :  { %3303 = vmatprep.subr.bf16.mxu1 %v4428_v55  ;;  %v203_v55 = vpack.c.bf16 %v98_v47, %v98_v47  ;;  %v4582_v47 = vld [vmem:[%s6523_s1 + $0x694] ss:$8 sps:$4 sm:$0xff]  }
  0x93   :  { %3263 = vmatpush1.bf16.msra.mxu0 %v4423_v56  ;;  %v4507_v56 = vld [vmem:[%s6523_s1 + $0x764] ss:$8 sps:$4 sm:$0xff]  }
  0x94   :  { %3264 = vmatprep.subr.bf16.mxu0 %v4431_v57  ;;  %3304 = vmatpush1.bf16.msra.mxu1 %v4426_v58  ;;  %v4510_v57 = vld [vmem:[%s6523_s1 + $0x654] ss:$8 sps:$4 sm:$0xff]   ;;  %v4505_v58 = vld [vmem:[%s6523_s1 + $0x760] ss:$8 sps:$4 sm:$0xff]  }
  0x95   :  { %3305 = vmatprep.subr.bf16.mxu1 %v4434_v59  ;;  %v4513_v59 = vld [vmem:[%s6523_s1 + $0x754] ss:$8 sps:$4 sm:$0xff]  }
  0x97   :  { %3265 = vmatpush1.bf16.msra.mxu0 %v4429_v60  ;;  %v4508_v60 = vld [vmem:[%s6523_s1 + $0x650] ss:$8 sps:$4 sm:$0xff]  }
  0x98   :  { %3266 = vmatprep.subr.bf16.mxu0 %v4437_v61  ;;  %3306 = vmatpush1.bf16.msra.mxu1 %v4432_v62  ;;  %v4516_v61 = vld [vmem:[%s6523_s1 + $0x644] ss:$8 sps:$4 sm:$0xff]   ;;  %v4511_v62 = vld [vmem:[%s6523_s1 + $0x750] ss:$8 sps:$4 sm:$0xff]  }
  0x99   :  { %3307 = vmatprep.subr.bf16.mxu1 %v4440_v63  ;;  %v4519_v63 = vld [vmem:[%s6523_s1 + $0x744] ss:$8 sps:$4 sm:$0xff]  }
  0x9b   :  { %3267 = vmatpush1.bf16.msra.mxu0 %v4435_v0  ;;  %v4514_v0 = vld [vmem:[%s6523_s1 + $0x640] ss:$8 sps:$4 sm:$0xff]  }
  0x9c   :  { %3268 = vmatprep.subr.bf16.mxu0 %v4443_v1  ;;  %3308 = vmatpush1.bf16.msra.mxu1 %v4438_v2  ;;  %v4522_v1 = vld [vmem:[%s6523_s1 + $0x634] ss:$8 sps:$4 sm:$0xff]   ;;  %v4517_v2 = vld [vmem:[%s6523_s1 + $0x740] ss:$8 sps:$4 sm:$0xff]  }
  0x9d   :  { %3309 = vmatprep.subr.bf16.mxu1 %v4446_v3  ;;  %v4525_v3 = vld [vmem:[%s6523_s1 + $0x734] ss:$8 sps:$4 sm:$0xff]  }
  0x9f   :  { %3269 = vmatpush1.bf16.msra.mxu0 %v4441_v4  ;;  %v4520_v4 = vld [vmem:[%s6523_s1 + $0x630] ss:$8 sps:$4 sm:$0xff]  }
  0xa0   :  { %3270 = vmatprep.subr.bf16.mxu0 %v4449_v5  ;;  %3310 = vmatpush1.bf16.msra.mxu1 %v4444_v6  ;;  %v4528_v5 = vld [vmem:[%s6523_s1 + $0x624] ss:$8 sps:$4 sm:$0xff]   ;;  %v4523_v6 = vld [vmem:[%s6523_s1 + $0x730] ss:$8 sps:$4 sm:$0xff]  }
  0xa1   :  { %3311 = vmatprep.subr.bf16.mxu1 %v4452_v7  ;;  %v4531_v7 = vld [vmem:[%s6523_s1 + $0x724] ss:$8 sps:$4 sm:$0xff]  }
  0xa3   :  { %3271 = vmatpush2.bf16.msra.mxu0 %v4447_v8  ;;  %v4526_v8 = vld [vmem:[%s6523_s1 + $0x620] ss:$8 sps:$4 sm:$0xff]  }
  0xa4   :  { %3272 = vmatprep.subr.bf16.mxu0 %v4455_v9  ;;  %3312 = vmatpush2.bf16.msra.mxu1 %v4450_v10  ;;  %v4534_v9 = vld [vmem:[%s6523_s1 + $0x614] ss:$8 sps:$4 sm:$0xff]   ;;  %v4529_v10 = vld [vmem:[%s6523_s1 + $0x720] ss:$8 sps:$4 sm:$0xff]  }
  0xa5   :  { %3313 = vmatprep.subr.bf16.mxu1 %v4458_v11  ;;  %v4537_v11 = vld [vmem:[%s6523_s1 + $0x714] ss:$8 sps:$4 sm:$0xff]  }
  0xa7   :  { %3273 = vmatpush2.bf16.msra.mxu0 %v4453_v12  ;;  %v4532_v12 = vld [vmem:[%s6523_s1 + $0x610] ss:$8 sps:$4 sm:$0xff]  }
  0xa8   :  { %3274 = vmatprep.subr.bf16.mxu0 %v4461_v13  ;;  %3314 = vmatpush2.bf16.msra.mxu1 %v4456_v14  ;;  %v4540_v13 = vld [vmem:[%s6523_s1 + $0x604] ss:$8 sps:$4 sm:$0xff]   ;;  %v4535_v14 = vld [vmem:[%s6523_s1 + $0x710] ss:$8 sps:$4 sm:$0xff]  }
  0xa9   :  { %3315 = vmatprep.subr.bf16.mxu1 %v4464_v15  ;;  %v4543_v15 = vld [vmem:[%s6523_s1 + $0x704] ss:$8 sps:$4 sm:$0xff]  }
  0xab   :  { %3275 = vmatpush2.bf16.msra.mxu0 %v4459_v16  ;;  %v4538_v16 = vld [vmem:[%s6523_s1 + $0x600] ss:$8 sps:$4 sm:$0xff]  }
  0xac   :  { %3276 = vmatprep.subr.bf16.mxu0 %v4467_v17  ;;  %3316 = vmatpush2.bf16.msra.mxu1 %v4462_v18  ;;  %v4546_v17 = vld [vmem:[%s6523_s1 + $0x6f4] ss:$8 sps:$4 sm:$0xff]   ;;  %v4541_v18 = vld [vmem:[%s6523_s1 + $0x700] ss:$8 sps:$4 sm:$0xff]  }
  0xad   :  { %3317 = vmatprep.subr.bf16.mxu1 %v4470_v19  ;;  %v4549_v19 = vld [vmem:[%s6523_s1 + $0x7f4] ss:$8 sps:$4 sm:$0xff]  }
  0xaf   :  { %3277 = vmatpush2.bf16.msra.mxu0 %v4465_v20  ;;  %v4544_v20 = vld [vmem:[%s6523_s1 + $0x6f0] ss:$8 sps:$4 sm:$0xff]  }
  0xb0   :  { %3278 = vmatprep.subr.bf16.mxu0 %v4473_v21  ;;  %3318 = vmatpush2.bf16.msra.mxu1 %v4468_v22  ;;  %v4552_v21 = vld [vmem:[%s6523_s1 + $0x6e4] ss:$8 sps:$4 sm:$0xff]   ;;  %v4547_v22 = vld [vmem:[%s6523_s1 + $0x7f0] ss:$8 sps:$4 sm:$0xff]  }
  0xb1   :  { %3319 = vmatprep.subr.bf16.mxu1 %v4476_v23  ;;  %v4555_v23 = vld [vmem:[%s6523_s1 + $0x7e4] ss:$8 sps:$4 sm:$0xff]  }
  0xb3   :  { %3279 = vmatpush2.bf16.msra.mxu0 %v4471_v24  ;;  %v4550_v24 = vld [vmem:[%s6523_s1 + $0x6e0] ss:$8 sps:$4 sm:$0xff]  }
  0xb4   :  { %3280 = vmatprep.subr.bf16.mxu0 %v4479_v25  ;;  %3320 = vmatpush2.bf16.msra.mxu1 %v4474_v26  ;;  %v4558_v25 = vld [vmem:[%s6523_s1 + $0x6d4] ss:$8 sps:$4 sm:$0xff]   ;;  %v4553_v26 = vld [vmem:[%s6523_s1 + $0x7e0] ss:$8 sps:$4 sm:$0xff]  }
  0xb5   :  { %3321 = vmatprep.subr.bf16.mxu1 %v4482_v27  ;;  %v4561_v27 = vld [vmem:[%s6523_s1 + $0x7d4] ss:$8 sps:$4 sm:$0xff]  }
  0xb7   :  { %3281 = vmatpush2.bf16.msra.mxu0 %v4477_v29  ;;  %v4564_v29 = vld [vmem:[%s6523_s1 + $0x6c4] ss:$8 sps:$4 sm:$0xff]  }
  0xb8   :  { %3282 = vmatprep.subr.bf16.mxu0 %v4485_v30  ;;  %3322 = vmatpush2.bf16.msra.mxu1 %v4480_v31  ;;  %v4559_v30 = vld [vmem:[%s6523_s1 + $0x7d0] ss:$8 sps:$4 sm:$0xff]   ;;  %v4567_v31 = vld [vmem:[%s6523_s1 + $0x7c4] ss:$8 sps:$4 sm:$0xff]  }
  0xb9   :  { %3323 = vmatprep.subr.bf16.mxu1 %v4488_v33  ;;  %v4570_v33 = vld [vmem:[%s6523_s1 + $0x6b4] ss:$8 sps:$4 sm:$0xff]  }
  0xbb   :  { %3283 = vmatpush2.bf16.msra.mxu0 %v4483_v35  ;;  %v4565_v35 = vld [vmem:[%s6523_s1 + $0x7c0] ss:$8 sps:$4 sm:$0xff]  }
  0xbc   :  { %3284 = vmatprep.subr.bf16.mxu0 %v4491_v37  ;;  %3324 = vmatpush2.bf16.msra.mxu1 %v4486_v38  ;;  %v4573_v37 = vld [vmem:[%s6523_s1 + $0x7b4] ss:$8 sps:$4 sm:$0xff]   ;;  %v4568_v38 = vld [vmem:[%s6523_s1 + $0x6b0] ss:$8 sps:$4 sm:$0xff]  }
  0xbd   :  { %3325 = vmatprep.subr.bf16.mxu1 %v4494_v41  ;;  %v4576_v41 = vld [vmem:[%s6523_s1 + $0x6a4] ss:$8 sps:$4 sm:$0xff]  }
  0xbf   :  { %3285 = vmatpush2.bf16.msra.mxu0 %v4489_v42  ;;  %v4571_v42 = vld [vmem:[%s6523_s1 + $0x7b0] ss:$8 sps:$4 sm:$0xff]  }
  0xc0   :  { %3336 = vmatprep.subr.bf16.mxu0 %v4497_v45  ;;  %3326 = vmatpush2.bf16.msra.mxu1 %v4492_v46  ;;  %v19_v45 = vld [vmem:[%s6524_s0 + $0x20] sm:$0xff] }
  0xc1   :  { %3377 = vmatprep.subr.bf16.mxu1 %v4501_v50  ;;  %v4574_v46 = vld [vmem:[%s6523_s1 + $0x6a0] ss:$8 sps:$4 sm:$0xff]   ;;  %v99_v50 = vcombine.high %v19_v45, %v19_v45 }
  0xc2   :  { %3287 = vmatmul.mubr.bf16.vlgmr.msra.gmra.mxu0 %v196_v49  ;;  %v4577_v49 = vld [vmem:[%s6523_s1 + $0x7a0] ss:$8 sps:$4 sm:$0xff]  }
  0xc3   :  { %3337 = vmatpush1.bf16.msra.mxu0 %v4495_v51  ;;  %3368 = vmatprep.mubr.bf16.mxu0 %v201_v52  ;;  %v4585_v51 = vld [vmem:[%s6523_s1 + $0x794] ss:$8 sps:$4 sm:$0xff]   ;;  %v4580_v52 = vld [vmem:[%s6523_s1 + $0x690] ss:$8 sps:$4 sm:$0xff]  }
  0xc4   :  { %3328 = vmatmul.mubr.bf16.vlgmr.msra.gmra.mxu1 %v198_v53  ;;  %3338 = vmatprep.subr.bf16.mxu0 %v4504_v54  ;;  %v5761_v53 = vrot.slane %v19_v45, %v5079_v48  ;;  %v4588_v54 = vld [vmem:[%s6523_s1 + $0x684] ss:$8 sps:$4 sm:$0xff]   ;;  %v4629_v45 = vld [vmem:[%s6523_s1 + $0x810] ss:$8 sps:$4 sm:$0xff]  }
  0xc5   :  { %3378 = vmatpush1.bf16.msra.mxu1 %v4499_v34  ;;  %3409 = vmatprep.mubr.bf16.mxu1 %v203_v55  ;;  %v4583_v34 = vld [vmem:[%s6523_s1 + $0x790] ss:$8 sps:$4 sm:$0xff]   ;;  %v5770_v55 = vrot.slane %v99_v50, %v5079_v48  ;;  %v4635_v50 = vld [vmem:[%s6523_s1 + $0x800] ss:$8 sps:$4 sm:$0xff]  }
  0xc6   :  { %3379 = vmatprep.subr.bf16.mxu1 %v4507_v56  ;;  %v4591_v56 = vld [vmem:[%s6523_s1 + $0x784] ss:$8 sps:$4 sm:$0xff]  }
  0xc7   :  { %3339 = vmatpush1.bf16.msra.mxu0 %v4502_v39  ;;  %v4586_v39 = vld [vmem:[%s6523_s1 + $0x680] ss:$8 sps:$4 sm:$0xff]  }
  0xc8   :  { %3340 = vmatprep.subr.bf16.mxu0 %v4510_v57  ;;  %v698_v57 = vsub.s32 0, %v5064_v43 }
  0xc9   :  { %3380 = vmatpush1.bf16.msra.mxu1 %v4505_v58  ;;  %v114_v58 = vcombine.high %v5761_v53, %v5761_v53 }
  0xca   :  { %3381 = vmatprep.subr.bf16.mxu1 %v4513_v59  ;;  %v694_v59 = vld [vmem:[%s6525_s2] sm:$0x3] }
  0xcb   :  { %3341 = vmatpush1.bf16.msra.mxu0 %v4508_v60  ;;  %v4594_v60 = vld [vmem:[%s6523_s1 + $0x874] ss:$8 sps:$4 sm:$0xff]  }
  0xcc   :  { %3342 = vmatprep.subr.bf16.mxu0 %v4516_v61  ;;  %v4589_v61 = vld [vmem:[%s6523_s1 + $0x780] ss:$8 sps:$4 sm:$0xff]  }
  0xcd   :  { %3382 = vmatpush1.bf16.msra.mxu1 %v4511_v62  ;;  %v702_v62 = vsub.s32 1, %v5064_v43  ;;  %v202_v43 = vpack.c.bf16 %v5561_v40, %v5561_v40  ;;  %v4599_v40 = vld [vmem:[%s6523_s1 + $0x860] ss:$8 sps:$4 sm:$0xff]  }
  0xce   :  { %3383 = vmatprep.subr.bf16.mxu1 %v4519_v63  ;;  %v115_v63 = vcombine.high %v5770_v55, %v5770_v55 }
  0xcf   :  { %3343 = vmatpush1.bf16.msra.mxu0 %v4514_v0  ;;  %v200_v0 = vpack.c.bf16 %v5552_v36, %v5552_v36  ;;  %v703_v36 = vrot.slane %v694_v59, %v702_v62  ;;  %v4653_v62 = vld [vmem:[%s6523_s1 + $0x8d0] ss:$8 sps:$4 sm:$0xff]  }
  0xd0   :  { %3344 = vmatprep.subr.bf16.mxu0 %v4522_v1  ;;  %v4598_v1 = vld [vmem:[%s6523_s1 + $0x974] ss:$8 sps:$4 sm:$0xff]  }
  0xd1   :  { %3384 = vmatpush1.bf16.msra.mxu1 %v4517_v2  ;;  %v699_v2 = vrot.slane %v694_v59, %v698_v57  ;;  %v4652_v57 = vld [vmem:[%s6523_s1 + $0x9e4] ss:$8 sps:$4 sm:$0xff]   ;;  %v4655_v59 = vld [vmem:[%s6523_s1 + $0x8d4] ss:$8 sps:$4 sm:$0xff]  }
  0xd2   :  { %3385 = vmatprep.subr.bf16.mxu1 %v4525_v3  ;;  %v4592_v3 = vld [vmem:[%s6523_s1 + $0x870] ss:$8 sps:$4 sm:$0xff]  }
  0xd3   :  { %3345 = vmatpush1.bf16.msra.mxu0 %v4520_v4  ;;  %v205_v4 = vpack.c.bf16 %v114_v58, %v114_v58  ;;  %v4647_v58 = vld [vmem:[%s6523_s1 + $0x8e0] ss:$8 sps:$4 sm:$0xff]  }
  0xd4   :  { %3346 = vmatprep.subr.bf16.mxu0 %v4528_v5  ;;  %v4601_v5 = vld [vmem:[%s6523_s1 + $0x864] ss:$8 sps:$4 sm:$0xff]  }
  0xd5   :  { %3386 = vmatpush1.bf16.msra.mxu1 %v4523_v6  ;;  %v4596_v6 = vld [vmem:[%s6523_s1 + $0x970] ss:$8 sps:$4 sm:$0xff]  }
  0xd6   :  { %3387 = vmatprep.subr.bf16.mxu1 %v4531_v7  ;;  %v207_v7 = vpack.c.bf16 %v115_v63, %v115_v63  ;;  %v4661_v63 = vld [vmem:[%s6523_s1 + $0x8c4] ss:$8 sps:$4 sm:$0xff]  }
  0xd7   :  { %3347 = vmatpush1.bf16.msra.mxu0 %v4526_v8 }
  0xd8   :  { %3348 = vmatprep.subr.bf16.mxu0 %v4534_v9  ;;  %v4604_v9 = vld [vmem:[%s6523_s1 + $0x964] ss:$8 sps:$4 sm:$0xff]  }
  0xd9   :  { %3388 = vmatpush1.bf16.msra.mxu1 %v4529_v10 }
  0xda   :  { %3389 = vmatprep.subr.bf16.mxu1 %v4537_v11 }
  0xdb   :  { %3349 = vmatpush1.bf16.msra.mxu0 %v4532_v12 }
  0xdc   :  { %3350 = vmatprep.subr.bf16.mxu0 %v4540_v13  ;;  %v4607_v13 = vld [vmem:[%s6523_s1 + $0x854] ss:$8 sps:$4 sm:$0xff]  }
  0xdd   :  { %3390 = vmatpush1.bf16.msra.mxu1 %v4535_v14 }
  0xde   :  { %3391 = vmatprep.subr.bf16.mxu1 %v4543_v15 }
  0xdf   :  { %3351 = vmatpush1.bf16.msra.mxu0 %v4538_v16  ;;  %v4602_v16 = vld [vmem:[%s6523_s1 + $0x960] ss:$8 sps:$4 sm:$0xff]  }
  0xe0   :  { %3352 = vmatprep.subr.bf16.mxu0 %v4546_v17 }
  0xe1   :  { %3392 = vmatpush1.bf16.msra.mxu1 %v4541_v18 }
  0xe2   :  { %3393 = vmatprep.subr.bf16.mxu1 %v4549_v19  ;;  %v4610_v19 = vld [vmem:[%s6523_s1 + $0x954] ss:$8 sps:$4 sm:$0xff]  }
  0xe3   :  { %3353 = vmatpush2.bf16.msra.mxu0 %v4544_v20 }
  0xe4   :  { %3354 = vmatprep.subr.bf16.mxu0 %v4552_v21  ;;  %v4605_v21 = vld [vmem:[%s6523_s1 + $0x850] ss:$8 sps:$4 sm:$0xff]  }
  0xe5   :  { %3394 = vmatpush2.bf16.msra.mxu1 %v4547_v22 }
  0xe6   :  { %3395 = vmatprep.subr.bf16.mxu1 %v4555_v23  ;;  %v4613_v23 = vld [vmem:[%s6523_s1 + $0x844] ss:$8 sps:$4 sm:$0xff]  }
  0xe7   :  { %3355 = vmatpush2.bf16.msra.mxu0 %v4550_v24 }
  0xe8   :  { %3356 = vmatprep.subr.bf16.mxu0 %v4558_v25  ;;  %v4608_v25 = vld [vmem:[%s6523_s1 + $0x950] ss:$8 sps:$4 sm:$0xff]  }
  0xe9   :  { %3396 = vmatpush2.bf16.msra.mxu1 %v4553_v26  ;;  %v4616_v26 = vld [vmem:[%s6523_s1 + $0x944] ss:$8 sps:$4 sm:$0xff]  }
  0xea   :  { %3397 = vmatprep.subr.bf16.mxu1 %v4561_v27 }
  0xeb   :  { %3357 = vmatpush2.bf16.msra.mxu0 %v4556_v28  ;;  %v4611_v28 = vld [vmem:[%s6523_s1 + $0x840] ss:$8 sps:$4 sm:$0xff]  }
  0xec   :  { %3358 = vmatprep.subr.bf16.mxu0 %v4564_v29  ;;  %v4619_v29 = vld [vmem:[%s6523_s1 + $0x834] ss:$8 sps:$4 sm:$0xff]  }
  0xed   :  { %3398 = vmatpush2.bf16.msra.mxu1 %v4559_v30  ;;  %v4614_v30 = vld [vmem:[%s6523_s1 + $0x940] ss:$8 sps:$4 sm:$0xff]  }
  0xee   :  { %3399 = vmatprep.subr.bf16.mxu1 %v4567_v31  ;;  %v4622_v31 = vld [vmem:[%s6523_s1 + $0x934] ss:$8 sps:$4 sm:$0xff]  }
  0xef   :  { %3359 = vmatpush2.bf16.msra.mxu0 %v4562_v32  ;;  %v4617_v32 = vld [vmem:[%s6523_s1 + $0x830] ss:$8 sps:$4 sm:$0xff]  }
  0xf0   :  { %3360 = vmatprep.subr.bf16.mxu0 %v4570_v33  ;;  %v4625_v33 = vld [vmem:[%s6523_s1 + $0x824] ss:$8 sps:$4 sm:$0xff]  }
  0xf1   :  { %3400 = vmatpush2.bf16.msra.mxu1 %v4565_v35  ;;  %v4620_v35 = vld [vmem:[%s6523_s1 + $0x930] ss:$8 sps:$4 sm:$0xff]  }
  0xf2   :  { %3401 = vmatprep.subr.bf16.mxu1 %v4573_v37  ;;  %v4628_v37 = vld [vmem:[%s6523_s1 + $0x924] ss:$8 sps:$4 sm:$0xff]  }
  0xf3   :  { %3361 = vmatpush2.bf16.msra.mxu0 %v4568_v38  ;;  %v4623_v38 = vld [vmem:[%s6523_s1 + $0x820] ss:$8 sps:$4 sm:$0xff]  }
  0xf4   :  { %3362 = vmatprep.subr.bf16.mxu0 %v4576_v41  ;;  %v4631_v41 = vld [vmem:[%s6523_s1 + $0x814] ss:$8 sps:$4 sm:$0xff]  }
  0xf5   :  { %3402 = vmatpush2.bf16.msra.mxu1 %v4571_v42  ;;  %v4626_v42 = vld [vmem:[%s6523_s1 + $0x920] ss:$8 sps:$4 sm:$0xff]  }
  0xf6   :  { %3403 = vmatprep.subr.bf16.mxu1 %v4579_v44  ;;  %v4634_v44 = vld [vmem:[%s6523_s1 + $0x914] ss:$8 sps:$4 sm:$0xff]  }
  0xf7   :  { %3363 = vmatpush2.bf16.msra.mxu0 %v4574_v46  ;;  %v4637_v46 = vld [vmem:[%s6523_s1 + $0x804] ss:$8 sps:$4 sm:$0xff]  }
  0xf8   :  { %3364 = vmatprep.subr.bf16.mxu0 %v4582_v47  ;;  %v4632_v47 = vld [vmem:[%s6523_s1 + $0x910] ss:$8 sps:$4 sm:$0xff]  }
  0xf9   :  { %3404 = vmatpush2.bf16.msra.mxu1 %v4577_v49  ;;  %v4640_v49 = vld [vmem:[%s6523_s1 + $0x904] ss:$8 sps:$4 sm:$0xff]  }
  0xfa   :  { %3405 = vmatprep.subr.bf16.mxu1 %v4585_v51  ;;  %v4643_v51 = vld [vmem:[%s6523_s1 + $0x8f4] ss:$8 sps:$4 sm:$0xff]  }
  0xfb   :  { %3365 = vmatpush2.bf16.msra.mxu0 %v4580_v52  ;;  %v4638_v52 = vld [vmem:[%s6523_s1 + $0x900] ss:$8 sps:$4 sm:$0xff]  }
  0xfc   :  { %3366 = vmatprep.subr.bf16.mxu0 %v4588_v54  ;;  %v4646_v54 = vld [vmem:[%s6523_s1 + $0x9f4] ss:$8 sps:$4 sm:$0xff]  }
  0xfd   :  { %3406 = vmatpush2.bf16.msra.mxu1 %v4583_v34  ;;  %v4641_v34 = vld [vmem:[%s6523_s1 + $0x8f0] ss:$8 sps:$4 sm:$0xff]  }
  0xfe   :  { %3407 = vmatprep.subr.bf16.mxu1 %v4591_v56  ;;  %v4649_v56 = vld [vmem:[%s6523_s1 + $0x8e4] ss:$8 sps:$4 sm:$0xff]  }
  0xff   :  { %3367 = vmatpush2.bf16.msra.mxu0 %v4586_v39  ;;  %v4644_v39 = vld [vmem:[%s6523_s1 + $0x9f0] ss:$8 sps:$4 sm:$0xff]  }
 0x100   :  { %3418 = vmatprep.subr.bf16.mxu0 %v4594_v60  ;;  %v4650_v60 = vld [vmem:[%s6523_s1 + $0x9e0] ss:$8 sps:$4 sm:$0xff]  }
 0x101   :  { %3408 = vmatpush2.bf16.msra.mxu1 %v4589_v61  ;;  %v4658_v61 = vld [vmem:[%s6523_s1 + $0x9d4] ss:$8 sps:$4 sm:$0xff]  }
 0x102   :  { %v3124_v8 = vpop.f32.mrf.mxu0  ;;  %3369 = vmatmul.mubr.bf16.vlgmr.msra.gmra.mxu0 %v200_v0  ;;  %3459 = vmatprep.subr.bf16.mxu1 %v4598_v1  ;;  %v4656_v0 = vld [vmem:[%s6523_s1 + $0x9d0] ss:$8 sps:$4 sm:$0xff]   ;;  %v4664_v1 = vld [vmem:[%s6523_s1 + $0x9c4] ss:$8 sps:$4 sm:$0xff]  }
 0x103   :  { %v3125_v10 = vadd.f32 %v3124_v8, %v699_v2  ;;  %3419 = vmatpush1.bf16.msra.mxu0 %v4592_v3  ;;  %3450 = vmatprep.mubr.bf16.mxu0 %v205_v4  ;;  %v3165_v12 = vpop.f32.mrf.mxu1  ;;  %v4659_v2 = vld [vmem:[%s6523_s1 + $0x8c0] ss:$8 sps:$4 sm:$0xff]   ;;  %v4667_v3 = vld [vmem:[%s6523_s1 + $0x8b4] ss:$8 sps:$4 sm:$0xff]  }
 0x104   :  { %v3126_v11 = vpop.f32.mrf.mxu0  ;;  %3410 = vmatmul.mubr.bf16.vlgmr.msra.gmra.mxu1 %v202_v43  ;;  %3420 = vmatprep.subr.bf16.mxu0 %v4601_v5  ;;  %v4662_v4 = vld [vmem:[%s6523_s1 + $0x9c0] ss:$8 sps:$4 sm:$0xff]   ;;  %v4670_v43 = vld [vmem:[%s6523_s1 + $0x9b4] ss:$8 sps:$4 sm:$0xff]   ;;  %v4665_v5 = vld [vmem:[%s6523_s1 + $0x8b0] ss:$8 sps:$4 sm:$0xff]  }
 0x105   :  { %v3127_v14 = vadd.f32 %v3126_v11, %v703_v36  ;;  %v5818_v15 = vadd.f32 %v3165_v12, %v3125_v10  ;;  %3460 = vmatpush1.bf16.msra.mxu1 %v4596_v6  ;;  %3491 = vmatprep.mubr.bf16.mxu1 %v207_v7  ;;  %v3167_v18 = vpop.f32.mrf.mxu1  ;;  %v4673_v36 = vld [vmem:[%s6523_s1 + $0x8a4] ss:$8 sps:$4 sm:$0xff]   ;;  %v4668_v6 = vld [vmem:[%s6523_s1 + $0x9b0] ss:$8 sps:$4 sm:$0xff]   ;;  %v4679_v10 = vld [vmem:[%s6523_s1 + $0x894] ss:$8 sps:$4 sm:$0xff]  }
 0x106   :  { %v3128_v17 = vpop.f32.mrf.mxu0  ;;  %3461 = vmatprep.subr.bf16.mxu1 %v4604_v9  ;;  %v4676_v7 = vld [vmem:[%s6523_s1 + $0x9a4] ss:$8 sps:$4 sm:$0xff]   ;;  %v4671_v9 = vld [vmem:[%s6523_s1 + $0x8a0] ss:$8 sps:$4 sm:$0xff]   ;;  %v4682_v12 = vld [vmem:[%s6523_s1 + $0x994] ss:$8 sps:$4 sm:$0xff]  }
 0x107   :  { %v5826_v20 = vadd.f32 %v3167_v18, %v3127_v14  ;;  %3421 = vmatpush1.bf16.msra.mxu0 %v4599_v40  ;;  %v3169_v24 = vpop.f32.mrf.mxu1  ;;  %v20_v8 = vld [vmem:[%s6524_s0 + $0x28] sm:$0xff]  ;;  %v4680_v17 = vld [vmem:[%s6523_s1 + $0x990] ss:$8 sps:$4 sm:$0xff]  }
 0x108   :  { %v3129_v22 = vpop.f32.mrf.mxu0  ;;  %3422 = vmatprep.subr.bf16.mxu0 %v4607_v13  ;;  %v4674_v40 = vld [vmem:[%s6523_s1 + $0x9a0] ss:$8 sps:$4 sm:$0xff]   ;;  %v116_v11 = vcombine.high %v20_v8, %v20_v8  ;;  %v4677_v13 = vld [vmem:[%s6523_s1 + $0x890] ss:$8 sps:$4 sm:$0xff]   ;;  %v5979_v14 = vrot.slane %v20_v8, %v5079_v48  ;;  %v4740_v8 = vld [vmem:[%s6523_s1 + $0xaf4] ss:$8 sps:$4 sm:$0xff]  }
 0x109   :  { %3462 = vmatpush1.bf16.msra.mxu1 %v4602_v16  ;;  %v3170_v27 = vpop.f32.mrf.mxu1  ;;  %v4685_v16 = vld [vmem:[%s6523_s1 + $0x884] ss:$8 sps:$4 sm:$0xff]   ;;  %v4686_v24 = vld [vmem:[%s6523_s1 + $0x980] ss:$8 sps:$4 sm:$0xff]  }
 0x10a   :  { %3463 = vmatprep.subr.bf16.mxu1 %v4610_v19  ;;  %v5988_v18 = vrot.slane %v116_v11, %v5079_v48  ;;  %v4688_v19 = vld [vmem:[%s6523_s1 + $0x984] ss:$8 sps:$4 sm:$0xff]   ;;  %v131_v22 = vcombine.high %v5979_v14, %v5979_v14  ;;  %v4695_v27 = vld [vmem:[%s6523_s1 + $0xb74] ss:$8 sps:$4 sm:$0xff]  }
 0x10b   :  { %3423 = vmatpush1.bf16.msra.mxu0 %v4605_v21  ;;  %v4683_v21 = vld [vmem:[%s6523_s1 + $0x880] ss:$8 sps:$4 sm:$0xff]   ;;  %v4746_v11 = vld [vmem:[%s6523_s1 + $0xae4] ss:$8 sps:$4 sm:$0xff]  }
 0x10c   :  { %3424 = vmatprep.subr.bf16.mxu0 %v4613_v23  ;;  %v4691_v23 = vld [vmem:[%s6523_s1 + $0xa74] ss:$8 sps:$4 sm:$0xff]  }
 0x10d   :  { %3464 = vmatpush1.bf16.msra.mxu1 %v4608_v25  ;;  %v132_v25 = vcombine.high %v5988_v18, %v5988_v18 }
 0x10e   :  { %3465 = vmatprep.subr.bf16.mxu1 %v4616_v26  ;;  %v204_v26 = vpack.c.bf16 %v5761_v53, %v5761_v53  ;;  %v4693_v53 = vld [vmem:[%s6523_s1 + $0xb70] ss:$8 sps:$4 sm:$0xff]  }
 0x10f   :  { %3425 = vmatpush1.bf16.msra.mxu0 %v4611_v28  ;;  %v4689_v28 = vld [vmem:[%s6523_s1 + $0xa70] ss:$8 sps:$4 sm:$0xff]  }
 0x110   :  { %3426 = vmatprep.subr.bf16.mxu0 %v4619_v29  ;;  %v209_v29 = vpack.c.bf16 %v131_v22, %v131_v22  ;;  %v4750_v22 = vld [vmem:[%s6523_s1 + $0xad0] ss:$8 sps:$4 sm:$0xff]  }
 0x111   :  { %3466 = vmatpush1.bf16.msra.mxu1 %v4614_v30  ;;  %v206_v30 = vpack.c.bf16 %v5770_v55, %v5770_v55  ;;  %v4696_v55 = vld [vmem:[%s6523_s1 + $0xa60] ss:$8 sps:$4 sm:$0xff]  }
 0x112   :  { %3467 = vmatprep.subr.bf16.mxu1 %v4622_v31  ;;  %v4698_v31 = vld [vmem:[%s6523_s1 + $0xa64] ss:$8 sps:$4 sm:$0xff]  }
 0x113   :  { %3427 = vmatpush1.bf16.msra.mxu0 %v4617_v32  ;;  %v211_v32 = vpack.c.bf16 %v132_v25, %v132_v25  ;;  %v4761_v25 = vld [vmem:[%s6523_s1 + $0xbc4] ss:$8 sps:$4 sm:$0xff]  }
 0x114   :  { %3428 = vmatprep.subr.bf16.mxu0 %v4625_v33 }
 0x115   :  { %3468 = vmatpush1.bf16.msra.mxu1 %v4620_v35  ;;  %v4701_v35 = vld [vmem:[%s6523_s1 + $0xb64] ss:$8 sps:$4 sm:$0xff]  }
 0x116   :  { %3469 = vmatprep.subr.bf16.mxu1 %v4628_v37 }
 0x117   :  { %3429 = vmatpush1.bf16.msra.mxu0 %v4623_v38 }
 0x118   :  { %3430 = vmatprep.subr.bf16.mxu0 %v4631_v41 }
 0x119   :  { %3470 = vmatpush1.bf16.msra.mxu1 %v4626_v42  ;;  %v4704_v42 = vld [vmem:[%s6523_s1 + $0xa54] ss:$8 sps:$4 sm:$0xff]  }
 0x11a   :  { %3471 = vmatprep.subr.bf16.mxu1 %v4634_v44 }
 0x11b   :  { %3431 = vmatpush1.bf16.msra.mxu0 %v4629_v45 }
 0x11c   :  { %3432 = vmatprep.subr.bf16.mxu0 %v4637_v46 }
 0x11d   :  { %3472 = vmatpush1.bf16.msra.mxu1 %v4632_v47 }
 0x11e   :  { %3473 = vmatprep.subr.bf16.mxu1 %v4640_v49  ;;  %v4707_v49 = vld [vmem:[%s6523_s1 + $0xb54] ss:$8 sps:$4 sm:$0xff]  }
 0x11f   :  { %3433 = vmatpush1.bf16.msra.mxu0 %v4635_v50 }
 0x120   :  { %3434 = vmatprep.subr.bf16.mxu0 %v4643_v51 }
 0x121   :  { %3474 = vmatpush1.bf16.msra.mxu1 %v4638_v52  ;;  %v4710_v52 = vld [vmem:[%s6523_s1 + $0xa44] ss:$8 sps:$4 sm:$0xff]  }
 0x122   :  { %3475 = vmatprep.subr.bf16.mxu1 %v4646_v54 }
 0x123   :  { %3435 = vmatpush2.bf16.msra.mxu0 %v4641_v34  ;;  %v4705_v34 = vld [vmem:[%s6523_s1 + $0xb50] ss:$8 sps:$4 sm:$0xff]  }
 0x124   :  { %3436 = vmatprep.subr.bf16.mxu0 %v4649_v56  ;;  %v4713_v56 = vld [vmem:[%s6523_s1 + $0xb44] ss:$8 sps:$4 sm:$0xff]  }
 0x125   :  { %3476 = vmatpush2.bf16.msra.mxu1 %v4644_v39 }
 0x126   :  { %3477 = vmatprep.subr.bf16.mxu1 %v4652_v57  ;;  %v4708_v57 = vld [vmem:[%s6523_s1 + $0xa40] ss:$8 sps:$4 sm:$0xff]  }
 0x127   :  { %3437 = vmatpush2.bf16.msra.mxu0 %v4647_v58  ;;  %v4716_v58 = vld [vmem:[%s6523_s1 + $0xa34] ss:$8 sps:$4 sm:$0xff]  }
 0x128   :  { %3438 = vmatprep.subr.bf16.mxu0 %v4655_v59  ;;  %v4711_v59 = vld [vmem:[%s6523_s1 + $0xb40] ss:$8 sps:$4 sm:$0xff]  }
 0x129   :  { %3478 = vmatpush2.bf16.msra.mxu1 %v4650_v60  ;;  %v4719_v60 = vld [vmem:[%s6523_s1 + $0xb34] ss:$8 sps:$4 sm:$0xff]  }
 0x12a   :  { %3479 = vmatprep.subr.bf16.mxu1 %v4658_v61  ;;  %v4714_v61 = vld [vmem:[%s6523_s1 + $0xa30] ss:$8 sps:$4 sm:$0xff]  }
 0x12b   :  { %3439 = vmatpush2.bf16.msra.mxu0 %v4653_v62  ;;  %v4722_v62 = vld [vmem:[%s6523_s1 + $0xa24] ss:$8 sps:$4 sm:$0xff]  }
 0x12c   :  { %3440 = vmatprep.subr.bf16.mxu0 %v4661_v63  ;;  %v4717_v63 = vld [vmem:[%s6523_s1 + $0xb30] ss:$8 sps:$4 sm:$0xff]  }
 0x12d   :  { %3480 = vmatpush2.bf16.msra.mxu1 %v4656_v0  ;;  %v4725_v0 = vld [vmem:[%s6523_s1 + $0xb24] ss:$8 sps:$4 sm:$0xff]  }
 0x12e   :  { %3481 = vmatprep.subr.bf16.mxu1 %v4664_v1  ;;  %v4720_v1 = vld [vmem:[%s6523_s1 + $0xa20] ss:$8 sps:$4 sm:$0xff]  }
 0x12f   :  { %3441 = vmatpush2.bf16.msra.mxu0 %v4659_v2  ;;  %v4728_v2 = vld [vmem:[%s6523_s1 + $0xa14] ss:$8 sps:$4 sm:$0xff]  }
 0x130   :  { %3442 = vmatprep.subr.bf16.mxu0 %v4667_v3  ;;  %v4723_v3 = vld [vmem:[%s6523_s1 + $0xb20] ss:$8 sps:$4 sm:$0xff]  }
 0x131   :  { %3482 = vmatpush2.bf16.msra.mxu1 %v4662_v4  ;;  %v4731_v4 = vld [vmem:[%s6523_s1 + $0xb14] ss:$8 sps:$4 sm:$0xff]  }
 0x132   :  { %3483 = vmatprep.subr.bf16.mxu1 %v4670_v43  ;;  %v4726_v43 = vld [vmem:[%s6523_s1 + $0xa10] ss:$8 sps:$4 sm:$0xff]  }
 0x133   :  { %3443 = vmatpush2.bf16.msra.mxu0 %v4665_v5  ;;  %v4734_v5 = vld [vmem:[%s6523_s1 + $0xa04] ss:$8 sps:$4 sm:$0xff]  }
 0x134   :  { %3444 = vmatprep.subr.bf16.mxu0 %v4673_v36  ;;  %v4729_v36 = vld [vmem:[%s6523_s1 + $0xb10] ss:$8 sps:$4 sm:$0xff]  }
 0x135   :  { %3484 = vmatpush2.bf16.msra.mxu1 %v4668_v6  ;;  %v4737_v6 = vld [vmem:[%s6523_s1 + $0xb04] ss:$8 sps:$4 sm:$0xff]  }
 0x136   :  { %3485 = vmatprep.subr.bf16.mxu1 %v4676_v7  ;;  %v4732_v7 = vld [vmem:[%s6523_s1 + $0xa00] ss:$8 sps:$4 sm:$0xff]  }
 0x137   :  { %3445 = vmatpush2.bf16.msra.mxu0 %v4671_v9  ;;  %v4735_v9 = vld [vmem:[%s6523_s1 + $0xb00] ss:$8 sps:$4 sm:$0xff]  }
 0x138   :  { %3446 = vmatprep.subr.bf16.mxu0 %v4679_v10  ;;  %v4743_v10 = vld [vmem:[%s6523_s1 + $0xbf4] ss:$8 sps:$4 sm:$0xff]  }
 0x139   :  { %3486 = vmatpush2.bf16.msra.mxu1 %v4674_v40  ;;  %v4738_v40 = vld [vmem:[%s6523_s1 + $0xaf0] ss:$8 sps:$4 sm:$0xff]  }
 0x13a   :  { %3487 = vmatprep.subr.bf16.mxu1 %v4682_v12  ;;  %v4741_v12 = vld [vmem:[%s6523_s1 + $0xbf0] ss:$8 sps:$4 sm:$0xff]  }
 0x13b   :  { %3447 = vmatpush2.bf16.msra.mxu0 %v4677_v13  ;;  %v4749_v13 = vld [vmem:[%s6523_s1 + $0xbe4] ss:$8 sps:$4 sm:$0xff]  }
 0x13c   :  { %3448 = vmatprep.subr.bf16.mxu0 %v4685_v16  ;;  %v4744_v16 = vld [vmem:[%s6523_s1 + $0xae0] ss:$8 sps:$4 sm:$0xff]  }
 0x13d   :  { %3488 = vmatpush2.bf16.msra.mxu1 %v4680_v17  ;;  %v4752_v17 = vld [vmem:[%s6523_s1 + $0xad4] ss:$8 sps:$4 sm:$0xff]  }
 0x13e   :  { %3489 = vmatprep.subr.bf16.mxu1 %v4688_v19  ;;  %v4747_v19 = vld [vmem:[%s6523_s1 + $0xbe0] ss:$8 sps:$4 sm:$0xff]  }
 0x13f   :  { %3449 = vmatpush2.bf16.msra.mxu0 %v4683_v21  ;;  %v4755_v21 = vld [vmem:[%s6523_s1 + $0xbd4] ss:$8 sps:$4 sm:$0xff]  }
 0x140   :  { %3500 = vmatprep.subr.bf16.mxu0 %v4691_v23  ;;  %v4758_v23 = vld [vmem:[%s6523_s1 + $0xac4] ss:$8 sps:$4 sm:$0xff]  }
 0x141   :  { %3490 = vmatpush2.bf16.msra.mxu1 %v4686_v24  ;;  %v4753_v24 = vld [vmem:[%s6523_s1 + $0xbd0] ss:$8 sps:$4 sm:$0xff]  }
 0x142   :  { %v3206_v33 = vpop.f32.mrf.mxu0  ;;  %3451 = vmatmul.mubr.bf16.vlgmr.msra.gmra.mxu0 %v204_v26  ;;  %3541 = vmatprep.subr.bf16.mxu1 %v4695_v27  ;;  %v4756_v26 = vld [vmem:[%s6523_s1 + $0xac0] ss:$8 sps:$4 sm:$0xff]   ;;  %v4764_v27 = vld [vmem:[%s6523_s1 + $0xab4] ss:$8 sps:$4 sm:$0xff]  }
 0x143   :  { %v3207_v37 = vadd.f32 %v3206_v33, %v5818_v15  ;;  %3501 = vmatpush1.bf16.msra.mxu0 %v4689_v28  ;;  %3532 = vmatprep.mubr.bf16.mxu0 %v209_v29  ;;  %v3247_v41 = vpop.f32.mrf.mxu1  ;;  %v4699_v15 = vld [vmem:[%s6523_s1 + $0xb60] ss:$8 sps:$4 sm:$0xff]   ;;  %v4767_v29 = vld [vmem:[%s6523_s1 + $0xbb4] ss:$8 sps:$4 sm:$0xff]  }
 0x144   :  { %v3208_v38 = vpop.f32.mrf.mxu0  ;;  %3492 = vmatmul.mubr.bf16.vlgmr.msra.gmra.mxu1 %v206_v30  ;;  %3502 = vmatprep.subr.bf16.mxu0 %v4698_v31  ;;  %v4759_v28 = vld [vmem:[%s6523_s1 + $0xbc0] ss:$8 sps:$4 sm:$0xff]   ;;  %v4762_v30 = vld [vmem:[%s6523_s1 + $0xab0] ss:$8 sps:$4 sm:$0xff]   ;;  %v4770_v31 = vld [vmem:[%s6523_s1 + $0xaa4] ss:$8 sps:$4 sm:$0xff]  }
 0x145   :  { %v3209_v44 = vadd.f32 %v3208_v38, %v5826_v20  ;;  %v6033_v45 = vadd.f32 %v3247_v41, %v3207_v37  ;;  %3542 = vmatpush1.bf16.msra.mxu1 %v4693_v53  ;;  %3573 = vmatprep.mubr.bf16.mxu1 %v211_v32  ;;  %v3249_v47 = vpop.f32.mrf.mxu1  ;;  %v4702_v20 = vld [vmem:[%s6523_s1 + $0xa50] ss:$8 sps:$4 sm:$0xff]   ;;  %v4773_v32 = vld [vmem:[%s6523_s1 + $0xba4] ss:$8 sps:$4 sm:$0xff]   ;;  %v4776_v37 = vld [vmem:[%s6523_s1 + $0xa94] ss:$8 sps:$4 sm:$0xff]  }
 0x146   :  { %v3210_v46 = vpop.f32.mrf.mxu0  ;;  %3543 = vmatprep.subr.bf16.mxu1 %v4701_v35  ;;  %v4765_v53 = vld [vmem:[%s6523_s1 + $0xbb0] ss:$8 sps:$4 sm:$0xff]   ;;  %v4768_v35 = vld [vmem:[%s6523_s1 + $0xaa0] ss:$8 sps:$4 sm:$0xff]   ;;  %v4779_v41 = vld [vmem:[%s6523_s1 + $0xb94] ss:$8 sps:$4 sm:$0xff]  }
 0x147   :  { %v6041_v50 = vadd.f32 %v3249_v47, %v3209_v44  ;;  %3503 = vmatpush1.bf16.msra.mxu0 %v4696_v55  ;;  %v3251_v54 = vpop.f32.mrf.mxu1  ;;  %v21_v33 = vld [vmem:[%s6524_s0 + $0x30] sm:$0xff]  ;;  %v4771_v55 = vld [vmem:[%s6523_s1 + $0xba0] ss:$8 sps:$4 sm:$0xff]  }
 0x148   :  { %v3211_v51 = vpop.f32.mrf.mxu0  ;;  %3504 = vmatprep.subr.bf16.mxu0 %v4704_v42  ;;  %v133_v38 = vcombine.high %v21_v33, %v21_v33  ;;  %v4774_v42 = vld [vmem:[%s6523_s1 + $0xa90] ss:$8 sps:$4 sm:$0xff]   ;;  %v6194_v44 = vrot.slane %v21_v33, %v5079_v48  ;;  %v4783_v54 = vld [vmem:[%s6523_s1 + $0xb80] ss:$8 sps:$4 sm:$0xff]   ;;  %v4837_v33 = vld [vmem:[%s6523_s1 + $0xcf4] ss:$8 sps:$4 sm:$0xff]  }
 0x149   :  { %3544 = vmatpush1.bf16.msra.mxu1 %v4699_v15  ;;  %v3252_v39 = vpop.f32.mrf.mxu1  ;;  %v4782_v15 = vld [vmem:[%s6523_s1 + $0xa84] ss:$8 sps:$4 sm:$0xff]   ;;  %v4777_v46 = vld [vmem:[%s6523_s1 + $0xb90] ss:$8 sps:$4 sm:$0xff]  }
 0x14a   :  { %3545 = vmatprep.subr.bf16.mxu1 %v4707_v49  ;;  %v6203_v47 = vrot.slane %v133_v38, %v5079_v48  ;;  %v4785_v49 = vld [vmem:[%s6523_s1 + $0xb84] ss:$8 sps:$4 sm:$0xff]   ;;  %v148_v51 = vcombine.high %v6194_v44, %v6194_v44  ;;  %v4792_v39 = vld [vmem:[%s6523_s1 + $0xd74] ss:$8 sps:$4 sm:$0xff]  }
 0x14b   :  { %3505 = vmatpush1.bf16.msra.mxu0 %v4702_v20  ;;  %v4780_v20 = vld [vmem:[%s6523_s1 + $0xa80] ss:$8 sps:$4 sm:$0xff]   ;;  %v4843_v38 = vld [vmem:[%s6523_s1 + $0xce4] ss:$8 sps:$4 sm:$0xff]  }
 0x14c   :  { %3506 = vmatprep.subr.bf16.mxu0 %v4710_v52  ;;  %v4788_v52 = vld [vmem:[%s6523_s1 + $0xc74] ss:$8 sps:$4 sm:$0xff]  }
 0x14d   :  { %3546 = vmatpush1.bf16.msra.mxu1 %v4705_v34  ;;  %v149_v34 = vcombine.high %v6203_v47, %v6203_v47 }
 0x14e   :  { %3547 = vmatprep.subr.bf16.mxu1 %v4713_v56  ;;  %v208_v56 = vpack.c.bf16 %v5979_v14, %v5979_v14  ;;  %v4790_v14 = vld [vmem:[%s6523_s1 + $0xd70] ss:$8 sps:$4 sm:$0xff]  }
 0x14f   :  { %3507 = vmatpush1.bf16.msra.mxu0 %v4708_v57  ;;  %v4786_v57 = vld [vmem:[%s6523_s1 + $0xc70] ss:$8 sps:$4 sm:$0xff]  }
 0x150   :  { %3508 = vmatprep.subr.bf16.mxu0 %v4716_v58  ;;  %v213_v58 = vpack.c.bf16 %v148_v51, %v148_v51  ;;  %v4847_v51 = vld [vmem:[%s6523_s1 + $0xcd0] ss:$8 sps:$4 sm:$0xff]  }
 0x151   :  { %3548 = vmatpush1.bf16.msra.mxu1 %v4711_v59  ;;  %v210_v59 = vpack.c.bf16 %v5988_v18, %v5988_v18  ;;  %v4793_v18 = vld [vmem:[%s6523_s1 + $0xc60] ss:$8 sps:$4 sm:$0xff]  }
 0x152   :  { %3549 = vmatprep.subr.bf16.mxu1 %v4719_v60  ;;  %v4795_v60 = vld [vmem:[%s6523_s1 + $0xc64] ss:$8 sps:$4 sm:$0xff]  }
 0x153   :  { %3509 = vmatpush1.bf16.msra.mxu0 %v4714_v61  ;;  %v215_v61 = vpack.c.bf16 %v149_v34, %v149_v34  ;;  %v4858_v34 = vld [vmem:[%s6523_s1 + $0xdc4] ss:$8 sps:$4 sm:$0xff]  }
 0x154   :  { %3510 = vmatprep.subr.bf16.mxu0 %v4722_v62 }
 0x155   :  { %3550 = vmatpush1.bf16.msra.mxu1 %v4717_v63  ;;  %v4798_v63 = vld [vmem:[%s6523_s1 + $0xd64] ss:$8 sps:$4 sm:$0xff]  }
 0x156   :  { %3551 = vmatprep.subr.bf16.mxu1 %v4725_v0 }
 0x157   :  { %3511 = vmatpush1.bf16.msra.mxu0 %v4720_v1 }
 0x158   :  { %3512 = vmatprep.subr.bf16.mxu0 %v4728_v2 }
 0x159   :  { %3552 = vmatpush1.bf16.msra.mxu1 %v4723_v3  ;;  %v4801_v3 = vld [vmem:[%s6523_s1 + $0xc54] ss:$8 sps:$4 sm:$0xff]  }
 0x15a   :  { %3553 = vmatprep.subr.bf16.mxu1 %v4731_v4 }
 0x15b   :  { %3513 = vmatpush1.bf16.msra.mxu0 %v4726_v43 }
 0x15c   :  { %3514 = vmatprep.subr.bf16.mxu0 %v4734_v5 }
 0x15d   :  { %3554 = vmatpush1.bf16.msra.mxu1 %v4729_v36 }
 0x15e   :  { %3555 = vmatprep.subr.bf16.mxu1 %v4737_v6  ;;  %v4804_v6 = vld [vmem:[%s6523_s1 + $0xd54] ss:$8 sps:$4 sm:$0xff]  }
 0x15f   :  { %3515 = vmatpush1.bf16.msra.mxu0 %v4732_v7 }
 0x160   :  { %3516 = vmatprep.subr.bf16.mxu0 %v4740_v8 }
 0x161   :  { %3556 = vmatpush1.bf16.msra.mxu1 %v4735_v9  ;;  %v4807_v9 = vld [vmem:[%s6523_s1 + $0xc44] ss:$8 sps:$4 sm:$0xff]  }
 0x162   :  { %3557 = vmatprep.subr.bf16.mxu1 %v4743_v10 }
 0x163   :  { %3517 = vmatpush2.bf16.msra.mxu0 %v4738_v40  ;;  %v4802_v40 = vld [vmem:[%s6523_s1 + $0xd50] ss:$8 sps:$4 sm:$0xff]  }
 0x164   :  { %3518 = vmatprep.subr.bf16.mxu0 %v4746_v11  ;;  %v4810_v11 = vld [vmem:[%s6523_s1 + $0xd44] ss:$8 sps:$4 sm:$0xff]  }
 0x165   :  { %3558 = vmatpush2.bf16.msra.mxu1 %v4741_v12 }
 0x166   :  { %3559 = vmatprep.subr.bf16.mxu1 %v4749_v13  ;;  %v4805_v13 = vld [vmem:[%s6523_s1 + $0xc40] ss:$8 sps:$4 sm:$0xff]  }
 0x167   :  { %3519 = vmatpush2.bf16.msra.mxu0 %v4744_v16  ;;  %v4813_v16 = vld [vmem:[%s6523_s1 + $0xc34] ss:$8 sps:$4 sm:$0xff]  }
 0x168   :  { %3520 = vmatprep.subr.bf16.mxu0 %v4752_v17  ;;  %v4808_v17 = vld [vmem:[%s6523_s1 + $0xd40] ss:$8 sps:$4 sm:$0xff]  }
 0x169   :  { %3560 = vmatpush2.bf16.msra.mxu1 %v4747_v19  ;;  %v4816_v19 = vld [vmem:[%s6523_s1 + $0xd34] ss:$8 sps:$4 sm:$0xff]  }
 0x16a   :  { %3561 = vmatprep.subr.bf16.mxu1 %v4755_v21  ;;  %v4811_v21 = vld [vmem:[%s6523_s1 + $0xc30] ss:$8 sps:$4 sm:$0xff]  }
 0x16b   :  { %3521 = vmatpush2.bf16.msra.mxu0 %v4750_v22  ;;  %v4819_v22 = vld [vmem:[%s6523_s1 + $0xc24] ss:$8 sps:$4 sm:$0xff]  }
 0x16c   :  { %3522 = vmatprep.subr.bf16.mxu0 %v4758_v23  ;;  %v4814_v23 = vld [vmem:[%s6523_s1 + $0xd30] ss:$8 sps:$4 sm:$0xff]  }
 0x16d   :  { %3562 = vmatpush2.bf16.msra.mxu1 %v4753_v24  ;;  %v4822_v24 = vld [vmem:[%s6523_s1 + $0xd24] ss:$8 sps:$4 sm:$0xff]  }
 0x16e   :  { %3563 = vmatprep.subr.bf16.mxu1 %v4761_v25  ;;  %v4817_v25 = vld [vmem:[%s6523_s1 + $0xc20] ss:$8 sps:$4 sm:$0xff]  }
 0x16f   :  { %3523 = vmatpush2.bf16.msra.mxu0 %v4756_v26  ;;  %v4825_v26 = vld [vmem:[%s6523_s1 + $0xc14] ss:$8 sps:$4 sm:$0xff]  }
 0x170   :  { %3524 = vmatprep.subr.bf16.mxu0 %v4764_v27  ;;  %v4820_v27 = vld [vmem:[%s6523_s1 + $0xd20] ss:$8 sps:$4 sm:$0xff]  }
 0x171   :  { %3564 = vmatpush2.bf16.msra.mxu1 %v4759_v28  ;;  %v4828_v28 = vld [vmem:[%s6523_s1 + $0xd14] ss:$8 sps:$4 sm:$0xff]  }
 0x172   :  { %3565 = vmatprep.subr.bf16.mxu1 %v4767_v29  ;;  %v4823_v29 = vld [vmem:[%s6523_s1 + $0xc10] ss:$8 sps:$4 sm:$0xff]  }
 0x173   :  { %3525 = vmatpush2.bf16.msra.mxu0 %v4762_v30  ;;  %v4831_v30 = vld [vmem:[%s6523_s1 + $0xc04] ss:$8 sps:$4 sm:$0xff]  }
 0x174   :  { %3526 = vmatprep.subr.bf16.mxu0 %v4770_v31  ;;  %v4826_v31 = vld [vmem:[%s6523_s1 + $0xd10] ss:$8 sps:$4 sm:$0xff]  }
 0x175   :  { %3566 = vmatpush2.bf16.msra.mxu1 %v4765_v53  ;;  %v4834_v53 = vld [vmem:[%s6523_s1 + $0xd04] ss:$8 sps:$4 sm:$0xff]  }
 0x176   :  { %3567 = vmatprep.subr.bf16.mxu1 %v4773_v32  ;;  %v4829_v32 = vld [vmem:[%s6523_s1 + $0xc00] ss:$8 sps:$4 sm:$0xff]  }
 0x177   :  { %3527 = vmatpush2.bf16.msra.mxu0 %v4768_v35  ;;  %v4832_v35 = vld [vmem:[%s6523_s1 + $0xd00] ss:$8 sps:$4 sm:$0xff]  }
 0x178   :  { %3528 = vmatprep.subr.bf16.mxu0 %v4776_v37  ;;  %v4840_v37 = vld [vmem:[%s6523_s1 + $0xdf4] ss:$8 sps:$4 sm:$0xff]  }
 0x179   :  { %3568 = vmatpush2.bf16.msra.mxu1 %v4771_v55  ;;  %v4835_v55 = vld [vmem:[%s6523_s1 + $0xcf0] ss:$8 sps:$4 sm:$0xff]  }
 0x17a   :  { %3569 = vmatprep.subr.bf16.mxu1 %v4779_v41  ;;  %v4838_v41 = vld [vmem:[%s6523_s1 + $0xdf0] ss:$8 sps:$4 sm:$0xff]  }
 0x17b   :  { %3529 = vmatpush2.bf16.msra.mxu0 %v4774_v42  ;;  %v4846_v42 = vld [vmem:[%s6523_s1 + $0xde4] ss:$8 sps:$4 sm:$0xff]  }
 0x17c   :  { %3530 = vmatprep.subr.bf16.mxu0 %v4782_v15  ;;  %v4841_v15 = vld [vmem:[%s6523_s1 + $0xce0] ss:$8 sps:$4 sm:$0xff]  }
 0x17d   :  { %3570 = vmatpush2.bf16.msra.mxu1 %v4777_v46  ;;  %v4849_v46 = vld [vmem:[%s6523_s1 + $0xcd4] ss:$8 sps:$4 sm:$0xff]  }
 0x17e   :  { %3571 = vmatprep.subr.bf16.mxu1 %v4785_v49  ;;  %v4844_v49 = vld [vmem:[%s6523_s1 + $0xde0] ss:$8 sps:$4 sm:$0xff]  }
 0x17f   :  { %3531 = vmatpush2.bf16.msra.mxu0 %v4780_v20  ;;  %v4852_v20 = vld [vmem:[%s6523_s1 + $0xdd4] ss:$8 sps:$4 sm:$0xff]  }
 0x180   :  { %3582 = vmatprep.subr.bf16.mxu0 %v4788_v52  ;;  %v4855_v52 = vld [vmem:[%s6523_s1 + $0xcc4] ss:$8 sps:$4 sm:$0xff]  }
 0x181   :  { %3572 = vmatpush2.bf16.msra.mxu1 %v4783_v54  ;;  %v4850_v54 = vld [vmem:[%s6523_s1 + $0xdd0] ss:$8 sps:$4 sm:$0xff]  }
 0x182   :  { %v3288_v62 = vpop.f32.mrf.mxu0  ;;  %3533 = vmatmul.mubr.bf16.vlgmr.msra.gmra.mxu0 %v208_v56  ;;  %3623 = vmatprep.subr.bf16.mxu1 %v4792_v39  ;;  %v4853_v56 = vld [vmem:[%s6523_s1 + $0xcc0] ss:$8 sps:$4 sm:$0xff]   ;;  %v4861_v39 = vld [vmem:[%s6523_s1 + $0xcb4] ss:$8 sps:$4 sm:$0xff]  }
 0x183   :  { %v3289_v0 = vadd.f32 %v3288_v62, %v6033_v45  ;;  %3583 = vmatpush1.bf16.msra.mxu0 %v4786_v57  ;;  %3614 = vmatprep.mubr.bf16.mxu0 %v213_v58  ;;  %v4796_v45 = vld [vmem:[%s6523_s1 + $0xd60] ss:$8 sps:$4 sm:$0xff]   ;;  %v4864_v58 = vld [vmem:[%s6523_s1 + $0xdb4] ss:$8 sps:$4 sm:$0xff]  }
 0x184   :  { %v3290_v1 = vpop.f32.mrf.mxu0  ;;  %v3329_v2 = vpop.f32.mrf.mxu1  ;;  %3574 = vmatmul.mubr.bf16.vlgmr.msra.gmra.mxu1 %v210_v59  ;;  %3584 = vmatprep.subr.bf16.mxu0 %v4795_v60  ;;  %v4856_v57 = vld [vmem:[%s6523_s1 + $0xdc0] ss:$8 sps:$4 sm:$0xff]   ;;  %v4859_v59 = vld [vmem:[%s6523_s1 + $0xcb0] ss:$8 sps:$4 sm:$0xff]   ;;  %v4867_v60 = vld [vmem:[%s6523_s1 + $0xca4] ss:$8 sps:$4 sm:$0xff]  }
 0x185   :  { %v3291_v4 = vadd.f32 %v3290_v1, %v6041_v50  ;;  %v6248_v43 = vadd.f32 %v3329_v2, %v3289_v0  ;;  %3624 = vmatpush1.bf16.msra.mxu1 %v4790_v14  ;;  %3655 = vmatprep.mubr.bf16.mxu1 %v215_v61  ;;  %v4799_v50 = vld [vmem:[%s6523_s1 + $0xc50] ss:$8 sps:$4 sm:$0xff]   ;;  %v4870_v61 = vld [vmem:[%s6523_s1 + $0xda4] ss:$8 sps:$4 sm:$0xff]   ;;  %v4865_v62 = vld [vmem:[%s6523_s1 + $0xca0] ss:$8 sps:$4 sm:$0xff]  }
 0x186   :  { %v3292_v5 = vpop.f32.mrf.mxu0  ;;  %v3331_v36 = vpop.f32.mrf.mxu1  ;;  %3625 = vmatprep.subr.bf16.mxu1 %v4798_v63  ;;  %v4862_v14 = vld [vmem:[%s6523_s1 + $0xdb0] ss:$8 sps:$4 sm:$0xff]   ;;  %v4873_v63 = vld [vmem:[%s6523_s1 + $0xc94] ss:$8 sps:$4 sm:$0xff]   ;;  %v4868_v0 = vld [vmem:[%s6523_s1 + $0xda0] ss:$8 sps:$4 sm:$0xff]  }
 0x187   :  { %v6256_v7 = vadd.f32 %v3331_v36, %v3291_v4  ;;  %3585 = vmatpush1.bf16.msra.mxu0 %v4793_v18  ;;  %v4876_v18 = vld [vmem:[%s6523_s1 + $0xd94] ss:$8 sps:$4 sm:$0xff]   ;;  %v4871_v1 = vld [vmem:[%s6523_s1 + $0xc90] ss:$8 sps:$4 sm:$0xff]   ;;  %v4879_v2 = vld [vmem:[%s6523_s1 + $0xc84] ss:$8 sps:$4 sm:$0xff]  }
 0x188   :  { %v3293_v8 = vpop.f32.mrf.mxu0  ;;  %3586 = vmatprep.subr.bf16.mxu0 %v4801_v3  ;;  %v3333_v10 = vpop.f32.mrf.mxu1  ;;  %v6411_v3 = vld.sshfl [vmem:[%s6524_s0 + $0x38] sm:$0x33 pattern:$0x76325410]  ;;  %v4877_v5 = vld [vmem:[%s6523_s1 + $0xc80] ss:$8 sps:$4 sm:$0xff]  }
 0x189   :  { %3626 = vmatpush1.bf16.msra.mxu1 %v4796_v45  ;;  %v4874_v4 = vld [vmem:[%s6523_s1 + $0xd90] ss:$8 sps:$4 sm:$0xff]   ;;  %v4882_v45 = vld [vmem:[%s6523_s1 + $0xd84] ss:$8 sps:$4 sm:$0xff]   ;;  %v157_v36 = vcombine.high %v6411_v3, %v6411_v3  ;;  %v212_v8 = vpack.c.bf16 %v6194_v44, %v6194_v44 }
 0x18a   :  { %3627 = vmatprep.subr.bf16.mxu1 %v4804_v6  ;;  %v3334_v12 = vpop.f32.mrf.mxu1  ;;  %v4885_v6 = vld [vmem:[%s6523_s1 + $0xe74] ss:$8 sps:$4 sm:$0xff]  }
 0x18b   :  { %3587 = vmatpush1.bf16.msra.mxu0 %v4799_v50  ;;  %v4880_v50 = vld [vmem:[%s6523_s1 + $0xd80] ss:$8 sps:$4 sm:$0xff]   ;;  %v217_v10 = vpack.c.bf16 %v157_v36, %v157_v36 }
 0x18c   :  { %3588 = vmatprep.subr.bf16.mxu0 %v4807_v9  ;;  %v4883_v9 = vld [vmem:[%s6523_s1 + $0xe70] ss:$8 sps:$4 sm:$0xff]  }
 0x18d   :  { %3628 = vmatpush1.bf16.msra.mxu1 %v4802_v40  ;;  %v214_v40 = vpack.c.bf16 %v6203_v47, %v6203_v47  ;;  %v4892_v47 = vld [vmem:[%s6523_s1 + $0xe54] ss:$8 sps:$4 sm:$0xff]  }
 0x18e   :  { %3629 = vmatprep.subr.bf16.mxu1 %v4810_v11  ;;  %v4889_v11 = vld [vmem:[%s6523_s1 + $0xe64] ss:$8 sps:$4 sm:$0xff]  }
 0x18f   :  { %3589 = vmatpush1.bf16.msra.mxu0 %v4805_v13  ;;  %v4887_v13 = vld [vmem:[%s6523_s1 + $0xe60] ss:$8 sps:$4 sm:$0xff]  }
 0x190   :  { %3590 = vmatprep.subr.bf16.mxu0 %v4813_v16 }
 0x191   :  { %3630 = vmatpush1.bf16.msra.mxu1 %v4808_v17 }
 0x192   :  { %3631 = vmatprep.subr.bf16.mxu1 %v4816_v19 }
 0x193   :  { %3591 = vmatpush1.bf16.msra.mxu0 %v4811_v21 }
 0x194   :  { %3592 = vmatprep.subr.bf16.mxu0 %v4819_v22 }
 0x195   :  { %3632 = vmatpush1.bf16.msra.mxu1 %v4814_v23 }
 0x196   :  { %3633 = vmatprep.subr.bf16.mxu1 %v4822_v24  ;;  %v4890_v24 = vld [vmem:[%s6523_s1 + $0xe50] ss:$8 sps:$4 sm:$0xff]  }
 0x197   :  { %3593 = vmatpush1.bf16.msra.mxu0 %v4817_v25 }
 0x198   :  { %3594 = vmatprep.subr.bf16.mxu0 %v4825_v26  ;;  %v4895_v26 = vld [vmem:[%s6523_s1 + $0xe44] ss:$8 sps:$4 sm:$0xff]  }
 0x199   :  { %3634 = vmatpush1.bf16.msra.mxu1 %v4820_v27 }
 0x19a   :  { %3635 = vmatprep.subr.bf16.mxu1 %v4828_v28 }
 0x19b   :  { %3595 = vmatpush1.bf16.msra.mxu0 %v4823_v29  ;;  %v4898_v29 = vld [vmem:[%s6523_s1 + $0xe34] ss:$8 sps:$4 sm:$0xff]  }
 0x19c   :  { %3596 = vmatprep.subr.bf16.mxu0 %v4831_v30  ;;  %v4896_v30 = vld [vmem:[%s6523_s1 + $0xe30] ss:$8 sps:$4 sm:$0xff]  }
 0x19d   :  { %3636 = vmatpush1.bf16.msra.mxu1 %v4826_v31  ;;  %v4901_v31 = vld [vmem:[%s6523_s1 + $0xe24] ss:$8 sps:$4 sm:$0xff]  }
 0x19e   :  { %3637 = vmatprep.subr.bf16.mxu1 %v4834_v53  ;;  %v4899_v53 = vld [vmem:[%s6523_s1 + $0xe20] ss:$8 sps:$4 sm:$0xff]  }
 0x19f   :  { %3597 = vmatpush1.bf16.msra.mxu0 %v4829_v32  ;;  %v4904_v32 = vld [vmem:[%s6523_s1 + $0xe14] ss:$8 sps:$4 sm:$0xff]  }
 0x1a0   :  { %3598 = vmatprep.subr.bf16.mxu0 %v4837_v33  ;;  %v4902_v33 = vld [vmem:[%s6523_s1 + $0xe10] ss:$8 sps:$4 sm:$0xff]  }
 0x1a1   :  { %3638 = vmatpush1.bf16.msra.mxu1 %v4832_v35  ;;  %v4907_v35 = vld [vmem:[%s6523_s1 + $0xe04] ss:$8 sps:$4 sm:$0xff]  }
 0x1a2   :  { %3639 = vmatprep.subr.bf16.mxu1 %v4840_v37  ;;  %v4905_v37 = vld [vmem:[%s6523_s1 + $0xe00] ss:$8 sps:$4 sm:$0xff]  }
 0x1a3   :  { %3599 = vmatpush2.bf16.msra.mxu0 %v4835_v55  ;;  %v4910_v55 = vld [vmem:[%s6523_s1 + $0xed4] ss:$8 sps:$4 sm:$0xff]  }
 0x1a4   :  { %3600 = vmatprep.subr.bf16.mxu0 %v4843_v38  ;;  %v4908_v38 = vld [vmem:[%s6523_s1 + $0xed0] ss:$8 sps:$4 sm:$0xff]  }
 0x1a5   :  { %3640 = vmatpush2.bf16.msra.mxu1 %v4838_v41  ;;  %v4913_v41 = vld [vmem:[%s6523_s1 + $0xec4] ss:$8 sps:$4 sm:$0xff]  }
 0x1a6   :  { %3641 = vmatprep.subr.bf16.mxu1 %v4846_v42  ;;  %v4911_v42 = vld [vmem:[%s6523_s1 + $0xec0] ss:$8 sps:$4 sm:$0xff]  }
 0x1a7   :  { %3601 = vmatpush2.bf16.msra.mxu0 %v4841_v15  ;;  %v4916_v15 = vld [vmem:[%s6523_s1 + $0xeb4] ss:$8 sps:$4 sm:$0xff]  }
 0x1a8   :  { %3602 = vmatprep.subr.bf16.mxu0 %v4849_v46  ;;  %v4914_v46 = vld [vmem:[%s6523_s1 + $0xeb0] ss:$8 sps:$4 sm:$0xff]  }
 0x1a9   :  { %3642 = vmatpush2.bf16.msra.mxu1 %v4844_v49  ;;  %v4919_v49 = vld [vmem:[%s6523_s1 + $0xea4] ss:$8 sps:$4 sm:$0xff]  }
 0x1aa   :  { %3643 = vmatprep.subr.bf16.mxu1 %v4852_v20  ;;  %v4917_v20 = vld [vmem:[%s6523_s1 + $0xea0] ss:$8 sps:$4 sm:$0xff]  }
 0x1ab   :  { %3603 = vmatpush2.bf16.msra.mxu0 %v4847_v51  ;;  %v4922_v51 = vld [vmem:[%s6523_s1 + $0xe94] ss:$8 sps:$4 sm:$0xff]  }
 0x1ac   :  { %3604 = vmatprep.subr.bf16.mxu0 %v4855_v52  ;;  %v4920_v52 = vld [vmem:[%s6523_s1 + $0xe90] ss:$8 sps:$4 sm:$0xff]  }
 0x1ad   :  { %3644 = vmatpush2.bf16.msra.mxu1 %v4850_v54  ;;  %v4925_v54 = vld [vmem:[%s6523_s1 + $0xe84] ss:$8 sps:$4 sm:$0xff]  }
 0x1ae   :  { %3645 = vmatprep.subr.bf16.mxu1 %v4858_v34  ;;  %v4923_v34 = vld [vmem:[%s6523_s1 + $0xe80] ss:$8 sps:$4 sm:$0xff]  }
 0x1af   :  { %3605 = vmatpush2.bf16.msra.mxu0 %v4853_v56  ;;  %v216_v56 = vpack.c.bf16 %v6411_v3, %v6411_v3 }
 0x1b0   :  { %3606 = vmatprep.subr.bf16.mxu0 %v4861_v39 }
 0x1b1   :  { %3646 = vmatpush2.bf16.msra.mxu1 %v4856_v57 }
 0x1b2   :  { %3647 = vmatprep.subr.bf16.mxu1 %v4864_v58 }
 0x1b3   :  { %3607 = vmatpush2.bf16.msra.mxu0 %v4859_v59 }
 0x1b4   :  { %3608 = vmatprep.subr.bf16.mxu0 %v4867_v60 }
 0x1b5   :  { %3648 = vmatpush2.bf16.msra.mxu1 %v4862_v14 }
 0x1b6   :  { %3649 = vmatprep.subr.bf16.mxu1 %v4870_v61 }
 0x1b7   :  { %3609 = vmatpush2.bf16.msra.mxu0 %v4865_v62 }
 0x1b8   :  { %3610 = vmatprep.subr.bf16.mxu0 %v4873_v63 }
 0x1b9   :  { %3650 = vmatpush2.bf16.msra.mxu1 %v4868_v0 }
 0x1ba   :  { %3651 = vmatprep.subr.bf16.mxu1 %v4876_v18 }
 0x1bb   :  { %3611 = vmatpush2.bf16.msra.mxu0 %v4871_v1 }
 0x1bc   :  { %3612 = vmatprep.subr.bf16.mxu0 %v4879_v2 }
 0x1bd   :  { %3652 = vmatpush2.bf16.msra.mxu1 %v4874_v4 }
 0x1be   :  { %3653 = vmatprep.subr.bf16.mxu1 %v4882_v45 }
 0x1bf   :  { %3613 = vmatpush2.bf16.msra.mxu0 %v4877_v5 }
 0x1c0   :  { %3664 = vmatprep.subr.bf16.mxu0 %v4885_v6 }
 0x1c1   :  { %3654 = vmatpush2.bf16.msra.mxu1 %v4880_v50 }
 0x1c2   :  { %v3370_v12 = vpop.f32.mrf.mxu0  ;;  %3615 = vmatmul.mubr.bf16.vlgmr.msra.gmra.mxu0 %v212_v8 }
 0x1c3   :  { %v3371_v44 = vadd.f32 %v3370_v12, %v6248_v43  ;;  %3665 = vmatpush1.bf16.msra.mxu0 %v4883_v9  ;;  %4203 = vmatprep.mubr.msk.bf16.mxu0 %vm3086_vm0, %v217_v10 }
 0x1c4   :  { %v3372_v16 = vpop.f32.mrf.mxu0  ;;  %v3411_v17 = vpop.f32.mrf.mxu1  ;;  %3656 = vmatmul.mubr.bf16.vlgmr.msra.gmra.mxu1 %v214_v40  ;;  %3666 = vmatprep.subr.bf16.mxu0 %v4889_v11 }
 0x1c5   :  { %v3373_v19 = vadd.f32 %v3372_v16, %v6256_v7  ;;  %v3412_v21 = vadd.f32 %v3411_v17, %v3371_v44  ;;  %v4893_v7 = vld [vmem:[%s6523_s1 + $0xe40] ss:$8 sps:$4 sm:$0xff]  }
 0x1c6   :  { %v3374_v22 = vpop.f32.mrf.mxu0  ;;  %v3413_v23 = vpop.f32.mrf.mxu1 }
 0x1c7   :  { %v3414_v43 = vadd.f32 %v3413_v23, %v3373_v19  ;;  %3667 = vmatpush1.bf16.msra.mxu0 %v4887_v13 }
 0x1c8   :  { %v3375_v25 = vpop.f32.mrf.mxu0  ;;  %3668 = vmatprep.subr.bf16.mxu0 %v4892_v47  ;;  %v3415_v27 = vpop.f32.mrf.mxu1 }
 0x1ca   :  { %v3416_v28 = vpop.f32.mrf.mxu1 }
 0x1cb   :  { %3669 = vmatpush1.bf16.msra.mxu0 %v4890_v24 }
 0x1cc   :  { %3670 = vmatprep.subr.bf16.mxu0 %v4895_v26 }
 0x1cf   :  { %3671 = vmatpush1.bf16.msra.mxu0 %v4893_v7 }
 0x1d0   :  { %3672 = vmatprep.subr.bf16.mxu0 %v4898_v29 }
 0x1d3   :  { %3673 = vmatpush1.bf16.msra.mxu0 %v4896_v30 }
 0x1d4   :  { %3674 = vmatprep.subr.bf16.mxu0 %v4901_v31 }
 0x1d7   :  { %3675 = vmatpush1.bf16.msra.mxu0 %v4899_v53 }
 0x1d8   :  { %3676 = vmatprep.subr.bf16.mxu0 %v4904_v32 }
 0x1db   :  { %3677 = vmatpush1.bf16.msra.mxu0 %v4902_v33 }
 0x1dc   :  { %3678 = vmatprep.subr.bf16.mxu0 %v4907_v35 }
 0x1df   :  { %3679 = vmatpush1.bf16.msra.mxu0 %v4905_v37 }
 0x1e0   :  { %3684 = vmatprep.subr.bf16.mxu0 %v4910_v55 }
 0x1e3   :  { %3685 = vmatpush2.bf16.msra.mxu0 %v4908_v38 }
 0x1e4   :  { %3686 = vmatprep.subr.bf16.mxu0 %v4913_v41 }
 0x1e7   :  { %3687 = vmatpush2.bf16.msra.mxu0 %v4911_v42 }
 0x1e8   :  { %3688 = vmatprep.subr.bf16.mxu0 %v4916_v15 }
 0x1eb   :  { %3689 = vmatpush2.bf16.msra.mxu0 %v4914_v46 }
 0x1ec   :  { %3690 = vmatprep.subr.bf16.mxu0 %v4919_v49 }
 0x1ef   :  { %3691 = vmatpush2.bf16.msra.mxu0 %v4917_v20 }
 0x1f0   :  { %3692 = vmatprep.subr.bf16.mxu0 %v4922_v51 }
 0x1f3   :  { %3693 = vmatpush2.bf16.msra.mxu0 %v4920_v52 }
 0x1f4   :  { %3694 = vmatprep.subr.bf16.mxu0 %v4925_v54 }
 0x1f7   :  { %3695 = vmatpush2.bf16.msra.mxu0 %v4923_v34 }
 0x1fa   :  { %3697 = vmatmul.mubr.bf16.vlgmr.msra.gmra.mxu0 %v216_v56 }
 0x202   :  { %v3452_v39 = vpop.f32.mrf.mxu0 }
 0x203   :  { %v3453_v57 = vadd.f32 %v3452_v39, %v3412_v21 }
 0x204   :  { %v3454_v58 = vpop.f32.mrf.mxu0  ;;  %v3493_v59 = vpop.f32.mrf.mxu1 }
 0x205   :  { %v3455_v60 = vadd.f32 %v3454_v58, %v3414_v43  ;;  %v3494_v14 = vadd.f32 %v3493_v59, %v3453_v57 }
 0x206   :  { %v3456_v61 = vpop.f32.mrf.mxu0  ;;  %v3495_v62 = vpop.f32.mrf.mxu1 }
 0x207   :  { %v3496_v63 = vadd.f32 %v3495_v62, %v3455_v60 }
 0x208   :  { %v3457_v0 = vpop.f32.mrf.mxu0  ;;  %v3497_v18 = vpop.f32.mrf.mxu1 }
 0x20a   :  { %v3498_v1 = vpop.f32.mrf.mxu1 }
 0x242   :  { %v3534_v2 = vpop.f32.mrf.mxu0 }
 0x243   :  { %v3535_v4 = vadd.f32 %v3534_v2, %v3494_v14 }
 0x244   :  { %v3536_v45 = vpop.f32.mrf.mxu0  ;;  %v3575_v5 = vpop.f32.mrf.mxu1 }
 0x245   :  { %v3537_v36 = vadd.f32 %v3536_v45, %v3496_v63  ;;  %v3576_v3 = vadd.f32 %v3575_v5, %v3535_v4 }
 0x246   :  { %v3538_v6 = vpop.f32.mrf.mxu0  ;;  %v3577_v50 = vpop.f32.mrf.mxu1 }
 0x247   :  { %v3578_v8 = vadd.f32 %v3577_v50, %v3537_v36 }
 0x248   :  { %v3539_v9 = vpop.f32.mrf.mxu0  ;;  %v3579_v10 = vpop.f32.mrf.mxu1 }
 0x24a   :  { %v3580_v40 = vpop.f32.mrf.mxu1 }
 0x282   :  { %v3616_v11 = vpop.f32.mrf.mxu0 }
 0x283   :  { %v3617_v21 = vadd.f32 %v3616_v11, %v3576_v3 }
 0x284   :  { %v3618_v12 = vpop.f32.mrf.mxu0  ;;  %v3657_v44 = vpop.f32.mrf.mxu1 }
 0x285   :  { %v3619_v22 = vadd.f32 %v3618_v12, %v3578_v8  ;;  %v3658_v23 = vadd.f32 %v3657_v44, %v3617_v21 }
 0x286   :  { %v3620_v13 = vpop.f32.mrf.mxu0  ;;  %v3659_v16 = vpop.f32.mrf.mxu1 }
 0x287   :  { %v3660_v24 = vadd.f32 %v3659_v16, %v3619_v22 }
 0x288   :  { %v3621_v17 = vpop.f32.mrf.mxu0  ;;  %v3661_v47 = vpop.f32.mrf.mxu1 }
 0x28a   :  { %v3662_v19 = vpop.f32.mrf.mxu1 }
 0x2ba   :  { %v3698_v43 = vpop.f32.mrf.mxu0 }
 0x2bb   :  { %v3699_v25 = vadd.f32 %v3698_v43, %v3658_v23 }
 0x2bc   :  { %v3700_v26 = vpop.f32.mrf.mxu0 }
 0x2bd   :  { %v3701_v27 = vadd.f32 %v3700_v26, %v3660_v24  ;;  %v3705_v7 = vmax.f32 %v3699_v25, 0.0 }
 0x2be   :  { %v3702_v28 = vpop.f32.mrf.mxu0 }
 0x2bf   :  { %v3706_v29 = vmax.f32 %v3701_v27, 0.0 }
 0x2c0   :  { %v3703_v30 = vpop.f32.mrf.mxu0 }
 0x2c1   :  { %v3709_v31 = vcombine.low %v3705_v7, %v3706_v29 }
 0x2c3   :  { %v3716_v53 = vrot.slane %v3709_v31, %v5079_v48 }
 0x2c5   :  { %3721 = vst.msk [vmem:[%s6526_s3] sm:$0xf] %vm3720_vm3, %v3716_v53 }

// kernel: mmvae_forward.5
= control target key start
LH: loop header
LB: loop body
LE: loop exit
PB: predicated region body
PF: predicated region fallthrough
CT: control target
= control target key end

     0   :  { %18 = vsyncpa [#allocation3], 0  ;;  %s14284_s0 = inlined_call_operand.vmem [shape: f32[2,3776], index: 0, kind: input, shape index: {}]   ;;  %s14285_s1 = inlined_call_operand.hbm [shape: f32[2,128], index: 1, kind: input, shape index: {}]   ;;  %s14286_s2 = inlined_call_operand.hbm [shape: bf16[3776,512], index: 2, kind: input, shape index: {}]   ;;  %s14287_s3 = inlined_call_operand.hbm [shape: f32[1,512], index: 3, kind: input, shape index: {}]   ;;  %s14288_s4 = inlined_call_operand.hbm [shape: bf16[512,128], index: 4, kind: input, shape index: {}]   ;;  %s14289_s5 = inlined_call_operand.hbm [shape: f32[1,128], index: 5, kind: input, shape index: {}]   ;;  %s14290_s6 = inlined_call_operand.hbm [shape: bf16[512,128], index: 6, kind: input, shape index: {}]   ;;  %s14291_s7 = inlined_call_operand.hbm [shape: f32[1,128], index: 7, kind: input, shape index: {}]   ;;  %s14292_s8 = inlined_call_operand.hbm [shape: bf16[128,4096], index: 8, kind: input, shape index: {}]   ;;  %s14293_s9 = inlined_call_operand.hbm [shape: f32[1,4096], index: 9, kind: input, shape index: {}]   ;;  %s14294_s10 = inlined_call_operand.vmem [shape: f32[2,4096], index: 10, kind: output, shape index: {0}]   ;;  %s14295_s11 = inlined_call_operand.hbm [shape: f32[2,128], index: 11, kind: output, shape index: {1}]   ;;  %s14296_s12 = inlined_call_operand.hbm [shape: f32[2,128], index: 12, kind: output, shape index: {2}]  }
   0x1   :  { %19 = vsyncpa [#allocation6], 0 }
   0x2   :  { %20 = vsyncpa [#allocation9], 0 }
   0x3   :  { %21 = vsyncpa [#allocation12], 0 }
   0x4   :  { %22 = vsyncpa [#allocation15], 0 }
   0x5   :  { %23 = vsyncpa [#allocation4], 0 }
   0x6   :  { %24 = vsyncpa [#allocation19], 0  ;;  %s13692_s21 = smov [#allocation5]  }
   0x7   :  { %s42_s22 = sshll.u32 %s13692_s21, 4  ;;  %s43_s22 = int_to_ptr.vmem [resolvable:$true] %s42_s22 }
   0x8   :  { %s13466_s23 = scalar_lea.vmem %s43_s22, 120832  ;;  %p13471_p1 = scmp.lt.s32.totalorder %s43_s22, %s43_s22 }
   0x9   :  { %p13467_p0 = scmp.ne.s32.totalorder %s43_s22, %s13466_s23  ;;  %p13472_p2 = scmp.lt.s32.totalorder %s13466_s23, %s13466_s23 }
   0xb   :  { %p13473_p3 = por %p13472_p2, %p13471_p1 }
   0xd   :  { %p13474_p4 = pnand %p13473_p3, %p13467_p0 }
   0xf   :  { %13477 = shalt.err (!%p13474_p4)
}
  0x10   :  { %s13693_s24 = smov 256   ;;  %s13694_s25 = smov 16  }
  0x11   :  { %48 = dma.hbm_to_vmem [thread:$0]  %s14286_s2, 120832, %s43_s22, [#allocation6], %s13693_s24, %s13693_s24, %s13694_s25  }
  0x12   :  { %s13695_s28 = smov [#allocation8]  }
  0x13   :  { %s64_s29 = sshll.u32 %s13695_s28, 4  ;;  %s65_s29 = int_to_ptr.vmem [resolvable:$true] %s64_s29 }
  0x14   :  { %s13486_s30 = scalar_lea.vmem %s65_s29, 4096  ;;  %p13491_p6 = scmp.lt.s32.totalorder %s65_s29, %s65_s29 }
  0x15   :  { %p13487_p5 = scmp.ne.s32.totalorder %s65_s29, %s13486_s30  ;;  %p13492_p7 = scmp.lt.s32.totalorder %s13486_s30, %s13486_s30 }
  0x17   :  { %p13493_p8 = por %p13492_p7, %p13491_p6 }
  0x19   :  { %p13494_p9 = pnand %p13493_p8, %p13487_p5 }
  0x1b   :  { %13497 = shalt.err (!%p13494_p9)
}
  0x1c   :  { %s13696_s13 = smov 64   ;;  %s13697_s14 = smov 4  }
  0x1d   :  { %70 = dma.hbm_to_vmem [thread:$0]  %s14288_s4, 4096, %s65_s29, [#allocation9], %s13696_s13, %s13696_s13, %s13697_s14  }
  0x1e   :  { %s13698_s17 = smov [#allocation11]   ;;  %s13699_s19 = smov [#allocation14]  }
  0x1f   :  { %s86_s18 = sshll.u32 %s13698_s17, 4  ;;  %s108_s2 = sshll.u32 %s13699_s19, 4  ;;  %s87_s18 = int_to_ptr.vmem [resolvable:$true] %s86_s18  ;;  %s109_s2 = int_to_ptr.vmem [resolvable:$true] %s108_s2 }
  0x20   :  { %s13506_s20 = scalar_lea.vmem %s87_s18, 4096  ;;  %p13511_p11 = scmp.lt.s32.totalorder %s87_s18, %s87_s18 }
  0x21   :  { %p13507_p10 = scmp.ne.s32.totalorder %s87_s18, %s13506_s20  ;;  %p13512_p12 = scmp.lt.s32.totalorder %s13506_s20, %s13506_s20 }
  0x23   :  { %p13513_p13 = por %p13512_p12, %p13511_p11 }
  0x25   :  { %p13514_p0 = pnand %p13513_p13, %p13507_p10 }
  0x27   :  { %13517 = shalt.err (!%p13514_p0)
}
  0x28   :  { %92 = dma.hbm_to_vmem [thread:$0]  %s14290_s6, 4096, %s87_s18, [#allocation12], %s13696_s13, %s13696_s13, %s13697_s14  }
  0x29   :  { %s13526_s23 = scalar_lea.vmem %s109_s2, 32768  ;;  %p13531_p2 = scmp.lt.s32.totalorder %s109_s2, %s109_s2 }
  0x2a   :  { %p13527_p1 = scmp.ne.s32.totalorder %s109_s2, %s13526_s23  ;;  %p13532_p3 = scmp.lt.s32.totalorder %s13526_s23, %s13526_s23 }
  0x2c   :  { %p13533_p4 = por %p13532_p3, %p13531_p2 }
  0x2e   :  { %p13534_p5 = pnand %p13533_p4, %p13527_p1 }
  0x30   :  { %13537 = shalt.err (!%p13534_p5)
}
  0x31   :  { %s13700_s4 = smov 2048   ;;  %s13701_s24 = smov 128  }
  0x32   :  { %114 = dma.hbm_to_vmem [thread:$0]  %s14292_s8, 32768, %s109_s2, [#allocation15], %s13700_s4, %s13700_s4, %s13701_s24  }
  0x33   :  { %s13702_s27 = smov [#allocation2]   ;;  %s13703_s29 = smov [#allocation7]  }
  0x34   :  { %s33_s28 = sshll.u32 %s13702_s27, 4  ;;  %s55_s30 = sshll.u32 %s13703_s29, 4  ;;  %s34_s28 = int_to_ptr.vmem [resolvable:$true] %s33_s28  ;;  %s56_s30 = int_to_ptr.vmem [resolvable:$true] %s55_s30 }
  0x35   :  { %s13546_s6 = scalar_lea.vmem %s34_s28, 32  ;;  %p13551_p7 = scmp.lt.s32.totalorder %s34_s28, %s34_s28 }
  0x36   :  { %p13547_p6 = scmp.ne.s32.totalorder %s34_s28, %s13546_s6  ;;  %p13552_p8 = scmp.lt.s32.totalorder %s13546_s6, %s13546_s6 }
  0x38   :  { %p13553_p9 = por %p13552_p8, %p13551_p7 }
  0x3a   :  { %p13554_p10 = pnand %p13553_p9, %p13547_p6 }
  0x3c   :  { %13557 = shalt.err (!%p13554_p10)
}
  0x3d   :  { %36 = dma.hbm_to_vmem [thread:$0]  %s14285_s1, 32, %s34_s28, [#allocation3]  }
  0x3e   :  { %s13566_s15 = scalar_lea.vmem %s56_s30, 64  ;;  %p13571_p12 = scmp.lt.s32.totalorder %s56_s30, %s56_s30 }
  0x3f   :  { %p13567_p11 = scmp.ne.s32.totalorder %s56_s30, %s13566_s15  ;;  %p13572_p13 = scmp.lt.s32.totalorder %s13566_s15, %s13566_s15 }
  0x41   :  { %p13573_p0 = por %p13572_p13, %p13571_p12 }
  0x43   :  { %p13574_p1 = pnand %p13573_p0, %p13567_p11 }
  0x45   :  { %13577 = shalt.err (!%p13574_p1)
}
  0x46   :  { %58 = dma.hbm_to_vmem [thread:$0]  %s14287_s3, 64, %s56_s30, [#allocation6]  }
  0x47   :  { %s13704_s17 = smov [#allocation10]   ;;  %s13705_s19 = smov [#allocation13]  }
  0x48   :  { %s77_s18 = sshll.u32 %s13704_s17, 4  ;;  %s99_s2 = sshll.u32 %s13705_s19, 4  ;;  %s78_s18 = int_to_ptr.vmem [resolvable:$true] %s77_s18  ;;  %s100_s2 = int_to_ptr.vmem [resolvable:$true] %s99_s2 }
  0x49   :  { %s13586_s20 = scalar_lea.vmem %s78_s18, 16  ;;  %s13590_s1 = scalar_lea.vmem %s78_s18, 32 }
  0x4a   :  { %p13587_p2 = scmp.ne.s32.totalorder %s78_s18, %s13586_s20  ;;  %p13591_p3 = scmp.lt.s32.totalorder %s78_s18, %s78_s18 }
  0x4b   :  { %p13592_p4 = scmp.lt.s32.totalorder %s13590_s1, %s13586_s20 }
  0x4d   :  { %p13593_p5 = por %p13592_p4, %p13591_p3 }
  0x4f   :  { %p13594_p6 = pnand %p13593_p5, %p13587_p2 }
  0x51   :  { %13597 = shalt.err (!%p13594_p6)
}
  0x52   :  { %80 = dma.hbm_to_vmem [thread:$0]  %s14289_s5, 16, %s78_s18, [#allocation9]  }
  0x53   :  { %s13606_s23 = scalar_lea.vmem %s100_s2, 16  ;;  %s13610_s3 = scalar_lea.vmem %s100_s2, 32 }
  0x54   :  { %p13607_p7 = scmp.ne.s32.totalorder %s100_s2, %s13606_s23  ;;  %p13611_p8 = scmp.lt.s32.totalorder %s100_s2, %s100_s2 }
  0x55   :  { %p13612_p9 = scmp.lt.s32.totalorder %s13610_s3, %s13606_s23 }
  0x57   :  { %p13613_p10 = por %p13612_p9, %p13611_p8 }
  0x59   :  { %p13614_p11 = pnand %p13613_p10, %p13607_p7 }
  0x5b   :  { %13617 = shalt.err (!%p13614_p11)
}
  0x5c   :  { %102 = dma.hbm_to_vmem [thread:$0]  %s14291_s7, 16, %s100_s2, [#allocation12]  }
  0x5d   :  { %s13706_s25 = smov [#allocation16]  }
  0x5e   :  { %s121_s26 = sshll.u32 %s13706_s25, 4  ;;  %s122_s26 = int_to_ptr.vmem [resolvable:$true] %s121_s26 }
  0x5f   :  { %s13626_s27 = scalar_lea.vmem %s122_s26, 512  ;;  %p13631_p13 = scmp.lt.s32.totalorder %s122_s26, %s122_s26 }
  0x60   :  { %p13627_p12 = scmp.ne.s32.totalorder %s122_s26, %s13626_s27  ;;  %p13632_p0 = scmp.lt.s32.totalorder %s13626_s27, %s13626_s27 }
  0x62   :  { %p13633_p1 = por %p13632_p0, %p13631_p13 }
  0x64   :  { %p13634_p2 = pnand %p13633_p1, %p13627_p12 }
  0x66   :  { %13637 = shalt.err (!%p13634_p2)
}
  0x67   :  { %124 = dma.hbm_to_vmem [thread:$0]  %s14293_s9, 512, %s122_s26, [#allocation15]  }
  0x68   :  { %13678 = dma.done.wait [#allocation3], 32  }
  0x69   :  { %13679 = vsyncadd [#allocation3], 4294967264 }
  0x6a   :  { %13680 = dma.done.wait [#allocation6], 120896  }
  0x6b   :  { %13681 = vsyncadd [#allocation6], 4294846400 }
  0x6c   :  { %13682 = dma.done.wait [#allocation9], 4112  }
  0x6d   :  { %13683 = vsyncadd [#allocation9], 4294963184 }
  0x6e   :  { %13684 = dma.done.wait [#allocation12], 4112  }
  0x6f   :  { %13685 = vsyncadd [#allocation12], 4294963184 }
  0x70   :  { %13686 = dma.done.wait [#allocation15], 33280  }
  0x71   :  { %13687 = vsyncadd [#allocation15], 4294934016  ;;  %v11968_v0 = vld [vmem:[#allocation5 + $0xe4] ss:$16 sps:$4 sm:$0xff]   ;;  %v11972_v2 = vld [vmem:[#allocation5 + $0xe0] ss:$16 sps:$4 sm:$0xff]   ;;  %v173_v38 = vlaneseq }
  0x72   :  { %v11970_v1 = vld [vmem:[#allocation5 + $0x2e4] ss:$16 sps:$4 sm:$0xff]   ;;  %6046 = vmatprep.subr.bf16.mxu0 %v11968_v0  ;;  %v11973_v3 = vld [vmem:[#allocation5 + $0x2e0] ss:$16 sps:$4 sm:$0xff]   ;;  %v13707_v36 = vmov 1983009808  }
  0x73   :  { %6087 = vmatprep.subr.bf16.mxu1 %v11970_v1  ;;  %v11974_v4 = vld [vmem:[#allocation5 + $0xc4] ss:$16 sps:$4 sm:$0xff]   ;;  %6047 = vmatpush1.bf16.msra.mxu0 %v11972_v2  ;;  %v11978_v6 = vld [vmem:[#allocation5 + $0xc0] ss:$16 sps:$4 sm:$0xff]   ;;  %v171_v37 = vunpack.c.l.s4 %v13707_v36  ;;  %v13803_v43 = vshrl.u32 %v173_v38, 7  ;;  %vm6042_vm0 = vcmask 523264  }
  0x74   :  { %6088 = vmatpush1.bf16.msra.mxu1 %v11973_v3  ;;  %v11976_v5 = vld [vmem:[#allocation5 + $0x2c4] ss:$16 sps:$4 sm:$0xff]   ;;  %6048 = vmatprep.subr.bf16.mxu0 %v11974_v4  ;;  %v11979_v7 = vld [vmem:[#allocation5 + $0x2c0] ss:$16 sps:$4 sm:$0xff]   ;;  %s13709_s24 = smov [#allocation17]   ;;  %s13710_s26 = smov [#allocation18]  }
  0x75   :  { %6089 = vmatprep.subr.bf16.mxu1 %v11976_v5  ;;  %v11980_v8 = vld [vmem:[#allocation5 + $0xa4] ss:$16 sps:$4 sm:$0xff]   ;;  %v11984_v10 = vld [vmem:[#allocation5 + $0xa0] ss:$16 sps:$4 sm:$0xff]   ;;  %v172_v42 = vunpack.c.0.s8 %v171_v37  ;;  %s10563_s25 = sshll.u32 %s13709_s24, 4  ;;  %s10573_s27 = sshll.u32 %s13710_s26, 4  ;;  %s10564_s25 = int_to_ptr.vmem [resolvable:$true] %s10563_s25  ;;  %s10574_s27 = int_to_ptr.vmem [resolvable:$true] %s10573_s27 }
  0x76   :  { %v11982_v9 = vld [vmem:[#allocation5 + $0x2a4] ss:$16 sps:$4 sm:$0xff]   ;;  %v11985_v11 = vld [vmem:[#allocation5 + $0x2a0] ss:$16 sps:$4 sm:$0xff]   ;;  %s13638_s7 = scalar_lea.vmem %s10564_s25, 32  ;;  %p13643_p4 = scmp.lt.s32.totalorder %s10564_s25, %s10564_s25 }
  0x77   :  { %6049 = vmatpush1.bf16.msra.mxu0 %v11978_v6  ;;  %v11986_v12 = vld [vmem:[#allocation5 + $0x84] ss:$16 sps:$4 sm:$0xff]   ;;  %v11990_v14 = vld [vmem:[#allocation5 + $0x80] ss:$16 sps:$4 sm:$0xff]   ;;  %v13806_v49 = vsub.s32 %v172_v42, %v13803_v43  ;;  %p13639_p3 = scmp.ne.s32.totalorder %s10564_s25, %s13638_s7  ;;  %p13644_p5 = scmp.lt.s32.totalorder %s13638_s7, %s13638_s7 }
  0x78   :  { %6090 = vmatpush1.bf16.msra.mxu1 %v11979_v7  ;;  %6050 = vmatprep.subr.bf16.mxu0 %v11980_v8  ;;  %v11988_v13 = vld [vmem:[#allocation5 + $0x284] ss:$16 sps:$4 sm:$0xff]   ;;  %v11991_v15 = vld [vmem:[#allocation5 + $0x280] ss:$16 sps:$4 sm:$0xff]  }
  0x79   :  { %6091 = vmatprep.subr.bf16.mxu1 %v11982_v9  ;;  %v11992_v16 = vld [vmem:[#allocation5 + $0x64] ss:$16 sps:$4 sm:$0xff]   ;;  %v11996_v18 = vld [vmem:[#allocation5 + $0x60] ss:$16 sps:$4 sm:$0xff]   ;;  %p13645_p6 = por %p13644_p5, %p13643_p4 }
  0x7a   :  { %v11994_v17 = vld [vmem:[#allocation5 + $0x264] ss:$16 sps:$4 sm:$0xff]   ;;  %v11997_v19 = vld [vmem:[#allocation5 + $0x260] ss:$16 sps:$4 sm:$0xff]  }
  0x7b   :  { %6051 = vmatpush1.bf16.msra.mxu0 %v11984_v10  ;;  %v11998_v20 = vld [vmem:[#allocation5 + $0x44] ss:$16 sps:$4 sm:$0xff]   ;;  %v12002_v22 = vld [vmem:[#allocation5 + $0x40] ss:$16 sps:$4 sm:$0xff]   ;;  %p13646_p7 = pnand %p13645_p6, %p13639_p3 }
  0x7c   :  { %6092 = vmatpush1.bf16.msra.mxu1 %v11985_v11  ;;  %6052 = vmatprep.subr.bf16.mxu0 %v11986_v12  ;;  %v12000_v21 = vld [vmem:[#allocation5 + $0x244] ss:$16 sps:$4 sm:$0xff]   ;;  %v12003_v23 = vld [vmem:[#allocation5 + $0x240] ss:$16 sps:$4 sm:$0xff]  }
  0x7d   :  { %6093 = vmatprep.subr.bf16.mxu1 %v11988_v13  ;;  %v12004_v24 = vld [vmem:[#allocation5 + $0x24] ss:$16 sps:$4 sm:$0xff]   ;;  %v12008_v26 = vld [vmem:[#allocation5 + $0x20] ss:$16 sps:$4 sm:$0xff]  }
  0x7e   :  { %v12006_v25 = vld [vmem:[#allocation5 + $0x224] ss:$16 sps:$4 sm:$0xff]   ;;  %v12009_v27 = vld [vmem:[#allocation5 + $0x220] ss:$16 sps:$4 sm:$0xff]  }
  0x7f   :  { %6053 = vmatpush1.bf16.msra.mxu0 %v11990_v14  ;;  %v12010_v28 = vld [vmem:[#allocation5 + $0x4] ss:$16 sps:$4 sm:$0xff]   ;;  %v12014_v30 = vld [vmem:[#allocation5] ss:$16 sps:$4 sm:$0xff]  }
  0x80   :  { %6094 = vmatpush1.bf16.msra.mxu1 %v11991_v15  ;;  %6054 = vmatprep.subr.bf16.mxu0 %v11992_v16  ;;  %v12012_v29 = vld [vmem:[#allocation5 + $0x204] ss:$16 sps:$4 sm:$0xff]   ;;  %v12015_v31 = vld [vmem:[#allocation5 + $0x200] ss:$16 sps:$4 sm:$0xff]  }
  0x81   :  { %6095 = vmatprep.subr.bf16.mxu1 %v11994_v17  ;;  %v12016_v32 = vld [vmem:[#allocation5 + $0x1e4] ss:$16 sps:$4 sm:$0xff]   ;;  %v12020_v34 = vld [vmem:[#allocation5 + $0x1e0] ss:$16 sps:$4 sm:$0xff]  }
  0x82   :  { %v12018_v33 = vld [vmem:[#allocation5 + $0x3e4] ss:$16 sps:$4 sm:$0xff]   ;;  %v12021_v35 = vld [vmem:[#allocation5 + $0x3e0] ss:$16 sps:$4 sm:$0xff]  }
  0x83   :  { %6055 = vmatpush1.bf16.msra.mxu0 %v11996_v18  ;;  %v12022_v39 = vld [vmem:[#allocation5 + $0x1c4] ss:$16 sps:$4 sm:$0xff]   ;;  %v12026_v41 = vld [vmem:[#allocation5 + $0x1c0] ss:$16 sps:$4 sm:$0xff]  }
  0x84   :  { %6096 = vmatpush1.bf16.msra.mxu1 %v11997_v19  ;;  %6056 = vmatprep.subr.bf16.mxu0 %v11998_v20  ;;  %v12024_v40 = vld [vmem:[#allocation5 + $0x3c4] ss:$16 sps:$4 sm:$0xff]   ;;  %v12027_v44 = vld [vmem:[#allocation5 + $0x3c0] ss:$16 sps:$4 sm:$0xff]  }
  0x85   :  { %6097 = vmatprep.subr.bf16.mxu1 %v12000_v21  ;;  %v12028_v45 = vld [vmem:[#allocation5 + $0x1a4] ss:$16 sps:$4 sm:$0xff]   ;;  %v12032_v47 = vld [vmem:[#allocation5 + $0x1a0] ss:$16 sps:$4 sm:$0xff]  }
  0x86   :  { %v12030_v46 = vld [vmem:[#allocation5 + $0x3a4] ss:$16 sps:$4 sm:$0xff]   ;;  %v12033_v48 = vld [vmem:[#allocation5 + $0x3a0] ss:$16 sps:$4 sm:$0xff]  }
  0x87   :  { %6057 = vmatpush1.bf16.msra.mxu0 %v12002_v22  ;;  %v12034_v50 = vld [vmem:[#allocation5 + $0x184] ss:$16 sps:$4 sm:$0xff]   ;;  %v12038_v53 = vld [vmem:[#allocation5 + $0x180] ss:$16 sps:$4 sm:$0xff]  }
  0x88   :  { %6098 = vmatpush1.bf16.msra.mxu1 %v12003_v23  ;;  %6058 = vmatprep.subr.bf16.mxu0 %v12004_v24  ;;  %v12036_v51 = vld [vmem:[#allocation5 + $0x384] ss:$16 sps:$4 sm:$0xff]   ;;  %v12039_v56 = vld [vmem:[#allocation5 + $0x380] ss:$16 sps:$4 sm:$0xff]  }
  0x89   :  { %6099 = vmatprep.subr.bf16.mxu1 %v12006_v25  ;;  %v153_v52 = vld [vmem:[%s14284_s0] sm:$0xff]  ;;  %v154_v42 = vld [vmem:[%s14284_s0 + $0x8] sm:$0xff] }
  0x8a   :  { %v176_v54 = vrot.slane %v153_v52, %v13806_v49  ;;  %v169_v55 = vcombine.high %v153_v52, %v153_v52  ;;  %v12040_v57 = vld [vmem:[#allocation5 + $0x164] ss:$16 sps:$4 sm:$0xff]   ;;  %v12044_v61 = vld [vmem:[#allocation5 + $0x160] ss:$16 sps:$4 sm:$0xff]  }
  0x8b   :  { %6059 = vmatpush1.bf16.msra.mxu0 %v12008_v26  ;;  %v12042_v58 = vld [vmem:[#allocation5 + $0x364] ss:$16 sps:$4 sm:$0xff]   ;;  %v12045_v0 = vld [vmem:[#allocation5 + $0x360] ss:$16 sps:$4 sm:$0xff]  }
  0x8c   :  { %6100 = vmatpush1.bf16.msra.mxu1 %v12009_v27  ;;  %6060 = vmatprep.subr.bf16.mxu0 %v12010_v28  ;;  %v184_v59 = vcombine.high %v176_v54, %v176_v54  ;;  %v183_v60 = vrot.slane %v169_v55, %v13806_v49  ;;  %v12046_v1 = vld [vmem:[#allocation5 + $0x144] ss:$16 sps:$4 sm:$0xff]   ;;  %v12050_v4 = vld [vmem:[#allocation5 + $0x140] ss:$16 sps:$4 sm:$0xff]   ;;  %v13819_v16 = vpack.c.bf16 %v176_v54, %v176_v54 }
  0x8d   :  { %6101 = vmatprep.subr.bf16.mxu1 %v12012_v29  ;;  %v12048_v2 = vld [vmem:[#allocation5 + $0x344] ss:$16 sps:$4 sm:$0xff]   ;;  %v12051_v5 = vld [vmem:[#allocation5 + $0x340] ss:$16 sps:$4 sm:$0xff]  }
  0x8e   :  { %v13813_v62 = vpack.c.bf16 %v184_v59, %v184_v59  ;;  %v185_v63 = vcombine.high %v183_v60, %v183_v60  ;;  %v12052_v6 = vld [vmem:[#allocation5 + $0x124] ss:$16 sps:$4 sm:$0xff]   ;;  %v12056_v8 = vld [vmem:[#allocation5 + $0x120] ss:$16 sps:$4 sm:$0xff]   ;;  %v13821_v17 = vpack.c.bf16 %v183_v60, %v183_v60 }
  0x8f   :  { %6061 = vmatpush1.bf16.msra.mxu0 %v12014_v30  ;;  %v12054_v7 = vld [vmem:[#allocation5 + $0x324] ss:$16 sps:$4 sm:$0xff]   ;;  %v12057_v9 = vld [vmem:[#allocation5 + $0x320] ss:$16 sps:$4 sm:$0xff]  }
  0x90   :  { %6102 = vmatpush1.bf16.msra.mxu1 %v12015_v31  ;;  %6062 = vmatprep.subr.bf16.mxu0 %v12016_v32  ;;  %v13815_v3 = vpack.c.bf16 %v185_v63, %v185_v63  ;;  %v12058_v10 = vld [vmem:[#allocation5 + $0x104] ss:$16 sps:$4 sm:$0xff]   ;;  %v12062_v12 = vld [vmem:[#allocation5 + $0x100] ss:$16 sps:$4 sm:$0xff]  }
  0x91   :  { %6103 = vmatprep.subr.bf16.mxu1 %v12018_v33  ;;  %6078 = vmatprep.mubr.bf16.mxu0 %v13813_v62  ;;  %v12060_v11 = vld [vmem:[#allocation5 + $0x304] ss:$16 sps:$4 sm:$0xff]   ;;  %v12063_v13 = vld [vmem:[#allocation5 + $0x300] ss:$16 sps:$4 sm:$0xff]  }
  0x92   :  { %6119 = vmatprep.mubr.bf16.mxu1 %v13815_v3  ;;  %v12067_v14 = vld [vmem:[#allocation5 + $0x4e4] ss:$16 sps:$4 sm:$0xff]   ;;  %v12065_v18 = vld [vmem:[#allocation5 + $0x4e0] ss:$16 sps:$4 sm:$0xff]  }
  0x93   :  { %6063 = vmatpush2.bf16.msra.mxu0 %v12020_v34  ;;  %v12070_v15 = vld [vmem:[#allocation5 + $0x6e4] ss:$16 sps:$4 sm:$0xff]   ;;  %v12068_v19 = vld [vmem:[#allocation5 + $0x6e0] ss:$16 sps:$4 sm:$0xff]  }
  0x94   :  { %6104 = vmatpush2.bf16.msra.mxu1 %v12021_v35  ;;  %6064 = vmatprep.subr.bf16.mxu0 %v12022_v39  ;;  %v12073_v20 = vld [vmem:[#allocation5 + $0x4c4] ss:$16 sps:$4 sm:$0xff]   ;;  %v12071_v22 = vld [vmem:[#allocation5 + $0x4c0] ss:$16 sps:$4 sm:$0xff]  }
  0x95   :  { %6105 = vmatprep.subr.bf16.mxu1 %v12024_v40  ;;  %v12076_v21 = vld [vmem:[#allocation5 + $0x6c4] ss:$16 sps:$4 sm:$0xff]   ;;  %v12074_v23 = vld [vmem:[#allocation5 + $0x6c0] ss:$16 sps:$4 sm:$0xff]  }
  0x96   :  { %v12079_v24 = vld [vmem:[#allocation5 + $0x4a4] ss:$16 sps:$4 sm:$0xff]   ;;  %v12077_v26 = vld [vmem:[#allocation5 + $0x4a0] ss:$16 sps:$4 sm:$0xff]  }
  0x97   :  { %6065 = vmatpush2.bf16.msra.mxu0 %v12026_v41  ;;  %v12082_v25 = vld [vmem:[#allocation5 + $0x6a4] ss:$16 sps:$4 sm:$0xff]   ;;  %v12080_v27 = vld [vmem:[#allocation5 + $0x6a0] ss:$16 sps:$4 sm:$0xff]  }
  0x98   :  { %6106 = vmatpush2.bf16.msra.mxu1 %v12027_v44  ;;  %6066 = vmatprep.subr.bf16.mxu0 %v12028_v45  ;;  %v12085_v28 = vld [vmem:[#allocation5 + $0x484] ss:$16 sps:$4 sm:$0xff]   ;;  %v12083_v30 = vld [vmem:[#allocation5 + $0x480] ss:$16 sps:$4 sm:$0xff]   ;;  %v13829_v44 = vrot.slane %v154_v42, %v13806_v49  ;;  %v186_v45 = vcombine.high %v154_v42, %v154_v42 }
  0x99   :  { %6107 = vmatprep.subr.bf16.mxu1 %v12030_v46  ;;  %v12088_v29 = vld [vmem:[#allocation5 + $0x684] ss:$16 sps:$4 sm:$0xff]   ;;  %v12086_v31 = vld [vmem:[#allocation5 + $0x680] ss:$16 sps:$4 sm:$0xff]  }
  0x9a   :  { %v12091_v32 = vld [vmem:[#allocation5 + $0x464] ss:$16 sps:$4 sm:$0xff]   ;;  %v12089_v34 = vld [vmem:[#allocation5 + $0x460] ss:$16 sps:$4 sm:$0xff]  }
  0x9b   :  { %6067 = vmatpush2.bf16.msra.mxu0 %v12032_v47  ;;  %v12094_v33 = vld [vmem:[#allocation5 + $0x664] ss:$16 sps:$4 sm:$0xff]   ;;  %v12092_v35 = vld [vmem:[#allocation5 + $0x660] ss:$16 sps:$4 sm:$0xff]  }
  0x9c   :  { %6108 = vmatpush2.bf16.msra.mxu1 %v12033_v48  ;;  %6068 = vmatprep.subr.bf16.mxu0 %v12034_v50  ;;  %v12097_v36 = vld [vmem:[#allocation5 + $0x444] ss:$16 sps:$4 sm:$0xff]   ;;  %v12095_v38 = vld [vmem:[#allocation5 + $0x440] ss:$16 sps:$4 sm:$0xff]   ;;  %v201_v48 = vcombine.high %v13829_v44, %v13829_v44  ;;  %v13834_v50 = vrot.slane %v186_v45, %v13806_v49 }
  0x9d   :  { %6109 = vmatprep.subr.bf16.mxu1 %v12036_v51  ;;  %v12100_v37 = vld [vmem:[#allocation5 + $0x644] ss:$16 sps:$4 sm:$0xff]   ;;  %v12098_v39 = vld [vmem:[#allocation5 + $0x640] ss:$16 sps:$4 sm:$0xff]  }
  0x9e   :  { %v12103_v40 = vld [vmem:[#allocation5 + $0x424] ss:$16 sps:$4 sm:$0xff]   ;;  %v12101_v46 = vld [vmem:[#allocation5 + $0x420] ss:$16 sps:$4 sm:$0xff]   ;;  %v202_v54 = vcombine.high %v13834_v50, %v13834_v50 }
  0x9f   :  { %6069 = vmatpush2.bf16.msra.mxu0 %v12038_v53  ;;  %v12106_v41 = vld [vmem:[#allocation5 + $0x624] ss:$16 sps:$4 sm:$0xff]   ;;  %v12104_v47 = vld [vmem:[#allocation5 + $0x620] ss:$16 sps:$4 sm:$0xff]   ;;  %v13836_v53 = vpack.c.bf16 %v201_v48, %v201_v48 }
  0xa0   :  { %6110 = vmatpush2.bf16.msra.mxu1 %v12039_v56  ;;  %6070 = vmatprep.subr.bf16.mxu0 %v12040_v57  ;;  %v12109_v51 = vld [vmem:[#allocation5 + $0x404] ss:$16 sps:$4 sm:$0xff]   ;;  %v12107_v55 = vld [vmem:[#allocation5 + $0x400] ss:$16 sps:$4 sm:$0xff]   ;;  %v13840_v57 = vpack.c.bf16 %v202_v54, %v202_v54 }
  0xa1   :  { %6111 = vmatprep.subr.bf16.mxu1 %v12042_v58  ;;  %v12112_v52 = vld [vmem:[#allocation5 + $0x604] ss:$16 sps:$4 sm:$0xff]   ;;  %v12110_v56 = vld [vmem:[#allocation5 + $0x600] ss:$16 sps:$4 sm:$0xff]  }
  0xa2   :  { %v12115_v58 = vld [vmem:[#allocation5 + $0x5e4] ss:$16 sps:$4 sm:$0xff]   ;;  %v12113_v60 = vld [vmem:[#allocation5 + $0x5e0] ss:$16 sps:$4 sm:$0xff]  }
  0xa3   :  { %6071 = vmatpush2.bf16.msra.mxu0 %v12044_v61  ;;  %v12118_v59 = vld [vmem:[#allocation5 + $0x7e4] ss:$16 sps:$4 sm:$0xff]   ;;  %v12116_v61 = vld [vmem:[#allocation5 + $0x7e0] ss:$16 sps:$4 sm:$0xff]  }
  0xa4   :  { %6112 = vmatpush2.bf16.msra.mxu1 %v12045_v0  ;;  %6072 = vmatprep.subr.bf16.mxu0 %v12046_v1  ;;  %v12121_v63 = vld [vmem:[#allocation5 + $0x5c4] ss:$16 sps:$4 sm:$0xff]   ;;  %v12119_v1 = vld [vmem:[#allocation5 + $0x5c0] ss:$16 sps:$4 sm:$0xff]  }
  0xa5   :  { %6113 = vmatprep.subr.bf16.mxu1 %v12048_v2  ;;  %v12124_v0 = vld [vmem:[#allocation5 + $0x7c4] ss:$16 sps:$4 sm:$0xff]   ;;  %v12122_v2 = vld [vmem:[#allocation5 + $0x7c0] ss:$16 sps:$4 sm:$0xff]  }
  0xa6   :  { %v12171_v45 = vld [vmem:[#allocation5 + $0xac0] ss:$16 sps:$4 sm:$0xff]  }
  0xa7   :  { %6073 = vmatpush2.bf16.msra.mxu0 %v12050_v4  ;;  %v12127_v4 = vld [vmem:[#allocation5 + $0x5a4] ss:$16 sps:$4 sm:$0xff]   ;;  %v12177_v54 = vld [vmem:[#allocation5 + $0xaa0] ss:$16 sps:$4 sm:$0xff]  }
  0xa8   :  { %6114 = vmatpush2.bf16.msra.mxu1 %v12051_v5  ;;  %6074 = vmatprep.subr.bf16.mxu0 %v12052_v6  ;;  %v12130_v5 = vld [vmem:[#allocation5 + $0x7a4] ss:$16 sps:$4 sm:$0xff]   ;;  %v12125_v6 = vld [vmem:[#allocation5 + $0x5a0] ss:$16 sps:$4 sm:$0xff]  }
  0xa9   :  { %6115 = vmatprep.subr.bf16.mxu1 %v12054_v7  ;;  %v12128_v7 = vld [vmem:[#allocation5 + $0x7a0] ss:$16 sps:$4 sm:$0xff]  }
  0xab   :  { %6075 = vmatpush2.bf16.msra.mxu0 %v12056_v8  ;;  %v12133_v8 = vld [vmem:[#allocation5 + $0x584] ss:$16 sps:$4 sm:$0xff]  }
  0xac   :  { %6116 = vmatpush2.bf16.msra.mxu1 %v12057_v9  ;;  %6076 = vmatprep.subr.bf16.mxu0 %v12058_v10  ;;  %v12136_v9 = vld [vmem:[#allocation5 + $0x784] ss:$16 sps:$4 sm:$0xff]   ;;  %v12131_v10 = vld [vmem:[#allocation5 + $0x580] ss:$16 sps:$4 sm:$0xff]  }
  0xad   :  { %6117 = vmatprep.subr.bf16.mxu1 %v12060_v11  ;;  %v12134_v11 = vld [vmem:[#allocation5 + $0x780] ss:$16 sps:$4 sm:$0xff]  }
  0xaf   :  { %6077 = vmatpush2.bf16.msra.mxu0 %v12062_v12  ;;  %v12139_v12 = vld [vmem:[#allocation5 + $0x564] ss:$16 sps:$4 sm:$0xff]  }
  0xb0   :  { %6118 = vmatpush2.bf16.msra.mxu1 %v12063_v13  ;;  %6128 = vmatprep.subr.bf16.mxu0 %v12067_v14  ;;  %v12142_v13 = vld [vmem:[#allocation5 + $0x764] ss:$16 sps:$4 sm:$0xff]   ;;  %v12137_v14 = vld [vmem:[#allocation5 + $0x560] ss:$16 sps:$4 sm:$0xff]  }
  0xb1   :  { %6169 = vmatprep.subr.bf16.mxu1 %v12070_v15  ;;  %v12140_v15 = vld [vmem:[#allocation5 + $0x760] ss:$16 sps:$4 sm:$0xff]  }
  0xb2   :  { %6079 = vmatmul.mubr.bf16.vlgmr.msra.gmra.mxu0 %v13819_v16 }
  0xb3   :  { %6120 = vmatmul.mubr.bf16.vlgmr.msra.gmra.mxu1 %v13821_v17  ;;  %6129 = vmatpush1.bf16.msra.mxu0 %v12065_v18  ;;  %v12145_v18 = vld [vmem:[#allocation5 + $0x544] ss:$16 sps:$4 sm:$0xff]  }
  0xb4   :  { %6170 = vmatpush1.bf16.msra.mxu1 %v12068_v19  ;;  %6130 = vmatprep.subr.bf16.mxu0 %v12073_v20  ;;  %v12148_v19 = vld [vmem:[#allocation5 + $0x744] ss:$16 sps:$4 sm:$0xff]   ;;  %v12143_v20 = vld [vmem:[#allocation5 + $0x540] ss:$16 sps:$4 sm:$0xff]  }
  0xb5   :  { %6171 = vmatprep.subr.bf16.mxu1 %v12076_v21  ;;  %6160 = vmatprep.mubr.bf16.mxu0 %v13836_v53  ;;  %v12146_v21 = vld [vmem:[#allocation5 + $0x740] ss:$16 sps:$4 sm:$0xff]  }
  0xb6   :  { %6201 = vmatprep.mubr.bf16.mxu1 %v13840_v57 }
  0xb7   :  { %6131 = vmatpush1.bf16.msra.mxu0 %v12071_v22  ;;  %v12151_v22 = vld [vmem:[#allocation5 + $0x524] ss:$16 sps:$4 sm:$0xff]  }
  0xb8   :  { %6172 = vmatpush1.bf16.msra.mxu1 %v12074_v23  ;;  %6132 = vmatprep.subr.bf16.mxu0 %v12079_v24  ;;  %v12154_v23 = vld [vmem:[#allocation5 + $0x724] ss:$16 sps:$4 sm:$0xff]   ;;  %v12149_v24 = vld [vmem:[#allocation5 + $0x520] ss:$16 sps:$4 sm:$0xff]  }
  0xb9   :  { %6173 = vmatprep.subr.bf16.mxu1 %v12082_v25  ;;  %v12152_v25 = vld [vmem:[#allocation5 + $0x720] ss:$16 sps:$4 sm:$0xff]  }
  0xbb   :  { %6133 = vmatpush1.bf16.msra.mxu0 %v12077_v26  ;;  %v12157_v26 = vld [vmem:[#allocation5 + $0x504] ss:$16 sps:$4 sm:$0xff]  }
  0xbc   :  { %6174 = vmatpush1.bf16.msra.mxu1 %v12080_v27  ;;  %6134 = vmatprep.subr.bf16.mxu0 %v12085_v28  ;;  %v12160_v27 = vld [vmem:[#allocation5 + $0x704] ss:$16 sps:$4 sm:$0xff]   ;;  %v12155_v28 = vld [vmem:[#allocation5 + $0x500] ss:$16 sps:$4 sm:$0xff]  }
  0xbd   :  { %6175 = vmatprep.subr.bf16.mxu1 %v12088_v29  ;;  %v12158_v29 = vld [vmem:[#allocation5 + $0x700] ss:$16 sps:$4 sm:$0xff]  }
  0xbf   :  { %6135 = vmatpush1.bf16.msra.mxu0 %v12083_v30  ;;  %v12164_v30 = vld [vmem:[#allocation5 + $0x8e4] ss:$16 sps:$4 sm:$0xff]  }
  0xc0   :  { %6176 = vmatpush1.bf16.msra.mxu1 %v12086_v31  ;;  %6136 = vmatprep.subr.bf16.mxu0 %v12091_v32  ;;  %v12167_v31 = vld [vmem:[#allocation5 + $0xae4] ss:$16 sps:$4 sm:$0xff]   ;;  %v13846_v32 = vpack.c.bf16 %v13829_v44, %v13829_v44 }
  0xc1   :  { %6177 = vmatprep.subr.bf16.mxu1 %v12094_v33  ;;  %v13850_v33 = vpack.c.bf16 %v13834_v50, %v13834_v50 }
  0xc3   :  { %6137 = vmatpush1.bf16.msra.mxu0 %v12089_v34  ;;  %v12162_v34 = vld [vmem:[#allocation5 + $0x8e0] ss:$16 sps:$4 sm:$0xff]  }
  0xc4   :  { %6178 = vmatpush1.bf16.msra.mxu1 %v12092_v35  ;;  %6138 = vmatprep.subr.bf16.mxu0 %v12097_v36  ;;  %v12165_v35 = vld [vmem:[#allocation5 + $0xae0] ss:$16 sps:$4 sm:$0xff]   ;;  %v12170_v36 = vld [vmem:[#allocation5 + $0x8c4] ss:$16 sps:$4 sm:$0xff]  }
  0xc5   :  { %6179 = vmatprep.subr.bf16.mxu1 %v12100_v37  ;;  %v155_v37 = vld [vmem:[%s14284_s0 + $0x10] sm:$0xff] }
  0xc7   :  { %6139 = vmatpush1.bf16.msra.mxu0 %v12095_v38  ;;  %v12173_v38 = vld [vmem:[#allocation5 + $0xac4] ss:$16 sps:$4 sm:$0xff]  }
  0xc8   :  { %6180 = vmatpush1.bf16.msra.mxu1 %v12098_v39  ;;  %6140 = vmatprep.subr.bf16.mxu0 %v12103_v40  ;;  %v13856_v39 = vrot.slane %v155_v37, %v13806_v49  ;;  %v203_v40 = vcombine.high %v155_v37, %v155_v37  ;;  %v12237_v37 = vld [vmem:[#allocation5 + $0xb60] ss:$16 sps:$4 sm:$0xff]  }
  0xc9   :  { %6181 = vmatprep.subr.bf16.mxu1 %v12106_v41  ;;  %v12168_v41 = vld [vmem:[#allocation5 + $0x8c0] ss:$16 sps:$4 sm:$0xff]  }
  0xca   :  { %v218_v42 = vcombine.high %v13856_v39, %v13856_v39  ;;  %v13863_v44 = vrot.slane %v203_v40, %v13806_v49  ;;  %v12245_v40 = vld [vmem:[#allocation5 + $0xb44] ss:$16 sps:$4 sm:$0xff]  }
  0xcb   :  { %6141 = vmatpush1.bf16.msra.mxu0 %v12101_v46  ;;  %v12176_v46 = vld [vmem:[#allocation5 + $0x8a4] ss:$16 sps:$4 sm:$0xff]  }
  0xcc   :  { %6182 = vmatpush1.bf16.msra.mxu1 %v12104_v47  ;;  %6142 = vmatprep.subr.bf16.mxu0 %v12109_v51  ;;  %v12179_v47 = vld [vmem:[#allocation5 + $0xaa4] ss:$16 sps:$4 sm:$0xff]   ;;  %v13865_v48 = vpack.c.bf16 %v218_v42, %v218_v42  ;;  %v219_v50 = vcombine.high %v13863_v44, %v13863_v44  ;;  %v12174_v51 = vld [vmem:[#allocation5 + $0x8a0] ss:$16 sps:$4 sm:$0xff]  }
  0xcd   :  { %6183 = vmatprep.subr.bf16.mxu1 %v12112_v52  ;;  %v156_v42 = vld [vmem:[%s14284_s0 + $0x18] sm:$0xff] }
  0xce   :  { %v13870_v52 = vpack.c.bf16 %v219_v50, %v219_v50  ;;  %v220_v50 = vcombine.high %v156_v42, %v156_v42 }
  0xcf   :  { %6143 = vmatpush1.bf16.msra.mxu0 %v12107_v55  ;;  %v12182_v55 = vld [vmem:[#allocation5 + $0x884] ss:$16 sps:$4 sm:$0xff]  }
  0xd0   :  { %6184 = vmatpush1.bf16.msra.mxu1 %v12110_v56  ;;  %6144 = vmatprep.subr.bf16.mxu0 %v12115_v58  ;;  %v12185_v56 = vld [vmem:[#allocation5 + $0xa84] ss:$16 sps:$4 sm:$0xff]   ;;  %v12180_v58 = vld [vmem:[#allocation5 + $0x880] ss:$16 sps:$4 sm:$0xff]  }
  0xd1   :  { %6185 = vmatprep.subr.bf16.mxu1 %v12118_v59  ;;  %v12183_v59 = vld [vmem:[#allocation5 + $0xa80] ss:$16 sps:$4 sm:$0xff]  }
  0xd3   :  { %6145 = vmatpush2.bf16.msra.mxu0 %v12113_v60  ;;  %v12188_v60 = vld [vmem:[#allocation5 + $0x864] ss:$16 sps:$4 sm:$0xff]  }
  0xd4   :  { %6186 = vmatpush2.bf16.msra.mxu1 %v12116_v61  ;;  %6146 = vmatprep.subr.bf16.mxu0 %v12121_v63  ;;  %v12191_v61 = vld [vmem:[#allocation5 + $0xa64] ss:$16 sps:$4 sm:$0xff]   ;;  %v12186_v63 = vld [vmem:[#allocation5 + $0x860] ss:$16 sps:$4 sm:$0xff]  }
  0xd5   :  { %6187 = vmatprep.subr.bf16.mxu1 %v12124_v0  ;;  %v12189_v0 = vld [vmem:[#allocation5 + $0xa60] ss:$16 sps:$4 sm:$0xff]  }
  0xd7   :  { %6147 = vmatpush2.bf16.msra.mxu0 %v12119_v1  ;;  %v12194_v1 = vld [vmem:[#allocation5 + $0x844] ss:$16 sps:$4 sm:$0xff]  }
  0xd8   :  { %6188 = vmatpush2.bf16.msra.mxu1 %v12122_v2  ;;  %6148 = vmatprep.subr.bf16.mxu0 %v12127_v4  ;;  %v12197_v2 = vld [vmem:[#allocation5 + $0xa44] ss:$16 sps:$4 sm:$0xff]   ;;  %v12192_v4 = vld [vmem:[#allocation5 + $0x840] ss:$16 sps:$4 sm:$0xff]  }
  0xd9   :  { %6189 = vmatprep.subr.bf16.mxu1 %v12130_v5  ;;  %v12195_v5 = vld [vmem:[#allocation5 + $0xa40] ss:$16 sps:$4 sm:$0xff]  }
  0xdb   :  { %6149 = vmatpush2.bf16.msra.mxu0 %v12125_v6  ;;  %v12200_v6 = vld [vmem:[#allocation5 + $0x824] ss:$16 sps:$4 sm:$0xff]  }
  0xdc   :  { %6190 = vmatpush2.bf16.msra.mxu1 %v12128_v7  ;;  %6150 = vmatprep.subr.bf16.mxu0 %v12133_v8  ;;  %v12203_v7 = vld [vmem:[#allocation5 + $0xa24] ss:$16 sps:$4 sm:$0xff]   ;;  %v12198_v8 = vld [vmem:[#allocation5 + $0x820] ss:$16 sps:$4 sm:$0xff]  }
  0xdd   :  { %6191 = vmatprep.subr.bf16.mxu1 %v12136_v9  ;;  %v12201_v9 = vld [vmem:[#allocation5 + $0xa20] ss:$16 sps:$4 sm:$0xff]  }
  0xdf   :  { %6151 = vmatpush2.bf16.msra.mxu0 %v12131_v10  ;;  %v12206_v10 = vld [vmem:[#allocation5 + $0x804] ss:$16 sps:$4 sm:$0xff]  }
  0xe0   :  { %6192 = vmatpush2.bf16.msra.mxu1 %v12134_v11  ;;  %6152 = vmatprep.subr.bf16.mxu0 %v12139_v12  ;;  %v12209_v11 = vld [vmem:[#allocation5 + $0xa04] ss:$16 sps:$4 sm:$0xff]   ;;  %v12204_v12 = vld [vmem:[#allocation5 + $0x800] ss:$16 sps:$4 sm:$0xff]  }
  0xe1   :  { %6193 = vmatprep.subr.bf16.mxu1 %v12142_v13  ;;  %v12207_v13 = vld [vmem:[#allocation5 + $0xa00] ss:$16 sps:$4 sm:$0xff]  }
  0xe3   :  { %6153 = vmatpush2.bf16.msra.mxu0 %v12137_v14  ;;  %v12212_v14 = vld [vmem:[#allocation5 + $0x9e4] ss:$16 sps:$4 sm:$0xff]  }
  0xe4   :  { %6194 = vmatpush2.bf16.msra.mxu1 %v12140_v15  ;;  %6154 = vmatprep.subr.bf16.mxu0 %v12145_v18  ;;  %v12215_v15 = vld [vmem:[#allocation5 + $0xbe4] ss:$16 sps:$4 sm:$0xff]   ;;  %v12210_v18 = vld [vmem:[#allocation5 + $0x9e0] ss:$16 sps:$4 sm:$0xff]  }
  0xe5   :  { %6195 = vmatprep.subr.bf16.mxu1 %v12148_v19  ;;  %v12213_v19 = vld [vmem:[#allocation5 + $0xbe0] ss:$16 sps:$4 sm:$0xff]  }
  0xe7   :  { %6155 = vmatpush2.bf16.msra.mxu0 %v12143_v20  ;;  %v12218_v20 = vld [vmem:[#allocation5 + $0x9c4] ss:$16 sps:$4 sm:$0xff]  }
  0xe8   :  { %6196 = vmatpush2.bf16.msra.mxu1 %v12146_v21  ;;  %6156 = vmatprep.subr.bf16.mxu0 %v12151_v22  ;;  %v12221_v21 = vld [vmem:[#allocation5 + $0xbc4] ss:$16 sps:$4 sm:$0xff]   ;;  %v12216_v22 = vld [vmem:[#allocation5 + $0x9c0] ss:$16 sps:$4 sm:$0xff]  }
  0xe9   :  { %6197 = vmatprep.subr.bf16.mxu1 %v12154_v23  ;;  %v12219_v23 = vld [vmem:[#allocation5 + $0xbc0] ss:$16 sps:$4 sm:$0xff]  }
  0xeb   :  { %6157 = vmatpush2.bf16.msra.mxu0 %v12149_v24  ;;  %v12224_v24 = vld [vmem:[#allocation5 + $0x9a4] ss:$16 sps:$4 sm:$0xff]  }
  0xec   :  { %6198 = vmatpush2.bf16.msra.mxu1 %v12152_v25  ;;  %6158 = vmatprep.subr.bf16.mxu0 %v12157_v26  ;;  %v12227_v25 = vld [vmem:[#allocation5 + $0xba4] ss:$16 sps:$4 sm:$0xff]   ;;  %v12222_v26 = vld [vmem:[#allocation5 + $0x9a0] ss:$16 sps:$4 sm:$0xff]  }
  0xed   :  { %6199 = vmatprep.subr.bf16.mxu1 %v12160_v27  ;;  %v12225_v27 = vld [vmem:[#allocation5 + $0xba0] ss:$16 sps:$4 sm:$0xff]  }
  0xef   :  { %6159 = vmatpush2.bf16.msra.mxu0 %v12155_v28  ;;  %v12230_v28 = vld [vmem:[#allocation5 + $0x984] ss:$16 sps:$4 sm:$0xff]  }
  0xf0   :  { %6200 = vmatpush2.bf16.msra.mxu1 %v12158_v29  ;;  %6210 = vmatprep.subr.bf16.mxu0 %v12164_v30  ;;  %v12233_v29 = vld [vmem:[#allocation5 + $0xb84] ss:$16 sps:$4 sm:$0xff]   ;;  %v12228_v30 = vld [vmem:[#allocation5 + $0x980] ss:$16 sps:$4 sm:$0xff]  }
  0xf1   :  { %6251 = vmatprep.subr.bf16.mxu1 %v12167_v31  ;;  %v12231_v31 = vld [vmem:[#allocation5 + $0xb80] ss:$16 sps:$4 sm:$0xff]  }
  0xf2   :  { %6161 = vmatmul.mubr.bf16.vlgmr.msra.gmra.mxu0 %v13846_v32 }
  0xf3   :  { %6202 = vmatmul.mubr.bf16.vlgmr.msra.gmra.mxu1 %v13850_v33  ;;  %6211 = vmatpush1.bf16.msra.mxu0 %v12162_v34  ;;  %v12236_v34 = vld [vmem:[#allocation5 + $0x964] ss:$16 sps:$4 sm:$0xff]  }
  0xf4   :  { %6252 = vmatpush1.bf16.msra.mxu1 %v12165_v35  ;;  %6212 = vmatprep.subr.bf16.mxu0 %v12170_v36  ;;  %v12239_v35 = vld [vmem:[#allocation5 + $0xb64] ss:$16 sps:$4 sm:$0xff]   ;;  %v12234_v36 = vld [vmem:[#allocation5 + $0x960] ss:$16 sps:$4 sm:$0xff]  }
  0xf5   :  { %6253 = vmatprep.subr.bf16.mxu1 %v12173_v38  ;;  %6242 = vmatprep.mubr.bf16.mxu0 %v13865_v48  ;;  %v12242_v38 = vld [vmem:[#allocation5 + $0x944] ss:$16 sps:$4 sm:$0xff]  }
  0xf6   :  { %6283 = vmatprep.mubr.bf16.mxu1 %v13870_v52 }
  0xf7   :  { %6213 = vmatpush1.bf16.msra.mxu0 %v12168_v41  ;;  %v12240_v41 = vld [vmem:[#allocation5 + $0x940] ss:$16 sps:$4 sm:$0xff]  }
  0xf8   :  { %6254 = vmatpush1.bf16.msra.mxu1 %v12171_v45  ;;  %6214 = vmatprep.subr.bf16.mxu0 %v12176_v46  ;;  %v12243_v45 = vld [vmem:[#allocation5 + $0xb40] ss:$16 sps:$4 sm:$0xff]   ;;  %v12248_v46 = vld [vmem:[#allocation5 + $0x924] ss:$16 sps:$4 sm:$0xff]  }
  0xf9   :  { %6255 = vmatprep.subr.bf16.mxu1 %v12179_v47  ;;  %v12251_v47 = vld [vmem:[#allocation5 + $0xb24] ss:$16 sps:$4 sm:$0xff]  }
  0xfb   :  { %6215 = vmatpush1.bf16.msra.mxu0 %v12174_v51  ;;  %v12246_v51 = vld [vmem:[#allocation5 + $0x920] ss:$16 sps:$4 sm:$0xff]  }
  0xfc   :  { %6256 = vmatpush1.bf16.msra.mxu1 %v12177_v54  ;;  %6216 = vmatprep.subr.bf16.mxu0 %v12182_v55  ;;  %v12249_v54 = vld [vmem:[#allocation5 + $0xb20] ss:$16 sps:$4 sm:$0xff]   ;;  %v12254_v55 = vld [vmem:[#allocation5 + $0x904] ss:$16 sps:$4 sm:$0xff]  }
  0xfd   :  { %6257 = vmatprep.subr.bf16.mxu1 %v12185_v56  ;;  %v12257_v56 = vld [vmem:[#allocation5 + $0xb04] ss:$16 sps:$4 sm:$0xff]  }
  0xff   :  { %6217 = vmatpush1.bf16.msra.mxu0 %v12180_v58  ;;  %v13877_v58 = vrot.slane %v156_v42, %v13806_v49  ;;  %v12312_v42 = vld [vmem:[#allocation5 + $0xfe4] ss:$16 sps:$4 sm:$0xff]  }
 0x100   :  { %6258 = vmatpush1.bf16.msra.mxu1 %v12183_v59  ;;  %6218 = vmatprep.subr.bf16.mxu0 %v12188_v60  ;;  %v13880_v59 = vrot.slane %v220_v50, %v13806_v49  ;;  %v12252_v60 = vld [vmem:[#allocation5 + $0x900] ss:$16 sps:$4 sm:$0xff]   ;;  %v12318_v50 = vld [vmem:[#allocation5 + $0xfc4] ss:$16 sps:$4 sm:$0xff]  }
 0x101   :  { %6259 = vmatprep.subr.bf16.mxu1 %v12191_v61  ;;  %v12255_v61 = vld [vmem:[#allocation5 + $0xb00] ss:$16 sps:$4 sm:$0xff]  }
 0x103   :  { %6219 = vmatpush1.bf16.msra.mxu0 %v12186_v63  ;;  %v12261_v63 = vld [vmem:[#allocation5 + $0xce4] ss:$16 sps:$4 sm:$0xff]  }
 0x104   :  { %6260 = vmatpush1.bf16.msra.mxu1 %v12189_v0  ;;  %6220 = vmatprep.subr.bf16.mxu0 %v12194_v1  ;;  %v12264_v0 = vld [vmem:[#allocation5 + $0xee4] ss:$16 sps:$4 sm:$0xff]   ;;  %v235_v1 = vcombine.high %v13877_v58, %v13877_v58 }
 0x105   :  { %6261 = vmatprep.subr.bf16.mxu1 %v12197_v2  ;;  %v236_v2 = vcombine.high %v13880_v59, %v13880_v59 }
 0x107   :  { %6221 = vmatpush1.bf16.msra.mxu0 %v12192_v4  ;;  %v13888_v4 = vpack.c.bf16 %v13856_v39, %v13856_v39  ;;  %v12265_v39 = vld [vmem:[#allocation5 + $0xcc0] ss:$16 sps:$4 sm:$0xff]  }
 0x108   :  { %6262 = vmatpush1.bf16.msra.mxu1 %v12195_v5  ;;  %6222 = vmatprep.subr.bf16.mxu0 %v12200_v6  ;;  %v13892_v5 = vpack.c.bf16 %v13863_v44, %v13863_v44  ;;  %v12259_v6 = vld [vmem:[#allocation5 + $0xce0] ss:$16 sps:$4 sm:$0xff]  }
 0x109   :  { %6263 = vmatprep.subr.bf16.mxu1 %v12203_v7  ;;  %v12262_v7 = vld [vmem:[#allocation5 + $0xee0] ss:$16 sps:$4 sm:$0xff]  }
 0x10a   :  { %v12268_v44 = vld [vmem:[#allocation5 + $0xec0] ss:$16 sps:$4 sm:$0xff]  }
 0x10b   :  { %6223 = vmatpush1.bf16.msra.mxu0 %v12198_v8  ;;  %v12267_v8 = vld [vmem:[#allocation5 + $0xcc4] ss:$16 sps:$4 sm:$0xff]  }
 0x10c   :  { %6264 = vmatpush1.bf16.msra.mxu1 %v12201_v9  ;;  %6224 = vmatprep.subr.bf16.mxu0 %v12206_v10  ;;  %v12270_v9 = vld [vmem:[#allocation5 + $0xec4] ss:$16 sps:$4 sm:$0xff]   ;;  %v13894_v10 = vpack.c.bf16 %v235_v1, %v235_v1  ;;  %v12325_v1 = vld [vmem:[#allocation5 + $0xd80] ss:$16 sps:$4 sm:$0xff]  }
 0x10d   :  { %6265 = vmatprep.subr.bf16.mxu1 %v12209_v11  ;;  %v13896_v11 = vpack.c.bf16 %v236_v2, %v236_v2  ;;  %v12328_v2 = vld [vmem:[#allocation5 + $0xf80] ss:$16 sps:$4 sm:$0xff]  }
 0x10f   :  { %6225 = vmatpush1.bf16.msra.mxu0 %v12204_v12  ;;  %v12273_v12 = vld [vmem:[#allocation5 + $0xca4] ss:$16 sps:$4 sm:$0xff]  }
 0x110   :  { %6266 = vmatpush1.bf16.msra.mxu1 %v12207_v13  ;;  %6226 = vmatprep.subr.bf16.mxu0 %v12212_v14  ;;  %v12276_v13 = vld [vmem:[#allocation5 + $0xea4] ss:$16 sps:$4 sm:$0xff]   ;;  %v12271_v14 = vld [vmem:[#allocation5 + $0xca0] ss:$16 sps:$4 sm:$0xff]  }
 0x111   :  { %6267 = vmatprep.subr.bf16.mxu1 %v12215_v15  ;;  %v12274_v15 = vld [vmem:[#allocation5 + $0xea0] ss:$16 sps:$4 sm:$0xff]  }
 0x113   :  { %6227 = vmatpush2.bf16.msra.mxu0 %v12210_v18  ;;  %v12279_v18 = vld [vmem:[#allocation5 + $0xc84] ss:$16 sps:$4 sm:$0xff]  }
 0x114   :  { %6268 = vmatpush2.bf16.msra.mxu1 %v12213_v19  ;;  %6228 = vmatprep.subr.bf16.mxu0 %v12218_v20  ;;  %v12282_v19 = vld [vmem:[#allocation5 + $0xe84] ss:$16 sps:$4 sm:$0xff]   ;;  %v12277_v20 = vld [vmem:[#allocation5 + $0xc80] ss:$16 sps:$4 sm:$0xff]  }
 0x115   :  { %6269 = vmatprep.subr.bf16.mxu1 %v12221_v21  ;;  %v12280_v21 = vld [vmem:[#allocation5 + $0xe80] ss:$16 sps:$4 sm:$0xff]  }
 0x117   :  { %6229 = vmatpush2.bf16.msra.mxu0 %v12216_v22  ;;  %v12285_v22 = vld [vmem:[#allocation5 + $0xc64] ss:$16 sps:$4 sm:$0xff]  }
 0x118   :  { %6270 = vmatpush2.bf16.msra.mxu1 %v12219_v23  ;;  %6230 = vmatprep.subr.bf16.mxu0 %v12224_v24  ;;  %v12288_v23 = vld [vmem:[#allocation5 + $0xe64] ss:$16 sps:$4 sm:$0xff]   ;;  %v12283_v24 = vld [vmem:[#allocation5 + $0xc60] ss:$16 sps:$4 sm:$0xff]  }
 0x119   :  { %6271 = vmatprep.subr.bf16.mxu1 %v12227_v25  ;;  %v12286_v25 = vld [vmem:[#allocation5 + $0xe60] ss:$16 sps:$4 sm:$0xff]  }
 0x11b   :  { %6231 = vmatpush2.bf16.msra.mxu0 %v12222_v26  ;;  %v12291_v26 = vld [vmem:[#allocation5 + $0xc44] ss:$16 sps:$4 sm:$0xff]  }
 0x11c   :  { %6272 = vmatpush2.bf16.msra.mxu1 %v12225_v27  ;;  %6232 = vmatprep.subr.bf16.mxu0 %v12230_v28  ;;  %v12294_v27 = vld [vmem:[#allocation5 + $0xe44] ss:$16 sps:$4 sm:$0xff]   ;;  %v12289_v28 = vld [vmem:[#allocation5 + $0xc40] ss:$16 sps:$4 sm:$0xff]  }
 0x11d   :  { %6273 = vmatprep.subr.bf16.mxu1 %v12233_v29  ;;  %v12292_v29 = vld [vmem:[#allocation5 + $0xe40] ss:$16 sps:$4 sm:$0xff]  }
 0x11f   :  { %6233 = vmatpush2.bf16.msra.mxu0 %v12228_v30  ;;  %v12297_v30 = vld [vmem:[#allocation5 + $0xc24] ss:$16 sps:$4 sm:$0xff]  }
 0x120   :  { %6274 = vmatpush2.bf16.msra.mxu1 %v12231_v31  ;;  %6234 = vmatprep.subr.bf16.mxu0 %v12236_v34  ;;  %v12300_v31 = vld [vmem:[#allocation5 + $0xe24] ss:$16 sps:$4 sm:$0xff]   ;;  %v12295_v34 = vld [vmem:[#allocation5 + $0xc20] ss:$16 sps:$4 sm:$0xff]  }
 0x121   :  { %6275 = vmatprep.subr.bf16.mxu1 %v12239_v35  ;;  %v12298_v35 = vld [vmem:[#allocation5 + $0xe20] ss:$16 sps:$4 sm:$0xff]  }
 0x123   :  { %6235 = vmatpush2.bf16.msra.mxu0 %v12234_v36  ;;  %v12303_v36 = vld [vmem:[#allocation5 + $0xc04] ss:$16 sps:$4 sm:$0xff]  }
 0x124   :  { %6276 = vmatpush2.bf16.msra.mxu1 %v12237_v37  ;;  %6236 = vmatprep.subr.bf16.mxu0 %v12242_v38  ;;  %v12306_v37 = vld [vmem:[#allocation5 + $0xe04] ss:$16 sps:$4 sm:$0xff]   ;;  %v12301_v38 = vld [vmem:[#allocation5 + $0xc00] ss:$16 sps:$4 sm:$0xff]  }
 0x125   :  { %6277 = vmatprep.subr.bf16.mxu1 %v12245_v40  ;;  %v12304_v40 = vld [vmem:[#allocation5 + $0xe00] ss:$16 sps:$4 sm:$0xff]  }
 0x127   :  { %6237 = vmatpush2.bf16.msra.mxu0 %v12240_v41  ;;  %v12309_v41 = vld [vmem:[#allocation5 + $0xde4] ss:$16 sps:$4 sm:$0xff]  }
 0x128   :  { %6278 = vmatpush2.bf16.msra.mxu1 %v12243_v45  ;;  %6238 = vmatprep.subr.bf16.mxu0 %v12248_v46  ;;  %v12307_v45 = vld [vmem:[#allocation5 + $0xde0] ss:$16 sps:$4 sm:$0xff]  }
 0x129   :  { %6279 = vmatprep.subr.bf16.mxu1 %v12251_v47  ;;  %v12310_v46 = vld [vmem:[#allocation5 + $0xfe0] ss:$16 sps:$4 sm:$0xff]   ;;  %v12315_v47 = vld [vmem:[#allocation5 + $0xdc4] ss:$16 sps:$4 sm:$0xff]  }
 0x12b   :  { %6239 = vmatpush2.bf16.msra.mxu0 %v12246_v51  ;;  %v12313_v51 = vld [vmem:[#allocation5 + $0xdc0] ss:$16 sps:$4 sm:$0xff]  }
 0x12c   :  { %6280 = vmatpush2.bf16.msra.mxu1 %v12249_v54  ;;  %6240 = vmatprep.subr.bf16.mxu0 %v12254_v55  ;;  %v12316_v54 = vld [vmem:[#allocation5 + $0xfc0] ss:$16 sps:$4 sm:$0xff]   ;;  %v12321_v55 = vld [vmem:[#allocation5 + $0xda4] ss:$16 sps:$4 sm:$0xff]  }
 0x12d   :  { %6281 = vmatprep.subr.bf16.mxu1 %v12257_v56  ;;  %v12324_v56 = vld [vmem:[#allocation5 + $0xfa4] ss:$16 sps:$4 sm:$0xff]  }
 0x12f   :  { %6241 = vmatpush2.bf16.msra.mxu0 %v12252_v60  ;;  %v12319_v60 = vld [vmem:[#allocation5 + $0xda0] ss:$16 sps:$4 sm:$0xff]  }
 0x130   :  { %6282 = vmatpush2.bf16.msra.mxu1 %v12255_v61  ;;  %6292 = vmatprep.subr.bf16.mxu0 %v12261_v63  ;;  %v12322_v61 = vld [vmem:[#allocation5 + $0xfa0] ss:$16 sps:$4 sm:$0xff]   ;;  %v12327_v63 = vld [vmem:[#allocation5 + $0xd84] ss:$16 sps:$4 sm:$0xff]  }
 0x131   :  { %6333 = vmatprep.subr.bf16.mxu1 %v12264_v0  ;;  %v12330_v0 = vld [vmem:[#allocation5 + $0xf84] ss:$16 sps:$4 sm:$0xff]  }
 0x132   :  { %6243 = vmatmul.mubr.bf16.vlgmr.msra.gmra.mxu0 %v13888_v4 }
 0x133   :  { %6284 = vmatmul.mubr.bf16.vlgmr.msra.gmra.mxu1 %v13892_v5  ;;  %6293 = vmatpush1.bf16.msra.mxu0 %v12259_v6  ;;  %v12333_v6 = vld [vmem:[#allocation5 + $0xd64] ss:$16 sps:$4 sm:$0xff]  }
 0x134   :  { %6334 = vmatpush1.bf16.msra.mxu1 %v12262_v7  ;;  %6294 = vmatprep.subr.bf16.mxu0 %v12267_v8  ;;  %v12336_v7 = vld [vmem:[#allocation5 + $0xf64] ss:$16 sps:$4 sm:$0xff]   ;;  %v12331_v8 = vld [vmem:[#allocation5 + $0xd60] ss:$16 sps:$4 sm:$0xff]  }
 0x135   :  { %6335 = vmatprep.subr.bf16.mxu1 %v12270_v9  ;;  %6324 = vmatprep.mubr.bf16.mxu0 %v13894_v10  ;;  %v12334_v9 = vld [vmem:[#allocation5 + $0xf60] ss:$16 sps:$4 sm:$0xff]  }
 0x136   :  { %6365 = vmatprep.mubr.bf16.mxu1 %v13896_v11 }
 0x137   :  { %6295 = vmatpush1.bf16.msra.mxu0 %v12265_v39  ;;  %v12339_v39 = vld [vmem:[#allocation5 + $0xd44] ss:$16 sps:$4 sm:$0xff]  }
 0x138   :  { %6336 = vmatpush1.bf16.msra.mxu1 %v12268_v44  ;;  %6296 = vmatprep.subr.bf16.mxu0 %v12273_v12  ;;  %v12342_v44 = vld [vmem:[#allocation5 + $0xf44] ss:$16 sps:$4 sm:$0xff]  }
 0x139   :  { %6337 = vmatprep.subr.bf16.mxu1 %v12276_v13  ;;  %v157_v12 = vld [vmem:[%s14284_s0 + $0x20] sm:$0xff] }
 0x13a   :  { %v12337_v13 = vld [vmem:[#allocation5 + $0xd40] ss:$16 sps:$4 sm:$0xff]  }
 0x13b   :  { %6297 = vmatpush1.bf16.msra.mxu0 %v12271_v14  ;;  %v12340_v14 = vld [vmem:[#allocation5 + $0xf40] ss:$16 sps:$4 sm:$0xff]  }
 0x13c   :  { %6338 = vmatpush1.bf16.msra.mxu1 %v12274_v15  ;;  %6298 = vmatprep.subr.bf16.mxu0 %v12279_v18  ;;  %v12345_v15 = vld [vmem:[#allocation5 + $0xd24] ss:$16 sps:$4 sm:$0xff]  }
 0x13d   :  { %6339 = vmatprep.subr.bf16.mxu1 %v12282_v19  ;;  %v12348_v18 = vld [vmem:[#allocation5 + $0xf24] ss:$16 sps:$4 sm:$0xff]   ;;  %v237_v19 = vcombine.high %v157_v12, %v157_v12 }
 0x13f   :  { %6299 = vmatpush1.bf16.msra.mxu0 %v12277_v20  ;;  %v12343_v20 = vld [vmem:[#allocation5 + $0xd20] ss:$16 sps:$4 sm:$0xff]  }
 0x140   :  { %6340 = vmatpush1.bf16.msra.mxu1 %v12280_v21  ;;  %6300 = vmatprep.subr.bf16.mxu0 %v12285_v22  ;;  %v12346_v21 = vld [vmem:[#allocation5 + $0xf20] ss:$16 sps:$4 sm:$0xff]   ;;  %v12351_v22 = vld [vmem:[#allocation5 + $0xd04] ss:$16 sps:$4 sm:$0xff]  }
 0x141   :  { %6341 = vmatprep.subr.bf16.mxu1 %v12288_v23  ;;  %v12354_v23 = vld [vmem:[#allocation5 + $0xf04] ss:$16 sps:$4 sm:$0xff]  }
 0x143   :  { %6301 = vmatpush1.bf16.msra.mxu0 %v12283_v24  ;;  %v13906_v24 = vrot.slane %v157_v12, %v13806_v49 }
 0x144   :  { %6342 = vmatpush1.bf16.msra.mxu1 %v12286_v25  ;;  %6302 = vmatprep.subr.bf16.mxu0 %v12291_v26  ;;  %v13909_v25 = vrot.slane %v237_v19, %v13806_v49  ;;  %v12349_v26 = vld [vmem:[#allocation5 + $0xd00] ss:$16 sps:$4 sm:$0xff]   ;;  %v12382_v19 = vld [vmem:[#allocation5 + $0x1064] ss:$16 sps:$4 sm:$0xff]  }
 0x145   :  { %6343 = vmatprep.subr.bf16.mxu1 %v12294_v27  ;;  %v12352_v27 = vld [vmem:[#allocation5 + $0xf00] ss:$16 sps:$4 sm:$0xff]  }
 0x147   :  { %6303 = vmatpush1.bf16.msra.mxu0 %v12289_v28  ;;  %v1300_v28 = vld [vmem:[#allocation7] sm:$0xf] }
 0x148   :  { %6344 = vmatpush1.bf16.msra.mxu1 %v12292_v29  ;;  %6304 = vmatprep.subr.bf16.mxu0 %v12297_v30  ;;  %v13912_v29 = vsub.s32 0, %v13803_v43  ;;  %v12358_v30 = vld [vmem:[#allocation5 + $0x10e4] ss:$16 sps:$4 sm:$0xff]  }
 0x149   :  { %6345 = vmatprep.subr.bf16.mxu1 %v12300_v31  ;;  %v12361_v31 = vld [vmem:[#allocation5 + $0x12e4] ss:$16 sps:$4 sm:$0xff]  }
 0x14b   :  { %6305 = vmatpush1.bf16.msra.mxu0 %v12295_v34  ;;  %v13915_v34 = vsub.s32 1, %v13803_v43 }
 0x14c   :  { %6346 = vmatpush1.bf16.msra.mxu1 %v12298_v35  ;;  %6306 = vmatprep.subr.bf16.mxu0 %v12303_v36  ;;  %v252_v35 = vcombine.high %v13906_v24, %v13906_v24  ;;  %v253_v36 = vcombine.high %v13909_v25, %v13909_v25 }
 0x14d   :  { %6347 = vmatprep.subr.bf16.mxu1 %v12306_v37  ;;  %v13923_v37 = vpack.c.bf16 %v13877_v58, %v13877_v58 }
 0x14e   :  { %v13933_v58 = vpack.c.bf16 %v253_v36, %v253_v36  ;;  %v12395_v36 = vld [vmem:[#allocation5 + $0x1220] ss:$16 sps:$4 sm:$0xff]  }
 0x14f   :  { %6307 = vmatpush1.bf16.msra.mxu0 %v12301_v38  ;;  %v13927_v38 = vpack.c.bf16 %v13880_v59, %v13880_v59  ;;  %v12362_v59 = vld [vmem:[#allocation5 + $0x10c0] ss:$16 sps:$4 sm:$0xff]  }
 0x150   :  { %6348 = vmatpush1.bf16.msra.mxu1 %v12304_v40  ;;  %6308 = vmatprep.subr.bf16.mxu0 %v12309_v41  ;;  %v1305_v40 = vrot.slane %v1300_v28, %v13912_v29  ;;  %v12356_v41 = vld [vmem:[#allocation5 + $0x10e0] ss:$16 sps:$4 sm:$0xff]  }
 0x151   :  { %6349 = vmatprep.subr.bf16.mxu1 %v12312_v42  ;;  %v12359_v42 = vld [vmem:[#allocation5 + $0x12e0] ss:$16 sps:$4 sm:$0xff]  }
 0x153   :  { %6309 = vmatpush2.bf16.msra.mxu0 %v12307_v45  ;;  %v12364_v45 = vld [vmem:[#allocation5 + $0x10c4] ss:$16 sps:$4 sm:$0xff]  }
 0x154   :  { %6350 = vmatpush2.bf16.msra.mxu1 %v12310_v46  ;;  %6310 = vmatprep.subr.bf16.mxu0 %v12315_v47  ;;  %v12367_v46 = vld [vmem:[#allocation5 + $0x12c4] ss:$16 sps:$4 sm:$0xff]   ;;  %v1309_v47 = vrot.slane %v1300_v28, %v13915_v34  ;;  %v12389_v28 = vld [vmem:[#allocation5 + $0x1240] ss:$16 sps:$4 sm:$0xff]  }
 0x155   :  { %6351 = vmatprep.subr.bf16.mxu1 %v12318_v50  ;;  %v13931_v50 = vpack.c.bf16 %v252_v35, %v252_v35  ;;  %v12392_v35 = vld [vmem:[#allocation5 + $0x1020] ss:$16 sps:$4 sm:$0xff]  }
 0x157   :  { %6311 = vmatpush2.bf16.msra.mxu0 %v12313_v51 }
 0x158   :  { %6352 = vmatpush2.bf16.msra.mxu1 %v12316_v54  ;;  %6312 = vmatprep.subr.bf16.mxu0 %v12321_v55 }
 0x159   :  { %6353 = vmatprep.subr.bf16.mxu1 %v12324_v56  ;;  %v12365_v56 = vld [vmem:[#allocation5 + $0x12c0] ss:$16 sps:$4 sm:$0xff]  }
 0x15b   :  { %6313 = vmatpush2.bf16.msra.mxu0 %v12319_v60  ;;  %v12370_v60 = vld [vmem:[#allocation5 + $0x10a4] ss:$16 sps:$4 sm:$0xff]  }
 0x15c   :  { %6354 = vmatpush2.bf16.msra.mxu1 %v12322_v61  ;;  %6314 = vmatprep.subr.bf16.mxu0 %v12327_v63 }
 0x15d   :  { %6355 = vmatprep.subr.bf16.mxu1 %v12330_v0  ;;  %v12373_v0 = vld [vmem:[#allocation5 + $0x12a4] ss:$16 sps:$4 sm:$0xff]  }
 0x15f   :  { %6315 = vmatpush2.bf16.msra.mxu0 %v12325_v1 }
 0x160   :  { %6356 = vmatpush2.bf16.msra.mxu1 %v12328_v2  ;;  %6316 = vmatprep.subr.bf16.mxu0 %v12333_v6 }
 0x161   :  { %6357 = vmatprep.subr.bf16.mxu1 %v12336_v7 }
 0x163   :  { %6317 = vmatpush2.bf16.msra.mxu0 %v12331_v8  ;;  %v12368_v8 = vld [vmem:[#allocation5 + $0x10a0] ss:$16 sps:$4 sm:$0xff]  }
 0x164   :  { %6358 = vmatpush2.bf16.msra.mxu1 %v12334_v9  ;;  %6318 = vmatprep.subr.bf16.mxu0 %v12339_v39  ;;  %v12371_v9 = vld [vmem:[#allocation5 + $0x12a0] ss:$16 sps:$4 sm:$0xff]  }
 0x165   :  { %6359 = vmatprep.subr.bf16.mxu1 %v12342_v44 }
 0x167   :  { %6319 = vmatpush2.bf16.msra.mxu0 %v12337_v13  ;;  %v12376_v13 = vld [vmem:[#allocation5 + $0x1084] ss:$16 sps:$4 sm:$0xff]  }
 0x168   :  { %6360 = vmatpush2.bf16.msra.mxu1 %v12340_v14  ;;  %6320 = vmatprep.subr.bf16.mxu0 %v12345_v15  ;;  %v12379_v14 = vld [vmem:[#allocation5 + $0x1284] ss:$16 sps:$4 sm:$0xff]   ;;  %v12374_v15 = vld [vmem:[#allocation5 + $0x1080] ss:$16 sps:$4 sm:$0xff]  }
 0x169   :  { %6361 = vmatprep.subr.bf16.mxu1 %v12348_v18  ;;  %v12377_v18 = vld [vmem:[#allocation5 + $0x1280] ss:$16 sps:$4 sm:$0xff]  }
 0x16b   :  { %6321 = vmatpush2.bf16.msra.mxu0 %v12343_v20  ;;  %v12385_v20 = vld [vmem:[#allocation5 + $0x1264] ss:$16 sps:$4 sm:$0xff]  }
 0x16c   :  { %6362 = vmatpush2.bf16.msra.mxu1 %v12346_v21  ;;  %6322 = vmatprep.subr.bf16.mxu0 %v12351_v22  ;;  %v12380_v21 = vld [vmem:[#allocation5 + $0x1060] ss:$16 sps:$4 sm:$0xff]  }
 0x16d   :  { %6363 = vmatprep.subr.bf16.mxu1 %v12354_v23  ;;  %v12383_v22 = vld [vmem:[#allocation5 + $0x1260] ss:$16 sps:$4 sm:$0xff]   ;;  %v12388_v23 = vld [vmem:[#allocation5 + $0x1044] ss:$16 sps:$4 sm:$0xff]  }
 0x16f   :  { %6323 = vmatpush2.bf16.msra.mxu0 %v12349_v26  ;;  %v12391_v26 = vld [vmem:[#allocation5 + $0x1244] ss:$16 sps:$4 sm:$0xff]  }
 0x170   :  { %6364 = vmatpush2.bf16.msra.mxu1 %v12352_v27  ;;  %6374 = vmatprep.subr.bf16.mxu0 %v12358_v30  ;;  %v12386_v27 = vld [vmem:[#allocation5 + $0x1040] ss:$16 sps:$4 sm:$0xff]   ;;  %v12394_v30 = vld [vmem:[#allocation5 + $0x1024] ss:$16 sps:$4 sm:$0xff]  }
 0x171   :  { %6415 = vmatprep.subr.bf16.mxu1 %v12361_v31  ;;  %v12397_v31 = vld [vmem:[#allocation5 + $0x1224] ss:$16 sps:$4 sm:$0xff]  }
 0x172   :  { %v6080_v51 = vpop.f32.mrf.mxu0  ;;  %6325 = vmatmul.mubr.bf16.vlgmr.msra.gmra.mxu0 %v13923_v37 }
 0x173   :  { %v6121_v54 = vpop.f32.mrf.mxu1  ;;  %6366 = vmatmul.mubr.bf16.vlgmr.msra.gmra.mxu1 %v13927_v38  ;;  %v6081_v55 = vadd.f32 %v6080_v51, %v1305_v40  ;;  %6375 = vmatpush1.bf16.msra.mxu0 %v12356_v41  ;;  %v12400_v40 = vld [vmem:[#allocation5 + $0x1004] ss:$16 sps:$4 sm:$0xff]   ;;  %v12404_v51 = vld [vmem:[#allocation5 + $0x11e0] ss:$16 sps:$4 sm:$0xff]  }
 0x174   :  { %6416 = vmatpush1.bf16.msra.mxu1 %v12359_v42  ;;  %v6082_v61 = vpop.f32.mrf.mxu0  ;;  %6376 = vmatprep.subr.bf16.mxu0 %v12364_v45  ;;  %v12403_v41 = vld [vmem:[#allocation5 + $0x1204] ss:$16 sps:$4 sm:$0xff]   ;;  %v12398_v42 = vld [vmem:[#allocation5 + $0x1000] ss:$16 sps:$4 sm:$0xff]  }
 0x175   :  { %v6123_v63 = vpop.f32.mrf.mxu1  ;;  %6417 = vmatprep.subr.bf16.mxu1 %v12367_v46  ;;  %v13937_v1 = vadd.f32 %v6121_v54, %v6081_v55  ;;  %v6083_v2 = vadd.f32 %v6082_v61, %v1309_v47  ;;  %6406 = vmatprep.mubr.bf16.mxu0 %v13931_v50  ;;  %v12401_v45 = vld [vmem:[#allocation5 + $0x1200] ss:$16 sps:$4 sm:$0xff]   ;;  %v12406_v46 = vld [vmem:[#allocation5 + $0x11e4] ss:$16 sps:$4 sm:$0xff]  }
 0x176   :  { %6447 = vmatprep.mubr.bf16.mxu1 %v13933_v58  ;;  %v6084_v6 = vpop.f32.mrf.mxu0  ;;  %v12409_v47 = vld [vmem:[#allocation5 + $0x13e4] ss:$16 sps:$4 sm:$0xff]   ;;  %v12407_v54 = vld [vmem:[#allocation5 + $0x13e0] ss:$16 sps:$4 sm:$0xff]  }
 0x177   :  { %v6125_v7 = vpop.f32.mrf.mxu1  ;;  %v13941_v39 = vadd.f32 %v6123_v63, %v6083_v2  ;;  %6377 = vmatpush1.bf16.msra.mxu0 %v12362_v59  ;;  %v12412_v59 = vld [vmem:[#allocation5 + $0x11c4] ss:$16 sps:$4 sm:$0xff]   ;;  %v12419_v2 = vld [vmem:[#allocation5 + $0x13a0] ss:$16 sps:$4 sm:$0xff]  }
 0x178   :  { %6418 = vmatpush1.bf16.msra.mxu1 %v12365_v56  ;;  %v6085_v44 = vpop.f32.mrf.mxu0  ;;  %6378 = vmatprep.subr.bf16.mxu0 %v12370_v60  ;;  %v12415_v55 = vld [vmem:[#allocation5 + $0x13c4] ss:$16 sps:$4 sm:$0xff]   ;;  %v12410_v56 = vld [vmem:[#allocation5 + $0x11c0] ss:$16 sps:$4 sm:$0xff]  }
 0x179   :  { %v6126_v12 = vpop.f32.mrf.mxu1  ;;  %6419 = vmatprep.subr.bf16.mxu1 %v12373_v0  ;;  %v12413_v60 = vld [vmem:[#allocation5 + $0x13c0] ss:$16 sps:$4 sm:$0xff]   ;;  %v12418_v61 = vld [vmem:[#allocation5 + $0x11a4] ss:$16 sps:$4 sm:$0xff]  }
 0x17a   :  { %v12421_v63 = vld [vmem:[#allocation5 + $0x13a4] ss:$16 sps:$4 sm:$0xff]   ;;  %v12416_v0 = vld [vmem:[#allocation5 + $0x11a0] ss:$16 sps:$4 sm:$0xff]  }
 0x17b   :  { %6379 = vmatpush1.bf16.msra.mxu0 %v12368_v8  ;;  %v12424_v6 = vld [vmem:[#allocation5 + $0x1184] ss:$16 sps:$4 sm:$0xff]   ;;  %v12422_v8 = vld [vmem:[#allocation5 + $0x1180] ss:$16 sps:$4 sm:$0xff]  }
 0x17c   :  { %6420 = vmatpush1.bf16.msra.mxu1 %v12371_v9  ;;  %6380 = vmatprep.subr.bf16.mxu0 %v12376_v13  ;;  %v12427_v7 = vld [vmem:[#allocation5 + $0x1384] ss:$16 sps:$4 sm:$0xff]   ;;  %v12425_v9 = vld [vmem:[#allocation5 + $0x1380] ss:$16 sps:$4 sm:$0xff]  }
 0x17d   :  { %6421 = vmatprep.subr.bf16.mxu1 %v12379_v14  ;;  %v12430_v44 = vld [vmem:[#allocation5 + $0x1164] ss:$16 sps:$4 sm:$0xff]   ;;  %v12428_v13 = vld [vmem:[#allocation5 + $0x1160] ss:$16 sps:$4 sm:$0xff]  }
 0x17e   :  { %v12433_v12 = vld [vmem:[#allocation5 + $0x1364] ss:$16 sps:$4 sm:$0xff]   ;;  %v12431_v14 = vld [vmem:[#allocation5 + $0x1360] ss:$16 sps:$4 sm:$0xff]  }
 0x17f   :  { %6381 = vmatpush1.bf16.msra.mxu0 %v12374_v15  ;;  %v12436_v15 = vld [vmem:[#allocation5 + $0x1144] ss:$16 sps:$4 sm:$0xff]  }
 0x180   :  { %6422 = vmatpush1.bf16.msra.mxu1 %v12377_v18  ;;  %6382 = vmatprep.subr.bf16.mxu0 %v12382_v19  ;;  %v12439_v18 = vld [vmem:[#allocation5 + $0x1344] ss:$16 sps:$4 sm:$0xff]  }
 0x181   :  { %6423 = vmatprep.subr.bf16.mxu1 %v12385_v20  ;;  %v158_v19 = vld [vmem:[%s14284_s0 + $0x28] sm:$0xff]  ;;  %v12434_v20 = vld [vmem:[#allocation5 + $0x1140] ss:$16 sps:$4 sm:$0xff]  }
 0x183   :  { %6383 = vmatpush1.bf16.msra.mxu0 %v12380_v21  ;;  %v12437_v21 = vld [vmem:[#allocation5 + $0x1340] ss:$16 sps:$4 sm:$0xff]  }
 0x184   :  { %6424 = vmatpush1.bf16.msra.mxu1 %v12383_v22  ;;  %6384 = vmatprep.subr.bf16.mxu0 %v12388_v23  ;;  %v12442_v22 = vld [vmem:[#allocation5 + $0x1124] ss:$16 sps:$4 sm:$0xff]  }
 0x185   :  { %6425 = vmatprep.subr.bf16.mxu1 %v12391_v26  ;;  %v12445_v23 = vld [vmem:[#allocation5 + $0x1324] ss:$16 sps:$4 sm:$0xff]   ;;  %v254_v26 = vcombine.high %v158_v19, %v158_v19 }
 0x187   :  { %6385 = vmatpush1.bf16.msra.mxu0 %v12386_v27  ;;  %v12440_v27 = vld [vmem:[#allocation5 + $0x1120] ss:$16 sps:$4 sm:$0xff]  }
 0x188   :  { %6426 = vmatpush1.bf16.msra.mxu1 %v12389_v28  ;;  %6386 = vmatprep.subr.bf16.mxu0 %v12394_v30  ;;  %v12443_v28 = vld [vmem:[#allocation5 + $0x1320] ss:$16 sps:$4 sm:$0xff]   ;;  %v12448_v30 = vld [vmem:[#allocation5 + $0x1104] ss:$16 sps:$4 sm:$0xff]  }
 0x189   :  { %6427 = vmatprep.subr.bf16.mxu1 %v12397_v31  ;;  %v12451_v31 = vld [vmem:[#allocation5 + $0x1304] ss:$16 sps:$4 sm:$0xff]  }
 0x18b   :  { %6387 = vmatpush1.bf16.msra.mxu0 %v12392_v35  ;;  %v13947_v35 = vrot.slane %v158_v19, %v13806_v49 }
 0x18c   :  { %6428 = vmatpush1.bf16.msra.mxu1 %v12395_v36  ;;  %6388 = vmatprep.subr.bf16.mxu0 %v12400_v40  ;;  %v13950_v36 = vrot.slane %v254_v26, %v13806_v49  ;;  %v12446_v40 = vld [vmem:[#allocation5 + $0x1100] ss:$16 sps:$4 sm:$0xff]  }
 0x18d   :  { %6429 = vmatprep.subr.bf16.mxu1 %v12403_v41  ;;  %v12449_v41 = vld [vmem:[#allocation5 + $0x1300] ss:$16 sps:$4 sm:$0xff]  }
 0x18e   :  { %v12474_v26 = vld [vmem:[#allocation5 + $0x1680] ss:$16 sps:$4 sm:$0xff]  }
 0x18f   :  { %6389 = vmatpush1.bf16.msra.mxu0 %v12398_v42  ;;  %v12455_v42 = vld [vmem:[#allocation5 + $0x14e4] ss:$16 sps:$4 sm:$0xff]  }
 0x190   :  { %6430 = vmatpush1.bf16.msra.mxu1 %v12401_v45  ;;  %6390 = vmatprep.subr.bf16.mxu0 %v12406_v46  ;;  %v12458_v45 = vld [vmem:[#allocation5 + $0x16e4] ss:$16 sps:$4 sm:$0xff]   ;;  %v12453_v46 = vld [vmem:[#allocation5 + $0x14e0] ss:$16 sps:$4 sm:$0xff]  }
 0x191   :  { %6431 = vmatprep.subr.bf16.mxu1 %v12409_v47  ;;  %v12456_v47 = vld [vmem:[#allocation5 + $0x16e0] ss:$16 sps:$4 sm:$0xff]  }
 0x193   :  { %6391 = vmatpush2.bf16.msra.mxu0 %v12404_v51  ;;  %v269_v51 = vcombine.high %v13947_v35, %v13947_v35 }
 0x194   :  { %6432 = vmatpush2.bf16.msra.mxu1 %v12407_v54  ;;  %6392 = vmatprep.subr.bf16.mxu0 %v12412_v59  ;;  %v270_v54 = vcombine.high %v13950_v36, %v13950_v36  ;;  %v13958_v59 = vpack.c.bf16 %v13906_v24, %v13906_v24 }
 0x195   :  { %6433 = vmatprep.subr.bf16.mxu1 %v12415_v55  ;;  %v13962_v55 = vpack.c.bf16 %v13909_v25, %v13909_v25 }
 0x197   :  { %6393 = vmatpush2.bf16.msra.mxu0 %v12410_v56  ;;  %v12461_v56 = vld [vmem:[#allocation5 + $0x14c4] ss:$16 sps:$4 sm:$0xff]  }
 0x198   :  { %6434 = vmatpush2.bf16.msra.mxu1 %v12413_v60  ;;  %6394 = vmatprep.subr.bf16.mxu0 %v12418_v61  ;;  %v12464_v60 = vld [vmem:[#allocation5 + $0x16c4] ss:$16 sps:$4 sm:$0xff]   ;;  %v12459_v61 = vld [vmem:[#allocation5 + $0x14c0] ss:$16 sps:$4 sm:$0xff]  }
 0x199   :  { %6435 = vmatprep.subr.bf16.mxu1 %v12421_v63  ;;  %v12462_v63 = vld [vmem:[#allocation5 + $0x16c0] ss:$16 sps:$4 sm:$0xff]  }
 0x19b   :  { %6395 = vmatpush2.bf16.msra.mxu0 %v12416_v0  ;;  %v13964_v0 = vpack.c.bf16 %v269_v51, %v269_v51  ;;  %v12489_v51 = vld [vmem:[#allocation5 + $0x1420] ss:$16 sps:$4 sm:$0xff]  }
 0x19c   :  { %6436 = vmatpush2.bf16.msra.mxu1 %v12419_v2  ;;  %6396 = vmatprep.subr.bf16.mxu0 %v12424_v6  ;;  %v13966_v2 = vpack.c.bf16 %v270_v54, %v270_v54  ;;  %v12492_v54 = vld [vmem:[#allocation5 + $0x1620] ss:$16 sps:$4 sm:$0xff]  }
 0x19d   :  { %6437 = vmatprep.subr.bf16.mxu1 %v12427_v7 }
 0x19f   :  { %6397 = vmatpush2.bf16.msra.mxu0 %v12422_v8 }
 0x1a0   :  { %6438 = vmatpush2.bf16.msra.mxu1 %v12425_v9  ;;  %6398 = vmatprep.subr.bf16.mxu0 %v12430_v44  ;;  %v12467_v9 = vld [vmem:[#allocation5 + $0x14a4] ss:$16 sps:$4 sm:$0xff]  }
 0x1a1   :  { %6439 = vmatprep.subr.bf16.mxu1 %v12433_v12  ;;  %v12470_v44 = vld [vmem:[#allocation5 + $0x16a4] ss:$16 sps:$4 sm:$0xff]  }
 0x1a3   :  { %6399 = vmatpush2.bf16.msra.mxu0 %v12428_v13 }
 0x1a4   :  { %6440 = vmatpush2.bf16.msra.mxu1 %v12431_v14  ;;  %6400 = vmatprep.subr.bf16.mxu0 %v12436_v15  ;;  %v12465_v14 = vld [vmem:[#allocation5 + $0x14a0] ss:$16 sps:$4 sm:$0xff]  }
 0x1a5   :  { %6441 = vmatprep.subr.bf16.mxu1 %v12439_v18  ;;  %v12468_v15 = vld [vmem:[#allocation5 + $0x16a0] ss:$16 sps:$4 sm:$0xff]  }
 0x1a7   :  { %6401 = vmatpush2.bf16.msra.mxu0 %v12434_v20 }
 0x1a8   :  { %6442 = vmatpush2.bf16.msra.mxu1 %v12437_v21  ;;  %6402 = vmatprep.subr.bf16.mxu0 %v12442_v22  ;;  %v12473_v22 = vld [vmem:[#allocation5 + $0x1484] ss:$16 sps:$4 sm:$0xff]  }
 0x1a9   :  { %6443 = vmatprep.subr.bf16.mxu1 %v12445_v23  ;;  %v12476_v23 = vld [vmem:[#allocation5 + $0x1684] ss:$16 sps:$4 sm:$0xff]  }
 0x1ab   :  { %6403 = vmatpush2.bf16.msra.mxu0 %v12440_v27  ;;  %v12479_v27 = vld [vmem:[#allocation5 + $0x1464] ss:$16 sps:$4 sm:$0xff]  }
 0x1ac   :  { %6444 = vmatpush2.bf16.msra.mxu1 %v12443_v28  ;;  %6404 = vmatprep.subr.bf16.mxu0 %v12448_v30  ;;  %v12482_v28 = vld [vmem:[#allocation5 + $0x1664] ss:$16 sps:$4 sm:$0xff]   ;;  %v12477_v30 = vld [vmem:[#allocation5 + $0x1460] ss:$16 sps:$4 sm:$0xff]  }
 0x1ad   :  { %6445 = vmatprep.subr.bf16.mxu1 %v12451_v31  ;;  %v12480_v31 = vld [vmem:[#allocation5 + $0x1660] ss:$16 sps:$4 sm:$0xff]  }
 0x1af   :  { %6405 = vmatpush2.bf16.msra.mxu0 %v12446_v40  ;;  %v12485_v40 = vld [vmem:[#allocation5 + $0x1444] ss:$16 sps:$4 sm:$0xff]  }
 0x1b0   :  { %6446 = vmatpush2.bf16.msra.mxu1 %v12449_v41  ;;  %6456 = vmatprep.subr.bf16.mxu0 %v12455_v42  ;;  %v12488_v41 = vld [vmem:[#allocation5 + $0x1644] ss:$16 sps:$4 sm:$0xff]   ;;  %v12483_v42 = vld [vmem:[#allocation5 + $0x1440] ss:$16 sps:$4 sm:$0xff]  }
 0x1b1   :  { %6497 = vmatprep.subr.bf16.mxu1 %v12458_v45  ;;  %v12486_v45 = vld [vmem:[#allocation5 + $0x1640] ss:$16 sps:$4 sm:$0xff]  }
 0x1b2   :  { %v6162_v6 = vpop.f32.mrf.mxu0  ;;  %6407 = vmatmul.mubr.bf16.vlgmr.msra.gmra.mxu0 %v13958_v59 }
 0x1b3   :  { %v6203_v7 = vpop.f32.mrf.mxu1  ;;  %6448 = vmatmul.mubr.bf16.vlgmr.msra.gmra.mxu1 %v13962_v55  ;;  %v6163_v24 = vadd.f32 %v6162_v6, %v13937_v1  ;;  %6457 = vmatpush1.bf16.msra.mxu0 %v12453_v46  ;;  %v12491_v46 = vld [vmem:[#allocation5 + $0x1424] ss:$16 sps:$4 sm:$0xff]  }
 0x1b4   :  { %6498 = vmatpush1.bf16.msra.mxu1 %v12456_v47  ;;  %v6164_v25 = vpop.f32.mrf.mxu0  ;;  %6458 = vmatprep.subr.bf16.mxu0 %v12461_v56  ;;  %v12494_v47 = vld [vmem:[#allocation5 + $0x1624] ss:$16 sps:$4 sm:$0xff]  }
 0x1b5   :  { %v6205_v8 = vpop.f32.mrf.mxu1  ;;  %6499 = vmatprep.subr.bf16.mxu1 %v12464_v60  ;;  %v13971_v12 = vadd.f32 %v6203_v7, %v6163_v24  ;;  %v6165_v13 = vadd.f32 %v6164_v25, %v13941_v39  ;;  %6488 = vmatprep.mubr.bf16.mxu0 %v13964_v0  ;;  %v12471_v39 = vld [vmem:[#allocation5 + $0x1480] ss:$16 sps:$4 sm:$0xff]   ;;  %v12497_v56 = vld [vmem:[#allocation5 + $0x1404] ss:$16 sps:$4 sm:$0xff]  }
 0x1b6   :  { %6529 = vmatprep.mubr.bf16.mxu1 %v13966_v2  ;;  %v6166_v18 = vpop.f32.mrf.mxu0  ;;  %v12500_v60 = vld [vmem:[#allocation5 + $0x1604] ss:$16 sps:$4 sm:$0xff]   ;;  %v12501_v24 = vld [vmem:[#allocation5 + $0x15e0] ss:$16 sps:$4 sm:$0xff]  }
 0x1b7   :  { %v6207_v1 = vpop.f32.mrf.mxu1  ;;  %v13976_v19 = vadd.f32 %v6205_v8, %v6165_v13  ;;  %6459 = vmatpush1.bf16.msra.mxu0 %v12459_v61  ;;  %v12495_v61 = vld [vmem:[#allocation5 + $0x1400] ss:$16 sps:$4 sm:$0xff]   ;;  %v12503_v6 = vld [vmem:[#allocation5 + $0x15e4] ss:$16 sps:$4 sm:$0xff]  }
 0x1b8   :  { %6500 = vmatpush1.bf16.msra.mxu1 %v12462_v63  ;;  %v6167_v20 = vpop.f32.mrf.mxu0  ;;  %6460 = vmatprep.subr.bf16.mxu0 %v12467_v9  ;;  %v12498_v63 = vld [vmem:[#allocation5 + $0x1600] ss:$16 sps:$4 sm:$0xff]   ;;  %v12506_v7 = vld [vmem:[#allocation5 + $0x17e4] ss:$16 sps:$4 sm:$0xff]  }
 0x1b9   :  { %v6208_v21 = vpop.f32.mrf.mxu1  ;;  %6501 = vmatprep.subr.bf16.mxu1 %v12470_v44  ;;  %v12504_v25 = vld [vmem:[#allocation5 + $0x17e0] ss:$16 sps:$4 sm:$0xff]   ;;  %v12509_v8 = vld [vmem:[#allocation5 + $0x15c4] ss:$16 sps:$4 sm:$0xff]  }
 0x1ba   :  { %v12512_v9 = vld [vmem:[#allocation5 + $0x17c4] ss:$16 sps:$4 sm:$0xff]   ;;  %v12507_v44 = vld [vmem:[#allocation5 + $0x15c0] ss:$16 sps:$4 sm:$0xff]  }
 0x1bb   :  { %6461 = vmatpush1.bf16.msra.mxu0 %v12465_v14  ;;  %v12510_v13 = vld [vmem:[#allocation5 + $0x17c0] ss:$16 sps:$4 sm:$0xff]   ;;  %v12515_v14 = vld [vmem:[#allocation5 + $0x15a4] ss:$16 sps:$4 sm:$0xff]  }
 0x1bc   :  { %6502 = vmatpush1.bf16.msra.mxu1 %v12468_v15  ;;  %6462 = vmatprep.subr.bf16.mxu0 %v12473_v22  ;;  %v12518_v15 = vld [vmem:[#allocation5 + $0x17a4] ss:$16 sps:$4 sm:$0xff]   ;;  %v12513_v18 = vld [vmem:[#allocation5 + $0x15a0] ss:$16 sps:$4 sm:$0xff]  }
 0x1bd   :  { %6503 = vmatprep.subr.bf16.mxu1 %v12476_v23  ;;  %v12516_v1 = vld [vmem:[#allocation5 + $0x17a0] ss:$16 sps:$4 sm:$0xff]   ;;  %v12521_v20 = vld [vmem:[#allocation5 + $0x1584] ss:$16 sps:$4 sm:$0xff]  }
 0x1be   :  { %v12524_v21 = vld [vmem:[#allocation5 + $0x1784] ss:$16 sps:$4 sm:$0xff]   ;;  %v12519_v22 = vld [vmem:[#allocation5 + $0x1580] ss:$16 sps:$4 sm:$0xff]  }
 0x1bf   :  { %6463 = vmatpush1.bf16.msra.mxu0 %v12471_v39  ;;  %v12522_v23 = vld [vmem:[#allocation5 + $0x1780] ss:$16 sps:$4 sm:$0xff]   ;;  %v12527_v39 = vld [vmem:[#allocation5 + $0x1564] ss:$16 sps:$4 sm:$0xff]  }
 0x1c0   :  { %6504 = vmatpush1.bf16.msra.mxu1 %v12474_v26  ;;  %6464 = vmatprep.subr.bf16.mxu0 %v12479_v27  ;;  %v12530_v26 = vld [vmem:[#allocation5 + $0x1764] ss:$16 sps:$4 sm:$0xff]   ;;  %v12525_v27 = vld [vmem:[#allocation5 + $0x1560] ss:$16 sps:$4 sm:$0xff]  }
 0x1c1   :  { %6505 = vmatprep.subr.bf16.mxu1 %v12482_v28  ;;  %v12528_v28 = vld [vmem:[#allocation5 + $0x1760] ss:$16 sps:$4 sm:$0xff]  }
 0x1c3   :  { %6465 = vmatpush1.bf16.msra.mxu0 %v12477_v30  ;;  %v12533_v30 = vld [vmem:[#allocation5 + $0x1544] ss:$16 sps:$4 sm:$0xff]  }
 0x1c4   :  { %6506 = vmatpush1.bf16.msra.mxu1 %v12480_v31  ;;  %6466 = vmatprep.subr.bf16.mxu0 %v12485_v40  ;;  %v12536_v31 = vld [vmem:[#allocation5 + $0x1744] ss:$16 sps:$4 sm:$0xff]  }
 0x1c5   :  { %6507 = vmatprep.subr.bf16.mxu1 %v12488_v41  ;;  %v159_v40 = vld [vmem:[%s14284_s0 + $0x30] sm:$0xff] }
 0x1c6   :  { %v12531_v41 = vld [vmem:[#allocation5 + $0x1540] ss:$16 sps:$4 sm:$0xff]  }
 0x1c7   :  { %6467 = vmatpush1.bf16.msra.mxu0 %v12483_v42  ;;  %v12534_v42 = vld [vmem:[#allocation5 + $0x1740] ss:$16 sps:$4 sm:$0xff]  }
 0x1c8   :  { %6508 = vmatpush1.bf16.msra.mxu1 %v12486_v45  ;;  %6468 = vmatprep.subr.bf16.mxu0 %v12491_v46  ;;  %v12539_v45 = vld [vmem:[#allocation5 + $0x1524] ss:$16 sps:$4 sm:$0xff]  }
 0x1c9   :  { %6509 = vmatprep.subr.bf16.mxu1 %v12494_v47  ;;  %v12542_v46 = vld [vmem:[#allocation5 + $0x1724] ss:$16 sps:$4 sm:$0xff]   ;;  %v271_v47 = vcombine.high %v159_v40, %v159_v40 }
 0x1cb   :  { %6469 = vmatpush1.bf16.msra.mxu0 %v12489_v51  ;;  %v12537_v51 = vld [vmem:[#allocation5 + $0x1520] ss:$16 sps:$4 sm:$0xff]  }
 0x1cc   :  { %6510 = vmatpush1.bf16.msra.mxu1 %v12492_v54  ;;  %6470 = vmatprep.subr.bf16.mxu0 %v12497_v56  ;;  %v12540_v54 = vld [vmem:[#allocation5 + $0x1720] ss:$16 sps:$4 sm:$0xff]   ;;  %v12545_v56 = vld [vmem:[#allocation5 + $0x1504] ss:$16 sps:$4 sm:$0xff]  }
 0x1cd   :  { %6511 = vmatprep.subr.bf16.mxu1 %v12500_v60  ;;  %v12548_v60 = vld [vmem:[#allocation5 + $0x1704] ss:$16 sps:$4 sm:$0xff]  }
 0x1cf   :  { %6471 = vmatpush1.bf16.msra.mxu0 %v12495_v61  ;;  %v13982_v61 = vrot.slane %v159_v40, %v13806_v49 }
 0x1d0   :  { %6512 = vmatpush1.bf16.msra.mxu1 %v12498_v63  ;;  %6472 = vmatprep.subr.bf16.mxu0 %v12503_v6  ;;  %v13985_v63 = vrot.slane %v271_v47, %v13806_v49  ;;  %v12543_v6 = vld [vmem:[#allocation5 + $0x1500] ss:$16 sps:$4 sm:$0xff]  }
 0x1d1   :  { %6513 = vmatprep.subr.bf16.mxu1 %v12506_v7  ;;  %v12546_v7 = vld [vmem:[#allocation5 + $0x1700] ss:$16 sps:$4 sm:$0xff]  }
 0x1d3   :  { %6473 = vmatpush2.bf16.msra.mxu0 %v12501_v24  ;;  %v12552_v24 = vld [vmem:[#allocation5 + $0x18e4] ss:$16 sps:$4 sm:$0xff]  }
 0x1d4   :  { %6514 = vmatpush2.bf16.msra.mxu1 %v12504_v25  ;;  %6474 = vmatprep.subr.bf16.mxu0 %v12509_v8  ;;  %v12555_v25 = vld [vmem:[#allocation5 + $0x1ae4] ss:$16 sps:$4 sm:$0xff]   ;;  %v12550_v8 = vld [vmem:[#allocation5 + $0x18e0] ss:$16 sps:$4 sm:$0xff]  }
 0x1d5   :  { %6515 = vmatprep.subr.bf16.mxu1 %v12512_v9  ;;  %v12553_v9 = vld [vmem:[#allocation5 + $0x1ae0] ss:$16 sps:$4 sm:$0xff]  }
 0x1d7   :  { %6475 = vmatpush2.bf16.msra.mxu0 %v12507_v44  ;;  %v286_v44 = vcombine.high %v13982_v61, %v13982_v61 }
 0x1d8   :  { %6516 = vmatpush2.bf16.msra.mxu1 %v12510_v13  ;;  %6476 = vmatprep.subr.bf16.mxu0 %v12515_v14  ;;  %v287_v13 = vcombine.high %v13985_v63, %v13985_v63  ;;  %v13993_v14 = vpack.c.bf16 %v13947_v35, %v13947_v35 }
 0x1d9   :  { %6517 = vmatprep.subr.bf16.mxu1 %v12518_v15  ;;  %v13997_v15 = vpack.c.bf16 %v13950_v36, %v13950_v36 }
 0x1db   :  { %6477 = vmatpush2.bf16.msra.mxu0 %v12513_v18  ;;  %v12558_v18 = vld [vmem:[#allocation5 + $0x18c4] ss:$16 sps:$4 sm:$0xff]  }
 0x1dc   :  { %6518 = vmatpush2.bf16.msra.mxu1 %v12516_v1  ;;  %6478 = vmatprep.subr.bf16.mxu0 %v12521_v20  ;;  %v12561_v1 = vld [vmem:[#allocation5 + $0x1ac4] ss:$16 sps:$4 sm:$0xff]   ;;  %v12556_v20 = vld [vmem:[#allocation5 + $0x18c0] ss:$16 sps:$4 sm:$0xff]  }
 0x1dd   :  { %6519 = vmatprep.subr.bf16.mxu1 %v12524_v21  ;;  %v12559_v21 = vld [vmem:[#allocation5 + $0x1ac0] ss:$16 sps:$4 sm:$0xff]  }
 0x1df   :  { %6479 = vmatpush2.bf16.msra.mxu0 %v12519_v22  ;;  %v13999_v22 = vpack.c.bf16 %v286_v44, %v286_v44  ;;  %v12580_v44 = vld [vmem:[#allocation5 + $0x1840] ss:$16 sps:$4 sm:$0xff]  }
 0x1e0   :  { %6520 = vmatpush2.bf16.msra.mxu1 %v12522_v23  ;;  %6480 = vmatprep.subr.bf16.mxu0 %v12527_v39  ;;  %v14001_v23 = vpack.c.bf16 %v287_v13, %v287_v13  ;;  %v12583_v13 = vld [vmem:[#allocation5 + $0x1a40] ss:$16 sps:$4 sm:$0xff]  }
 0x1e1   :  { %6521 = vmatprep.subr.bf16.mxu1 %v12530_v26 }
 0x1e3   :  { %6481 = vmatpush2.bf16.msra.mxu0 %v12525_v27 }
 0x1e4   :  { %6522 = vmatpush2.bf16.msra.mxu1 %v12528_v28  ;;  %6482 = vmatprep.subr.bf16.mxu0 %v12533_v30  ;;  %v12564_v28 = vld [vmem:[#allocation5 + $0x18a4] ss:$16 sps:$4 sm:$0xff]  }
 0x1e5   :  { %6523 = vmatprep.subr.bf16.mxu1 %v12536_v31  ;;  %v12567_v30 = vld [vmem:[#allocation5 + $0x1aa4] ss:$16 sps:$4 sm:$0xff]  }
 0x1e7   :  { %6483 = vmatpush2.bf16.msra.mxu0 %v12531_v41  ;;  %v12562_v41 = vld [vmem:[#allocation5 + $0x18a0] ss:$16 sps:$4 sm:$0xff]  }
 0x1e8   :  { %6524 = vmatpush2.bf16.msra.mxu1 %v12534_v42  ;;  %6484 = vmatprep.subr.bf16.mxu0 %v12539_v45  ;;  %v12565_v42 = vld [vmem:[#allocation5 + $0x1aa0] ss:$16 sps:$4 sm:$0xff]  }
 0x1e9   :  { %6525 = vmatprep.subr.bf16.mxu1 %v12542_v46 }
 0x1eb   :  { %6485 = vmatpush2.bf16.msra.mxu0 %v12537_v51 }
 0x1ec   :  { %6526 = vmatpush2.bf16.msra.mxu1 %v12540_v54  ;;  %6486 = vmatprep.subr.bf16.mxu0 %v12545_v56  ;;  %v12570_v54 = vld [vmem:[#allocation5 + $0x1884] ss:$16 sps:$4 sm:$0xff]  }
 0x1ed   :  { %6527 = vmatprep.subr.bf16.mxu1 %v12548_v60  ;;  %v12573_v56 = vld [vmem:[#allocation5 + $0x1a84] ss:$16 sps:$4 sm:$0xff]   ;;  %v12571_v60 = vld [vmem:[#allocation5 + $0x1a80] ss:$16 sps:$4 sm:$0xff]  }
 0x1ef   :  { %6487 = vmatpush2.bf16.msra.mxu0 %v12543_v6  ;;  %v12576_v6 = vld [vmem:[#allocation5 + $0x1864] ss:$16 sps:$4 sm:$0xff]  }
 0x1f0   :  { %6528 = vmatpush2.bf16.msra.mxu1 %v12546_v7  ;;  %6538 = vmatprep.subr.bf16.mxu0 %v12552_v24  ;;  %v12579_v7 = vld [vmem:[#allocation5 + $0x1a64] ss:$16 sps:$4 sm:$0xff]   ;;  %v12574_v24 = vld [vmem:[#allocation5 + $0x1860] ss:$16 sps:$4 sm:$0xff]  }
 0x1f1   :  { %6579 = vmatprep.subr.bf16.mxu1 %v12555_v25  ;;  %v12577_v25 = vld [vmem:[#allocation5 + $0x1a60] ss:$16 sps:$4 sm:$0xff]  }
 0x1f2   :  { %v6244_v39 = vpop.f32.mrf.mxu0  ;;  %6489 = vmatmul.mubr.bf16.vlgmr.msra.gmra.mxu0 %v13993_v14 }
 0x1f3   :  { %v6285_v26 = vpop.f32.mrf.mxu1  ;;  %6530 = vmatmul.mubr.bf16.vlgmr.msra.gmra.mxu1 %v13997_v15  ;;  %v6245_v35 = vadd.f32 %v6244_v39, %v13971_v12  ;;  %6539 = vmatpush1.bf16.msra.mxu0 %v12550_v8  ;;  %v12582_v8 = vld [vmem:[#allocation5 + $0x1844] ss:$16 sps:$4 sm:$0xff]  }
 0x1f4   :  { %6580 = vmatpush1.bf16.msra.mxu1 %v12553_v9  ;;  %v6246_v36 = vpop.f32.mrf.mxu0  ;;  %6540 = vmatprep.subr.bf16.mxu0 %v12558_v18  ;;  %v12585_v9 = vld [vmem:[#allocation5 + $0x1a44] ss:$16 sps:$4 sm:$0xff]  }
 0x1f5   :  { %v6287_v27 = vpop.f32.mrf.mxu1  ;;  %6581 = vmatprep.subr.bf16.mxu1 %v12561_v1  ;;  %v14006_v31 = vadd.f32 %v6285_v26, %v6245_v35  ;;  %v6247_v40 = vadd.f32 %v6246_v36, %v13976_v19  ;;  %6570 = vmatprep.mubr.bf16.mxu0 %v13999_v22  ;;  %v12568_v19 = vld [vmem:[#allocation5 + $0x1880] ss:$16 sps:$4 sm:$0xff]   ;;  %v12588_v18 = vld [vmem:[#allocation5 + $0x1824] ss:$16 sps:$4 sm:$0xff]  }
 0x1f6   :  { %6611 = vmatprep.mubr.bf16.mxu1 %v14001_v23  ;;  %v6248_v45 = vpop.f32.mrf.mxu0  ;;  %v12591_v1 = vld [vmem:[#allocation5 + $0x1a24] ss:$16 sps:$4 sm:$0xff]   ;;  %v12592_v35 = vld [vmem:[#allocation5 + $0x1800] ss:$16 sps:$4 sm:$0xff]  }
 0x1f7   :  { %v6289_v12 = vpop.f32.mrf.mxu1  ;;  %v14011_v46 = vadd.f32 %v6287_v27, %v6247_v40  ;;  %6541 = vmatpush1.bf16.msra.mxu0 %v12556_v20  ;;  %v12586_v20 = vld [vmem:[#allocation5 + $0x1820] ss:$16 sps:$4 sm:$0xff]   ;;  %v12594_v39 = vld [vmem:[#allocation5 + $0x1804] ss:$16 sps:$4 sm:$0xff]  }
 0x1f8   :  { %6582 = vmatpush1.bf16.msra.mxu1 %v12559_v21  ;;  %v6249_v47 = vpop.f32.mrf.mxu0  ;;  %6542 = vmatprep.subr.bf16.mxu0 %v12564_v28  ;;  %v12589_v21 = vld [vmem:[#allocation5 + $0x1a20] ss:$16 sps:$4 sm:$0xff]   ;;  %v12597_v26 = vld [vmem:[#allocation5 + $0x1a04] ss:$16 sps:$4 sm:$0xff]  }
 0x1f9   :  { %v6290_v51 = vpop.f32.mrf.mxu1  ;;  %6583 = vmatprep.subr.bf16.mxu1 %v12567_v30  ;;  %v12595_v36 = vld [vmem:[#allocation5 + $0x1a00] ss:$16 sps:$4 sm:$0xff]   ;;  %v12600_v27 = vld [vmem:[#allocation5 + $0x19e4] ss:$16 sps:$4 sm:$0xff]  }
 0x1fa   :  { %v12603_v28 = vld [vmem:[#allocation5 + $0x1be4] ss:$16 sps:$4 sm:$0xff]   ;;  %v12598_v30 = vld [vmem:[#allocation5 + $0x19e0] ss:$16 sps:$4 sm:$0xff]  }
 0x1fb   :  { %6543 = vmatpush1.bf16.msra.mxu0 %v12562_v41  ;;  %v12601_v40 = vld [vmem:[#allocation5 + $0x1be0] ss:$16 sps:$4 sm:$0xff]   ;;  %v12606_v41 = vld [vmem:[#allocation5 + $0x19c4] ss:$16 sps:$4 sm:$0xff]  }
 0x1fc   :  { %6584 = vmatpush1.bf16.msra.mxu1 %v12565_v42  ;;  %6544 = vmatprep.subr.bf16.mxu0 %v12570_v54  ;;  %v12609_v42 = vld [vmem:[#allocation5 + $0x1bc4] ss:$16 sps:$4 sm:$0xff]   ;;  %v12604_v45 = vld [vmem:[#allocation5 + $0x19c0] ss:$16 sps:$4 sm:$0xff]  }
 0x1fd   :  { %6585 = vmatprep.subr.bf16.mxu1 %v12573_v56  ;;  %v12607_v12 = vld [vmem:[#allocation5 + $0x1bc0] ss:$16 sps:$4 sm:$0xff]   ;;  %v12612_v47 = vld [vmem:[#allocation5 + $0x19a4] ss:$16 sps:$4 sm:$0xff]  }
 0x1fe   :  { %v12615_v51 = vld [vmem:[#allocation5 + $0x1ba4] ss:$16 sps:$4 sm:$0xff]   ;;  %v12610_v54 = vld [vmem:[#allocation5 + $0x19a0] ss:$16 sps:$4 sm:$0xff]  }
 0x1ff   :  { %6545 = vmatpush1.bf16.msra.mxu0 %v12568_v19  ;;  %v12613_v56 = vld [vmem:[#allocation5 + $0x1ba0] ss:$16 sps:$4 sm:$0xff]   ;;  %v12618_v19 = vld [vmem:[#allocation5 + $0x1984] ss:$16 sps:$4 sm:$0xff]  }
 0x200   :  { %6586 = vmatpush1.bf16.msra.mxu1 %v12571_v60  ;;  %6546 = vmatprep.subr.bf16.mxu0 %v12576_v6  ;;  %v12621_v60 = vld [vmem:[#allocation5 + $0x1b84] ss:$16 sps:$4 sm:$0xff]   ;;  %v12616_v6 = vld [vmem:[#allocation5 + $0x1980] ss:$16 sps:$4 sm:$0xff]  }
 0x201   :  { %6587 = vmatprep.subr.bf16.mxu1 %v12579_v7  ;;  %v12619_v7 = vld [vmem:[#allocation5 + $0x1b80] ss:$16 sps:$4 sm:$0xff]  }
 0x203   :  { %6547 = vmatpush1.bf16.msra.mxu0 %v12574_v24  ;;  %v12624_v24 = vld [vmem:[#allocation5 + $0x1964] ss:$16 sps:$4 sm:$0xff]  }
 0x204   :  { %6588 = vmatpush1.bf16.msra.mxu1 %v12577_v25  ;;  %6548 = vmatprep.subr.bf16.mxu0 %v12582_v8  ;;  %v12627_v25 = vld [vmem:[#allocation5 + $0x1b64] ss:$16 sps:$4 sm:$0xff]   ;;  %v12622_v8 = vld [vmem:[#allocation5 + $0x1960] ss:$16 sps:$4 sm:$0xff]  }
 0x205   :  { %6589 = vmatprep.subr.bf16.mxu1 %v12585_v9  ;;  %v12625_v9 = vld [vmem:[#allocation5 + $0x1b60] ss:$16 sps:$4 sm:$0xff]  }
 0x207   :  { %6549 = vmatpush1.bf16.msra.mxu0 %v12580_v44  ;;  %v12630_v44 = vld [vmem:[#allocation5 + $0x1944] ss:$16 sps:$4 sm:$0xff]  }
 0x208   :  { %6590 = vmatpush1.bf16.msra.mxu1 %v12583_v13  ;;  %6550 = vmatprep.subr.bf16.mxu0 %v12588_v18  ;;  %v12633_v13 = vld [vmem:[#allocation5 + $0x1b44] ss:$16 sps:$4 sm:$0xff]   ;;  %v12628_v18 = vld [vmem:[#allocation5 + $0x1940] ss:$16 sps:$4 sm:$0xff]  }
 0x209   :  { %6591 = vmatprep.subr.bf16.mxu1 %v12591_v1  ;;  %v12631_v1 = vld [vmem:[#allocation5 + $0x1b40] ss:$16 sps:$4 sm:$0xff]  }
 0x20b   :  { %6551 = vmatpush1.bf16.msra.mxu0 %v12586_v20  ;;  %v12636_v20 = vld [vmem:[#allocation5 + $0x1924] ss:$16 sps:$4 sm:$0xff]  }
 0x20c   :  { %6592 = vmatpush1.bf16.msra.mxu1 %v12589_v21  ;;  %6552 = vmatprep.subr.bf16.mxu0 %v12594_v39  ;;  %v12639_v21 = vld [vmem:[#allocation5 + $0x1b24] ss:$16 sps:$4 sm:$0xff]   ;;  %v12634_v39 = vld [vmem:[#allocation5 + $0x1920] ss:$16 sps:$4 sm:$0xff]  }
 0x20d   :  { %6593 = vmatprep.subr.bf16.mxu1 %v12597_v26  ;;  %v12637_v26 = vld [vmem:[#allocation5 + $0x1b20] ss:$16 sps:$4 sm:$0xff]  }
 0x20f   :  { %6553 = vmatpush1.bf16.msra.mxu0 %v12592_v35  ;;  %v12642_v35 = vld [vmem:[#allocation5 + $0x1904] ss:$16 sps:$4 sm:$0xff]  }
 0x210   :  { %6594 = vmatpush1.bf16.msra.mxu1 %v12595_v36  ;;  %6554 = vmatprep.subr.bf16.mxu0 %v12600_v27  ;;  %v12645_v36 = vld [vmem:[#allocation5 + $0x1b04] ss:$16 sps:$4 sm:$0xff]  }
 0x211   :  { %6595 = vmatprep.subr.bf16.mxu1 %v12603_v28  ;;  %v14016_v27 = vld.sshfl [vmem:[%s14284_s0 + $0x38] sm:$0x33 pattern:$0x76325410]  ;;  %v12640_v28 = vld [vmem:[#allocation5 + $0x1900] ss:$16 sps:$4 sm:$0xff]  }
 0x213   :  { %6555 = vmatpush2.bf16.msra.mxu0 %v12598_v30  ;;  %v12643_v30 = vld [vmem:[#allocation5 + $0x1b00] ss:$16 sps:$4 sm:$0xff]  }
 0x214   :  { %6596 = vmatpush2.bf16.msra.mxu1 %v12601_v40  ;;  %6556 = vmatprep.subr.bf16.mxu0 %v12606_v41  ;;  %v12649_v40 = vld [vmem:[#allocation5 + $0x1ce4] ss:$16 sps:$4 sm:$0xff]   ;;  %v12652_v41 = vld [vmem:[#allocation5 + $0xec] ss:$16 sps:$4 sm:$0xff]  }
 0x215   :  { %6597 = vmatprep.subr.bf16.mxu1 %v12609_v42  ;;  %v12647_v42 = vld [vmem:[#allocation5 + $0x1ce0] ss:$16 sps:$4 sm:$0xff]  }
 0x217   :  { %6557 = vmatpush2.bf16.msra.mxu0 %v12604_v45  ;;  %v12650_v45 = vld [vmem:[#allocation5 + $0xe8] ss:$16 sps:$4 sm:$0xff]  }
 0x218   :  { %6598 = vmatpush2.bf16.msra.mxu1 %v12607_v12  ;;  %6558 = vmatprep.subr.bf16.mxu0 %v12612_v47  ;;  %v295_v12 = vcombine.high %v14016_v27, %v14016_v27  ;;  %v14022_v47 = vpack.c.bf16 %v13982_v61, %v13982_v61 }
 0x219   :  { %6599 = vmatprep.subr.bf16.mxu1 %v12615_v51  ;;  %v14026_v51 = vpack.c.bf16 %v13985_v63, %v13985_v63 }
 0x21b   :  { %6559 = vmatpush2.bf16.msra.mxu0 %v12610_v54  ;;  %v12655_v54 = vld [vmem:[#allocation5 + $0x1cc4] ss:$16 sps:$4 sm:$0xff]  }
 0x21c   :  { %6600 = vmatpush2.bf16.msra.mxu1 %v12613_v56  ;;  %6560 = vmatprep.subr.bf16.mxu0 %v12618_v19  ;;  %v12658_v56 = vld [vmem:[#allocation5 + $0xcc] ss:$16 sps:$4 sm:$0xff]   ;;  %v12653_v19 = vld [vmem:[#allocation5 + $0x1cc0] ss:$16 sps:$4 sm:$0xff]  }
 0x21d   :  { %6601 = vmatprep.subr.bf16.mxu1 %v12621_v60  ;;  %v12656_v60 = vld [vmem:[#allocation5 + $0xc8] ss:$16 sps:$4 sm:$0xff]  }
 0x21f   :  { %6561 = vmatpush2.bf16.msra.mxu0 %v12616_v6  ;;  %v14028_v6 = vpack.c.bf16 %v295_v12, %v295_v12  ;;  %v12677_v12 = vld [vmem:[#allocation5 + $0x1c40] ss:$16 sps:$4 sm:$0xff]  }
 0x220   :  { %6602 = vmatpush2.bf16.msra.mxu1 %v12619_v7  ;;  %6562 = vmatprep.subr.bf16.mxu0 %v12624_v24 }
 0x221   :  { %6603 = vmatprep.subr.bf16.mxu1 %v12627_v25 }
 0x223   :  { %6563 = vmatpush2.bf16.msra.mxu0 %v12622_v8  ;;  %v12661_v8 = vld [vmem:[#allocation5 + $0x1ca4] ss:$16 sps:$4 sm:$0xff]  }
 0x224   :  { %6604 = vmatpush2.bf16.msra.mxu1 %v12625_v9  ;;  %6564 = vmatprep.subr.bf16.mxu0 %v12630_v44  ;;  %v12664_v9 = vld [vmem:[#allocation5 + $0xac] ss:$16 sps:$4 sm:$0xff]  }
 0x225   :  { %6605 = vmatprep.subr.bf16.mxu1 %v12633_v13 }
 0x227   :  { %6565 = vmatpush2.bf16.msra.mxu0 %v12628_v18  ;;  %v12659_v18 = vld [vmem:[#allocation5 + $0x1ca0] ss:$16 sps:$4 sm:$0xff]  }
 0x228   :  { %6606 = vmatpush2.bf16.msra.mxu1 %v12631_v1  ;;  %6566 = vmatprep.subr.bf16.mxu0 %v12636_v20  ;;  %v12662_v1 = vld [vmem:[#allocation5 + $0xa8] ss:$16 sps:$4 sm:$0xff]  }
 0x229   :  { %6607 = vmatprep.subr.bf16.mxu1 %v12639_v21 }
 0x22b   :  { %6567 = vmatpush2.bf16.msra.mxu0 %v12634_v39 }
 0x22c   :  { %6608 = vmatpush2.bf16.msra.mxu1 %v12637_v26  ;;  %6568 = vmatprep.subr.bf16.mxu0 %v12642_v35  ;;  %v12667_v35 = vld [vmem:[#allocation5 + $0x1c84] ss:$16 sps:$4 sm:$0xff]  }
 0x22d   :  { %6609 = vmatprep.subr.bf16.mxu1 %v12645_v36  ;;  %v12670_v36 = vld [vmem:[#allocation5 + $0x8c] ss:$16 sps:$4 sm:$0xff]  }
 0x22f   :  { %6569 = vmatpush2.bf16.msra.mxu0 %v12640_v28  ;;  %v12668_v28 = vld [vmem:[#allocation5 + $0x88] ss:$16 sps:$4 sm:$0xff]  }
 0x230   :  { %6610 = vmatpush2.bf16.msra.mxu1 %v12643_v30  ;;  %6620 = vmatprep.subr.bf16.mxu0 %v12649_v40  ;;  %v12673_v30 = vld [vmem:[#allocation5 + $0x1c64] ss:$16 sps:$4 sm:$0xff]   ;;  %v12671_v40 = vld [vmem:[#allocation5 + $0x1c60] ss:$16 sps:$4 sm:$0xff]  }
 0x231   :  { %6661 = vmatprep.subr.bf16.mxu1 %v12652_v41  ;;  %v12674_v41 = vld [vmem:[#allocation5 + $0x68] ss:$16 sps:$4 sm:$0xff]  }
 0x232   :  { %v6326_v7 = vpop.f32.mrf.mxu0  ;;  %6571 = vmatmul.mubr.bf16.vlgmr.msra.gmra.mxu0 %v14022_v47 }
 0x233   :  { %v6367_v24 = vpop.f32.mrf.mxu1  ;;  %6612 = vmatmul.mubr.bf16.vlgmr.msra.gmra.mxu1 %v14026_v51  ;;  %v6327_v61 = vadd.f32 %v6326_v7, %v14006_v31  ;;  %6621 = vmatpush1.bf16.msra.mxu0 %v12647_v42  ;;  %v12679_v42 = vld [vmem:[#allocation5 + $0x1c44] ss:$16 sps:$4 sm:$0xff]   ;;  %v12686_v7 = vld [vmem:[#allocation5 + $0x28] ss:$16 sps:$4 sm:$0xff]  }
 0x234   :  { %6662 = vmatpush1.bf16.msra.mxu1 %v12650_v45  ;;  %v6328_v63 = vpop.f32.mrf.mxu0  ;;  %6622 = vmatprep.subr.bf16.mxu0 %v12655_v54  ;;  %v12682_v45 = vld [vmem:[#allocation5 + $0x4c] ss:$16 sps:$4 sm:$0xff]   ;;  %v12680_v54 = vld [vmem:[#allocation5 + $0x48] ss:$16 sps:$4 sm:$0xff]  }
 0x235   :  { %v6369_v25 = vpop.f32.mrf.mxu1  ;;  %6663 = vmatprep.subr.bf16.mxu1 %v12658_v56  ;;  %v14033_v44 = vadd.f32 %v6367_v24, %v6327_v61  ;;  %v6329_v13 = vadd.f32 %v6328_v63, %v14011_v46  ;;  %11537 = vmatprep.mubr.msk.bf16.mxu0 %vm6042_vm0, %v14028_v6  ;;  %v12665_v46 = vld [vmem:[#allocation5 + $0x1c80] ss:$16 sps:$4 sm:$0xff]   ;;  %v12685_v56 = vld [vmem:[#allocation5 + $0x1c24] ss:$16 sps:$4 sm:$0xff]   ;;  %v12694_v61 = vld [vmem:[#allocation5 + $0xc] ss:$16 sps:$4 sm:$0xff]  }
 0x236   :  { %6693 = vmatprep.mubr.bf16.mxu1 %v13813_v62  ;;  %v6330_v31 = vpop.f32.mrf.mxu0  ;;  %v12676_v62 = vld [vmem:[#allocation5 + $0x6c] ss:$16 sps:$4 sm:$0xff]   ;;  %v12691_v24 = vld [vmem:[#allocation5 + $0x1c04] ss:$16 sps:$4 sm:$0xff]   ;;  %v12689_v63 = vld [vmem:[#allocation5 + $0x1c00] ss:$16 sps:$4 sm:$0xff]  }
 0x237   :  { %v6371_v20 = vpop.f32.mrf.mxu1  ;;  %v14039_v21 = vadd.f32 %v6369_v25, %v6329_v13  ;;  %6623 = vmatpush1.bf16.msra.mxu0 %v12653_v19  ;;  %v12688_v19 = vld [vmem:[#allocation5 + $0x2c] ss:$16 sps:$4 sm:$0xff]   ;;  %v12692_v25 = vld [vmem:[#allocation5 + $0x8] ss:$16 sps:$4 sm:$0xff]   ;;  %v12695_v13 = vld [vmem:[#allocation5 + $0x1d60] ss:$16 sps:$4 sm:$0xff]  }
 0x238   :  { %6664 = vmatpush1.bf16.msra.mxu1 %v12656_v60  ;;  %v6331_v39 = vpop.f32.mrf.mxu0  ;;  %6624 = vmatprep.subr.bf16.mxu0 %v12661_v8  ;;  %v12683_v60 = vld [vmem:[#allocation5 + $0x1c20] ss:$16 sps:$4 sm:$0xff]   ;;  %v12697_v8 = vld [vmem:[#allocation5 + $0x1d64] ss:$16 sps:$4 sm:$0xff]   ;;  %v12706_v31 = vld [vmem:[#allocation5 + $0x1cc] ss:$16 sps:$4 sm:$0xff]  }
 0x239   :  { %v6372_v26 = vpop.f32.mrf.mxu1  ;;  %6665 = vmatprep.subr.bf16.mxu1 %v12664_v9  ;;  %v12700_v9 = vld [vmem:[#allocation5 + $0x1ec] ss:$16 sps:$4 sm:$0xff]   ;;  %v12701_v20 = vld [vmem:[#allocation5 + $0x1d40] ss:$16 sps:$4 sm:$0xff]   ;;  %v12704_v39 = vld [vmem:[#allocation5 + $0x1c8] ss:$16 sps:$4 sm:$0xff]  }
 0x23a   :  { %v12709_v26 = vld [vmem:[#allocation5 + $0x1d24] ss:$16 sps:$4 sm:$0xff]  }
 0x23b   :  { %6625 = vmatpush1.bf16.msra.mxu0 %v12659_v18  ;;  %v12698_v18 = vld [vmem:[#allocation5 + $0x1e8] ss:$16 sps:$4 sm:$0xff]  }
 0x23c   :  { %6666 = vmatpush1.bf16.msra.mxu1 %v12662_v1  ;;  %6626 = vmatprep.subr.bf16.mxu0 %v12667_v35  ;;  %v12703_v1 = vld [vmem:[#allocation5 + $0x1d44] ss:$16 sps:$4 sm:$0xff]   ;;  %v12712_v35 = vld [vmem:[#allocation5 + $0x1ac] ss:$16 sps:$4 sm:$0xff]  }
 0x23d   :  { %6667 = vmatprep.subr.bf16.mxu1 %v12670_v36  ;;  %v12707_v36 = vld [vmem:[#allocation5 + $0x1d20] ss:$16 sps:$4 sm:$0xff]  }
 0x23f   :  { %6627 = vmatpush1.bf16.msra.mxu0 %v12665_v46  ;;  %v12710_v46 = vld [vmem:[#allocation5 + $0x1a8] ss:$16 sps:$4 sm:$0xff]  }
 0x240   :  { %6668 = vmatpush1.bf16.msra.mxu1 %v12668_v28  ;;  %6628 = vmatprep.subr.bf16.mxu0 %v12673_v30  ;;  %v12715_v28 = vld [vmem:[#allocation5 + $0x1d04] ss:$16 sps:$4 sm:$0xff]   ;;  %v12718_v30 = vld [vmem:[#allocation5 + $0x18c] ss:$16 sps:$4 sm:$0xff]  }
 0x241   :  { %6669 = vmatprep.subr.bf16.mxu1 %v12676_v62  ;;  %v12713_v62 = vld [vmem:[#allocation5 + $0x1d00] ss:$16 sps:$4 sm:$0xff]  }
 0x243   :  { %6629 = vmatpush1.bf16.msra.mxu0 %v12671_v40  ;;  %v12716_v40 = vld [vmem:[#allocation5 + $0x188] ss:$16 sps:$4 sm:$0xff]  }
 0x244   :  { %6670 = vmatpush1.bf16.msra.mxu1 %v12674_v41  ;;  %6630 = vmatprep.subr.bf16.mxu0 %v12679_v42  ;;  %v12721_v41 = vld [vmem:[#allocation5 + $0x16c] ss:$16 sps:$4 sm:$0xff]  }
 0x245   :  { %6671 = vmatprep.subr.bf16.mxu1 %v12682_v45  ;;  %v12724_v42 = vld [vmem:[#allocation5 + $0x2ec] ss:$16 sps:$4 sm:$0xff]   ;;  %v12719_v45 = vld [vmem:[#allocation5 + $0x168] ss:$16 sps:$4 sm:$0xff]  }
 0x247   :  { %6631 = vmatpush1.bf16.msra.mxu0 %v12677_v12  ;;  %v12722_v12 = vld [vmem:[#allocation5 + $0x2e8] ss:$16 sps:$4 sm:$0xff]  }
 0x248   :  { %6672 = vmatpush1.bf16.msra.mxu1 %v12680_v54  ;;  %6632 = vmatprep.subr.bf16.mxu0 %v12685_v56  ;;  %v14043_v54 = vpack.c.bf16 %v14016_v27, %v14016_v27  ;;  %v12727_v56 = vld [vmem:[#allocation5 + $0x14c] ss:$16 sps:$4 sm:$0xff]   ;;  %v12731_v27 = vld [vmem:[#allocation5 + $0x128] ss:$16 sps:$4 sm:$0xff]  }
 0x249   :  { %6673 = vmatprep.subr.bf16.mxu1 %v12688_v19  ;;  %v12730_v19 = vld [vmem:[#allocation5 + $0x2cc] ss:$16 sps:$4 sm:$0xff]  }
 0x24b   :  { %6633 = vmatpush1.bf16.msra.mxu0 %v12683_v60  ;;  %v12725_v60 = vld [vmem:[#allocation5 + $0x148] ss:$16 sps:$4 sm:$0xff]  }
 0x24c   :  { %6674 = vmatpush1.bf16.msra.mxu1 %v12686_v7  ;;  %6634 = vmatprep.subr.bf16.mxu0 %v12691_v24  ;;  %v12728_v7 = vld [vmem:[#allocation5 + $0x2c8] ss:$16 sps:$4 sm:$0xff]   ;;  %v12733_v24 = vld [vmem:[#allocation5 + $0x12c] ss:$16 sps:$4 sm:$0xff]  }
 0x24d   :  { %6675 = vmatprep.subr.bf16.mxu1 %v12694_v61  ;;  %v12736_v61 = vld [vmem:[#allocation5 + $0x2ac] ss:$16 sps:$4 sm:$0xff]  }
 0x24f   :  { %6635 = vmatpush1.bf16.msra.mxu0 %v12689_v63  ;;  %v12734_v63 = vld [vmem:[#allocation5 + $0x2a8] ss:$16 sps:$4 sm:$0xff]  }
 0x250   :  { %6676 = vmatpush1.bf16.msra.mxu1 %v12692_v25  ;;  %6644 = vmatprep.subr.bf16.mxu0 %v12697_v8  ;;  %v12739_v25 = vld [vmem:[#allocation5 + $0x10c] ss:$16 sps:$4 sm:$0xff]  }
 0x251   :  { %6677 = vmatprep.subr.bf16.mxu1 %v12700_v9  ;;  %v12742_v8 = vld [vmem:[#allocation5 + $0x28c] ss:$16 sps:$4 sm:$0xff]   ;;  %v12737_v9 = vld [vmem:[#allocation5 + $0x108] ss:$16 sps:$4 sm:$0xff]  }
 0x253   :  { %6645 = vmatpush2.bf16.msra.mxu0 %v12695_v13  ;;  %v12740_v13 = vld [vmem:[#allocation5 + $0x288] ss:$16 sps:$4 sm:$0xff]  }
 0x254   :  { %6678 = vmatpush2.bf16.msra.mxu1 %v12698_v18  ;;  %6646 = vmatprep.subr.bf16.mxu0 %v12703_v1  ;;  %v12745_v18 = vld [vmem:[#allocation5 + $0x26c] ss:$16 sps:$4 sm:$0xff]  }
 0x255   :  { %6679 = vmatprep.subr.bf16.mxu1 %v12706_v31  ;;  %v12748_v1 = vld [vmem:[#allocation5 + $0x4ec] ss:$16 sps:$4 sm:$0xff]   ;;  %v12743_v31 = vld [vmem:[#allocation5 + $0x268] ss:$16 sps:$4 sm:$0xff]  }
 0x257   :  { %6647 = vmatpush2.bf16.msra.mxu0 %v12701_v20  ;;  %v12746_v20 = vld [vmem:[#allocation5 + $0x4e8] ss:$16 sps:$4 sm:$0xff]  }
 0x258   :  { %6680 = vmatpush2.bf16.msra.mxu1 %v12704_v39  ;;  %6648 = vmatprep.subr.bf16.mxu0 %v12709_v26  ;;  %v12754_v39 = vld [vmem:[#allocation5 + $0x4cc] ss:$16 sps:$4 sm:$0xff]   ;;  %v12749_v26 = vld [vmem:[#allocation5 + $0x248] ss:$16 sps:$4 sm:$0xff]  }
 0x259   :  { %6681 = vmatprep.subr.bf16.mxu1 %v12712_v35  ;;  %v12752_v35 = vld [vmem:[#allocation5 + $0x4c8] ss:$16 sps:$4 sm:$0xff]  }
 0x25b   :  { %6649 = vmatpush2.bf16.msra.mxu0 %v12707_v36 }
 0x25c   :  { %6682 = vmatpush2.bf16.msra.mxu1 %v12710_v46  ;;  %6650 = vmatprep.subr.bf16.mxu0 %v12715_v28 }
 0x25d   :  { %6683 = vmatprep.subr.bf16.mxu1 %v12718_v30 }
 0x25f   :  { %6651 = vmatpush2.bf16.msra.mxu0 %v12713_v62 }
 0x260   :  { %6684 = vmatpush2.bf16.msra.mxu1 %v12716_v40  ;;  %6702 = vmatprep.subr.bf16.mxu0 %v12724_v42  ;;  %v12757_v40 = vld [vmem:[#allocation5 + $0x22c] ss:$16 sps:$4 sm:$0xff]  }
 0x261   :  { %6685 = vmatprep.subr.bf16.mxu1 %v12721_v41  ;;  %v12760_v41 = vld [vmem:[#allocation5 + $0x4ac] ss:$16 sps:$4 sm:$0xff]  }
 0x262   :  { %6653 = vmatmul.mubr.bf16.vlgmr.msra.gmra.mxu0 %v14043_v54 }
 0x263   :  { %6703 = vmatpush1.bf16.msra.mxu0 %v12722_v12  ;;  %6734 = vmatprep.mubr.bf16.mxu0 %v13815_v3  ;;  %v12751_v3 = vld [vmem:[#allocation5 + $0x24c] ss:$16 sps:$4 sm:$0xff]   ;;  %v12755_v12 = vld [vmem:[#allocation5 + $0x228] ss:$16 sps:$4 sm:$0xff]  }
 0x264   :  { %6686 = vmatpush2.bf16.msra.mxu1 %v12719_v45  ;;  %6704 = vmatprep.subr.bf16.mxu0 %v12730_v19 }
 0x265   :  { %6687 = vmatprep.subr.bf16.mxu1 %v12727_v56  ;;  %v12758_v56 = vld [vmem:[#allocation5 + $0x4a8] ss:$16 sps:$4 sm:$0xff]  }
 0x267   :  { %6705 = vmatpush1.bf16.msra.mxu0 %v12728_v7 }
 0x268   :  { %6688 = vmatpush2.bf16.msra.mxu1 %v12725_v60  ;;  %6706 = vmatprep.subr.bf16.mxu0 %v12736_v61  ;;  %v12766_v61 = vld [vmem:[#allocation5 + $0x48c] ss:$16 sps:$4 sm:$0xff]  }
 0x269   :  { %6689 = vmatprep.subr.bf16.mxu1 %v12733_v24  ;;  %v12763_v24 = vld [vmem:[#allocation5 + $0x20c] ss:$16 sps:$4 sm:$0xff]  }
 0x26b   :  { %6707 = vmatpush1.bf16.msra.mxu0 %v12734_v63  ;;  %v12769_v63 = vld [vmem:[#allocation5 + $0x3ec] ss:$16 sps:$4 sm:$0xff]  }
 0x26c   :  { %6690 = vmatpush2.bf16.msra.mxu1 %v12731_v27  ;;  %6708 = vmatprep.subr.bf16.mxu0 %v12742_v8  ;;  %v12761_v27 = vld [vmem:[#allocation5 + $0x208] ss:$16 sps:$4 sm:$0xff]  }
 0x26d   :  { %6691 = vmatprep.subr.bf16.mxu1 %v12739_v25  ;;  %v12767_v25 = vld [vmem:[#allocation5 + $0x3e8] ss:$16 sps:$4 sm:$0xff]  }
 0x26e   :  { %v12770_v8 = vld [vmem:[#allocation5 + $0x468] ss:$16 sps:$4 sm:$0xff]  }
 0x26f   :  { %6709 = vmatpush1.bf16.msra.mxu0 %v12740_v13  ;;  %v12778_v13 = vld [vmem:[#allocation5 + $0x44c] ss:$16 sps:$4 sm:$0xff]  }
 0x270   :  { %6692 = vmatpush2.bf16.msra.mxu1 %v12737_v9  ;;  %6710 = vmatprep.subr.bf16.mxu0 %v12745_v18  ;;  %v12775_v9 = vld [vmem:[#allocation5 + $0x3cc] ss:$16 sps:$4 sm:$0xff]   ;;  %v12773_v18 = vld [vmem:[#allocation5 + $0x3c8] ss:$16 sps:$4 sm:$0xff]  }
 0x271   :  { %6743 = vmatprep.subr.bf16.mxu1 %v12748_v1  ;;  %v12776_v1 = vld [vmem:[#allocation5 + $0x448] ss:$16 sps:$4 sm:$0xff]  }
 0x272   :  { %v6408_v36 = vpop.f32.mrf.mxu0 }
 0x273   :  { %v6449_v46 = vpop.f32.mrf.mxu1  ;;  %6694 = vmatmul.mubr.bf16.vlgmr.msra.gmra.mxu1 %v13819_v16  ;;  %v6409_v28 = vadd.f32 %v6408_v36, %v14033_v44  ;;  %6711 = vmatpush1.bf16.msra.mxu0 %v12743_v31  ;;  %v12781_v31 = vld [vmem:[#allocation5 + $0x3ac] ss:$16 sps:$4 sm:$0xff]   ;;  %v12785_v36 = vld [vmem:[#allocation5 + $0x388] ss:$16 sps:$4 sm:$0xff]  }
 0x274   :  { %6744 = vmatpush1.bf16.msra.mxu1 %v12746_v20  ;;  %v6410_v30 = vpop.f32.mrf.mxu0  ;;  %6712 = vmatprep.subr.bf16.mxu0 %v12751_v3  ;;  %v12784_v20 = vld [vmem:[#allocation5 + $0x42c] ss:$16 sps:$4 sm:$0xff]   ;;  %v12779_v3 = vld [vmem:[#allocation5 + $0x3a8] ss:$16 sps:$4 sm:$0xff]  }
 0x275   :  { %v6451_v62 = vpop.f32.mrf.mxu1  ;;  %6745 = vmatprep.subr.bf16.mxu1 %v12754_v39  ;;  %v14049_v42 = vadd.f32 %v6449_v46, %v6409_v28  ;;  %v6411_v45 = vadd.f32 %v6410_v30, %v14039_v21  ;;  %6775 = vmatprep.mubr.bf16.mxu1 %v13836_v53  ;;  %v12764_v21 = vld [vmem:[#allocation5 + $0x488] ss:$16 sps:$4 sm:$0xff]   ;;  %v12772_v53 = vld [vmem:[#allocation5 + $0x46c] ss:$16 sps:$4 sm:$0xff]  }
 0x276   :  { %v6412_v19 = vpop.f32.mrf.mxu0  ;;  %v12782_v39 = vld [vmem:[#allocation5 + $0x428] ss:$16 sps:$4 sm:$0xff]   ;;  %v12793_v28 = vld [vmem:[#allocation5 + $0x36c] ss:$16 sps:$4 sm:$0xff]  }
 0x277   :  { %v6453_v16 = vpop.f32.mrf.mxu1  ;;  %v14053_v60 = vadd.f32 %v6451_v62, %v6411_v45  ;;  %6713 = vmatpush1.bf16.msra.mxu0 %v12749_v26  ;;  %v12787_v26 = vld [vmem:[#allocation5 + $0x38c] ss:$16 sps:$4 sm:$0xff]   ;;  %v12788_v46 = vld [vmem:[#allocation5 + $0x408] ss:$16 sps:$4 sm:$0xff]  }
 0x278   :  { %6746 = vmatpush1.bf16.msra.mxu1 %v12752_v35  ;;  %v6413_v44 = vpop.f32.mrf.mxu0  ;;  %6714 = vmatprep.subr.bf16.mxu0 %v12757_v40  ;;  %v12790_v35 = vld [vmem:[#allocation5 + $0x40c] ss:$16 sps:$4 sm:$0xff]   ;;  %v12791_v62 = vld [vmem:[#allocation5 + $0x368] ss:$16 sps:$4 sm:$0xff]  }
 0x279   :  { %v6454_v7 = vpop.f32.mrf.mxu1  ;;  %6747 = vmatprep.subr.bf16.mxu1 %v12760_v41  ;;  %v12796_v30 = vld [vmem:[#allocation5 + $0x5ec] ss:$16 sps:$4 sm:$0xff]   ;;  %v12794_v40 = vld [vmem:[#allocation5 + $0x5e8] ss:$16 sps:$4 sm:$0xff]  }
 0x27a   :  { %v12799_v41 = vld [vmem:[#allocation5 + $0x34c] ss:$16 sps:$4 sm:$0xff]   ;;  %v12803_v44 = vld [vmem:[#allocation5 + $0x328] ss:$16 sps:$4 sm:$0xff]  }
 0x27b   :  { %6715 = vmatpush1.bf16.msra.mxu0 %v12755_v12  ;;  %v12802_v45 = vld [vmem:[#allocation5 + $0x5cc] ss:$16 sps:$4 sm:$0xff]   ;;  %v12797_v12 = vld [vmem:[#allocation5 + $0x348] ss:$16 sps:$4 sm:$0xff]  }
 0x27c   :  { %6748 = vmatpush1.bf16.msra.mxu1 %v12758_v56  ;;  %6716 = vmatprep.subr.bf16.mxu0 %v12763_v24  ;;  %v12800_v56 = vld [vmem:[#allocation5 + $0x5c8] ss:$16 sps:$4 sm:$0xff]   ;;  %v12805_v19 = vld [vmem:[#allocation5 + $0x32c] ss:$16 sps:$4 sm:$0xff]  }
 0x27d   :  { %6749 = vmatprep.subr.bf16.mxu1 %v12766_v61  ;;  %v12808_v16 = vld [vmem:[#allocation5 + $0x5ac] ss:$16 sps:$4 sm:$0xff]   ;;  %v12806_v7 = vld [vmem:[#allocation5 + $0x5a8] ss:$16 sps:$4 sm:$0xff]  }
 0x27e   :  { %v12811_v24 = vld [vmem:[#allocation5 + $0x30c] ss:$16 sps:$4 sm:$0xff]  }
 0x27f   :  { %6717 = vmatpush1.bf16.msra.mxu0 %v12761_v27  ;;  %v12814_v61 = vld [vmem:[#allocation5 + $0x58c] ss:$16 sps:$4 sm:$0xff]   ;;  %v12809_v27 = vld [vmem:[#allocation5 + $0x308] ss:$16 sps:$4 sm:$0xff]  }
 0x280   :  { %6750 = vmatpush1.bf16.msra.mxu1 %v12764_v21  ;;  %6718 = vmatprep.subr.bf16.mxu0 %v12769_v63  ;;  %v12812_v21 = vld [vmem:[#allocation5 + $0x588] ss:$16 sps:$4 sm:$0xff]   ;;  %v12817_v63 = vld [vmem:[#allocation5 + $0x56c] ss:$16 sps:$4 sm:$0xff]  }
 0x281   :  { %6751 = vmatprep.subr.bf16.mxu1 %v12772_v53  ;;  %v12820_v53 = vld [vmem:[#allocation5 + $0x6ec] ss:$16 sps:$4 sm:$0xff]  }
 0x283   :  { %6719 = vmatpush2.bf16.msra.mxu0 %v12767_v25  ;;  %v12815_v25 = vld [vmem:[#allocation5 + $0x568] ss:$16 sps:$4 sm:$0xff]  }
 0x284   :  { %6752 = vmatpush1.bf16.msra.mxu1 %v12770_v8  ;;  %6720 = vmatprep.subr.bf16.mxu0 %v12775_v9  ;;  %v12818_v8 = vld [vmem:[#allocation5 + $0x6e8] ss:$16 sps:$4 sm:$0xff]   ;;  %v12823_v9 = vld [vmem:[#allocation5 + $0x54c] ss:$16 sps:$4 sm:$0xff]  }
 0x285   :  { %6753 = vmatprep.subr.bf16.mxu1 %v12778_v13  ;;  %v12826_v13 = vld [vmem:[#allocation5 + $0x6cc] ss:$16 sps:$4 sm:$0xff]  }
 0x287   :  { %6721 = vmatpush2.bf16.msra.mxu0 %v12773_v18  ;;  %v12821_v18 = vld [vmem:[#allocation5 + $0x548] ss:$16 sps:$4 sm:$0xff]  }
 0x288   :  { %6754 = vmatpush1.bf16.msra.mxu1 %v12776_v1  ;;  %6722 = vmatprep.subr.bf16.mxu0 %v12781_v31  ;;  %v12824_v1 = vld [vmem:[#allocation5 + $0x6c8] ss:$16 sps:$4 sm:$0xff]   ;;  %v12829_v31 = vld [vmem:[#allocation5 + $0x52c] ss:$16 sps:$4 sm:$0xff]  }
 0x289   :  { %6755 = vmatprep.subr.bf16.mxu1 %v12784_v20  ;;  %v12832_v20 = vld [vmem:[#allocation5 + $0x6ac] ss:$16 sps:$4 sm:$0xff]  }
 0x28b   :  { %6723 = vmatpush2.bf16.msra.mxu0 %v12779_v3  ;;  %v12827_v3 = vld [vmem:[#allocation5 + $0x528] ss:$16 sps:$4 sm:$0xff]  }
 0x28c   :  { %6756 = vmatpush1.bf16.msra.mxu1 %v12782_v39  ;;  %6724 = vmatprep.subr.bf16.mxu0 %v12787_v26  ;;  %v12830_v39 = vld [vmem:[#allocation5 + $0x6a8] ss:$16 sps:$4 sm:$0xff]   ;;  %v12835_v26 = vld [vmem:[#allocation5 + $0x50c] ss:$16 sps:$4 sm:$0xff]  }
 0x28d   :  { %6757 = vmatprep.subr.bf16.mxu1 %v12790_v35  ;;  %v12838_v35 = vld [vmem:[#allocation5 + $0x68c] ss:$16 sps:$4 sm:$0xff]  }
 0x28f   :  { %6725 = vmatpush2.bf16.msra.mxu0 %v12785_v36  ;;  %v12833_v36 = vld [vmem:[#allocation5 + $0x508] ss:$16 sps:$4 sm:$0xff]  }
 0x290   :  { %6758 = vmatpush1.bf16.msra.mxu1 %v12788_v46  ;;  %6726 = vmatprep.subr.bf16.mxu0 %v12793_v28  ;;  %v12841_v46 = vld [vmem:[#allocation5 + $0x66c] ss:$16 sps:$4 sm:$0xff]  }
 0x291   :  { %6759 = vmatprep.subr.bf16.mxu1 %v12796_v30  ;;  %v12844_v28 = vld [vmem:[#allocation5 + $0x8ec] ss:$16 sps:$4 sm:$0xff]   ;;  %v12839_v30 = vld [vmem:[#allocation5 + $0x668] ss:$16 sps:$4 sm:$0xff]  }
 0x293   :  { %6727 = vmatpush2.bf16.msra.mxu0 %v12791_v62  ;;  %v12842_v62 = vld [vmem:[#allocation5 + $0x8e8] ss:$16 sps:$4 sm:$0xff]  }
 0x294   :  { %6760 = vmatpush2.bf16.msra.mxu1 %v12794_v40  ;;  %6728 = vmatprep.subr.bf16.mxu0 %v12799_v41  ;;  %v12850_v40 = vld [vmem:[#allocation5 + $0x8cc] ss:$16 sps:$4 sm:$0xff]   ;;  %v12845_v41 = vld [vmem:[#allocation5 + $0x648] ss:$16 sps:$4 sm:$0xff]  }
 0x295   :  { %6761 = vmatprep.subr.bf16.mxu1 %v12802_v45 }
 0x297   :  { %6729 = vmatpush2.bf16.msra.mxu0 %v12797_v12 }
 0x298   :  { %6762 = vmatpush2.bf16.msra.mxu1 %v12800_v56  ;;  %6730 = vmatprep.subr.bf16.mxu0 %v12805_v19  ;;  %v12848_v56 = vld [vmem:[#allocation5 + $0x8c8] ss:$16 sps:$4 sm:$0xff]  }
 0x299   :  { %6763 = vmatprep.subr.bf16.mxu1 %v12808_v16 }
 0x29b   :  { %6731 = vmatpush2.bf16.msra.mxu0 %v12803_v44 }
 0x29c   :  { %6764 = vmatpush2.bf16.msra.mxu1 %v12806_v7  ;;  %6732 = vmatprep.subr.bf16.mxu0 %v12811_v24  ;;  %v12853_v7 = vld [vmem:[#allocation5 + $0x62c] ss:$16 sps:$4 sm:$0xff]  }
 0x29d   :  { %6765 = vmatprep.subr.bf16.mxu1 %v12814_v61  ;;  %v12856_v24 = vld [vmem:[#allocation5 + $0x8ac] ss:$16 sps:$4 sm:$0xff]  }
 0x29f   :  { %6733 = vmatpush2.bf16.msra.mxu0 %v12809_v27 }
 0x2a0   :  { %6766 = vmatpush2.bf16.msra.mxu1 %v12812_v21  ;;  %6784 = vmatprep.subr.bf16.mxu0 %v12820_v53  ;;  %v12851_v21 = vld [vmem:[#allocation5 + $0x628] ss:$16 sps:$4 sm:$0xff]  }
 0x2a1   :  { %6767 = vmatprep.subr.bf16.mxu1 %v12817_v63  ;;  %v12854_v63 = vld [vmem:[#allocation5 + $0x8a8] ss:$16 sps:$4 sm:$0xff]  }
 0x2a2   :  { %6735 = vmatmul.mubr.bf16.vlgmr.msra.gmra.mxu0 %v13821_v17  ;;  %v12836_v17 = vld [vmem:[#allocation5 + $0x688] ss:$16 sps:$4 sm:$0xff]  }
 0x2a3   :  { %6785 = vmatpush1.bf16.msra.mxu0 %v12818_v8  ;;  %6816 = vmatprep.mubr.bf16.mxu0 %v13840_v57  ;;  %v12847_v57 = vld [vmem:[#allocation5 + $0x64c] ss:$16 sps:$4 sm:$0xff]  }
 0x2a4   :  { %6768 = vmatpush2.bf16.msra.mxu1 %v12815_v25  ;;  %6786 = vmatprep.subr.bf16.mxu0 %v12826_v13  ;;  %v12862_v13 = vld [vmem:[#allocation5 + $0x88c] ss:$16 sps:$4 sm:$0xff]  }
 0x2a5   :  { %6769 = vmatprep.subr.bf16.mxu1 %v12823_v9  ;;  %v12859_v9 = vld [vmem:[#allocation5 + $0x60c] ss:$16 sps:$4 sm:$0xff]  }
 0x2a7   :  { %6787 = vmatpush1.bf16.msra.mxu0 %v12824_v1  ;;  %v12865_v1 = vld [vmem:[#allocation5 + $0x7ec] ss:$16 sps:$4 sm:$0xff]  }
 0x2a8   :  { %6770 = vmatpush2.bf16.msra.mxu1 %v12821_v18  ;;  %6788 = vmatprep.subr.bf16.mxu0 %v12832_v20  ;;  %v12857_v18 = vld [vmem:[#allocation5 + $0x608] ss:$16 sps:$4 sm:$0xff]  }
 0x2a9   :  { %6771 = vmatprep.subr.bf16.mxu1 %v12829_v31  ;;  %v12863_v31 = vld [vmem:[#allocation5 + $0x7e8] ss:$16 sps:$4 sm:$0xff]  }
 0x2aa   :  { %v12866_v20 = vld [vmem:[#allocation5 + $0x868] ss:$16 sps:$4 sm:$0xff]  }
 0x2ab   :  { %6789 = vmatpush1.bf16.msra.mxu0 %v12830_v39  ;;  %v12874_v39 = vld [vmem:[#allocation5 + $0x84c] ss:$16 sps:$4 sm:$0xff]  }
 0x2ac   :  { %6772 = vmatpush2.bf16.msra.mxu1 %v12827_v3  ;;  %6790 = vmatprep.subr.bf16.mxu0 %v12838_v35  ;;  %v12871_v3 = vld [vmem:[#allocation5 + $0x7cc] ss:$16 sps:$4 sm:$0xff]   ;;  %v12872_v35 = vld [vmem:[#allocation5 + $0x848] ss:$16 sps:$4 sm:$0xff]  }
 0x2ad   :  { %6773 = vmatprep.subr.bf16.mxu1 %v12835_v26  ;;  %v12869_v26 = vld [vmem:[#allocation5 + $0x7c8] ss:$16 sps:$4 sm:$0xff]  }
 0x2af   :  { %6791 = vmatpush1.bf16.msra.mxu0 %v12836_v17  ;;  %v12880_v17 = vld [vmem:[#allocation5 + $0x82c] ss:$16 sps:$4 sm:$0xff]  }
 0x2b0   :  { %6774 = vmatpush2.bf16.msra.mxu1 %v12833_v36  ;;  %6792 = vmatprep.subr.bf16.mxu0 %v12841_v46  ;;  %v12877_v36 = vld [vmem:[#allocation5 + $0x7ac] ss:$16 sps:$4 sm:$0xff]   ;;  %v12875_v46 = vld [vmem:[#allocation5 + $0x7a8] ss:$16 sps:$4 sm:$0xff]  }
 0x2b1   :  { %6825 = vmatprep.subr.bf16.mxu1 %v12844_v28  ;;  %v12878_v28 = vld [vmem:[#allocation5 + $0x828] ss:$16 sps:$4 sm:$0xff]  }
 0x2b2   :  { %v6490_v45 = vpop.f32.mrf.mxu0 }
 0x2b3   :  { %v6531_v12 = vpop.f32.mrf.mxu1  ;;  %6776 = vmatmul.mubr.bf16.vlgmr.msra.gmra.mxu1 %v13846_v32  ;;  %v6491_v19 = vadd.f32 %v6490_v45, %v14049_v42  ;;  %6793 = vmatpush1.bf16.msra.mxu0 %v12839_v30  ;;  %v12883_v30 = vld [vmem:[#allocation5 + $0x78c] ss:$16 sps:$4 sm:$0xff]  }
 0x2b4   :  { %6826 = vmatpush1.bf16.msra.mxu1 %v12842_v62  ;;  %v6492_v16 = vpop.f32.mrf.mxu0  ;;  %6794 = vmatprep.subr.bf16.mxu0 %v12847_v57  ;;  %v12886_v62 = vld [vmem:[#allocation5 + $0x80c] ss:$16 sps:$4 sm:$0xff]   ;;  %v12881_v57 = vld [vmem:[#allocation5 + $0x788] ss:$16 sps:$4 sm:$0xff]  }
 0x2b5   :  { %v6533_v44 = vpop.f32.mrf.mxu1  ;;  %6827 = vmatprep.subr.bf16.mxu1 %v12850_v40  ;;  %v14059_v61 = vadd.f32 %v6531_v12, %v6491_v19  ;;  %v6493_v27 = vadd.f32 %v6492_v16, %v14053_v60  ;;  %6857 = vmatprep.mubr.bf16.mxu1 %v13865_v48  ;;  %v12860_v60 = vld [vmem:[#allocation5 + $0x888] ss:$16 sps:$4 sm:$0xff]   ;;  %v12868_v48 = vld [vmem:[#allocation5 + $0x86c] ss:$16 sps:$4 sm:$0xff]  }
 0x2b6   :  { %v6494_v32 = vpop.f32.mrf.mxu0  ;;  %v12884_v40 = vld [vmem:[#allocation5 + $0x808] ss:$16 sps:$4 sm:$0xff]   ;;  %v12892_v45 = vld [vmem:[#allocation5 + $0x9ec] ss:$16 sps:$4 sm:$0xff]  }
 0x2b7   :  { %v6535_v53 = vpop.f32.mrf.mxu1  ;;  %v14063_v25 = vadd.f32 %v6533_v44, %v6493_v27  ;;  %6795 = vmatpush1.bf16.msra.mxu0 %v12845_v41  ;;  %v12889_v41 = vld [vmem:[#allocation5 + $0x76c] ss:$16 sps:$4 sm:$0xff]   ;;  %v12887_v12 = vld [vmem:[#allocation5 + $0x768] ss:$16 sps:$4 sm:$0xff]  }
 0x2b8   :  { %6828 = vmatpush1.bf16.msra.mxu1 %v12848_v56  ;;  %v6495_v42 = vpop.f32.mrf.mxu0  ;;  %6796 = vmatprep.subr.bf16.mxu0 %v12853_v7  ;;  %v12890_v56 = vld [vmem:[#allocation5 + $0x9e8] ss:$16 sps:$4 sm:$0xff]   ;;  %v12895_v19 = vld [vmem:[#allocation5 + $0x74c] ss:$16 sps:$4 sm:$0xff]  }
 0x2b9   :  { %v6536_v8 = vpop.f32.mrf.mxu1  ;;  %6829 = vmatprep.subr.bf16.mxu1 %v12856_v24  ;;  %v12898_v16 = vld [vmem:[#allocation5 + $0x9cc] ss:$16 sps:$4 sm:$0xff]   ;;  %v12893_v44 = vld [vmem:[#allocation5 + $0x748] ss:$16 sps:$4 sm:$0xff]  }
 0x2ba   :  { %v12896_v7 = vld [vmem:[#allocation5 + $0x9c8] ss:$16 sps:$4 sm:$0xff]   ;;  %v12901_v24 = vld [vmem:[#allocation5 + $0x72c] ss:$16 sps:$4 sm:$0xff]  }
 0x2bb   :  { %6797 = vmatpush1.bf16.msra.mxu0 %v12851_v21  ;;  %v12904_v27 = vld [vmem:[#allocation5 + $0x9ac] ss:$16 sps:$4 sm:$0xff]   ;;  %v12899_v21 = vld [vmem:[#allocation5 + $0x728] ss:$16 sps:$4 sm:$0xff]  }
 0x2bc   :  { %6830 = vmatpush1.bf16.msra.mxu1 %v12854_v63  ;;  %6798 = vmatprep.subr.bf16.mxu0 %v12859_v9  ;;  %v12902_v63 = vld [vmem:[#allocation5 + $0x9a8] ss:$16 sps:$4 sm:$0xff]   ;;  %v12907_v32 = vld [vmem:[#allocation5 + $0x70c] ss:$16 sps:$4 sm:$0xff]  }
 0x2bd   :  { %6831 = vmatprep.subr.bf16.mxu1 %v12862_v13  ;;  %v12910_v53 = vld [vmem:[#allocation5 + $0x98c] ss:$16 sps:$4 sm:$0xff]   ;;  %v12905_v42 = vld [vmem:[#allocation5 + $0x708] ss:$16 sps:$4 sm:$0xff]  }
 0x2be   :  { %v12908_v8 = vld [vmem:[#allocation5 + $0x988] ss:$16 sps:$4 sm:$0xff]   ;;  %v12913_v9 = vld [vmem:[#allocation5 + $0x96c] ss:$16 sps:$4 sm:$0xff]  }
 0x2bf   :  { %6799 = vmatpush1.bf16.msra.mxu0 %v12857_v18  ;;  %v12916_v13 = vld [vmem:[#allocation5 + $0xaec] ss:$16 sps:$4 sm:$0xff]   ;;  %v12911_v18 = vld [vmem:[#allocation5 + $0x968] ss:$16 sps:$4 sm:$0xff]  }
 0x2c0   :  { %6832 = vmatpush1.bf16.msra.mxu1 %v12860_v60  ;;  %6800 = vmatprep.subr.bf16.mxu0 %v12865_v1  ;;  %v12914_v60 = vld [vmem:[#allocation5 + $0xae8] ss:$16 sps:$4 sm:$0xff]   ;;  %v12919_v1 = vld [vmem:[#allocation5 + $0x94c] ss:$16 sps:$4 sm:$0xff]  }
 0x2c1   :  { %6833 = vmatprep.subr.bf16.mxu1 %v12868_v48  ;;  %v12922_v48 = vld [vmem:[#allocation5 + $0xacc] ss:$16 sps:$4 sm:$0xff]  }
 0x2c3   :  { %6801 = vmatpush2.bf16.msra.mxu0 %v12863_v31  ;;  %v12917_v31 = vld [vmem:[#allocation5 + $0x948] ss:$16 sps:$4 sm:$0xff]  }
 0x2c4   :  { %6834 = vmatpush1.bf16.msra.mxu1 %v12866_v20  ;;  %6802 = vmatprep.subr.bf16.mxu0 %v12871_v3  ;;  %v12920_v20 = vld [vmem:[#allocation5 + $0xac8] ss:$16 sps:$4 sm:$0xff]   ;;  %v12925_v3 = vld [vmem:[#allocation5 + $0x92c] ss:$16 sps:$4 sm:$0xff]  }
 0x2c5   :  { %6835 = vmatprep.subr.bf16.mxu1 %v12874_v39  ;;  %v12928_v39 = vld [vmem:[#allocation5 + $0xaac] ss:$16 sps:$4 sm:$0xff]  }
 0x2c7   :  { %6803 = vmatpush2.bf16.msra.mxu0 %v12869_v26  ;;  %v12923_v26 = vld [vmem:[#allocation5 + $0x928] ss:$16 sps:$4 sm:$0xff]  }
 0x2c8   :  { %6836 = vmatpush1.bf16.msra.mxu1 %v12872_v35  ;;  %6804 = vmatprep.subr.bf16.mxu0 %v12877_v36  ;;  %v12926_v35 = vld [vmem:[#allocation5 + $0xaa8] ss:$16 sps:$4 sm:$0xff]   ;;  %v12931_v36 = vld [vmem:[#allocation5 + $0x90c] ss:$16 sps:$4 sm:$0xff]  }
 0x2c9   :  { %6837 = vmatprep.subr.bf16.mxu1 %v12880_v17  ;;  %v12934_v17 = vld [vmem:[#allocation5 + $0xa8c] ss:$16 sps:$4 sm:$0xff]  }
 0x2cb   :  { %6805 = vmatpush2.bf16.msra.mxu0 %v12875_v46  ;;  %v12932_v46 = vld [vmem:[#allocation5 + $0xa88] ss:$16 sps:$4 sm:$0xff]  }
 0x2cc   :  { %6838 = vmatpush1.bf16.msra.mxu1 %v12878_v28  ;;  %6806 = vmatprep.subr.bf16.mxu0 %v12883_v30  ;;  %v12937_v28 = vld [vmem:[#allocation5 + $0xa6c] ss:$16 sps:$4 sm:$0xff]  }
 0x2cd   :  { %6839 = vmatprep.subr.bf16.mxu1 %v12886_v62  ;;  %v12940_v30 = vld [vmem:[#allocation5 + $0xcec] ss:$16 sps:$4 sm:$0xff]   ;;  %v12935_v62 = vld [vmem:[#allocation5 + $0xa68] ss:$16 sps:$4 sm:$0xff]  }
 0x2cf   :  { %6807 = vmatpush2.bf16.msra.mxu0 %v12881_v57  ;;  %v12943_v57 = vld [vmem:[#allocation5 + $0xa4c] ss:$16 sps:$4 sm:$0xff]  }
 0x2d0   :  { %6840 = vmatpush1.bf16.msra.mxu1 %v12884_v40  ;;  %6808 = vmatprep.subr.bf16.mxu0 %v12889_v41  ;;  %v12946_v40 = vld [vmem:[#allocation5 + $0xccc] ss:$16 sps:$4 sm:$0xff]  }
 0x2d1   :  { %6841 = vmatprep.subr.bf16.mxu1 %v12892_v45 }
 0x2d3   :  { %6809 = vmatpush2.bf16.msra.mxu0 %v12887_v12 }
 0x2d4   :  { %6842 = vmatpush2.bf16.msra.mxu1 %v12890_v56  ;;  %6810 = vmatprep.subr.bf16.mxu0 %v12895_v19  ;;  %v12941_v56 = vld [vmem:[#allocation5 + $0xa48] ss:$16 sps:$4 sm:$0xff]  }
 0x2d5   :  { %6843 = vmatprep.subr.bf16.mxu1 %v12898_v16  ;;  %v12944_v19 = vld [vmem:[#allocation5 + $0xcc8] ss:$16 sps:$4 sm:$0xff]  }
 0x2d7   :  { %6811 = vmatpush2.bf16.msra.mxu0 %v12893_v44 }
 0x2d8   :  { %6844 = vmatpush2.bf16.msra.mxu1 %v12896_v7  ;;  %6812 = vmatprep.subr.bf16.mxu0 %v12901_v24  ;;  %v12949_v7 = vld [vmem:[#allocation5 + $0xa2c] ss:$16 sps:$4 sm:$0xff]  }
 0x2d9   :  { %6845 = vmatprep.subr.bf16.mxu1 %v12904_v27  ;;  %v12952_v24 = vld [vmem:[#allocation5 + $0xcac] ss:$16 sps:$4 sm:$0xff]  }
 0x2db   :  { %6813 = vmatpush2.bf16.msra.mxu0 %v12899_v21 }
 0x2dc   :  { %6846 = vmatpush2.bf16.msra.mxu1 %v12902_v63  ;;  %6814 = vmatprep.subr.bf16.mxu0 %v12907_v32 }
 0x2dd   :  { %6847 = vmatprep.subr.bf16.mxu1 %v12910_v53  ;;  %v12950_v53 = vld [vmem:[#allocation5 + $0xca8] ss:$16 sps:$4 sm:$0xff]  }
 0x2df   :  { %6815 = vmatpush2.bf16.msra.mxu0 %v12905_v42 }
 0x2e0   :  { %6848 = vmatpush2.bf16.msra.mxu1 %v12908_v8  ;;  %6866 = vmatprep.subr.bf16.mxu0 %v12916_v13  ;;  %v12958_v13 = vld [vmem:[#allocation5 + $0xc8c] ss:$16 sps:$4 sm:$0xff]  }
 0x2e1   :  { %6849 = vmatprep.subr.bf16.mxu1 %v12913_v9  ;;  %v12955_v9 = vld [vmem:[#allocation5 + $0xa0c] ss:$16 sps:$4 sm:$0xff]  }
 0x2e2   :  { %6817 = vmatmul.mubr.bf16.vlgmr.msra.gmra.mxu0 %v13850_v33  ;;  %v12929_v33 = vld [vmem:[#allocation5 + $0x908] ss:$16 sps:$4 sm:$0xff]  }
 0x2e3   :  { %6867 = vmatpush1.bf16.msra.mxu0 %v12914_v60  ;;  %6898 = vmatprep.mubr.bf16.mxu0 %v13870_v52  ;;  %v12938_v52 = vld [vmem:[#allocation5 + $0xce8] ss:$16 sps:$4 sm:$0xff]   ;;  %v12964_v60 = vld [vmem:[#allocation5 + $0xc6c] ss:$16 sps:$4 sm:$0xff]  }
 0x2e4   :  { %6850 = vmatpush2.bf16.msra.mxu1 %v12911_v18  ;;  %6868 = vmatprep.subr.bf16.mxu0 %v12922_v48  ;;  %v12953_v18 = vld [vmem:[#allocation5 + $0xa08] ss:$16 sps:$4 sm:$0xff]  }
 0x2e5   :  { %6851 = vmatprep.subr.bf16.mxu1 %v12919_v1  ;;  %v12959_v1 = vld [vmem:[#allocation5 + $0xbe8] ss:$16 sps:$4 sm:$0xff]  }
 0x2e6   :  { %v12962_v48 = vld [vmem:[#allocation5 + $0xc68] ss:$16 sps:$4 sm:$0xff]  }
 0x2e7   :  { %6869 = vmatpush1.bf16.msra.mxu0 %v12920_v20  ;;  %v12970_v20 = vld [vmem:[#allocation5 + $0xc4c] ss:$16 sps:$4 sm:$0xff]  }
 0x2e8   :  { %6852 = vmatpush2.bf16.msra.mxu1 %v12917_v31  ;;  %6870 = vmatprep.subr.bf16.mxu0 %v12928_v39  ;;  %v12967_v31 = vld [vmem:[#allocation5 + $0xbcc] ss:$16 sps:$4 sm:$0xff]   ;;  %v12968_v39 = vld [vmem:[#allocation5 + $0xc48] ss:$16 sps:$4 sm:$0xff]  }
 0x2e9   :  { %6853 = vmatprep.subr.bf16.mxu1 %v12925_v3  ;;  %v12965_v3 = vld [vmem:[#allocation5 + $0xbc8] ss:$16 sps:$4 sm:$0xff]  }
 0x2eb   :  { %6871 = vmatpush1.bf16.msra.mxu0 %v12926_v35  ;;  %v12976_v35 = vld [vmem:[#allocation5 + $0xc2c] ss:$16 sps:$4 sm:$0xff]  }
 0x2ec   :  { %6854 = vmatpush2.bf16.msra.mxu1 %v12923_v26  ;;  %6872 = vmatprep.subr.bf16.mxu0 %v12934_v17  ;;  %v12973_v26 = vld [vmem:[#allocation5 + $0xbac] ss:$16 sps:$4 sm:$0xff]   ;;  %v12974_v17 = vld [vmem:[#allocation5 + $0xc28] ss:$16 sps:$4 sm:$0xff]  }
 0x2ed   :  { %6855 = vmatprep.subr.bf16.mxu1 %v12931_v36  ;;  %v12971_v36 = vld [vmem:[#allocation5 + $0xba8] ss:$16 sps:$4 sm:$0xff]  }
 0x2ef   :  { %6873 = vmatpush1.bf16.msra.mxu0 %v12932_v46  ;;  %v12982_v46 = vld [vmem:[#allocation5 + $0xc0c] ss:$16 sps:$4 sm:$0xff]  }
 0x2f0   :  { %6856 = vmatpush2.bf16.msra.mxu1 %v12929_v33  ;;  %6874 = vmatprep.subr.bf16.mxu0 %v12937_v28  ;;  %v12979_v33 = vld [vmem:[#allocation5 + $0xb8c] ss:$16 sps:$4 sm:$0xff]   ;;  %v12977_v28 = vld [vmem:[#allocation5 + $0xb88] ss:$16 sps:$4 sm:$0xff]  }
 0x2f1   :  { %6907 = vmatprep.subr.bf16.mxu1 %v12940_v30  ;;  %v12980_v30 = vld [vmem:[#allocation5 + $0xc08] ss:$16 sps:$4 sm:$0xff]  }
 0x2f2   :  { %v6572_v41 = vpop.f32.mrf.mxu0 }
 0x2f3   :  { %v6613_v45 = vpop.f32.mrf.mxu1  ;;  %6858 = vmatmul.mubr.bf16.vlgmr.msra.gmra.mxu1 %v13888_v4  ;;  %v6573_v12 = vadd.f32 %v6572_v41, %v14059_v61  ;;  %6875 = vmatpush1.bf16.msra.mxu0 %v12935_v62  ;;  %v12947_v61 = vld [vmem:[#allocation5 + $0xa28] ss:$16 sps:$4 sm:$0xff]   ;;  %v12985_v62 = vld [vmem:[#allocation5 + $0xb6c] ss:$16 sps:$4 sm:$0xff]  }
 0x2f4   :  { %6908 = vmatpush1.bf16.msra.mxu1 %v12938_v52  ;;  %v6574_v16 = vpop.f32.mrf.mxu0  ;;  %6876 = vmatprep.subr.bf16.mxu0 %v12943_v57  ;;  %v12988_v52 = vld [vmem:[#allocation5 + $0xdec] ss:$16 sps:$4 sm:$0xff]   ;;  %v12983_v57 = vld [vmem:[#allocation5 + $0xb68] ss:$16 sps:$4 sm:$0xff]  }
 0x2f5   :  { %v6615_v44 = vpop.f32.mrf.mxu1  ;;  %6909 = vmatprep.subr.bf16.mxu1 %v12946_v40  ;;  %v14069_v27 = vadd.f32 %v6613_v45, %v6573_v12  ;;  %v6575_v21 = vadd.f32 %v6574_v16, %v14063_v25  ;;  %6939 = vmatprep.mubr.bf16.mxu1 %v13894_v10  ;;  %v12956_v25 = vld [vmem:[#allocation5 + $0xc88] ss:$16 sps:$4 sm:$0xff]   ;;  %v12961_v10 = vld [vmem:[#allocation5 + $0xbec] ss:$16 sps:$4 sm:$0xff]  }
 0x2f6   :  { %v6576_v63 = vpop.f32.mrf.mxu0  ;;  %v12986_v40 = vld [vmem:[#allocation5 + $0xde8] ss:$16 sps:$4 sm:$0xff]   ;;  %v12991_v41 = vld [vmem:[#allocation5 + $0xb4c] ss:$16 sps:$4 sm:$0xff]  }
 0x2f7   :  { %v6617_v4 = vpop.f32.mrf.mxu1  ;;  %v14073_v32 = vadd.f32 %v6615_v44, %v6575_v21  ;;  %6877 = vmatpush1.bf16.msra.mxu0 %v12941_v56  ;;  %v12994_v45 = vld [vmem:[#allocation5 + $0xdcc] ss:$16 sps:$4 sm:$0xff]   ;;  %v12989_v12 = vld [vmem:[#allocation5 + $0xb48] ss:$16 sps:$4 sm:$0xff]  }
 0x2f8   :  { %6910 = vmatpush1.bf16.msra.mxu1 %v12944_v19  ;;  %v6577_v42 = vpop.f32.mrf.mxu0  ;;  %6878 = vmatprep.subr.bf16.mxu0 %v12949_v7  ;;  %v12992_v56 = vld [vmem:[#allocation5 + $0xdc8] ss:$16 sps:$4 sm:$0xff]   ;;  %v12997_v19 = vld [vmem:[#allocation5 + $0xb2c] ss:$16 sps:$4 sm:$0xff]  }
 0x2f9   :  { %v6618_v8 = vpop.f32.mrf.mxu1  ;;  %6911 = vmatprep.subr.bf16.mxu1 %v12952_v24  ;;  %v13000_v16 = vld [vmem:[#allocation5 + $0xdac] ss:$16 sps:$4 sm:$0xff]   ;;  %v12995_v44 = vld [vmem:[#allocation5 + $0xb28] ss:$16 sps:$4 sm:$0xff]  }
 0x2fa   :  { %v12998_v7 = vld [vmem:[#allocation5 + $0xda8] ss:$16 sps:$4 sm:$0xff]   ;;  %v13003_v24 = vld [vmem:[#allocation5 + $0xb0c] ss:$16 sps:$4 sm:$0xff]  }
 0x2fb   :  { %6879 = vmatpush1.bf16.msra.mxu0 %v12947_v61  ;;  %v13006_v21 = vld [vmem:[#allocation5 + $0xd8c] ss:$16 sps:$4 sm:$0xff]   ;;  %v13001_v63 = vld [vmem:[#allocation5 + $0xb08] ss:$16 sps:$4 sm:$0xff]  }
 0x2fc   :  { %6912 = vmatpush1.bf16.msra.mxu1 %v12950_v53  ;;  %6880 = vmatprep.subr.bf16.mxu0 %v12955_v9  ;;  %v13004_v4 = vld [vmem:[#allocation5 + $0xd88] ss:$16 sps:$4 sm:$0xff]   ;;  %v13009_v61 = vld [vmem:[#allocation5 + $0xd6c] ss:$16 sps:$4 sm:$0xff]  }
 0x2fd   :  { %6913 = vmatprep.subr.bf16.mxu1 %v12958_v13  ;;  %v13012_v53 = vld [vmem:[#allocation5 + $0xeec] ss:$16 sps:$4 sm:$0xff]   ;;  %v13007_v42 = vld [vmem:[#allocation5 + $0xd68] ss:$16 sps:$4 sm:$0xff]  }
 0x2fe   :  { %v13010_v8 = vld [vmem:[#allocation5 + $0xee8] ss:$16 sps:$4 sm:$0xff]   ;;  %v13015_v9 = vld [vmem:[#allocation5 + $0xd4c] ss:$16 sps:$4 sm:$0xff]  }
 0x2ff   :  { %6881 = vmatpush1.bf16.msra.mxu0 %v12953_v18  ;;  %v13018_v13 = vld [vmem:[#allocation5 + $0xecc] ss:$16 sps:$4 sm:$0xff]  }
 0x300   :  { %6914 = vmatpush1.bf16.msra.mxu1 %v12956_v25  ;;  %6882 = vmatprep.subr.bf16.mxu0 %v12961_v10  ;;  %v13013_v10 = vld [vmem:[#allocation5 + $0xd48] ss:$16 sps:$4 sm:$0xff]  }
 0x301   :  { %6915 = vmatprep.subr.bf16.mxu1 %v12964_v60  ;;  %v13016_v60 = vld [vmem:[#allocation5 + $0xec8] ss:$16 sps:$4 sm:$0xff]  }
 0x303   :  { %6883 = vmatpush2.bf16.msra.mxu0 %v12959_v1 }
 0x304   :  { %6916 = vmatpush1.bf16.msra.mxu1 %v12962_v48  ;;  %6884 = vmatprep.subr.bf16.mxu0 %v12967_v31  ;;  %v13021_v48 = vld [vmem:[#allocation5 + $0xd2c] ss:$16 sps:$4 sm:$0xff]  }
 0x305   :  { %6917 = vmatprep.subr.bf16.mxu1 %v12970_v20  ;;  %v13024_v31 = vld [vmem:[#allocation5 + $0xeac] ss:$16 sps:$4 sm:$0xff]  }
 0x307   :  { %6885 = vmatpush2.bf16.msra.mxu0 %v12965_v3 }
 0x308   :  { %6918 = vmatpush1.bf16.msra.mxu1 %v12968_v39  ;;  %6886 = vmatprep.subr.bf16.mxu0 %v12973_v26  ;;  %v13027_v26 = vld [vmem:[#allocation5 + $0xd0c] ss:$16 sps:$4 sm:$0xff]  }
 0x309   :  { %6919 = vmatprep.subr.bf16.mxu1 %v12976_v35  ;;  %v13030_v35 = vld [vmem:[#allocation5 + $0xe8c] ss:$16 sps:$4 sm:$0xff]  }
 0x30b   :  { %6887 = vmatpush2.bf16.msra.mxu0 %v12971_v36  ;;  %v13025_v36 = vld [vmem:[#allocation5 + $0xd08] ss:$16 sps:$4 sm:$0xff]  }
 0x30c   :  { %6920 = vmatpush1.bf16.msra.mxu1 %v12974_v17  ;;  %6888 = vmatprep.subr.bf16.mxu0 %v12979_v33  ;;  %v13028_v17 = vld [vmem:[#allocation5 + $0xe88] ss:$16 sps:$4 sm:$0xff]   ;;  %v13036_v33 = vld [vmem:[#allocation5 + $0x10ec] ss:$16 sps:$4 sm:$0xff]  }
 0x30d   :  { %6921 = vmatprep.subr.bf16.mxu1 %v12982_v46  ;;  %v13034_v46 = vld [vmem:[#allocation5 + $0x10e8] ss:$16 sps:$4 sm:$0xff]  }
 0x30f   :  { %6889 = vmatpush2.bf16.msra.mxu0 %v12977_v28  ;;  %v13039_v28 = vld [vmem:[#allocation5 + $0xe4c] ss:$16 sps:$4 sm:$0xff]  }
 0x310   :  { %6922 = vmatpush1.bf16.msra.mxu1 %v12980_v30  ;;  %6890 = vmatprep.subr.bf16.mxu0 %v12985_v62  ;;  %v13042_v30 = vld [vmem:[#allocation5 + $0x10cc] ss:$16 sps:$4 sm:$0xff]  }
 0x311   :  { %6923 = vmatprep.subr.bf16.mxu1 %v12988_v52  ;;  %v13037_v52 = vld [vmem:[#allocation5 + $0xe48] ss:$16 sps:$4 sm:$0xff]  }
 0x313   :  { %6891 = vmatpush2.bf16.msra.mxu0 %v12983_v57  ;;  %v13040_v57 = vld [vmem:[#allocation5 + $0x10c8] ss:$16 sps:$4 sm:$0xff]  }
 0x314   :  { %6924 = vmatpush2.bf16.msra.mxu1 %v12986_v40  ;;  %6892 = vmatprep.subr.bf16.mxu0 %v12991_v41  ;;  %v13045_v41 = vld [vmem:[#allocation5 + $0xe2c] ss:$16 sps:$4 sm:$0xff]  }
 0x315   :  { %6925 = vmatprep.subr.bf16.mxu1 %v12994_v45  ;;  %v13048_v45 = vld [vmem:[#allocation5 + $0x10ac] ss:$16 sps:$4 sm:$0xff]  }
 0x317   :  { %6893 = vmatpush2.bf16.msra.mxu0 %v12989_v12 }
 0x318   :  { %6926 = vmatpush2.bf16.msra.mxu1 %v12992_v56  ;;  %6894 = vmatprep.subr.bf16.mxu0 %v12997_v19  ;;  %v13043_v56 = vld [vmem:[#allocation5 + $0xe28] ss:$16 sps:$4 sm:$0xff]  }
 0x319   :  { %6927 = vmatprep.subr.bf16.mxu1 %v13000_v16  ;;  %v13046_v19 = vld [vmem:[#allocation5 + $0x10a8] ss:$16 sps:$4 sm:$0xff]  }
 0x31b   :  { %6895 = vmatpush2.bf16.msra.mxu0 %v12995_v44  ;;  %v13054_v44 = vld [vmem:[#allocation5 + $0x108c] ss:$16 sps:$4 sm:$0xff]  }
 0x31c   :  { %6928 = vmatpush2.bf16.msra.mxu1 %v12998_v7  ;;  %6896 = vmatprep.subr.bf16.mxu0 %v13003_v24  ;;  %v13049_v7 = vld [vmem:[#allocation5 + $0xe08] ss:$16 sps:$4 sm:$0xff]  }
 0x31d   :  { %6929 = vmatprep.subr.bf16.mxu1 %v13006_v21  ;;  %v13052_v24 = vld [vmem:[#allocation5 + $0x1088] ss:$16 sps:$4 sm:$0xff]   ;;  %v13057_v21 = vld [vmem:[#allocation5 + $0xfec] ss:$16 sps:$4 sm:$0xff]  }
 0x31f   :  { %6897 = vmatpush2.bf16.msra.mxu0 %v13001_v63  ;;  %v13060_v63 = vld [vmem:[#allocation5 + $0x106c] ss:$16 sps:$4 sm:$0xff]  }
 0x320   :  { %6930 = vmatpush2.bf16.msra.mxu1 %v13004_v4  ;;  %6948 = vmatprep.subr.bf16.mxu0 %v13012_v53  ;;  %v13058_v4 = vld [vmem:[#allocation5 + $0x1068] ss:$16 sps:$4 sm:$0xff]   ;;  %v13066_v53 = vld [vmem:[#allocation5 + $0x104c] ss:$16 sps:$4 sm:$0xff]  }
 0x321   :  { %6931 = vmatprep.subr.bf16.mxu1 %v13009_v61  ;;  %v13063_v61 = vld [vmem:[#allocation5 + $0xfcc] ss:$16 sps:$4 sm:$0xff]  }
 0x322   :  { %v6654_v18 = vpop.f32.mrf.mxu0  ;;  %6899 = vmatmul.mubr.bf16.vlgmr.msra.gmra.mxu0 %v13892_v5  ;;  %v13019_v5 = vld [vmem:[#allocation5 + $0xd28] ss:$16 sps:$4 sm:$0xff]  }
 0x323   :  { %v14077_v25 = vadd.f32 %v6654_v18, %v14069_v27  ;;  %6949 = vmatpush1.bf16.msra.mxu0 %v13010_v8  ;;  %6980 = vmatprep.mubr.bf16.mxu0 %v13896_v11  ;;  %v13022_v27 = vld [vmem:[#allocation5 + $0xea8] ss:$16 sps:$4 sm:$0xff]  }
 0x324   :  { %6932 = vmatpush2.bf16.msra.mxu1 %v13007_v42  ;;  %v6656_v1 = vpop.f32.mrf.mxu0  ;;  %6950 = vmatprep.subr.bf16.mxu0 %v13018_v13  ;;  %v13031_v11 = vld [vmem:[#allocation5 + $0xe68] ss:$16 sps:$4 sm:$0xff]   ;;  %v13072_v13 = vld [vmem:[#allocation5 + $0x102c] ss:$16 sps:$4 sm:$0xff]  }
 0x325   :  { %6933 = vmatprep.subr.bf16.mxu1 %v13015_v9  ;;  %v14080_v20 = vadd.f32 %v6656_v1, %v14073_v32  ;;  %v13033_v32 = vld [vmem:[#allocation5 + $0xe6c] ss:$16 sps:$4 sm:$0xff]   ;;  %v13061_v42 = vld [vmem:[#allocation5 + $0xfc8] ss:$16 sps:$4 sm:$0xff]  }
 0x326   :  { %v6658_v3 = vpop.f32.mrf.mxu0  ;;  %v13064_v8 = vld [vmem:[#allocation5 + $0x1048] ss:$16 sps:$4 sm:$0xff]   ;;  %v13069_v9 = vld [vmem:[#allocation5 + $0xfac] ss:$16 sps:$4 sm:$0xff]  }
 0x327   :  { %6951 = vmatpush1.bf16.msra.mxu0 %v13016_v60  ;;  %v13067_v18 = vld [vmem:[#allocation5 + $0xfa8] ss:$16 sps:$4 sm:$0xff]   ;;  %v13075_v60 = vld [vmem:[#allocation5 + $0xf8c] ss:$16 sps:$4 sm:$0xff]  }
 0x328   :  { %6934 = vmatpush2.bf16.msra.mxu1 %v13013_v10  ;;  %v6659_v39 = vpop.f32.mrf.mxu0  ;;  %6952 = vmatprep.subr.bf16.mxu0 %v13024_v31  ;;  %v13070_v10 = vld [vmem:[#allocation5 + $0x1028] ss:$16 sps:$4 sm:$0xff]   ;;  %v13078_v1 = vld [vmem:[#allocation5 + $0x100c] ss:$16 sps:$4 sm:$0xff]  }
 0x329   :  { %6935 = vmatprep.subr.bf16.mxu1 %v13021_v48  ;;  %v13073_v48 = vld [vmem:[#allocation5 + $0xf88] ss:$16 sps:$4 sm:$0xff]   ;;  %v13081_v3 = vld [vmem:[#allocation5 + $0xf6c] ss:$16 sps:$4 sm:$0xff]  }
 0x32a   :  { %v13076_v31 = vld [vmem:[#allocation5 + $0x1008] ss:$16 sps:$4 sm:$0xff]  }
 0x32b   :  { %6953 = vmatpush1.bf16.msra.mxu0 %v13022_v27  ;;  %v13079_v27 = vld [vmem:[#allocation5 + $0xf68] ss:$16 sps:$4 sm:$0xff]  }
 0x32c   :  { %6936 = vmatpush2.bf16.msra.mxu1 %v13019_v5  ;;  %6954 = vmatprep.subr.bf16.mxu0 %v13030_v35  ;;  %v13084_v5 = vld [vmem:[#allocation5 + $0x11ec] ss:$16 sps:$4 sm:$0xff]   ;;  %v13082_v39 = vld [vmem:[#allocation5 + $0x11e8] ss:$16 sps:$4 sm:$0xff]  }
 0x32d   :  { %6937 = vmatprep.subr.bf16.mxu1 %v13027_v26  ;;  %v13087_v26 = vld [vmem:[#allocation5 + $0xf4c] ss:$16 sps:$4 sm:$0xff]  }
 0x32e   :  { %v13090_v35 = vld [vmem:[#allocation5 + $0x11cc] ss:$16 sps:$4 sm:$0xff]  }
 0x32f   :  { %6955 = vmatpush1.bf16.msra.mxu0 %v13028_v17  ;;  %v13088_v17 = vld [vmem:[#allocation5 + $0x11c8] ss:$16 sps:$4 sm:$0xff]  }
 0x330   :  { %6938 = vmatpush2.bf16.msra.mxu1 %v13025_v36  ;;  %6956 = vmatprep.subr.bf16.mxu0 %v13033_v32  ;;  %v13085_v36 = vld [vmem:[#allocation5 + $0xf48] ss:$16 sps:$4 sm:$0xff]   ;;  %v13093_v32 = vld [vmem:[#allocation5 + $0xf2c] ss:$16 sps:$4 sm:$0xff]  }
 0x331   :  { %6989 = vmatprep.subr.bf16.mxu1 %v13036_v33  ;;  %v13096_v33 = vld [vmem:[#allocation5 + $0x11ac] ss:$16 sps:$4 sm:$0xff]  }
 0x333   :  { %v14083_v62 = vpop.f32.mrf.mxu1  ;;  %6940 = vmatmul.mubr.bf16.vlgmr.msra.gmra.mxu1 %v13923_v37  ;;  %6957 = vmatpush1.bf16.msra.mxu0 %v13031_v11  ;;  %v13051_v37 = vld [vmem:[#allocation5 + $0xe0c] ss:$16 sps:$4 sm:$0xff]   ;;  %v13091_v11 = vld [vmem:[#allocation5 + $0xf28] ss:$16 sps:$4 sm:$0xff]  }
 0x334   :  { %6990 = vmatpush1.bf16.msra.mxu1 %v13034_v46  ;;  %6958 = vmatprep.subr.bf16.mxu0 %v13039_v28  ;;  %v13094_v46 = vld [vmem:[#allocation5 + $0x11a8] ss:$16 sps:$4 sm:$0xff]   ;;  %v13099_v28 = vld [vmem:[#allocation5 + $0xf0c] ss:$16 sps:$4 sm:$0xff]  }
 0x335   :  { %v14086_v40 = vpop.f32.mrf.mxu1  ;;  %6991 = vmatprep.subr.bf16.mxu1 %v13042_v30  ;;  %7021 = vmatprep.mubr.bf16.mxu1 %v13931_v50  ;;  %v13055_v50 = vld [vmem:[#allocation5 + $0xfe8] ss:$16 sps:$4 sm:$0xff]   ;;  %v13102_v30 = vld [vmem:[#allocation5 + $0x118c] ss:$16 sps:$4 sm:$0xff]  }
 0x337   :  { %v6699_v12 = vpop.f32.mrf.mxu1  ;;  %6959 = vmatpush1.bf16.msra.mxu0 %v13037_v52  ;;  %v14090_v52 = vsub.s32 2, %v13803_v43 }
 0x338   :  { %6992 = vmatpush1.bf16.msra.mxu1 %v13040_v57  ;;  %6960 = vmatprep.subr.bf16.mxu0 %v13045_v41  ;;  %v14093_v57 = vsub.s32 3, %v13803_v43  ;;  %v13097_v41 = vld [vmem:[#allocation5 + $0xf08] ss:$16 sps:$4 sm:$0xff]   ;;  %v13105_v12 = vld [vmem:[#allocation5 + $0x116c] ss:$16 sps:$4 sm:$0xff]  }
 0x339   :  { %v6700_v16 = vpop.f32.mrf.mxu1  ;;  %6993 = vmatprep.subr.bf16.mxu1 %v13048_v45  ;;  %v13100_v45 = vld [vmem:[#allocation5 + $0x1188] ss:$16 sps:$4 sm:$0xff]  }
 0x33b   :  { %6961 = vmatpush1.bf16.msra.mxu0 %v13043_v56  ;;  %v13108_v56 = vld [vmem:[#allocation5 + $0x12ec] ss:$16 sps:$4 sm:$0xff]  }
 0x33c   :  { %6994 = vmatpush1.bf16.msra.mxu1 %v13046_v19  ;;  %6962 = vmatprep.subr.bf16.mxu0 %v13051_v37  ;;  %v13457_v19 = vld [vmem:[#allocation7] sm:$0xf] }
 0x33d   :  { %6995 = vmatprep.subr.bf16.mxu1 %v13054_v44  ;;  %v1313_v16 = vrot.slane %v13457_v19, %v14090_v52  ;;  %v1317_v37 = vrot.slane %v13457_v19, %v14093_v57  ;;  %v13103_v44 = vld [vmem:[#allocation5 + $0x1168] ss:$16 sps:$4 sm:$0xff]  }
 0x33e   :  { %v13145_v19 = vld [vmem:[#allocation5 + $0x1208] ss:$16 sps:$4 sm:$0xff]  }
 0x33f   :  { %6963 = vmatpush1.bf16.msra.mxu0 %v13049_v7  ;;  %v13106_v7 = vld [vmem:[#allocation5 + $0x12e8] ss:$16 sps:$4 sm:$0xff]  }
 0x340   :  { %6996 = vmatpush1.bf16.msra.mxu1 %v13052_v24  ;;  %6964 = vmatprep.subr.bf16.mxu0 %v13057_v21  ;;  %v13111_v24 = vld [vmem:[#allocation5 + $0x114c] ss:$16 sps:$4 sm:$0xff]  }
 0x341   :  { %6997 = vmatprep.subr.bf16.mxu1 %v13060_v63  ;;  %v13114_v21 = vld [vmem:[#allocation5 + $0x12cc] ss:$16 sps:$4 sm:$0xff]   ;;  %v6696_v63 = vadd.f32 %v14083_v62, %v1313_v16  ;;  %v13115_v62 = vld [vmem:[#allocation5 + $0x1128] ss:$16 sps:$4 sm:$0xff]  }
 0x342   :  { %v13148_v16 = vld [vmem:[#allocation5 + $0x1488] ss:$16 sps:$4 sm:$0xff]  }
 0x343   :  { %6965 = vmatpush2.bf16.msra.mxu0 %v13055_v50 }
 0x344   :  { %6998 = vmatpush1.bf16.msra.mxu1 %v13058_v4  ;;  %6966 = vmatprep.subr.bf16.mxu0 %v13063_v61  ;;  %v6698_v4 = vadd.f32 %v14086_v40, %v1317_v37  ;;  %v13123_v40 = vld [vmem:[#allocation5 + $0x110c] ss:$16 sps:$4 sm:$0xff]  }
 0x345   :  { %6999 = vmatprep.subr.bf16.mxu1 %v13066_v53  ;;  %v13109_v53 = vld [vmem:[#allocation5 + $0x1148] ss:$16 sps:$4 sm:$0xff]   ;;  %v13153_v37 = vld [vmem:[#allocation5 + $0x13ec] ss:$16 sps:$4 sm:$0xff]  }
 0x347   :  { %6967 = vmatpush2.bf16.msra.mxu0 %v13061_v42  ;;  %v13112_v42 = vld [vmem:[#allocation5 + $0x12c8] ss:$16 sps:$4 sm:$0xff]  }
 0x348   :  { %7000 = vmatpush1.bf16.msra.mxu1 %v13064_v8  ;;  %6968 = vmatprep.subr.bf16.mxu0 %v13069_v9  ;;  %v13117_v9 = vld [vmem:[#allocation5 + $0x112c] ss:$16 sps:$4 sm:$0xff]  }
 0x349   :  { %7001 = vmatprep.subr.bf16.mxu1 %v13072_v13  ;;  %v13120_v13 = vld [vmem:[#allocation5 + $0x12ac] ss:$16 sps:$4 sm:$0xff]  }
 0x34b   :  { %6969 = vmatpush2.bf16.msra.mxu0 %v13067_v18 }
 0x34c   :  { %7002 = vmatpush1.bf16.msra.mxu1 %v13070_v10  ;;  %6970 = vmatprep.subr.bf16.mxu0 %v13075_v60 }
 0x34d   :  { %7003 = vmatprep.subr.bf16.mxu1 %v13078_v1  ;;  %v13126_v1 = vld [vmem:[#allocation5 + $0x128c] ss:$16 sps:$4 sm:$0xff]  }
 0x34f   :  { %6971 = vmatpush2.bf16.msra.mxu0 %v13073_v48  ;;  %v13121_v48 = vld [vmem:[#allocation5 + $0x1108] ss:$16 sps:$4 sm:$0xff]  }
 0x350   :  { %7004 = vmatpush1.bf16.msra.mxu1 %v13076_v31  ;;  %6972 = vmatprep.subr.bf16.mxu0 %v13081_v3  ;;  %v13124_v31 = vld [vmem:[#allocation5 + $0x1288] ss:$16 sps:$4 sm:$0xff]   ;;  %v13129_v3 = vld [vmem:[#allocation5 + $0x126c] ss:$16 sps:$4 sm:$0xff]  }
 0x351   :  { %7005 = vmatprep.subr.bf16.mxu1 %v13084_v5  ;;  %v13132_v5 = vld [vmem:[#allocation5 + $0x14ec] ss:$16 sps:$4 sm:$0xff]  }
 0x353   :  { %6973 = vmatpush2.bf16.msra.mxu0 %v13079_v27  ;;  %v13130_v27 = vld [vmem:[#allocation5 + $0x14e8] ss:$16 sps:$4 sm:$0xff]  }
 0x354   :  { %7006 = vmatpush2.bf16.msra.mxu1 %v13082_v39  ;;  %6974 = vmatprep.subr.bf16.mxu0 %v13087_v26  ;;  %v13135_v39 = vld [vmem:[#allocation5 + $0x124c] ss:$16 sps:$4 sm:$0xff]  }
 0x355   :  { %7007 = vmatprep.subr.bf16.mxu1 %v13090_v35  ;;  %v13138_v26 = vld [vmem:[#allocation5 + $0x14cc] ss:$16 sps:$4 sm:$0xff]  }
 0x357   :  { %6975 = vmatpush2.bf16.msra.mxu0 %v13085_v36 }
 0x358   :  { %7008 = vmatpush2.bf16.msra.mxu1 %v13088_v17  ;;  %6976 = vmatprep.subr.bf16.mxu0 %v13093_v32  ;;  %v13133_v17 = vld [vmem:[#allocation5 + $0x1248] ss:$16 sps:$4 sm:$0xff]  }
 0x359   :  { %7009 = vmatprep.subr.bf16.mxu1 %v13096_v33  ;;  %v13136_v32 = vld [vmem:[#allocation5 + $0x14c8] ss:$16 sps:$4 sm:$0xff]  }
 0x35b   :  { %6977 = vmatpush2.bf16.msra.mxu0 %v13091_v11  ;;  %v13141_v11 = vld [vmem:[#allocation5 + $0x122c] ss:$16 sps:$4 sm:$0xff]  }
 0x35c   :  { %7010 = vmatpush2.bf16.msra.mxu1 %v13094_v46  ;;  %6978 = vmatprep.subr.bf16.mxu0 %v13099_v28  ;;  %v13144_v46 = vld [vmem:[#allocation5 + $0x14ac] ss:$16 sps:$4 sm:$0xff]  }
 0x35d   :  { %7011 = vmatprep.subr.bf16.mxu1 %v13102_v30 }
 0x35f   :  { %6979 = vmatpush2.bf16.msra.mxu0 %v13097_v41  ;;  %v13139_v41 = vld [vmem:[#allocation5 + $0x1228] ss:$16 sps:$4 sm:$0xff]  }
 0x360   :  { %7012 = vmatpush2.bf16.msra.mxu1 %v13100_v45  ;;  %7030 = vmatprep.subr.bf16.mxu0 %v13108_v56  ;;  %v13150_v56 = vld [vmem:[#allocation5 + $0x148c] ss:$16 sps:$4 sm:$0xff]  }
 0x361   :  { %7013 = vmatprep.subr.bf16.mxu1 %v13105_v12  ;;  %v13147_v12 = vld [vmem:[#allocation5 + $0x120c] ss:$16 sps:$4 sm:$0xff]  }
 0x362   :  { %v6736_v50 = vpop.f32.mrf.mxu0  ;;  %6981 = vmatmul.mubr.bf16.vlgmr.msra.gmra.mxu0 %v13927_v38  ;;  %v13118_v38 = vld [vmem:[#allocation5 + $0x12a8] ss:$16 sps:$4 sm:$0xff]  }
 0x363   :  { %v6737_v61 = vadd.f32 %v6736_v50, %v6696_v63  ;;  %7031 = vmatpush1.bf16.msra.mxu0 %v13106_v7  ;;  %7062 = vmatprep.mubr.bf16.mxu0 %v13933_v58  ;;  %v13127_v58 = vld [vmem:[#allocation5 + $0x1268] ss:$16 sps:$4 sm:$0xff]  }
 0x364   :  { %7014 = vmatpush2.bf16.msra.mxu1 %v13103_v44  ;;  %v6738_v8 = vpop.f32.mrf.mxu0  ;;  %7032 = vmatprep.subr.bf16.mxu0 %v13114_v21  ;;  %v13156_v44 = vld [vmem:[#allocation5 + $0x146c] ss:$16 sps:$4 sm:$0xff]   ;;  %v13154_v7 = vld [vmem:[#allocation5 + $0x1468] ss:$16 sps:$4 sm:$0xff]  }
 0x365   :  { %7015 = vmatprep.subr.bf16.mxu1 %v13111_v24  ;;  %v6739_v18 = vadd.f32 %v6738_v8, %v6698_v4  ;;  %v13159_v24 = vld [vmem:[#allocation5 + $0x13cc] ss:$16 sps:$4 sm:$0xff]   ;;  %v13157_v63 = vld [vmem:[#allocation5 + $0x13c8] ss:$16 sps:$4 sm:$0xff]  }
 0x366   :  { %v6740_v10 = vpop.f32.mrf.mxu0  ;;  %v13162_v21 = vld [vmem:[#allocation5 + $0x144c] ss:$16 sps:$4 sm:$0xff]   ;;  %v13160_v50 = vld [vmem:[#allocation5 + $0x1448] ss:$16 sps:$4 sm:$0xff]  }
 0x367   :  { %7033 = vmatpush1.bf16.msra.mxu0 %v13112_v42  ;;  %v13165_v4 = vld [vmem:[#allocation5 + $0x13ac] ss:$16 sps:$4 sm:$0xff]   ;;  %v13166_v42 = vld [vmem:[#allocation5 + $0x1428] ss:$16 sps:$4 sm:$0xff]  }
 0x368   :  { %7016 = vmatpush2.bf16.msra.mxu1 %v13109_v53  ;;  %v6741_v60 = vpop.f32.mrf.mxu0  ;;  %7034 = vmatprep.subr.bf16.mxu0 %v13120_v13  ;;  %v13163_v53 = vld [vmem:[#allocation5 + $0x13a8] ss:$16 sps:$4 sm:$0xff]   ;;  %v13171_v8 = vld [vmem:[#allocation5 + $0x138c] ss:$16 sps:$4 sm:$0xff]  }
 0x369   :  { %7017 = vmatprep.subr.bf16.mxu1 %v13117_v9  ;;  %v13174_v9 = vld [vmem:[#allocation5 + $0x140c] ss:$16 sps:$4 sm:$0xff]   ;;  %v13169_v13 = vld [vmem:[#allocation5 + $0x1388] ss:$16 sps:$4 sm:$0xff]  }
 0x36a   :  { %v13177_v10 = vld [vmem:[#allocation5 + $0x136c] ss:$16 sps:$4 sm:$0xff]   ;;  %v13178_v60 = vld [vmem:[#allocation5 + $0x15e8] ss:$16 sps:$4 sm:$0xff]  }
 0x36b   :  { %7035 = vmatpush1.bf16.msra.mxu0 %v13118_v38  ;;  %v13175_v38 = vld [vmem:[#allocation5 + $0x1368] ss:$16 sps:$4 sm:$0xff]  }
 0x36c   :  { %7018 = vmatpush2.bf16.msra.mxu1 %v13115_v62  ;;  %7036 = vmatprep.subr.bf16.mxu0 %v13126_v1  ;;  %v13180_v62 = vld [vmem:[#allocation5 + $0x15ec] ss:$16 sps:$4 sm:$0xff]  }
 0x36d   :  { %7019 = vmatprep.subr.bf16.mxu1 %v13123_v40  ;;  %v13183_v40 = vld [vmem:[#allocation5 + $0x134c] ss:$16 sps:$4 sm:$0xff]  }
 0x36e   :  { %v13186_v1 = vld [vmem:[#allocation5 + $0x15cc] ss:$16 sps:$4 sm:$0xff]  }
 0x36f   :  { %7037 = vmatpush1.bf16.msra.mxu0 %v13124_v31  ;;  %v13184_v31 = vld [vmem:[#allocation5 + $0x15c8] ss:$16 sps:$4 sm:$0xff]  }
 0x370   :  { %7020 = vmatpush2.bf16.msra.mxu1 %v13121_v48  ;;  %7038 = vmatprep.subr.bf16.mxu0 %v13129_v3  ;;  %v13181_v48 = vld [vmem:[#allocation5 + $0x1348] ss:$16 sps:$4 sm:$0xff]   ;;  %v13189_v3 = vld [vmem:[#allocation5 + $0x132c] ss:$16 sps:$4 sm:$0xff]  }
 0x371   :  { %7071 = vmatprep.subr.bf16.mxu1 %v13132_v5  ;;  %v13192_v5 = vld [vmem:[#allocation5 + $0x15ac] ss:$16 sps:$4 sm:$0xff]  }
 0x373   :  { %v6777_v35 = vpop.f32.mrf.mxu1  ;;  %7022 = vmatmul.mubr.bf16.vlgmr.msra.gmra.mxu1 %v13958_v59  ;;  %7039 = vmatpush1.bf16.msra.mxu0 %v13127_v58  ;;  %v13142_v59 = vld [vmem:[#allocation5 + $0x14a8] ss:$16 sps:$4 sm:$0xff]  }
 0x374   :  { %v14102_v36 = vadd.f32 %v6777_v35, %v6737_v61  ;;  %7072 = vmatpush1.bf16.msra.mxu1 %v13130_v27  ;;  %7040 = vmatprep.subr.bf16.mxu0 %v13135_v39  ;;  %v13168_v61 = vld [vmem:[#allocation5 + $0x142c] ss:$16 sps:$4 sm:$0xff]   ;;  %v13187_v58 = vld [vmem:[#allocation5 + $0x1328] ss:$16 sps:$4 sm:$0xff]  }
 0x375   :  { %v6779_v33 = vpop.f32.mrf.mxu1  ;;  %7073 = vmatprep.subr.bf16.mxu1 %v13138_v26  ;;  %7103 = vmatprep.mubr.bf16.mxu1 %v13964_v0  ;;  %v13151_v0 = vld [vmem:[#allocation5 + $0x13e8] ss:$16 sps:$4 sm:$0xff]   ;;  %v13195_v39 = vld [vmem:[#allocation5 + $0x130c] ss:$16 sps:$4 sm:$0xff]  }
 0x376   :  { %v14104_v28 = vadd.f32 %v6779_v33, %v6739_v18  ;;  %v13172_v18 = vld [vmem:[#allocation5 + $0x1408] ss:$16 sps:$4 sm:$0xff]   ;;  %v13198_v26 = vld [vmem:[#allocation5 + $0x158c] ss:$16 sps:$4 sm:$0xff]  }
 0x377   :  { %v6781_v30 = vpop.f32.mrf.mxu1  ;;  %7041 = vmatpush1.bf16.msra.mxu0 %v13133_v17  ;;  %v13190_v27 = vld [vmem:[#allocation5 + $0x15a8] ss:$16 sps:$4 sm:$0xff]   ;;  %v13204_v33 = vld [vmem:[#allocation5 + $0x16ec] ss:$16 sps:$4 sm:$0xff]  }
 0x378   :  { %7074 = vmatpush1.bf16.msra.mxu1 %v13136_v32  ;;  %7042 = vmatprep.subr.bf16.mxu0 %v13141_v11  ;;  %v13193_v35 = vld [vmem:[#allocation5 + $0x1308] ss:$16 sps:$4 sm:$0xff]   ;;  %v13201_v32 = vld [vmem:[#allocation5 + $0x156c] ss:$16 sps:$4 sm:$0xff]  }
 0x379   :  { %v6782_v45 = vpop.f32.mrf.mxu1  ;;  %7075 = vmatprep.subr.bf16.mxu1 %v13144_v46  ;;  %v13196_v17 = vld [vmem:[#allocation5 + $0x1588] ss:$16 sps:$4 sm:$0xff]   ;;  %v13207_v30 = vld [vmem:[#allocation5 + $0x154c] ss:$16 sps:$4 sm:$0xff]  }
 0x37a   :  { %v13199_v11 = vld [vmem:[#allocation5 + $0x1568] ss:$16 sps:$4 sm:$0xff]  }
 0x37b   :  { %7043 = vmatpush1.bf16.msra.mxu0 %v13139_v41  ;;  %v13202_v46 = vld [vmem:[#allocation5 + $0x16e8] ss:$16 sps:$4 sm:$0xff]   ;;  %v13210_v41 = vld [vmem:[#allocation5 + $0x16cc] ss:$16 sps:$4 sm:$0xff]  }
 0x37c   :  { %7076 = vmatpush1.bf16.msra.mxu1 %v13142_v59  ;;  %7044 = vmatprep.subr.bf16.mxu0 %v13147_v12  ;;  %v13205_v12 = vld [vmem:[#allocation5 + $0x1548] ss:$16 sps:$4 sm:$0xff]  }
 0x37d   :  { %7077 = vmatprep.subr.bf16.mxu1 %v13150_v56  ;;  %v13208_v56 = vld [vmem:[#allocation5 + $0x16c8] ss:$16 sps:$4 sm:$0xff]  }
 0x37f   :  { %7045 = vmatpush1.bf16.msra.mxu0 %v13145_v19 }
 0x380   :  { %7078 = vmatpush1.bf16.msra.mxu1 %v13148_v16  ;;  %7046 = vmatprep.subr.bf16.mxu0 %v13153_v37  ;;  %v13213_v16 = vld [vmem:[#allocation5 + $0x152c] ss:$16 sps:$4 sm:$0xff]  }
 0x381   :  { %7079 = vmatprep.subr.bf16.mxu1 %v13156_v44  ;;  %v13216_v37 = vld [vmem:[#allocation5 + $0x16ac] ss:$16 sps:$4 sm:$0xff]  }
 0x383   :  { %7047 = vmatpush2.bf16.msra.mxu0 %v13151_v0 }
 0x384   :  { %7080 = vmatpush1.bf16.msra.mxu1 %v13154_v7  ;;  %7048 = vmatprep.subr.bf16.mxu0 %v13159_v24  ;;  %v13211_v7 = vld [vmem:[#allocation5 + $0x1528] ss:$16 sps:$4 sm:$0xff]  }
 0x385   :  { %7081 = vmatprep.subr.bf16.mxu1 %v13162_v21  ;;  %v13222_v21 = vld [vmem:[#allocation5 + $0x168c] ss:$16 sps:$4 sm:$0xff]  }
 0x387   :  { %7049 = vmatpush2.bf16.msra.mxu0 %v13157_v63  ;;  %v13217_v63 = vld [vmem:[#allocation5 + $0x1508] ss:$16 sps:$4 sm:$0xff]  }
 0x388   :  { %7082 = vmatpush1.bf16.msra.mxu1 %v13160_v50  ;;  %7050 = vmatprep.subr.bf16.mxu0 %v13165_v4  ;;  %v13220_v50 = vld [vmem:[#allocation5 + $0x1688] ss:$16 sps:$4 sm:$0xff]   ;;  %v13225_v4 = vld [vmem:[#allocation5 + $0x166c] ss:$16 sps:$4 sm:$0xff]  }
 0x389   :  { %7083 = vmatprep.subr.bf16.mxu1 %v13168_v61  ;;  %v13226_v61 = vld [vmem:[#allocation5 + $0x18e8] ss:$16 sps:$4 sm:$0xff]  }
 0x38b   :  { %7051 = vmatpush2.bf16.msra.mxu0 %v13163_v53  ;;  %v13231_v53 = vld [vmem:[#allocation5 + $0x164c] ss:$16 sps:$4 sm:$0xff]  }
 0x38c   :  { %7084 = vmatpush1.bf16.msra.mxu1 %v13166_v42  ;;  %7052 = vmatprep.subr.bf16.mxu0 %v13171_v8  ;;  %v13234_v42 = vld [vmem:[#allocation5 + $0x18cc] ss:$16 sps:$4 sm:$0xff]  }
 0x38d   :  { %7085 = vmatprep.subr.bf16.mxu1 %v13174_v9 }
 0x38f   :  { %7053 = vmatpush2.bf16.msra.mxu0 %v13169_v13  ;;  %v13229_v13 = vld [vmem:[#allocation5 + $0x1648] ss:$16 sps:$4 sm:$0xff]  }
 0x390   :  { %7086 = vmatpush1.bf16.msra.mxu1 %v13172_v18  ;;  %7054 = vmatprep.subr.bf16.mxu0 %v13177_v10  ;;  %v13232_v18 = vld [vmem:[#allocation5 + $0x18c8] ss:$16 sps:$4 sm:$0xff]  }
 0x391   :  { %7087 = vmatprep.subr.bf16.mxu1 %v13180_v62  ;;  %v13237_v62 = vld [vmem:[#allocation5 + $0x162c] ss:$16 sps:$4 sm:$0xff]  }
 0x393   :  { %7055 = vmatpush2.bf16.msra.mxu0 %v13175_v38  ;;  %v13240_v38 = vld [vmem:[#allocation5 + $0x18ac] ss:$16 sps:$4 sm:$0xff]  }
 0x394   :  { %7088 = vmatpush2.bf16.msra.mxu1 %v13178_v60  ;;  %7056 = vmatprep.subr.bf16.mxu0 %v13183_v40 }
 0x395   :  { %7089 = vmatprep.subr.bf16.mxu1 %v13186_v1  ;;  %v13235_v1 = vld [vmem:[#allocation5 + $0x1628] ss:$16 sps:$4 sm:$0xff]  }
 0x397   :  { %7057 = vmatpush2.bf16.msra.mxu0 %v13181_v48 }
 0x398   :  { %7090 = vmatpush2.bf16.msra.mxu1 %v13184_v31  ;;  %7058 = vmatprep.subr.bf16.mxu0 %v13189_v3  ;;  %v13243_v31 = vld [vmem:[#allocation5 + $0x160c] ss:$16 sps:$4 sm:$0xff]  }
 0x399   :  { %7091 = vmatprep.subr.bf16.mxu1 %v13192_v5  ;;  %v13246_v3 = vld [vmem:[#allocation5 + $0x188c] ss:$16 sps:$4 sm:$0xff]   ;;  %v13241_v5 = vld [vmem:[#allocation5 + $0x1608] ss:$16 sps:$4 sm:$0xff]  }
 0x39b   :  { %7059 = vmatpush2.bf16.msra.mxu0 %v13187_v58  ;;  %v13244_v58 = vld [vmem:[#allocation5 + $0x1888] ss:$16 sps:$4 sm:$0xff]  }
 0x39c   :  { %7092 = vmatpush2.bf16.msra.mxu1 %v13190_v27  ;;  %7060 = vmatprep.subr.bf16.mxu0 %v13195_v39  ;;  %v13249_v27 = vld [vmem:[#allocation5 + $0x17ec] ss:$16 sps:$4 sm:$0xff]  }
 0x39d   :  { %7093 = vmatprep.subr.bf16.mxu1 %v13198_v26  ;;  %v13252_v39 = vld [vmem:[#allocation5 + $0x186c] ss:$16 sps:$4 sm:$0xff]   ;;  %v13250_v26 = vld [vmem:[#allocation5 + $0x1868] ss:$16 sps:$4 sm:$0xff]  }
 0x39f   :  { %7061 = vmatpush2.bf16.msra.mxu0 %v13193_v35  ;;  %v13255_v35 = vld [vmem:[#allocation5 + $0x17cc] ss:$16 sps:$4 sm:$0xff]  }
 0x3a0   :  { %7094 = vmatpush2.bf16.msra.mxu1 %v13196_v17  ;;  %7112 = vmatprep.subr.bf16.mxu0 %v13204_v33  ;;  %v13258_v17 = vld [vmem:[#allocation5 + $0x184c] ss:$16 sps:$4 sm:$0xff]   ;;  %v13256_v33 = vld [vmem:[#allocation5 + $0x1848] ss:$16 sps:$4 sm:$0xff]  }
 0x3a1   :  { %7095 = vmatprep.subr.bf16.mxu1 %v13201_v32  ;;  %v13253_v32 = vld [vmem:[#allocation5 + $0x17c8] ss:$16 sps:$4 sm:$0xff]  }
 0x3a2   :  { %v6818_v59 = vpop.f32.mrf.mxu0  ;;  %7063 = vmatmul.mubr.bf16.vlgmr.msra.gmra.mxu0 %v13962_v55  ;;  %v13214_v55 = vld [vmem:[#allocation5 + $0x16a8] ss:$16 sps:$4 sm:$0xff]  }
 0x3a3   :  { %v6819_v45 = vadd.f32 %v6818_v59, %v14102_v36  ;;  %7113 = vmatpush1.bf16.msra.mxu0 %v13202_v46  ;;  %7144 = vmatprep.mubr.bf16.mxu0 %v13966_v2  ;;  %v13219_v36 = vld [vmem:[#allocation5 + $0x150c] ss:$16 sps:$4 sm:$0xff]   ;;  %v13223_v2 = vld [vmem:[#allocation5 + $0x1668] ss:$16 sps:$4 sm:$0xff]  }
 0x3a4   :  { %7096 = vmatpush2.bf16.msra.mxu1 %v13199_v11  ;;  %v6820_v19 = vpop.f32.mrf.mxu0  ;;  %7114 = vmatprep.subr.bf16.mxu0 %v13210_v41  ;;  %v13261_v11 = vld [vmem:[#allocation5 + $0x17ac] ss:$16 sps:$4 sm:$0xff]   ;;  %v13262_v41 = vld [vmem:[#allocation5 + $0x1828] ss:$16 sps:$4 sm:$0xff]  }
 0x3a5   :  { %7097 = vmatprep.subr.bf16.mxu1 %v13207_v30  ;;  %v6821_v44 = vadd.f32 %v6820_v19, %v14104_v28  ;;  %v13228_v28 = vld [vmem:[#allocation5 + $0x18ec] ss:$16 sps:$4 sm:$0xff]   ;;  %v13259_v30 = vld [vmem:[#allocation5 + $0x17a8] ss:$16 sps:$4 sm:$0xff]  }
 0x3a6   :  { %v6822_v0 = vpop.f32.mrf.mxu0  ;;  %v13264_v46 = vld [vmem:[#allocation5 + $0x182c] ss:$16 sps:$4 sm:$0xff]  }
 0x3a7   :  { %7115 = vmatpush1.bf16.msra.mxu0 %v13208_v56  ;;  %v13267_v59 = vld [vmem:[#allocation5 + $0x178c] ss:$16 sps:$4 sm:$0xff]   ;;  %v13268_v56 = vld [vmem:[#allocation5 + $0x1808] ss:$16 sps:$4 sm:$0xff]  }
 0x3a8   :  { %7098 = vmatpush2.bf16.msra.mxu1 %v13205_v12  ;;  %v6823_v24 = vpop.f32.mrf.mxu0  ;;  %7116 = vmatprep.subr.bf16.mxu0 %v13216_v37  ;;  %v13265_v12 = vld [vmem:[#allocation5 + $0x1788] ss:$16 sps:$4 sm:$0xff]   ;;  %v13273_v19 = vld [vmem:[#allocation5 + $0x176c] ss:$16 sps:$4 sm:$0xff]  }
 0x3a9   :  { %7099 = vmatprep.subr.bf16.mxu1 %v13213_v16  ;;  %v13276_v16 = vld [vmem:[#allocation5 + $0x19ec] ss:$16 sps:$4 sm:$0xff]   ;;  %v13271_v37 = vld [vmem:[#allocation5 + $0x1768] ss:$16 sps:$4 sm:$0xff]  }
 0x3aa   :  { %v13279_v0 = vld [vmem:[#allocation5 + $0x174c] ss:$16 sps:$4 sm:$0xff]   ;;  %v13280_v24 = vld [vmem:[#allocation5 + $0x19c8] ss:$16 sps:$4 sm:$0xff]  }
 0x3ab   :  { %7117 = vmatpush1.bf16.msra.mxu0 %v13214_v55  ;;  %v13277_v55 = vld [vmem:[#allocation5 + $0x1748] ss:$16 sps:$4 sm:$0xff]  }
 0x3ac   :  { %7100 = vmatpush2.bf16.msra.mxu1 %v13211_v7  ;;  %7118 = vmatprep.subr.bf16.mxu0 %v13222_v21  ;;  %v13282_v7 = vld [vmem:[#allocation5 + $0x19cc] ss:$16 sps:$4 sm:$0xff]  }
 0x3ad   :  { %7101 = vmatprep.subr.bf16.mxu1 %v13219_v36  ;;  %v13285_v36 = vld [vmem:[#allocation5 + $0x172c] ss:$16 sps:$4 sm:$0xff]  }
 0x3ae   :  { %v13288_v21 = vld [vmem:[#allocation5 + $0x19ac] ss:$16 sps:$4 sm:$0xff]  }
 0x3af   :  { %7119 = vmatpush1.bf16.msra.mxu0 %v13220_v50  ;;  %v13286_v50 = vld [vmem:[#allocation5 + $0x19a8] ss:$16 sps:$4 sm:$0xff]  }
 0x3b0   :  { %7102 = vmatpush2.bf16.msra.mxu1 %v13217_v63  ;;  %7120 = vmatprep.subr.bf16.mxu0 %v13225_v4  ;;  %v13283_v63 = vld [vmem:[#allocation5 + $0x1728] ss:$16 sps:$4 sm:$0xff]   ;;  %v13291_v4 = vld [vmem:[#allocation5 + $0x170c] ss:$16 sps:$4 sm:$0xff]  }
 0x3b1   :  { %7153 = vmatprep.subr.bf16.mxu1 %v13228_v28  ;;  %v13294_v28 = vld [vmem:[#allocation5 + $0x198c] ss:$16 sps:$4 sm:$0xff]  }
 0x3b3   :  { %v6859_v8 = vpop.f32.mrf.mxu1  ;;  %7104 = vmatmul.mubr.bf16.vlgmr.msra.gmra.mxu1 %v13993_v14  ;;  %7121 = vmatpush1.bf16.msra.mxu0 %v13223_v2  ;;  %v13238_v14 = vld [vmem:[#allocation5 + $0x18a8] ss:$16 sps:$4 sm:$0xff]  }
 0x3b4   :  { %v14112_v9 = vadd.f32 %v6859_v8, %v6819_v45  ;;  %7154 = vmatpush1.bf16.msra.mxu1 %v13226_v61  ;;  %7122 = vmatprep.subr.bf16.mxu0 %v13231_v53  ;;  %v13270_v45 = vld [vmem:[#allocation5 + $0x180c] ss:$16 sps:$4 sm:$0xff]   ;;  %v13289_v2 = vld [vmem:[#allocation5 + $0x1708] ss:$16 sps:$4 sm:$0xff]  }
 0x3b5   :  { %v6861_v10 = vpop.f32.mrf.mxu1  ;;  %7155 = vmatprep.subr.bf16.mxu1 %v13234_v42  ;;  %7185 = vmatprep.mubr.bf16.mxu1 %v13999_v22  ;;  %v13247_v22 = vld [vmem:[#allocation5 + $0x17e8] ss:$16 sps:$4 sm:$0xff]   ;;  %v13297_v53 = vld [vmem:[#allocation5 + $0x196c] ss:$16 sps:$4 sm:$0xff]  }
 0x3b6   :  { %v14114_v60 = vadd.f32 %v6861_v10, %v6821_v44  ;;  %v13274_v44 = vld [vmem:[#allocation5 + $0x19e8] ss:$16 sps:$4 sm:$0xff]   ;;  %v13300_v42 = vld [vmem:[#allocation5 + $0x1aec] ss:$16 sps:$4 sm:$0xff]  }
 0x3b7   :  { %v6863_v40 = vpop.f32.mrf.mxu1  ;;  %7123 = vmatpush1.bf16.msra.mxu0 %v13229_v13  ;;  %v13292_v61 = vld [vmem:[#allocation5 + $0x1988] ss:$16 sps:$4 sm:$0xff]   ;;  %v13306_v10 = vld [vmem:[#allocation5 + $0x1acc] ss:$16 sps:$4 sm:$0xff]  }
 0x3b8   :  { %7156 = vmatpush1.bf16.msra.mxu1 %v13232_v18  ;;  %7124 = vmatprep.subr.bf16.mxu0 %v13237_v62  ;;  %v13295_v8 = vld [vmem:[#allocation5 + $0x1968] ss:$16 sps:$4 sm:$0xff]   ;;  %v13303_v18 = vld [vmem:[#allocation5 + $0x194c] ss:$16 sps:$4 sm:$0xff]  }
 0x3b9   :  { %v6864_v48 = vpop.f32.mrf.mxu1  ;;  %7157 = vmatprep.subr.bf16.mxu1 %v13240_v38  ;;  %v13298_v13 = vld [vmem:[#allocation5 + $0x1ae8] ss:$16 sps:$4 sm:$0xff]  }
 0x3ba   :  { %v13301_v40 = vld [vmem:[#allocation5 + $0x1948] ss:$16 sps:$4 sm:$0xff]   ;;  %v13309_v48 = vld [vmem:[#allocation5 + $0x192c] ss:$16 sps:$4 sm:$0xff]  }
 0x3bb   :  { %7125 = vmatpush1.bf16.msra.mxu0 %v13235_v1  ;;  %v13304_v1 = vld [vmem:[#allocation5 + $0x1ac8] ss:$16 sps:$4 sm:$0xff]  }
 0x3bc   :  { %7158 = vmatpush1.bf16.msra.mxu1 %v13238_v14  ;;  %7126 = vmatprep.subr.bf16.mxu0 %v13243_v31  ;;  %v13312_v31 = vld [vmem:[#allocation5 + $0x1aac] ss:$16 sps:$4 sm:$0xff]  }
 0x3bd   :  { %7159 = vmatprep.subr.bf16.mxu1 %v13246_v3 }
 0x3bf   :  { %7127 = vmatpush1.bf16.msra.mxu0 %v13241_v5 }
 0x3c0   :  { %7160 = vmatpush1.bf16.msra.mxu1 %v13244_v58  ;;  %7128 = vmatprep.subr.bf16.mxu0 %v13249_v27  ;;  %v13307_v58 = vld [vmem:[#allocation5 + $0x1928] ss:$16 sps:$4 sm:$0xff]  }
 0x3c1   :  { %7161 = vmatprep.subr.bf16.mxu1 %v13252_v39  ;;  %v13318_v39 = vld [vmem:[#allocation5 + $0x1a8c] ss:$16 sps:$4 sm:$0xff]  }
 0x3c3   :  { %7129 = vmatpush2.bf16.msra.mxu0 %v13247_v22  ;;  %v13313_v22 = vld [vmem:[#allocation5 + $0x1908] ss:$16 sps:$4 sm:$0xff]  }
 0x3c4   :  { %7162 = vmatpush1.bf16.msra.mxu1 %v13250_v26  ;;  %7130 = vmatprep.subr.bf16.mxu0 %v13255_v35  ;;  %v13316_v26 = vld [vmem:[#allocation5 + $0x1a88] ss:$16 sps:$4 sm:$0xff]   ;;  %v13321_v35 = vld [vmem:[#allocation5 + $0x1a6c] ss:$16 sps:$4 sm:$0xff]  }
 0x3c5   :  { %7163 = vmatprep.subr.bf16.mxu1 %v13258_v17  ;;  %v13322_v17 = vld [vmem:[#allocation5 + $0x1ce8] ss:$16 sps:$4 sm:$0xff]  }
 0x3c7   :  { %7131 = vmatpush2.bf16.msra.mxu0 %v13253_v32  ;;  %v13327_v32 = vld [vmem:[#allocation5 + $0x1a4c] ss:$16 sps:$4 sm:$0xff]  }
 0x3c8   :  { %7164 = vmatpush1.bf16.msra.mxu1 %v13256_v33  ;;  %7132 = vmatprep.subr.bf16.mxu0 %v13261_v11  ;;  %v13330_v33 = vld [vmem:[#allocation5 + $0x1ccc] ss:$16 sps:$4 sm:$0xff]  }
 0x3c9   :  { %7165 = vmatprep.subr.bf16.mxu1 %v13264_v46 }
 0x3cb   :  { %7133 = vmatpush2.bf16.msra.mxu0 %v13259_v30  ;;  %v13325_v30 = vld [vmem:[#allocation5 + $0x1a48] ss:$16 sps:$4 sm:$0xff]  }
 0x3cc   :  { %7166 = vmatpush1.bf16.msra.mxu1 %v13262_v41  ;;  %7134 = vmatprep.subr.bf16.mxu0 %v13267_v59  ;;  %v13328_v41 = vld [vmem:[#allocation5 + $0x1cc8] ss:$16 sps:$4 sm:$0xff]  }
 0x3cd   :  { %7167 = vmatprep.subr.bf16.mxu1 %v13270_v45  ;;  %v13333_v45 = vld [vmem:[#allocation5 + $0x1a2c] ss:$16 sps:$4 sm:$0xff]  }
 0x3cf   :  { %7135 = vmatpush2.bf16.msra.mxu0 %v13265_v12  ;;  %v13336_v12 = vld [vmem:[#allocation5 + $0x1cac] ss:$16 sps:$4 sm:$0xff]  }
 0x3d0   :  { %7168 = vmatpush1.bf16.msra.mxu1 %v13268_v56  ;;  %7136 = vmatprep.subr.bf16.mxu0 %v13273_v19 }
 0x3d1   :  { %7169 = vmatprep.subr.bf16.mxu1 %v13276_v16  ;;  %v13334_v16 = vld [vmem:[#allocation5 + $0x1ca8] ss:$16 sps:$4 sm:$0xff]  }
 0x3d3   :  { %7137 = vmatpush2.bf16.msra.mxu0 %v13271_v37 }
 0x3d4   :  { %7170 = vmatpush2.bf16.msra.mxu1 %v13274_v44  ;;  %7138 = vmatprep.subr.bf16.mxu0 %v13279_v0  ;;  %v13339_v44 = vld [vmem:[#allocation5 + $0x1a0c] ss:$16 sps:$4 sm:$0xff]  }
 0x3d5   :  { %7171 = vmatprep.subr.bf16.mxu1 %v13282_v7  ;;  %v13342_v0 = vld [vmem:[#allocation5 + $0x1c8c] ss:$16 sps:$4 sm:$0xff]   ;;  %v13337_v7 = vld [vmem:[#allocation5 + $0x1a08] ss:$16 sps:$4 sm:$0xff]  }
 0x3d7   :  { %7139 = vmatpush2.bf16.msra.mxu0 %v13277_v55  ;;  %v13340_v55 = vld [vmem:[#allocation5 + $0x1c88] ss:$16 sps:$4 sm:$0xff]  }
 0x3d8   :  { %7172 = vmatpush2.bf16.msra.mxu1 %v13280_v24  ;;  %7140 = vmatprep.subr.bf16.mxu0 %v13285_v36  ;;  %v13345_v24 = vld [vmem:[#allocation5 + $0x1bec] ss:$16 sps:$4 sm:$0xff]  }
 0x3d9   :  { %7173 = vmatprep.subr.bf16.mxu1 %v13288_v21  ;;  %v13348_v36 = vld [vmem:[#allocation5 + $0x1c6c] ss:$16 sps:$4 sm:$0xff]   ;;  %v13346_v21 = vld [vmem:[#allocation5 + $0x1c68] ss:$16 sps:$4 sm:$0xff]  }
 0x3db   :  { %7141 = vmatpush2.bf16.msra.mxu0 %v13283_v63  ;;  %v13351_v63 = vld [vmem:[#allocation5 + $0x1bcc] ss:$16 sps:$4 sm:$0xff]  }
 0x3dc   :  { %7174 = vmatpush2.bf16.msra.mxu1 %v13286_v50  ;;  %7142 = vmatprep.subr.bf16.mxu0 %v13291_v4  ;;  %v13354_v50 = vld [vmem:[#allocation5 + $0x1c4c] ss:$16 sps:$4 sm:$0xff]   ;;  %v13349_v4 = vld [vmem:[#allocation5 + $0x1bc8] ss:$16 sps:$4 sm:$0xff]  }
 0x3dd   :  { %7175 = vmatprep.subr.bf16.mxu1 %v13294_v28  ;;  %v13352_v28 = vld [vmem:[#allocation5 + $0x1c48] ss:$16 sps:$4 sm:$0xff]  }
 0x3df   :  { %7143 = vmatpush2.bf16.msra.mxu0 %v13289_v2  ;;  %v13357_v2 = vld [vmem:[#allocation5 + $0x1bac] ss:$16 sps:$4 sm:$0xff]  }
 0x3e0   :  { %7176 = vmatpush2.bf16.msra.mxu1 %v13292_v61  ;;  %7194 = vmatprep.subr.bf16.mxu0 %v13300_v42  ;;  %v13360_v61 = vld [vmem:[#allocation5 + $0x1c2c] ss:$16 sps:$4 sm:$0xff]   ;;  %v13358_v42 = vld [vmem:[#allocation5 + $0x1c28] ss:$16 sps:$4 sm:$0xff]  }
 0x3e1   :  { %7177 = vmatprep.subr.bf16.mxu1 %v13297_v53  ;;  %v13355_v53 = vld [vmem:[#allocation5 + $0x1ba8] ss:$16 sps:$4 sm:$0xff]  }
 0x3e2   :  { %v6900_v62 = vpop.f32.mrf.mxu0  ;;  %7145 = vmatmul.mubr.bf16.vlgmr.msra.gmra.mxu0 %v13997_v15  ;;  %v13310_v15 = vld [vmem:[#allocation5 + $0x1aa8] ss:$16 sps:$4 sm:$0xff]  }
 0x3e3   :  { %v6901_v38 = vadd.f32 %v6900_v62, %v14112_v9  ;;  %7195 = vmatpush1.bf16.msra.mxu0 %v13298_v13  ;;  %7226 = vmatprep.mubr.bf16.mxu0 %v14001_v23  ;;  %v13315_v9 = vld [vmem:[#allocation5 + $0x190c] ss:$16 sps:$4 sm:$0xff]   ;;  %v13319_v23 = vld [vmem:[#allocation5 + $0x1a68] ss:$16 sps:$4 sm:$0xff]  }
 0x3e4   :  { %7178 = vmatpush2.bf16.msra.mxu1 %v13295_v8  ;;  %v6902_v14 = vpop.f32.mrf.mxu0  ;;  %7196 = vmatprep.subr.bf16.mxu0 %v13306_v10  ;;  %v13363_v8 = vld [vmem:[#allocation5 + $0x1b8c] ss:$16 sps:$4 sm:$0xff]   ;;  %v13364_v10 = vld [vmem:[#allocation5 + $0x1c08] ss:$16 sps:$4 sm:$0xff]  }
 0x3e5   :  { %7179 = vmatprep.subr.bf16.mxu1 %v13303_v18  ;;  %v6903_v3 = vadd.f32 %v6902_v14, %v14114_v60  ;;  %v13324_v60 = vld [vmem:[#allocation5 + $0x1cec] ss:$16 sps:$4 sm:$0xff]   ;;  %v13361_v18 = vld [vmem:[#allocation5 + $0x1b88] ss:$16 sps:$4 sm:$0xff]  }
 0x3e6   :  { %v6904_v5 = vpop.f32.mrf.mxu0  ;;  %v13366_v13 = vld [vmem:[#allocation5 + $0x1c0c] ss:$16 sps:$4 sm:$0xff]  }
 0x3e7   :  { %7197 = vmatpush1.bf16.msra.mxu0 %v13304_v1  ;;  %v13369_v62 = vld [vmem:[#allocation5 + $0x1b6c] ss:$16 sps:$4 sm:$0xff]   ;;  %v13370_v1 = vld [vmem:[#allocation5 + $0x1d68] ss:$16 sps:$4 sm:$0xff]  }
 0x3e8   :  { %7180 = vmatpush2.bf16.msra.mxu1 %v13301_v40  ;;  %v6905_v27 = vpop.f32.mrf.mxu0  ;;  %7198 = vmatprep.subr.bf16.mxu0 %v13312_v31  ;;  %v13367_v40 = vld [vmem:[#allocation5 + $0x1b68] ss:$16 sps:$4 sm:$0xff]   ;;  %v13375_v14 = vld [vmem:[#allocation5 + $0x1b4c] ss:$16 sps:$4 sm:$0xff]  }
 0x3e9   :  { %7181 = vmatprep.subr.bf16.mxu1 %v13309_v48  ;;  %v13378_v48 = vld [vmem:[#allocation5 + $0x1d4c] ss:$16 sps:$4 sm:$0xff]   ;;  %v13373_v31 = vld [vmem:[#allocation5 + $0x1b48] ss:$16 sps:$4 sm:$0xff]  }
 0x3ea   :  { %v13381_v5 = vld [vmem:[#allocation5 + $0x1b2c] ss:$16 sps:$4 sm:$0xff]   ;;  %v13382_v27 = vld [vmem:[#allocation5 + $0x1d28] ss:$16 sps:$4 sm:$0xff]  }
 0x3eb   :  { %7199 = vmatpush1.bf16.msra.mxu0 %v13310_v15  ;;  %v13379_v15 = vld [vmem:[#allocation5 + $0x1b28] ss:$16 sps:$4 sm:$0xff]  }
 0x3ec   :  { %7182 = vmatpush2.bf16.msra.mxu1 %v13307_v58  ;;  %7200 = vmatprep.subr.bf16.mxu0 %v13318_v39  ;;  %v13384_v58 = vld [vmem:[#allocation5 + $0x1d2c] ss:$16 sps:$4 sm:$0xff]  }
 0x3ed   :  { %7183 = vmatprep.subr.bf16.mxu1 %v13315_v9  ;;  %v13387_v9 = vld [vmem:[#allocation5 + $0x1b0c] ss:$16 sps:$4 sm:$0xff]  }
 0x3ee   :  { %v13390_v39 = vld [vmem:[#allocation5 + $0x1d0c] ss:$16 sps:$4 sm:$0xff]  }
 0x3ef   :  { %7201 = vmatpush1.bf16.msra.mxu0 %v13316_v26  ;;  %v13388_v26 = vld [vmem:[#allocation5 + $0x1d08] ss:$16 sps:$4 sm:$0xff]  }
 0x3f0   :  { %7184 = vmatpush2.bf16.msra.mxu1 %v13313_v22  ;;  %7202 = vmatprep.subr.bf16.mxu0 %v13321_v35  ;;  %v13385_v22 = vld [vmem:[#allocation5 + $0x1b08] ss:$16 sps:$4 sm:$0xff]   ;;  %v13391_v35 = vld [vmem:[#allocation8 + $0x78] sm:$0xff]  }
 0x3f1   :  { %7235 = vmatprep.subr.bf16.mxu1 %v13324_v60  ;;  %v7277_v60 = vmax.f32 %v14080_v20, 0.0  ;;  %v13395_v20 = vld [vmem:[#allocation8 + $0x68] sm:$0xff]  }
 0x3f3   :  { %v6941_v11 = vpop.f32.mrf.mxu1  ;;  %7186 = vmatmul.mubr.bf16.vlgmr.msra.gmra.mxu1 %v14022_v47  ;;  %7203 = vmatpush1.bf16.msra.mxu0 %v13319_v23  ;;  %v13331_v47 = vld [vmem:[#allocation5 + $0x1a28] ss:$16 sps:$4 sm:$0xff]   ;;  %v13392_v23 = vld [vmem:[#allocation8 + $0x38] sm:$0xff]  }
 0x3f4   :  { %v14122_v46 = vadd.f32 %v6941_v11, %v6901_v38  ;;  %7236 = vmatpush1.bf16.msra.mxu1 %v13322_v17  ;;  %7204 = vmatprep.subr.bf16.mxu0 %v13327_v32  ;;  %v13372_v38 = vld [vmem:[#allocation5 + $0x1d6c] ss:$16 sps:$4 sm:$0xff]   ;;  %v13393_v17 = vld [vmem:[#allocation8 + $0x70] sm:$0xff]   ;;  %v14129_v32 = vpack.c.bf16 %v7277_v60, %v7277_v60 }
 0x3f5   :  { %v6943_v59 = vpop.f32.mrf.mxu1  ;;  %7237 = vmatprep.subr.bf16.mxu1 %v13330_v33  ;;  %11538 = vmatprep.mubr.msk.bf16.mxu1 %vm6042_vm0, %v14028_v6  ;;  %v13343_v6 = vld [vmem:[#allocation5 + $0x1be8] ss:$16 sps:$4 sm:$0xff]  }
 0x3f6   :  { %v14124_v56 = vadd.f32 %v6943_v59, %v6903_v3  ;;  %v13376_v3 = vld [vmem:[#allocation5 + $0x1d48] ss:$16 sps:$4 sm:$0xff]  }
 0x3f7   :  { %v6945_v19 = vpop.f32.mrf.mxu1  ;;  %7205 = vmatpush1.bf16.msra.mxu0 %v13325_v30  ;;  %v13394_v30 = vld [vmem:[#allocation8 + $0x30] sm:$0xff]  }
 0x3f8   :  { %7238 = vmatpush1.bf16.msra.mxu1 %v13328_v41  ;;  %7206 = vmatprep.subr.bf16.mxu0 %v13333_v45  ;;  %v13434_v60 = vld [vmem:[#allocation8 + $0x90] sm:$0xff]  }
 0x3f9   :  { %v6946_v37 = vpop.f32.mrf.mxu1  ;;  %7239 = vmatprep.subr.bf16.mxu1 %v13336_v12  ;;  %v13396_v12 = vld [vmem:[#allocation8 + $0x28] sm:$0xff]  }
 0x3fb   :  { %7207 = vmatpush1.bf16.msra.mxu0 %v13331_v47  ;;  %v13397_v47 = vld [vmem:[#allocation8 + $0x60] sm:$0xff]  }
 0x3fc   :  { %7240 = vmatpush1.bf16.msra.mxu1 %v13334_v16  ;;  %7208 = vmatprep.subr.bf16.mxu0 %v13339_v44  ;;  %v13401_v16 = vld [vmem:[#allocation8 + $0x50] sm:$0xff]  }
 0x3fd   :  { %7241 = vmatprep.subr.bf16.mxu1 %v13342_v0  ;;  %v13402_v0 = vld [vmem:[#allocation8 + $0x10] sm:$0xff]  }
 0x3ff   :  { %7209 = vmatpush1.bf16.msra.mxu0 %v13337_v7  ;;  %v13403_v7 = vld [vmem:[#allocation8 + $0x48] sm:$0xff]  }
 0x400   :  { %7242 = vmatpush1.bf16.msra.mxu1 %v13340_v55  ;;  %7210 = vmatprep.subr.bf16.mxu0 %v13345_v24 }
 0x401   :  { %7243 = vmatprep.subr.bf16.mxu1 %v13348_v36  ;;  %v13404_v36 = vld [vmem:[#allocation8 + $0x8] sm:$0xff]  }
 0x403   :  { %7211 = vmatpush2.bf16.msra.mxu0 %v13343_v6  ;;  %v13405_v6 = vld [vmem:[#allocation8 + $0x40] sm:$0xff]  }
 0x404   :  { %7244 = vmatpush1.bf16.msra.mxu1 %v13346_v21  ;;  %7212 = vmatprep.subr.bf16.mxu0 %v13351_v63  ;;  %v13423_v63 = vld [vmem:[#allocation8 + $0xf8] sm:$0xff]  }
 0x405   :  { %7245 = vmatprep.subr.bf16.mxu1 %v13354_v50  ;;  %v13424_v50 = vld [vmem:[#allocation8 + $0xb8] sm:$0xff]  }
 0x407   :  { %7213 = vmatpush2.bf16.msra.mxu0 %v13349_v4  ;;  %v13425_v4 = vld [vmem:[#allocation8 + $0xf0] sm:$0xff]  }
 0x408   :  { %7246 = vmatpush1.bf16.msra.mxu1 %v13352_v28  ;;  %7214 = vmatprep.subr.bf16.mxu0 %v13357_v2  ;;  %v13406_v28 = vld [vmem:[#allocation8] sm:$0xff]   ;;  %v13426_v2 = vld [vmem:[#allocation8 + $0xb0] sm:$0xff]  }
 0x409   :  { %7247 = vmatprep.subr.bf16.mxu1 %v13360_v61  ;;  %v7276_v61 = vmax.f32 %v14077_v25, 0.0  ;;  %v13411_v25 = vld [vmem:[#allocation11 + $0x68] sm:$0xff]  }
 0x40b   :  { %7215 = vmatpush2.bf16.msra.mxu0 %v13355_v53  ;;  %v13407_v53 = vld [vmem:[#allocation11 + $0x78] sm:$0xff]  }
 0x40c   :  { %7248 = vmatpush1.bf16.msra.mxu1 %v13358_v42  ;;  %7216 = vmatprep.subr.bf16.mxu0 %v13363_v8  ;;  %v13427_v42 = vld [vmem:[#allocation8 + $0xe8] sm:$0xff]   ;;  %v13408_v8 = vld [vmem:[#allocation11 + $0x38] sm:$0xff]  }
 0x40d   :  { %7249 = vmatprep.subr.bf16.mxu1 %v13366_v13  ;;  %v7280_v13 = vpack.c.bf16 %v7276_v61, %v7276_v61 }
 0x40f   :  { %7217 = vmatpush2.bf16.msra.mxu0 %v13361_v18  ;;  %v13409_v18 = vld [vmem:[#allocation11 + $0x70] sm:$0xff]  }
 0x410   :  { %7250 = vmatpush1.bf16.msra.mxu1 %v13364_v10  ;;  %7218 = vmatprep.subr.bf16.mxu0 %v13369_v62  ;;  %v13428_v10 = vld [vmem:[#allocation8 + $0xa8] sm:$0xff]   ;;  %v13429_v62 = vld [vmem:[#allocation8 + $0xe0] sm:$0xff]  }
 0x411   :  { %7259 = vmatprep.subr.bf16.mxu1 %v13372_v38  ;;  %v13410_v38 = vld [vmem:[#allocation11 + $0x30] sm:$0xff]  }
 0x413   :  { %7219 = vmatpush2.bf16.msra.mxu0 %v13367_v40  ;;  %v13430_v40 = vld [vmem:[#allocation8 + $0xa0] sm:$0xff]  }
 0x414   :  { %7260 = vmatpush2.bf16.msra.mxu1 %v13370_v1  ;;  %7220 = vmatprep.subr.bf16.mxu0 %v13375_v14  ;;  %v13431_v1 = vld [vmem:[#allocation8 + $0xd8] sm:$0xff]   ;;  %v13412_v14 = vld [vmem:[#allocation11 + $0x28] sm:$0xff]  }
 0x415   :  { %7261 = vmatprep.subr.bf16.mxu1 %v13378_v48  ;;  %v13413_v48 = vld [vmem:[#allocation11 + $0x60] sm:$0xff]  }
 0x417   :  { %7221 = vmatpush2.bf16.msra.mxu0 %v13373_v31  ;;  %v13432_v31 = vld [vmem:[#allocation8 + $0x98] sm:$0xff]  }
 0x418   :  { %7262 = vmatpush2.bf16.msra.mxu1 %v13376_v3  ;;  %7222 = vmatprep.subr.bf16.mxu0 %v13381_v5  ;;  %v13433_v3 = vld [vmem:[#allocation8 + $0xd0] sm:$0xff]   ;;  %v13414_v5 = vld [vmem:[#allocation11 + $0x20] sm:$0xff]  }
 0x419   :  { %7263 = vmatprep.subr.bf16.mxu1 %v13384_v58  ;;  %v13415_v58 = vld [vmem:[#allocation11 + $0x58] sm:$0xff]  }
 0x41b   :  { %7223 = vmatpush2.bf16.msra.mxu0 %v13379_v15  ;;  %v13416_v15 = vld [vmem:[#allocation11 + $0x18] sm:$0xff]  }
 0x41c   :  { %7264 = vmatpush2.bf16.msra.mxu1 %v13382_v27  ;;  %7224 = vmatprep.subr.bf16.mxu0 %v13387_v9  ;;  %v13417_v27 = vld [vmem:[#allocation11 + $0x50] sm:$0xff]  }
 0x41d   :  { %7265 = vmatprep.subr.bf16.mxu1 %v13390_v39  ;;  %v13418_v9 = vld [vmem:[#allocation11 + $0x10] sm:$0xff]   ;;  %v13419_v39 = vld [vmem:[#allocation11 + $0x48] sm:$0xff]  }
 0x41f   :  { %7225 = vmatpush2.bf16.msra.mxu0 %v13385_v22  ;;  %v13420_v22 = vld [vmem:[#allocation11 + $0x8] sm:$0xff]  }
 0x420   :  { %7266 = vmatpush2.bf16.msra.mxu1 %v13388_v26  ;;  %11861 = vmatprep.subr.bf16.mxu0 %v13391_v35  ;;  %v13421_v26 = vld [vmem:[#allocation11 + $0x40] sm:$0xff]  }
 0x421   :  { %11883 = vmatprep.subr.bf16.mxu1 %v13423_v63  ;;  %v13422_v35 = vld [vmem:[#allocation11] sm:$0xff]  }
 0x422   :  { %v6982_v33 = vpop.f32.mrf.mxu0  ;;  %7227 = vmatmul.mubr.bf16.vlgmr.msra.gmra.mxu0 %v14026_v51  ;;  %v13398_v51 = vld [vmem:[#allocation8 + $0x20] sm:$0xff]  }
 0x423   :  { %7268 = vmatmul.mubr.bf16.vlgmr.msra.gmra.mxu1 %v14043_v54  ;;  %v6983_v11 = vadd.f32 %v6982_v33, %v14122_v46  ;;  %11862 = vmatpush3.bf16.msra.mxu0 %v13392_v23  ;;  %v13399_v54 = vld [vmem:[#allocation8 + $0x58] sm:$0xff]  }
 0x424   :  { %7579 = vmatprep.mubr.bf16.mxu0 %v14129_v32  ;;  %v6984_v41 = vpop.f32.mrf.mxu0  ;;  %11863 = vmatprep.subr.bf16.mxu0 %v13393_v17  ;;  %v13400_v46 = vld [vmem:[#allocation8 + $0x18] sm:$0xff]  }
 0x425   :  { %v6985_v59 = vadd.f32 %v6984_v41, %v14124_v56  ;;  %11884 = vmatpush3.bf16.msra.mxu1 %v13424_v50 }
 0x426   :  { %v6986_v45 = vpop.f32.mrf.mxu0  ;;  %11885 = vmatprep.subr.bf16.mxu1 %v13425_v4 }
 0x427   :  { %11864 = vmatpush3.bf16.msra.mxu0 %v13394_v30  ;;  %v13438_v45 = vld [vmem:[#allocation8 + $0x80] sm:$0xff]  }
 0x428   :  { %v6987_v19 = vpop.f32.mrf.mxu0  ;;  %11865 = vmatprep.subr.bf16.mxu0 %v13395_v20  ;;  %v13437_v20 = vld [vmem:[#allocation8 + $0xc0] sm:$0xff]  }
 0x429   :  { %11886 = vmatpush3.bf16.msra.mxu1 %v13426_v2 }
 0x42a   :  { %11887 = vmatprep.subr.bf16.mxu1 %v13427_v42 }
 0x42b   :  { %11866 = vmatpush3.bf16.msra.mxu0 %v13396_v12  ;;  %v13439_v12 = vld [vmem:[#allocation11 + $0xf8] sm:$0xff]  }
 0x42c   :  { %11867 = vmatprep.subr.bf16.mxu0 %v13397_v47 }
 0x42d   :  { %11888 = vmatpush3.bf16.msra.mxu1 %v13428_v10 }
 0x42e   :  { %11889 = vmatprep.subr.bf16.mxu1 %v13429_v62 }
 0x42f   :  { %11868 = vmatpush3.bf16.msra.mxu0 %v13398_v51 }
 0x430   :  { %11869 = vmatprep.subr.bf16.mxu0 %v13399_v54 }
 0x431   :  { %11890 = vmatpush3.bf16.msra.mxu1 %v13430_v40 }
 0x432   :  { %11891 = vmatprep.subr.bf16.mxu1 %v13431_v1 }
 0x433   :  { %v7023_v37 = vpop.f32.mrf.mxu1  ;;  %11870 = vmatpush3.bf16.msra.mxu0 %v13400_v46 }
 0x434   :  { %v14136_v44 = vadd.f32 %v7023_v37, %v6983_v11  ;;  %11871 = vmatprep.subr.bf16.mxu0 %v13401_v16  ;;  %v13436_v11 = vld [vmem:[#allocation8 + $0x88] sm:$0xff]  }
 0x435   :  { %v7025_v56 = vpop.f32.mrf.mxu1  ;;  %11892 = vmatpush3.bf16.msra.mxu1 %v13432_v31  ;;  %v13441_v31 = vld [vmem:[#allocation11 + $0xf0] sm:$0xff]  }
 0x436   :  { %v14138_v55 = vadd.f32 %v7025_v56, %v6985_v59  ;;  %11893 = vmatprep.subr.bf16.mxu1 %v13433_v3  ;;  %v13442_v3 = vld [vmem:[#allocation11 + $0xb0] sm:$0xff]  }
 0x437   :  { %v7027_v24 = vpop.f32.mrf.mxu1  ;;  %11872 = vmatpush3.bf16.msra.mxu0 %v13402_v0 }
 0x438   :  { %11873 = vmatprep.subr.bf16.mxu0 %v13403_v7 }
 0x439   :  { %v7028_v21 = vpop.f32.mrf.mxu1  ;;  %11894 = vmatpush3.bf16.msra.mxu1 %v13434_v60 }
 0x43b   :  { %11874 = vmatpush3.bf16.msra.mxu0 %v13404_v36 }
 0x43c   :  { %11875 = vmatprep.subr.bf16.mxu0 %v13405_v6 }
 0x43f   :  { %11876 = vmatpush3.bf16.msra.mxu0 %v13406_v28 }
 0x440   :  { %11905 = vmatprep.subr.bf16.mxu0 %v13407_v53 }
 0x442   :  { %7580 = vmatmul.mubr.bf16.vlgmr.msra.gmra.mxu0 %v7280_v13 }
 0x443   :  { %11906 = vmatpush3.bf16.msra.mxu0 %v13408_v8  ;;  %7922 = vmatprep.mubr.bf16.mxu0 %v14129_v32  ;;  %v13435_v32 = vld [vmem:[#allocation8 + $0xc8] sm:$0xff]  }
 0x444   :  { %11907 = vmatprep.subr.bf16.mxu0 %v13409_v18  ;;  %11895 = vmatprep.subr.bf16.mxu1 %v13435_v32  ;;  %v13453_v32 = vld [vmem:[#allocation11 + $0xc0] sm:$0xff]  }
 0x445   :  { %11896 = vmatpush3.bf16.msra.mxu1 %v13436_v11 }
 0x446   :  { %11897 = vmatprep.subr.bf16.mxu1 %v13437_v20 }
 0x447   :  { %11908 = vmatpush3.bf16.msra.mxu0 %v13410_v38 }
 0x448   :  { %11909 = vmatprep.subr.bf16.mxu0 %v13411_v25 }
 0x449   :  { %11898 = vmatpush3.bf16.msra.mxu1 %v13438_v45 }
 0x44a   :  { %11927 = vmatprep.subr.bf16.mxu1 %v13439_v12 }
 0x44b   :  { %11910 = vmatpush3.bf16.msra.mxu0 %v13412_v14  ;;  %v13440_v14 = vld [vmem:[#allocation11 + $0xb8] sm:$0xff]  }
 0x44c   :  { %11911 = vmatprep.subr.bf16.mxu0 %v13413_v48 }
 0x44f   :  { %11912 = vmatpush3.bf16.msra.mxu0 %v13414_v5  ;;  %v13443_v5 = vld [vmem:[#allocation11 + $0xe8] sm:$0xff]  }
 0x450   :  { %11913 = vmatprep.subr.bf16.mxu0 %v13415_v58  ;;  %v13444_v58 = vld [vmem:[#allocation11 + $0xa8] sm:$0xff]  }
 0x453   :  { %11914 = vmatpush3.bf16.msra.mxu0 %v13416_v15  ;;  %v13445_v15 = vld [vmem:[#allocation11 + $0xe0] sm:$0xff]  }
 0x454   :  { %11915 = vmatprep.subr.bf16.mxu0 %v13417_v27  ;;  %v13446_v27 = vld [vmem:[#allocation11 + $0xa0] sm:$0xff]  }
 0x457   :  { %11916 = vmatpush3.bf16.msra.mxu0 %v13418_v9  ;;  %v13447_v9 = vld [vmem:[#allocation11 + $0xd8] sm:$0xff]  }
 0x458   :  { %11917 = vmatprep.subr.bf16.mxu0 %v13419_v39  ;;  %v13448_v39 = vld [vmem:[#allocation11 + $0x98] sm:$0xff]  }
 0x45b   :  { %11918 = vmatpush3.bf16.msra.mxu0 %v13420_v22  ;;  %v13449_v22 = vld [vmem:[#allocation11 + $0xd0] sm:$0xff]  }
 0x45c   :  { %11919 = vmatprep.subr.bf16.mxu0 %v13421_v26  ;;  %v13450_v26 = vld [vmem:[#allocation11 + $0x90] sm:$0xff]  }
 0x45f   :  { %11920 = vmatpush3.bf16.msra.mxu0 %v13422_v35  ;;  %v13451_v35 = vld [vmem:[#allocation11 + $0xc8] sm:$0xff]  }
 0x462   :  { %v7064_v23 = vpop.f32.mrf.mxu0  ;;  %7923 = vmatmul.mubr.bf16.vlgmr.msra.gmra.mxu0 %v7280_v13 }
 0x463   :  { %v7065_v17 = vadd.f32 %v7064_v23, %v14136_v44  ;;  %v13452_v23 = vld [vmem:[#allocation11 + $0x88] sm:$0xff]  }
 0x464   :  { %v7066_v33 = vpop.f32.mrf.mxu0 }
 0x465   :  { %v7067_v30 = vadd.f32 %v7066_v33, %v14138_v55 }
 0x466   :  { %v7068_v41 = vpop.f32.mrf.mxu0 }
 0x468   :  { %v7069_v59 = vpop.f32.mrf.mxu0 }
 0x473   :  { %v7105_v19 = vpop.f32.mrf.mxu1 }
 0x474   :  { %v7106_v47 = vadd.f32 %v7105_v19, %v7065_v17 }
 0x475   :  { %v7107_v51 = vpop.f32.mrf.mxu1 }
 0x476   :  { %v7108_v54 = vadd.f32 %v7107_v51, %v7067_v30  ;;  %v13454_v30 = vld [vmem:[#allocation11 + $0x80] sm:$0xff]  }
 0x477   :  { %v7109_v46 = vpop.f32.mrf.mxu1  ;;  %v8217_v51 = vld [vmem:[#allocation14 + $0x780] sm:$0xff] }
 0x479   :  { %v7110_v16 = vpop.f32.mrf.mxu1 }
 0x4a2   :  { %v7146_v37 = vpop.f32.mrf.mxu0 }
 0x4a3   :  { %v7147_v6 = vadd.f32 %v7146_v37, %v7106_v47  ;;  %v8201_v47 = vld [vmem:[#allocation14 + $0x700] sm:$0xff]  ;;  %v8218_v37 = vld [vmem:[#allocation14 + $0x788] sm:$0xff] }
 0x4a4   :  { %v7148_v44 = vpop.f32.mrf.mxu0  ;;  %v11829_v46 = vcombine.low %v8201_v47, %v8217_v51  ;;  %v11830_v16 = vcombine.high %v8201_v47, %v8217_v51  ;;  %v7977_v47 = vld [vmem:[#allocation14] sm:$0xff] }
 0x4a5   :  { %v7149_v21 = vadd.f32 %v7148_v44, %v7108_v54  ;;  %v8202_v54 = vld [vmem:[#allocation14 + $0x708] sm:$0xff]  ;;  %v7993_v51 = vld [vmem:[#allocation14 + $0x80] sm:$0xff] }
 0x4a6   :  { %v7150_v0 = vpop.f32.mrf.mxu0  ;;  %v11831_v44 = vcombine.low %v8202_v54, %v8218_v37  ;;  %9681 = vmatprep.subr.bf16.mxu0 %v11830_v16  ;;  %v7994_v16 = vld [vmem:[#allocation14 + $0x88] sm:$0xff] }
 0x4a7   :  { %v11832_v0 = vcombine.high %v8202_v54, %v8218_v37  ;;  %9682 = vmatpush1.bf16.msra.mxu0 %v11829_v46  ;;  %v7978_v54 = vld [vmem:[#allocation14 + $0x8] sm:$0xff]  ;;  %v11606_v46 = vcombine.high %v7977_v47, %v7993_v51  ;;  %v11605_v37 = vcombine.low %v7977_v47, %v7993_v51 }
 0x4a8   :  { %v7151_v56 = vpop.f32.mrf.mxu0 }
 0x4a9   :  { %v8169_v56 = vld [vmem:[#allocation14 + $0x600] sm:$0xff] }
 0x4b3   :  { %v7187_v7 = vpop.f32.mrf.mxu1 }
 0x4b4   :  { %v7188_v63 = vadd.f32 %v7187_v7, %v7147_v6  ;;  %v8185_v7 = vld [vmem:[#allocation14 + $0x680] sm:$0xff] }
 0x4b5   :  { %v7189_v55 = vpop.f32.mrf.mxu1  ;;  %v11797_v6 = vcombine.low %v8169_v56, %v8185_v7 }
 0x4b6   :  { %v7190_v28 = vadd.f32 %v7189_v55, %v7149_v21  ;;  %v8170_v55 = vld [vmem:[#allocation14 + $0x608] sm:$0xff] }
 0x4b7   :  { %v7191_v24 = vpop.f32.mrf.mxu1 }
 0x4b8   :  { %v11798_v24 = vcombine.high %v8169_v56, %v8185_v7  ;;  %v8203_v56 = vld [vmem:[#allocation14 + $0x710] sm:$0xff] }
 0x4b9   :  { %v7192_v36 = vpop.f32.mrf.mxu1  ;;  %v8219_v7 = vld [vmem:[#allocation14 + $0x790] sm:$0xff] }
 0x4ba   :  { %v8186_v36 = vld [vmem:[#allocation14 + $0x688] sm:$0xff]  ;;  %9683 = vmatprep.subr.bf16.mxu0 %v11798_v24  ;;  %v11834_v24 = vcombine.high %v8203_v56, %v8219_v7 }
 0x4bb   :  { %v11799_v21 = vcombine.low %v8170_v55, %v8186_v36  ;;  %9684 = vmatpush1.bf16.msra.mxu0 %v11797_v6  ;;  %v11833_v6 = vcombine.low %v8203_v56, %v8219_v7 }
 0x4e2   :  { %v7228_v50 = vpop.f32.mrf.mxu0 }
 0x4e3   :  { %v7269_v4 = vpop.f32.mrf.mxu1  ;;  %v7229_v2 = vadd.f32 %v7228_v50, %v7188_v63  ;;  %v11800_v63 = vcombine.high %v8170_v55, %v8186_v36  ;;  %v8137_v50 = vld [vmem:[#allocation14 + $0x500] sm:$0xff]  ;;  %v8204_v55 = vld [vmem:[#allocation14 + $0x718] sm:$0xff] }
 0x4e4   :  { %v7230_v61 = vpop.f32.mrf.mxu0  ;;  %v8220_v36 = vld [vmem:[#allocation14 + $0x798] sm:$0xff] }
 0x4e5   :  { %v7271_v53 = vpop.f32.mrf.mxu1  ;;  %v7270_v42 = vadd.f32 %v7269_v4, %v7229_v2  ;;  %v7231_v8 = vadd.f32 %v7230_v61, %v7190_v28  ;;  %v8153_v4 = vld [vmem:[#allocation14 + $0x580] sm:$0xff]  ;;  %v8138_v28 = vld [vmem:[#allocation14 + $0x508] sm:$0xff] }
 0x4e6   :  { %v7232_v13 = vpop.f32.mrf.mxu0  ;;  %v11766_v2 = vcombine.high %v8137_v50, %v8153_v4  ;;  %v8154_v61 = vld [vmem:[#allocation14 + $0x588] sm:$0xff] }
 0x4e7   :  { %v7273_v18 = vpop.f32.mrf.mxu1  ;;  %v7272_v10 = vadd.f32 %v7271_v53, %v7231_v8  ;;  %v7278_v62 = vmax.f32 %v7270_v42, 0.0  ;;  %v11765_v53 = vcombine.low %v8137_v50, %v8153_v4  ;;  %v11767_v42 = vcombine.low %v8138_v28, %v8154_v61  ;;  %v8105_v13 = vld [vmem:[#allocation14 + $0x400] sm:$0xff]  ;;  %v11539_v4 = vld [vmem:[#allocation10] ss:$0 sm:$0xff] }
 0x4e8   :  { %v7233_v38 = vpop.f32.mrf.mxu0  ;;  %v11768_v8 = vcombine.high %v8138_v28, %v8154_v61  ;;  %9685 = vmatprep.subr.bf16.mxu0 %v11766_v2  ;;  %v8121_v18 = vld [vmem:[#allocation14 + $0x480] sm:$0xff]  ;;  %v13708_v50 = vmov 0  }
 0x4e9   :  { %v7274_v25 = vpop.f32.mrf.mxu1  ;;  %v7279_v40 = vmax.f32 %v7272_v10, 0.0  ;;  %v7282_v48 = vpack.c.bf16 %v7278_v62, %v7278_v62  ;;  %9686 = vmatpush1.bf16.msra.mxu0 %v11765_v53  ;;  %v8106_v10 = vld [vmem:[#allocation14 + $0x408] sm:$0xff]  ;;  %v11734_v62 = vcombine.high %v8105_v13, %v8121_v18  ;;  %9713 = vmatprep.mubr.bf16.mxu0 %v13708_v50 }
 0x4ea   :  { %v8122_v38 = vld [vmem:[#allocation14 + $0x488] sm:$0xff]  ;;  %v11733_v25 = vcombine.low %v8105_v13, %v8121_v18  ;;  %v11572_v18 = vld [vmem:[#allocation13] ss:$0 sm:$0xff] }
 0x4eb   :  { %v7283_v1 = vpack.c.bf16 %v7279_v40, %v7279_v40  ;;  %v11735_v40 = vcombine.low %v8106_v10, %v8122_v38  ;;  %9687 = vmatprep.subr.bf16.mxu0 %v11734_v62 }
 0x4ed   :  { %7619 = vmatprep.mubr.bf16.mxu1 %v7283_v1  ;;  %9688 = vmatpush1.bf16.msra.mxu0 %v11733_v25 }
 0x4ee   :  { %7620 = vmatmul.mubr.bf16.vlgmr.msra.gmra.mxu1 %v7282_v48 }
 0x4ef   :  { %11928 = vmatpush3.bf16.msra.mxu1 %v13440_v14  ;;  %7962 = vmatprep.mubr.bf16.mxu1 %v7283_v1  ;;  %v11736_v1 = vcombine.high %v8106_v10, %v8122_v38  ;;  %v8073_v14 = vld [vmem:[#allocation14 + $0x300] sm:$0xff] }
 0x4f0   :  { %11929 = vmatprep.subr.bf16.mxu1 %v13441_v31  ;;  %v8074_v31 = vld [vmem:[#allocation14 + $0x308] sm:$0xff] }
 0x4f3   :  { %11930 = vmatpush3.bf16.msra.mxu1 %v13442_v3 }
 0x4f4   :  { %11931 = vmatprep.subr.bf16.mxu1 %v13443_v5  ;;  %v8090_v5 = vld [vmem:[#allocation14 + $0x388] sm:$0xff] }
 0x4f7   :  { %11932 = vmatpush3.bf16.msra.mxu1 %v13444_v58 }
 0x4f8   :  { %11933 = vmatprep.subr.bf16.mxu1 %v13445_v15  ;;  %v11703_v15 = vcombine.low %v8074_v31, %v8090_v5 }
 0x4fb   :  { %11934 = vmatpush3.bf16.msra.mxu1 %v13446_v27  ;;  %v11704_v27 = vcombine.high %v8074_v31, %v8090_v5 }
 0x4fc   :  { %11935 = vmatprep.subr.bf16.mxu1 %v13447_v9  ;;  %v8041_v9 = vld [vmem:[#allocation14 + $0x200] sm:$0xff] }
 0x4ff   :  { %11936 = vmatpush3.bf16.msra.mxu1 %v13448_v39  ;;  %v8057_v39 = vld [vmem:[#allocation14 + $0x280] sm:$0xff] }
 0x500   :  { %11937 = vmatprep.subr.bf16.mxu1 %v13449_v22  ;;  %v8042_v22 = vld [vmem:[#allocation14 + $0x208] sm:$0xff] }
 0x502   :  { %v11877_v60 = vpop.f32.mrf.mxu0 }
 0x503   :  { %11938 = vmatpush3.bf16.msra.mxu1 %v13450_v26  ;;  %v11670_v26 = vcombine.high %v8041_v9, %v8057_v39 }
 0x504   :  { %v11878_v17 = vpop.f32.mrf.mxu0  ;;  %11939 = vmatprep.subr.bf16.mxu1 %v13451_v35  ;;  %v8058_v35 = vld [vmem:[#allocation14 + $0x288] sm:$0xff] }
 0x505   :  { %v14144_v33 = vadd.f32 %v11878_v17, %v11877_v60  ;;  %v11669_v60 = vcombine.low %v8041_v9, %v8057_v39  ;;  %v11672_v17 = vcombine.high %v8042_v22, %v8058_v35  ;;  %v8188_v9 = vld [vmem:[#allocation14 + $0x698] sm:$0xff] }
 0x506   :  { %v11880_v11 = vpop.f32.mrf.mxu0 }
 0x507   :  { %11940 = vmatpush3.bf16.msra.mxu1 %v13452_v23  ;;  %v11671_v23 = vcombine.low %v8042_v22, %v8058_v35  ;;  %v8025_v11 = vld [vmem:[#allocation14 + $0x180] sm:$0xff]  ;;  %v7582_v61 = vadd.f32 %v14144_v33, %v11539_v4  ;;  %v8139_v35 = vld [vmem:[#allocation14 + $0x510] sm:$0xff] }
 0x508   :  { %v11881_v41 = vpop.f32.mrf.mxu0  ;;  %11941 = vmatprep.subr.bf16.mxu1 %v13453_v32  ;;  %v8009_v32 = vld [vmem:[#allocation14 + $0x100] sm:$0xff] }
 0x509   :  { %v11638_v41 = vcombine.high %v8009_v32, %v8025_v11 }
 0x50b   :  { %11942 = vmatpush3.bf16.msra.mxu1 %v13454_v30  ;;  %v8010_v30 = vld [vmem:[#allocation14 + $0x108] sm:$0xff] }
 0x50c   :  { %9722 = vmatprep.subr.bf16.mxu1 %v11832_v0  ;;  %v11608_v0 = vcombine.high %v7978_v54, %v7994_v16 }
 0x50e   :  { %7963 = vmatmul.mubr.bf16.vlgmr.msra.gmra.mxu1 %v7282_v48  ;;  %v8089_v48 = vld [vmem:[#allocation14 + $0x380] sm:$0xff] }
 0x50f   :  { %9723 = vmatpush1.bf16.msra.mxu1 %v11831_v44  ;;  %v11702_v3 = vcombine.high %v8073_v14, %v8089_v48  ;;  %v11701_v58 = vcombine.low %v8073_v14, %v8089_v48  ;;  %v11607_v44 = vcombine.low %v7978_v54, %v7994_v16  ;;  %9754 = vmatprep.mubr.bf16.mxu1 %v13708_v50  ;;  %v8075_v16 = vld [vmem:[#allocation14 + $0x310] sm:$0xff] }
 0x510   :  { %9724 = vmatprep.subr.bf16.mxu1 %v11800_v63  ;;  %v11836_v63 = vcombine.high %v8204_v55, %v8220_v36 }
 0x511   :  { %9689 = vmatprep.subr.bf16.mxu0 %v11702_v3  ;;  %v7970_v3 = vld [vmem:[#allocation2] sm:$0x3] }
 0x512   :  { %9690 = vmatpush1.bf16.msra.mxu0 %v11701_v58  ;;  %v8171_v58 = vld [vmem:[#allocation14 + $0x610] sm:$0xff] }
 0x513   :  { %9725 = vmatpush1.bf16.msra.mxu1 %v11799_v21  ;;  %9691 = vmatprep.subr.bf16.mxu0 %v11670_v26  ;;  %v11835_v21 = vcombine.low %v8204_v55, %v8220_v36  ;;  %v8043_v36 = vld [vmem:[#allocation14 + $0x210] sm:$0xff] }
 0x514   :  { %9726 = vmatprep.subr.bf16.mxu1 %v11768_v8 }
 0x516   :  { %9692 = vmatpush1.bf16.msra.mxu0 %v11669_v60  ;;  %v8155_v60 = vld [vmem:[#allocation14 + $0x590] sm:$0xff] }
 0x517   :  { %9727 = vmatpush1.bf16.msra.mxu1 %v11767_v42  ;;  %9693 = vmatprep.subr.bf16.mxu0 %v11638_v41  ;;  %v11769_v47 = vcombine.low %v8139_v35, %v8155_v60 }
 0x518   :  { %9728 = vmatprep.subr.bf16.mxu1 %v11736_v1 }
 0x51b   :  { %9729 = vmatpush1.bf16.msra.mxu1 %v11735_v40 }
 0x51c   :  { %9730 = vmatprep.subr.bf16.mxu1 %v11704_v27  ;;  %v8172_v27 = vld [vmem:[#allocation14 + $0x618] sm:$0xff] }
 0x51f   :  { %9731 = vmatpush1.bf16.msra.mxu1 %v11703_v15  ;;  %v8187_v15 = vld [vmem:[#allocation14 + $0x690] sm:$0xff] }
 0x520   :  { %9732 = vmatprep.subr.bf16.mxu1 %v11672_v17  ;;  %v11802_v26 = vcombine.high %v8171_v58, %v8187_v15  ;;  %v8156_v17 = vld [vmem:[#allocation14 + $0x598] sm:$0xff] }
 0x522   :  { %v11921_v20 = vpop.f32.mrf.mxu0 }
 0x523   :  { %9733 = vmatpush1.bf16.msra.mxu1 %v11671_v23  ;;  %v8140_v23 = vld [vmem:[#allocation14 + $0x518] sm:$0xff] }
 0x524   :  { %v11922_v59 = vpop.f32.mrf.mxu0  ;;  %v11772_v41 = vcombine.high %v8140_v23, %v8156_v17  ;;  %v11771_v51 = vcombine.low %v8140_v23, %v8156_v17  ;;  %v8174_v23 = vld [vmem:[#allocation14 + $0x628] sm:$0xff] }
 0x525   :  { %v14146_v45 = vadd.f32 %v11922_v59, %v11921_v20  ;;  %v8026_v20 = vld [vmem:[#allocation14 + $0x188] sm:$0xff]  ;;  %v11637_v59 = vcombine.low %v8009_v32, %v8025_v11  ;;  %v11801_v32 = vcombine.low %v8171_v58, %v8187_v15  ;;  %v11803_v11 = vcombine.low %v8172_v27, %v8188_v9  ;;  %v8221_v58 = vld [vmem:[#allocation14 + $0x7a0] sm:$0xff] }
 0x526   :  { %v11924_v12 = vpop.f32.mrf.mxu0  ;;  %v8206_v15 = vld [vmem:[#allocation14 + $0x728] sm:$0xff] }
 0x527   :  { %v11639_v12 = vcombine.low %v8010_v30, %v8026_v20  ;;  %9694 = vmatpush1.bf16.msra.mxu0 %v11637_v59  ;;  %v7925_v38 = vadd.f32 %v14146_v45, %v11572_v18  ;;  %v11804_v45 = vcombine.high %v8172_v27, %v8188_v9  ;;  %v8123_v59 = vld [vmem:[#allocation14 + $0x490] sm:$0xff]  ;;  %v8222_v27 = vld [vmem:[#allocation14 + $0x7a8] sm:$0xff] }
 0x528   :  { %v11925_v19 = vpop.f32.mrf.mxu0  ;;  %9695 = vmatprep.subr.bf16.mxu0 %v11606_v46  ;;  %v8190_v17 = vld [vmem:[#allocation14 + $0x6a8] sm:$0xff] }
 0x529   :  { %v11640_v19 = vcombine.high %v8010_v30, %v8026_v20  ;;  %v11770_v30 = vcombine.high %v8139_v35, %v8155_v60  ;;  %v8107_v20 = vld [vmem:[#allocation14 + $0x410] sm:$0xff]  ;;  %v8173_v35 = vld [vmem:[#allocation14 + $0x620] sm:$0xff] }
 0x52a   :  { %v11738_v54 = vcombine.high %v8107_v20, %v8123_v59  ;;  %v11737_v56 = vcombine.low %v8107_v20, %v8123_v59  ;;  %v8189_v60 = vld [vmem:[#allocation14 + $0x6a0] sm:$0xff] }
 0x52b   :  { %9734 = vmatprep.subr.bf16.mxu1 %v11640_v19  ;;  %9696 = vmatpush1.bf16.msra.mxu0 %v11605_v37  ;;  %v8124_v19 = vld [vmem:[#allocation14 + $0x498] sm:$0xff]  ;;  %v8091_v37 = vld [vmem:[#allocation14 + $0x390] sm:$0xff]  ;;  %v8141_v20 = vld [vmem:[#allocation14 + $0x520] sm:$0xff] }
 0x52c   :  { %9735 = vmatpush1.bf16.msra.mxu1 %v11639_v12  ;;  %9763 = vmatprep.subr.bf16.mxu0 %v11834_v24  ;;  %v8108_v12 = vld [vmem:[#allocation14 + $0x418] sm:$0xff]  ;;  %v11706_v55 = vcombine.high %v8075_v16, %v8091_v37  ;;  %v11705_v4 = vcombine.low %v8075_v16, %v8091_v37  ;;  %v8157_v59 = vld [vmem:[#allocation14 + $0x5a0] sm:$0xff] }
 0x52d   :  { %9736 = vmatprep.subr.bf16.mxu1 %v11608_v0  ;;  %v11740_v46 = vcombine.high %v8108_v12, %v8124_v19  ;;  %v8092_v0 = vld [vmem:[#allocation14 + $0x398] sm:$0xff]  ;;  %v11739_v7 = vcombine.low %v8108_v12, %v8124_v19  ;;  %v8142_v12 = vld [vmem:[#allocation14 + $0x528] sm:$0xff]  ;;  %v8109_v16 = vld [vmem:[#allocation14 + $0x420] sm:$0xff] }
 0x52e   :  { %v8158_v19 = vld [vmem:[#allocation14 + $0x5a8] sm:$0xff]  ;;  %v8125_v37 = vld [vmem:[#allocation14 + $0x4a0] sm:$0xff] }
 0x530   :  { %9737 = vmatpush1.bf16.msra.mxu1 %v11607_v44  ;;  %v8076_v44 = vld [vmem:[#allocation14 + $0x318] sm:$0xff] }
 0x531   :  { %9804 = vmatprep.subr.bf16.mxu1 %v11836_v63  ;;  %v11708_v24 = vcombine.high %v8076_v44, %v8092_v0  ;;  %v8060_v63 = vld [vmem:[#allocation14 + $0x298] sm:$0xff] }
 0x5ae   :  { %v11899_v28 = vpop.f32.mrf.mxu1 }
 0x5b0   :  { %v11900_v2 = vpop.f32.mrf.mxu1 }
 0x5b1   :  { %v11901_v53 = vadd.f32 %v11900_v2, %v11899_v28  ;;  %v11707_v28 = vcombine.low %v8076_v44, %v8092_v0  ;;  %v8110_v44 = vld [vmem:[#allocation14 + $0x428] sm:$0xff] }
 0x5b2   :  { %v11902_v42 = vpop.f32.mrf.mxu1  ;;  %v8126_v0 = vld [vmem:[#allocation14 + $0x4a8] sm:$0xff] }
 0x5b3   :  { %v7622_v8 = vadd.f32 %v11901_v53, %v7582_v61  ;;  %v8011_v53 = vld [vmem:[#allocation14 + $0x110] sm:$0xff] }
 0x5b4   :  { %v11903_v13 = vpop.f32.mrf.mxu1  ;;  %v8027_v42 = vld [vmem:[#allocation14 + $0x190] sm:$0xff] }
 0x5b5   :  { %10553 = vst [vmem:[#allocation17] sm:$0x3] %v7622_v8  ;;  %v8028_v13 = vld [vmem:[#allocation14 + $0x198] sm:$0xff] }
 0x5ce   :  { %v11943_v10 = vpop.f32.mrf.mxu1 }
 0x5d0   :  { %v11944_v62 = vpop.f32.mrf.mxu1 }
 0x5d1   :  { %v11945_v25 = vadd.f32 %v11944_v62, %v11943_v10  ;;  %v11642_v62 = vcombine.high %v8011_v53, %v8027_v42 }
 0x5d2   :  { %v11946_v40 = vpop.f32.mrf.mxu1 }
 0x5d3   :  { %v7965_v1 = vadd.f32 %v11945_v25, %v7925_v38  ;;  %v7979_v25 = vld [vmem:[#allocation14 + $0x10] sm:$0xff] }
 0x5d4   :  { %v11947_v14 = vpop.f32.mrf.mxu1  ;;  %v7995_v40 = vld [vmem:[#allocation14 + $0x90] sm:$0xff] }
 0x5d5   :  { %v7971_v48 = vmul.f32 0.5, %v7965_v1  ;;  %10554 = vst [vmem:[#allocation18] sm:$0x3] %v7965_v1  ;;  %v7980_v1 = vld [vmem:[#allocation14 + $0x18] sm:$0xff]  ;;  %v11609_v9 = vcombine.low %v7979_v25, %v7995_v40 }
 0x5d6   :  { %v7996_v14 = vld [vmem:[#allocation14 + $0x98] sm:$0xff] }
 0x5d7   :  { %v7972_v31 = vmul.f32 1.442695, %v7971_v48  ;;  %v11641_v48 = vcombine.low %v8011_v53, %v8027_v42  ;;  %v8045_v53 = vld [vmem:[#allocation14 + $0x220] sm:$0xff] }
 0x5d8   :  { %v8061_v42 = vld [vmem:[#allocation14 + $0x2a0] sm:$0xff] }
 0x5d9   :  { %13455 = vpow2.f32 %v7972_v31 }
 0x5e6   :  { %v13456_v33 = vpop.eup %13455 }
 0x5e7   :  { %v7974_v5 = vmul.f32 %v13456_v33, %v7970_v3  ;;  %v11610_v3 = vcombine.high %v7979_v25, %v7995_v40  ;;  %v11612_v33 = vcombine.high %v7980_v1, %v7996_v14  ;;  %v8013_v25 = vld [vmem:[#allocation14 + $0x120] sm:$0xff] }
 0x5e8   :  { %v8029_v40 = vld [vmem:[#allocation14 + $0x1a0] sm:$0xff] }
 0x5e9   :  { %v7975_v39 = vadd.f32 %v7974_v5, %v7622_v8  ;;  %v8012_v8 = vld [vmem:[#allocation14 + $0x118] sm:$0xff]  ;;  %v8205_v5 = vld [vmem:[#allocation14 + $0x720] sm:$0xff] }
 0x5ea   :  { %v11644_v38 = vcombine.high %v8012_v8, %v8028_v13  ;;  %v11643_v31 = vcombine.low %v8012_v8, %v8028_v13  ;;  %v8046_v8 = vld [vmem:[#allocation14 + $0x228] sm:$0xff] }
 0x5eb   :  { %v14152_v22 = vpack.c.bf16 %v7975_v39, %v7975_v39  ;;  %v11611_v39 = vcombine.low %v7980_v1, %v7996_v14  ;;  %v8062_v13 = vld [vmem:[#allocation14 + $0x2a8] sm:$0xff] }
 0x5ec   :  { %v8014_v1 = vld [vmem:[#allocation14 + $0x128] sm:$0xff] }
 0x5ed   :  { %9714 = vmatmul.mubr.bf16.vlgmr.msra.gmra.mxu0 %v14152_v22  ;;  %9755 = vmatmul.mubr.bf16.vlgmr.msra.gmra.mxu1 %v14152_v22  ;;  %v8030_v14 = vld [vmem:[#allocation14 + $0x1a8] sm:$0xff] }
 0x5ee   :  { %9764 = vmatpush1.bf16.msra.mxu0 %v11833_v6  ;;  %9805 = vmatpush1.bf16.msra.mxu1 %v11835_v21  ;;  %v8059_v6 = vld [vmem:[#allocation14 + $0x290] sm:$0xff]  ;;  %v8044_v21 = vld [vmem:[#allocation14 + $0x218] sm:$0xff] }
 0x5ef   :  { %9765 = vmatprep.subr.bf16.mxu0 %v11802_v26  ;;  %9806 = vmatprep.subr.bf16.mxu1 %v11804_v45  ;;  %v11674_v2 = vcombine.high %v8043_v36, %v8059_v6  ;;  %v11676_v61 = vcombine.high %v8044_v21, %v8060_v63  ;;  %v11673_v18 = vcombine.low %v8043_v36, %v8059_v6  ;;  %v8077_v36 = vld [vmem:[#allocation14 + $0x320] sm:$0xff] }
 0x5f0   :  { %9795 = vmatprep.mubr.bf16.mxu0 %v13708_v50  ;;  %9836 = vmatprep.mubr.bf16.mxu1 %v13708_v50  ;;  %v11675_v10 = vcombine.low %v8044_v21, %v8060_v63  ;;  %v11838_v26 = vcombine.high %v8205_v5, %v8221_v58  ;;  %v11840_v45 = vcombine.high %v8206_v15, %v8222_v27  ;;  %v8093_v6 = vld [vmem:[#allocation14 + $0x3a0] sm:$0xff]  ;;  %v8078_v21 = vld [vmem:[#allocation14 + $0x328] sm:$0xff] }
 0x5f1   :  { %v8094_v63 = vld [vmem:[#allocation14 + $0x3a8] sm:$0xff] }
 0x5f2   :  { %9766 = vmatpush1.bf16.msra.mxu0 %v11801_v32  ;;  %9807 = vmatpush1.bf16.msra.mxu1 %v11803_v11  ;;  %v11837_v32 = vcombine.low %v8205_v5, %v8221_v58  ;;  %v11839_v11 = vcombine.low %v8206_v15, %v8222_v27  ;;  %v7981_v5 = vld [vmem:[#allocation14 + $0x20] sm:$0xff]  ;;  %v7982_v15 = vld [vmem:[#allocation14 + $0x28] sm:$0xff] }
 0x5f3   :  { %9767 = vmatprep.subr.bf16.mxu0 %v11770_v30  ;;  %9808 = vmatprep.subr.bf16.mxu1 %v11772_v41  ;;  %v11806_v30 = vcombine.high %v8173_v35, %v8189_v60  ;;  %v11808_v41 = vcombine.high %v8174_v23, %v8190_v17  ;;  %v7997_v58 = vld [vmem:[#allocation14 + $0xa0] sm:$0xff]  ;;  %v7998_v27 = vld [vmem:[#allocation14 + $0xa8] sm:$0xff] }
 0x5f6   :  { %9768 = vmatpush1.bf16.msra.mxu0 %v11769_v47  ;;  %9809 = vmatpush1.bf16.msra.mxu1 %v11771_v51  ;;  %v11805_v47 = vcombine.low %v8173_v35, %v8189_v60  ;;  %v11807_v51 = vcombine.low %v8174_v23, %v8190_v17  ;;  %v8207_v35 = vld [vmem:[#allocation14 + $0x730] sm:$0xff]  ;;  %v8208_v23 = vld [vmem:[#allocation14 + $0x738] sm:$0xff] }
 0x5f7   :  { %9769 = vmatprep.subr.bf16.mxu0 %v11738_v54  ;;  %9810 = vmatprep.subr.bf16.mxu1 %v11740_v46  ;;  %v11774_v54 = vcombine.high %v8141_v20, %v8157_v59  ;;  %v11776_v46 = vcombine.high %v8142_v12, %v8158_v19  ;;  %v8223_v60 = vld [vmem:[#allocation14 + $0x7b0] sm:$0xff]  ;;  %v8224_v17 = vld [vmem:[#allocation14 + $0x7b8] sm:$0xff] }
 0x5fa   :  { %9770 = vmatpush1.bf16.msra.mxu0 %v11737_v56  ;;  %9811 = vmatpush1.bf16.msra.mxu1 %v11739_v7  ;;  %v11773_v56 = vcombine.low %v8141_v20, %v8157_v59  ;;  %v11775_v7 = vcombine.low %v8142_v12, %v8158_v19  ;;  %v8175_v20 = vld [vmem:[#allocation14 + $0x630] sm:$0xff]  ;;  %v8176_v12 = vld [vmem:[#allocation14 + $0x638] sm:$0xff] }
 0x5fb   :  { %9771 = vmatprep.subr.bf16.mxu0 %v11706_v55  ;;  %9812 = vmatprep.subr.bf16.mxu1 %v11708_v24  ;;  %v11742_v55 = vcombine.high %v8109_v16, %v8125_v37  ;;  %v11744_v24 = vcombine.high %v8110_v44, %v8126_v0  ;;  %v8191_v59 = vld [vmem:[#allocation14 + $0x6b0] sm:$0xff]  ;;  %v8192_v19 = vld [vmem:[#allocation14 + $0x6b8] sm:$0xff] }
 0x5fe   :  { %9772 = vmatpush1.bf16.msra.mxu0 %v11705_v4  ;;  %9813 = vmatpush1.bf16.msra.mxu1 %v11707_v28  ;;  %v11741_v4 = vcombine.low %v8109_v16, %v8125_v37  ;;  %v11743_v28 = vcombine.low %v8110_v44, %v8126_v0  ;;  %v8143_v16 = vld [vmem:[#allocation14 + $0x530] sm:$0xff]  ;;  %v8144_v44 = vld [vmem:[#allocation14 + $0x538] sm:$0xff] }
 0x5ff   :  { %9773 = vmatprep.subr.bf16.mxu0 %v11674_v2  ;;  %9814 = vmatprep.subr.bf16.mxu1 %v11676_v61  ;;  %v11710_v2 = vcombine.high %v8077_v36, %v8093_v6  ;;  %v11712_v61 = vcombine.high %v8078_v21, %v8094_v63  ;;  %v8159_v37 = vld [vmem:[#allocation14 + $0x5b0] sm:$0xff]  ;;  %v8160_v0 = vld [vmem:[#allocation14 + $0x5b8] sm:$0xff] }
 0x602   :  { %9774 = vmatpush1.bf16.msra.mxu0 %v11673_v18  ;;  %9815 = vmatpush1.bf16.msra.mxu1 %v11675_v10  ;;  %v11709_v18 = vcombine.low %v8077_v36, %v8093_v6  ;;  %v11711_v10 = vcombine.low %v8078_v21, %v8094_v63  ;;  %v8111_v36 = vld [vmem:[#allocation14 + $0x430] sm:$0xff]  ;;  %v8112_v21 = vld [vmem:[#allocation14 + $0x438] sm:$0xff] }
 0x603   :  { %9775 = vmatprep.subr.bf16.mxu0 %v11642_v62  ;;  %9816 = vmatprep.subr.bf16.mxu1 %v11644_v38  ;;  %v11678_v62 = vcombine.high %v8045_v53, %v8061_v42  ;;  %v11680_v38 = vcombine.high %v8046_v8, %v8062_v13  ;;  %v8127_v6 = vld [vmem:[#allocation14 + $0x4b0] sm:$0xff]  ;;  %v8128_v63 = vld [vmem:[#allocation14 + $0x4b8] sm:$0xff] }
 0x606   :  { %9776 = vmatpush1.bf16.msra.mxu0 %v11641_v48  ;;  %9817 = vmatpush1.bf16.msra.mxu1 %v11643_v31  ;;  %v11677_v48 = vcombine.low %v8045_v53, %v8061_v42  ;;  %v11679_v31 = vcombine.low %v8046_v8, %v8062_v13  ;;  %v8079_v53 = vld [vmem:[#allocation14 + $0x330] sm:$0xff]  ;;  %v8080_v8 = vld [vmem:[#allocation14 + $0x338] sm:$0xff] }
 0x607   :  { %9777 = vmatprep.subr.bf16.mxu0 %v11610_v3  ;;  %9818 = vmatprep.subr.bf16.mxu1 %v11612_v33  ;;  %v11646_v3 = vcombine.high %v8013_v25, %v8029_v40  ;;  %v11648_v33 = vcombine.high %v8014_v1, %v8030_v14  ;;  %v8095_v42 = vld [vmem:[#allocation14 + $0x3b0] sm:$0xff]  ;;  %v8096_v13 = vld [vmem:[#allocation14 + $0x3b8] sm:$0xff] }
 0x60a   :  { %9778 = vmatpush1.bf16.msra.mxu0 %v11609_v9  ;;  %9819 = vmatpush1.bf16.msra.mxu1 %v11611_v39  ;;  %v11645_v9 = vcombine.low %v8013_v25, %v8029_v40  ;;  %v11647_v39 = vcombine.low %v8014_v1, %v8030_v14  ;;  %v8047_v25 = vld [vmem:[#allocation14 + $0x230] sm:$0xff]  ;;  %v8048_v1 = vld [vmem:[#allocation14 + $0x238] sm:$0xff] }
 0x60b   :  { %9845 = vmatprep.subr.bf16.mxu0 %v11838_v26  ;;  %9886 = vmatprep.subr.bf16.mxu1 %v11840_v45  ;;  %v11614_v26 = vcombine.high %v7981_v5, %v7997_v58  ;;  %v11616_v45 = vcombine.high %v7982_v15, %v7998_v27  ;;  %v8063_v40 = vld [vmem:[#allocation14 + $0x2b0] sm:$0xff]  ;;  %v8064_v14 = vld [vmem:[#allocation14 + $0x2b8] sm:$0xff] }
 0x60d   :  { %9796 = vmatmul.mubr.bf16.vlgmr.msra.gmra.mxu0 %v14152_v22  ;;  %9837 = vmatmul.mubr.bf16.vlgmr.msra.gmra.mxu1 %v14152_v22 }
 0x60e   :  { %9846 = vmatpush1.bf16.msra.mxu0 %v11837_v32  ;;  %9887 = vmatpush1.bf16.msra.mxu1 %v11839_v11  ;;  %v11613_v32 = vcombine.low %v7981_v5, %v7997_v58  ;;  %v11615_v11 = vcombine.low %v7982_v15, %v7998_v27  ;;  %v8015_v5 = vld [vmem:[#allocation14 + $0x130] sm:$0xff]  ;;  %v8016_v15 = vld [vmem:[#allocation14 + $0x138] sm:$0xff] }
 0x60f   :  { %9847 = vmatprep.subr.bf16.mxu0 %v11806_v30  ;;  %9888 = vmatprep.subr.bf16.mxu1 %v11808_v41  ;;  %v11842_v30 = vcombine.high %v8207_v35, %v8223_v60  ;;  %v11844_v41 = vcombine.high %v8208_v23, %v8224_v17  ;;  %v8031_v58 = vld [vmem:[#allocation14 + $0x1b0] sm:$0xff]  ;;  %v8032_v27 = vld [vmem:[#allocation14 + $0x1b8] sm:$0xff] }
 0x610   :  { %9877 = vmatprep.mubr.bf16.mxu0 %v13708_v50  ;;  %9918 = vmatprep.mubr.bf16.mxu1 %v13708_v50 }
 0x612   :  { %9848 = vmatpush1.bf16.msra.mxu0 %v11805_v47  ;;  %9889 = vmatpush1.bf16.msra.mxu1 %v11807_v51  ;;  %v11841_v47 = vcombine.low %v8207_v35, %v8223_v60  ;;  %v11843_v51 = vcombine.low %v8208_v23, %v8224_v17  ;;  %v7983_v35 = vld [vmem:[#allocation14 + $0x30] sm:$0xff]  ;;  %v7984_v23 = vld [vmem:[#allocation14 + $0x38] sm:$0xff] }
 0x613   :  { %9849 = vmatprep.subr.bf16.mxu0 %v11774_v54  ;;  %9890 = vmatprep.subr.bf16.mxu1 %v11776_v46  ;;  %v11810_v54 = vcombine.high %v8175_v20, %v8191_v59  ;;  %v11812_v46 = vcombine.high %v8176_v12, %v8192_v19  ;;  %v7999_v60 = vld [vmem:[#allocation14 + $0xb0] sm:$0xff]  ;;  %v8000_v17 = vld [vmem:[#allocation14 + $0xb8] sm:$0xff] }
 0x616   :  { %9850 = vmatpush1.bf16.msra.mxu0 %v11773_v56  ;;  %9891 = vmatpush1.bf16.msra.mxu1 %v11775_v7  ;;  %v11809_v56 = vcombine.low %v8175_v20, %v8191_v59  ;;  %v11811_v7 = vcombine.low %v8176_v12, %v8192_v19  ;;  %v8209_v20 = vld [vmem:[#allocation14 + $0x740] sm:$0xff]  ;;  %v8210_v12 = vld [vmem:[#allocation14 + $0x748] sm:$0xff] }
 0x617   :  { %9851 = vmatprep.subr.bf16.mxu0 %v11742_v55  ;;  %9892 = vmatprep.subr.bf16.mxu1 %v11744_v24  ;;  %v11778_v55 = vcombine.high %v8143_v16, %v8159_v37  ;;  %v11780_v24 = vcombine.high %v8144_v44, %v8160_v0  ;;  %v8225_v59 = vld [vmem:[#allocation14 + $0x7c0] sm:$0xff]  ;;  %v8226_v19 = vld [vmem:[#allocation14 + $0x7c8] sm:$0xff] }
 0x61a   :  { %9852 = vmatpush1.bf16.msra.mxu0 %v11741_v4  ;;  %9893 = vmatpush1.bf16.msra.mxu1 %v11743_v28  ;;  %v11777_v4 = vcombine.low %v8143_v16, %v8159_v37  ;;  %v11779_v28 = vcombine.low %v8144_v44, %v8160_v0  ;;  %v8177_v16 = vld [vmem:[#allocation14 + $0x640] sm:$0xff]  ;;  %v8178_v44 = vld [vmem:[#allocation14 + $0x648] sm:$0xff] }
 0x61b   :  { %9853 = vmatprep.subr.bf16.mxu0 %v11710_v2  ;;  %9894 = vmatprep.subr.bf16.mxu1 %v11712_v61  ;;  %v11746_v2 = vcombine.high %v8111_v36, %v8127_v6  ;;  %v11748_v61 = vcombine.high %v8112_v21, %v8128_v63  ;;  %v8193_v37 = vld [vmem:[#allocation14 + $0x6c0] sm:$0xff]  ;;  %v8194_v0 = vld [vmem:[#allocation14 + $0x6c8] sm:$0xff] }
 0x61e   :  { %9854 = vmatpush1.bf16.msra.mxu0 %v11709_v18  ;;  %9895 = vmatpush1.bf16.msra.mxu1 %v11711_v10  ;;  %v11745_v18 = vcombine.low %v8111_v36, %v8127_v6  ;;  %v11747_v10 = vcombine.low %v8112_v21, %v8128_v63  ;;  %v8145_v36 = vld [vmem:[#allocation14 + $0x540] sm:$0xff]  ;;  %v8146_v21 = vld [vmem:[#allocation14 + $0x548] sm:$0xff] }
 0x61f   :  { %9855 = vmatprep.subr.bf16.mxu0 %v11678_v62  ;;  %9896 = vmatprep.subr.bf16.mxu1 %v11680_v38  ;;  %v11714_v62 = vcombine.high %v8079_v53, %v8095_v42  ;;  %v11716_v38 = vcombine.high %v8080_v8, %v8096_v13  ;;  %v8161_v6 = vld [vmem:[#allocation14 + $0x5c0] sm:$0xff]  ;;  %v8162_v63 = vld [vmem:[#allocation14 + $0x5c8] sm:$0xff] }
 0x622   :  { %9856 = vmatpush1.bf16.msra.mxu0 %v11677_v48  ;;  %9897 = vmatpush1.bf16.msra.mxu1 %v11679_v31  ;;  %v11713_v48 = vcombine.low %v8079_v53, %v8095_v42  ;;  %v11715_v31 = vcombine.low %v8080_v8, %v8096_v13  ;;  %v8113_v53 = vld [vmem:[#allocation14 + $0x440] sm:$0xff]  ;;  %v8114_v8 = vld [vmem:[#allocation14 + $0x448] sm:$0xff] }
 0x623   :  { %9857 = vmatprep.subr.bf16.mxu0 %v11646_v3  ;;  %9898 = vmatprep.subr.bf16.mxu1 %v11648_v33  ;;  %v11682_v3 = vcombine.high %v8047_v25, %v8063_v40  ;;  %v11684_v33 = vcombine.high %v8048_v1, %v8064_v14  ;;  %v8129_v42 = vld [vmem:[#allocation14 + $0x4c0] sm:$0xff]  ;;  %v8130_v13 = vld [vmem:[#allocation14 + $0x4c8] sm:$0xff] }
 0x626   :  { %9858 = vmatpush1.bf16.msra.mxu0 %v11645_v9  ;;  %9899 = vmatpush1.bf16.msra.mxu1 %v11647_v39  ;;  %v11681_v9 = vcombine.low %v8047_v25, %v8063_v40  ;;  %v11683_v39 = vcombine.low %v8048_v1, %v8064_v14  ;;  %v8081_v25 = vld [vmem:[#allocation14 + $0x340] sm:$0xff]  ;;  %v8082_v1 = vld [vmem:[#allocation14 + $0x348] sm:$0xff] }
 0x627   :  { %9859 = vmatprep.subr.bf16.mxu0 %v11614_v26  ;;  %9900 = vmatprep.subr.bf16.mxu1 %v11616_v45  ;;  %v11650_v26 = vcombine.high %v8015_v5, %v8031_v58  ;;  %v11652_v45 = vcombine.high %v8016_v15, %v8032_v27  ;;  %v8097_v40 = vld [vmem:[#allocation14 + $0x3c0] sm:$0xff]  ;;  %v8098_v14 = vld [vmem:[#allocation14 + $0x3c8] sm:$0xff] }
 0x62a   :  { %9860 = vmatpush1.bf16.msra.mxu0 %v11613_v32  ;;  %9901 = vmatpush1.bf16.msra.mxu1 %v11615_v11  ;;  %v11649_v32 = vcombine.low %v8015_v5, %v8031_v58  ;;  %v11651_v11 = vcombine.low %v8016_v15, %v8032_v27  ;;  %v8049_v5 = vld [vmem:[#allocation14 + $0x240] sm:$0xff]  ;;  %v8050_v15 = vld [vmem:[#allocation14 + $0x248] sm:$0xff] }
 0x62b   :  { %9927 = vmatprep.subr.bf16.mxu0 %v11842_v30  ;;  %9968 = vmatprep.subr.bf16.mxu1 %v11844_v41  ;;  %v11618_v30 = vcombine.high %v7983_v35, %v7999_v60  ;;  %v11620_v41 = vcombine.high %v7984_v23, %v8000_v17  ;;  %v8065_v58 = vld [vmem:[#allocation14 + $0x2c0] sm:$0xff]  ;;  %v8066_v27 = vld [vmem:[#allocation14 + $0x2c8] sm:$0xff] }
 0x62d   :  { %9878 = vmatmul.mubr.bf16.vlgmr.msra.gmra.mxu0 %v14152_v22  ;;  %9919 = vmatmul.mubr.bf16.vlgmr.msra.gmra.mxu1 %v14152_v22 }
 0x62e   :  { %9928 = vmatpush1.bf16.msra.mxu0 %v11841_v47  ;;  %9969 = vmatpush1.bf16.msra.mxu1 %v11843_v51  ;;  %v11617_v47 = vcombine.low %v7983_v35, %v7999_v60  ;;  %v11619_v51 = vcombine.low %v7984_v23, %v8000_v17  ;;  %v8017_v35 = vld [vmem:[#allocation14 + $0x140] sm:$0xff]  ;;  %v8018_v23 = vld [vmem:[#allocation14 + $0x148] sm:$0xff] }
 0x62f   :  { %9929 = vmatprep.subr.bf16.mxu0 %v11810_v54  ;;  %9970 = vmatprep.subr.bf16.mxu1 %v11812_v46  ;;  %v11846_v54 = vcombine.high %v8209_v20, %v8225_v59  ;;  %v11848_v46 = vcombine.high %v8210_v12, %v8226_v19  ;;  %v8033_v60 = vld [vmem:[#allocation14 + $0x1c0] sm:$0xff]  ;;  %v8034_v17 = vld [vmem:[#allocation14 + $0x1c8] sm:$0xff] }
 0x630   :  { %9959 = vmatprep.mubr.bf16.mxu0 %v13708_v50  ;;  %10000 = vmatprep.mubr.bf16.mxu1 %v13708_v50 }
 0x632   :  { %9930 = vmatpush1.bf16.msra.mxu0 %v11809_v56  ;;  %9971 = vmatpush1.bf16.msra.mxu1 %v11811_v7  ;;  %v11845_v56 = vcombine.low %v8209_v20, %v8225_v59  ;;  %v11847_v7 = vcombine.low %v8210_v12, %v8226_v19  ;;  %v7985_v20 = vld [vmem:[#allocation14 + $0x40] sm:$0xff]  ;;  %v7986_v12 = vld [vmem:[#allocation14 + $0x48] sm:$0xff] }
 0x633   :  { %9931 = vmatprep.subr.bf16.mxu0 %v11778_v55  ;;  %9972 = vmatprep.subr.bf16.mxu1 %v11780_v24  ;;  %v11814_v55 = vcombine.high %v8177_v16, %v8193_v37  ;;  %v11816_v24 = vcombine.high %v8178_v44, %v8194_v0  ;;  %v8001_v59 = vld [vmem:[#allocation14 + $0xc0] sm:$0xff]  ;;  %v8002_v19 = vld [vmem:[#allocation14 + $0xc8] sm:$0xff] }
 0x636   :  { %9932 = vmatpush1.bf16.msra.mxu0 %v11777_v4  ;;  %9973 = vmatpush1.bf16.msra.mxu1 %v11779_v28  ;;  %v11813_v4 = vcombine.low %v8177_v16, %v8193_v37  ;;  %v11815_v28 = vcombine.low %v8178_v44, %v8194_v0  ;;  %v8211_v16 = vld [vmem:[#allocation14 + $0x750] sm:$0xff]  ;;  %v8212_v44 = vld [vmem:[#allocation14 + $0x758] sm:$0xff] }
 0x637   :  { %9933 = vmatprep.subr.bf16.mxu0 %v11746_v2  ;;  %9974 = vmatprep.subr.bf16.mxu1 %v11748_v61  ;;  %v11782_v2 = vcombine.high %v8145_v36, %v8161_v6  ;;  %v11784_v61 = vcombine.high %v8146_v21, %v8162_v63  ;;  %v8227_v37 = vld [vmem:[#allocation14 + $0x7d0] sm:$0xff]  ;;  %v8228_v0 = vld [vmem:[#allocation14 + $0x7d8] sm:$0xff] }
 0x63a   :  { %9934 = vmatpush1.bf16.msra.mxu0 %v11745_v18  ;;  %9975 = vmatpush1.bf16.msra.mxu1 %v11747_v10  ;;  %v11781_v18 = vcombine.low %v8145_v36, %v8161_v6  ;;  %v11783_v10 = vcombine.low %v8146_v21, %v8162_v63  ;;  %v8179_v36 = vld [vmem:[#allocation14 + $0x650] sm:$0xff]  ;;  %v8180_v21 = vld [vmem:[#allocation14 + $0x658] sm:$0xff] }
 0x63b   :  { %9935 = vmatprep.subr.bf16.mxu0 %v11714_v62  ;;  %9976 = vmatprep.subr.bf16.mxu1 %v11716_v38  ;;  %v11750_v62 = vcombine.high %v8113_v53, %v8129_v42  ;;  %v11752_v38 = vcombine.high %v8114_v8, %v8130_v13  ;;  %v8195_v6 = vld [vmem:[#allocation14 + $0x6d0] sm:$0xff]  ;;  %v8196_v63 = vld [vmem:[#allocation14 + $0x6d8] sm:$0xff] }
 0x63e   :  { %9936 = vmatpush1.bf16.msra.mxu0 %v11713_v48  ;;  %9977 = vmatpush1.bf16.msra.mxu1 %v11715_v31  ;;  %v11749_v48 = vcombine.low %v8113_v53, %v8129_v42  ;;  %v11751_v31 = vcombine.low %v8114_v8, %v8130_v13  ;;  %v8147_v53 = vld [vmem:[#allocation14 + $0x550] sm:$0xff]  ;;  %v8148_v8 = vld [vmem:[#allocation14 + $0x558] sm:$0xff] }
 0x63f   :  { %9937 = vmatprep.subr.bf16.mxu0 %v11682_v3  ;;  %9978 = vmatprep.subr.bf16.mxu1 %v11684_v33  ;;  %v11718_v3 = vcombine.high %v8081_v25, %v8097_v40  ;;  %v11720_v33 = vcombine.high %v8082_v1, %v8098_v14  ;;  %v8163_v42 = vld [vmem:[#allocation14 + $0x5d0] sm:$0xff]  ;;  %v8164_v13 = vld [vmem:[#allocation14 + $0x5d8] sm:$0xff] }
 0x642   :  { %9938 = vmatpush1.bf16.msra.mxu0 %v11681_v9  ;;  %9979 = vmatpush1.bf16.msra.mxu1 %v11683_v39  ;;  %v11717_v9 = vcombine.low %v8081_v25, %v8097_v40  ;;  %v11719_v39 = vcombine.low %v8082_v1, %v8098_v14  ;;  %v8115_v25 = vld [vmem:[#allocation14 + $0x450] sm:$0xff]  ;;  %v8116_v1 = vld [vmem:[#allocation14 + $0x458] sm:$0xff] }
 0x643   :  { %9939 = vmatprep.subr.bf16.mxu0 %v11650_v26  ;;  %9980 = vmatprep.subr.bf16.mxu1 %v11652_v45  ;;  %v11686_v26 = vcombine.high %v8049_v5, %v8065_v58  ;;  %v11688_v45 = vcombine.high %v8050_v15, %v8066_v27  ;;  %v8131_v40 = vld [vmem:[#allocation14 + $0x4d0] sm:$0xff]  ;;  %v8132_v14 = vld [vmem:[#allocation14 + $0x4d8] sm:$0xff] }
 0x646   :  { %9940 = vmatpush1.bf16.msra.mxu0 %v11649_v32  ;;  %9981 = vmatpush1.bf16.msra.mxu1 %v11651_v11  ;;  %v11685_v32 = vcombine.low %v8049_v5, %v8065_v58  ;;  %v11687_v11 = vcombine.low %v8050_v15, %v8066_v27  ;;  %v8083_v5 = vld [vmem:[#allocation14 + $0x350] sm:$0xff]  ;;  %v8084_v15 = vld [vmem:[#allocation14 + $0x358] sm:$0xff] }
 0x647   :  { %9941 = vmatprep.subr.bf16.mxu0 %v11618_v30  ;;  %9982 = vmatprep.subr.bf16.mxu1 %v11620_v41  ;;  %v11654_v30 = vcombine.high %v8017_v35, %v8033_v60  ;;  %v11656_v41 = vcombine.high %v8018_v23, %v8034_v17  ;;  %v8099_v58 = vld [vmem:[#allocation14 + $0x3d0] sm:$0xff]  ;;  %v8100_v27 = vld [vmem:[#allocation14 + $0x3d8] sm:$0xff] }
 0x64a   :  { %9942 = vmatpush1.bf16.msra.mxu0 %v11617_v47  ;;  %9983 = vmatpush1.bf16.msra.mxu1 %v11619_v51  ;;  %v11653_v47 = vcombine.low %v8017_v35, %v8033_v60  ;;  %v11655_v51 = vcombine.low %v8018_v23, %v8034_v17  ;;  %v8051_v35 = vld [vmem:[#allocation14 + $0x250] sm:$0xff]  ;;  %v8052_v23 = vld [vmem:[#allocation14 + $0x258] sm:$0xff] }
 0x64b   :  { %10009 = vmatprep.subr.bf16.mxu0 %v11846_v54  ;;  %10050 = vmatprep.subr.bf16.mxu1 %v11848_v46  ;;  %v11622_v54 = vcombine.high %v7985_v20, %v8001_v59  ;;  %v11624_v46 = vcombine.high %v7986_v12, %v8002_v19  ;;  %v8067_v60 = vld [vmem:[#allocation14 + $0x2d0] sm:$0xff]  ;;  %v8068_v17 = vld [vmem:[#allocation14 + $0x2d8] sm:$0xff] }
 0x64d   :  { %9960 = vmatmul.mubr.bf16.vlgmr.msra.gmra.mxu0 %v14152_v22  ;;  %10001 = vmatmul.mubr.bf16.vlgmr.msra.gmra.mxu1 %v14152_v22 }
 0x64e   :  { %10010 = vmatpush1.bf16.msra.mxu0 %v11845_v56  ;;  %10051 = vmatpush1.bf16.msra.mxu1 %v11847_v7  ;;  %v11621_v56 = vcombine.low %v7985_v20, %v8001_v59  ;;  %v11623_v7 = vcombine.low %v7986_v12, %v8002_v19  ;;  %v8019_v20 = vld [vmem:[#allocation14 + $0x150] sm:$0xff]  ;;  %v8020_v12 = vld [vmem:[#allocation14 + $0x158] sm:$0xff] }
 0x64f   :  { %10011 = vmatprep.subr.bf16.mxu0 %v11814_v55  ;;  %10052 = vmatprep.subr.bf16.mxu1 %v11816_v24  ;;  %v11850_v55 = vcombine.high %v8211_v16, %v8227_v37  ;;  %v11852_v24 = vcombine.high %v8212_v44, %v8228_v0  ;;  %v8035_v59 = vld [vmem:[#allocation14 + $0x1d0] sm:$0xff]  ;;  %v8036_v19 = vld [vmem:[#allocation14 + $0x1d8] sm:$0xff] }
 0x650   :  { %10041 = vmatprep.mubr.bf16.mxu0 %v13708_v50  ;;  %10082 = vmatprep.mubr.bf16.mxu1 %v13708_v50 }
 0x652   :  { %10012 = vmatpush1.bf16.msra.mxu0 %v11813_v4  ;;  %10053 = vmatpush1.bf16.msra.mxu1 %v11815_v28  ;;  %v11849_v4 = vcombine.low %v8211_v16, %v8227_v37  ;;  %v11851_v28 = vcombine.low %v8212_v44, %v8228_v0  ;;  %v7987_v16 = vld [vmem:[#allocation14 + $0x50] sm:$0xff]  ;;  %v7988_v44 = vld [vmem:[#allocation14 + $0x58] sm:$0xff] }
 0x653   :  { %10013 = vmatprep.subr.bf16.mxu0 %v11782_v2  ;;  %10054 = vmatprep.subr.bf16.mxu1 %v11784_v61  ;;  %v11818_v2 = vcombine.high %v8179_v36, %v8195_v6  ;;  %v11820_v61 = vcombine.high %v8180_v21, %v8196_v63  ;;  %v8003_v37 = vld [vmem:[#allocation14 + $0xd0] sm:$0xff]  ;;  %v8004_v0 = vld [vmem:[#allocation14 + $0xd8] sm:$0xff] }
 0x656   :  { %10014 = vmatpush1.bf16.msra.mxu0 %v11781_v18  ;;  %10055 = vmatpush1.bf16.msra.mxu1 %v11783_v10  ;;  %v11817_v18 = vcombine.low %v8179_v36, %v8195_v6  ;;  %v11819_v10 = vcombine.low %v8180_v21, %v8196_v63  ;;  %v8213_v36 = vld [vmem:[#allocation14 + $0x760] sm:$0xff]  ;;  %v8214_v21 = vld [vmem:[#allocation14 + $0x768] sm:$0xff] }
 0x657   :  { %10015 = vmatprep.subr.bf16.mxu0 %v11750_v62  ;;  %10056 = vmatprep.subr.bf16.mxu1 %v11752_v38  ;;  %v11786_v62 = vcombine.high %v8147_v53, %v8163_v42  ;;  %v11788_v38 = vcombine.high %v8148_v8, %v8164_v13  ;;  %v8229_v6 = vld [vmem:[#allocation14 + $0x7e0] sm:$0xff]  ;;  %v8230_v63 = vld [vmem:[#allocation14 + $0x7e8] sm:$0xff] }
 0x65a   :  { %10016 = vmatpush1.bf16.msra.mxu0 %v11749_v48  ;;  %10057 = vmatpush1.bf16.msra.mxu1 %v11751_v31  ;;  %v11785_v48 = vcombine.low %v8147_v53, %v8163_v42  ;;  %v11787_v31 = vcombine.low %v8148_v8, %v8164_v13  ;;  %v8181_v53 = vld [vmem:[#allocation14 + $0x660] sm:$0xff]  ;;  %v8182_v8 = vld [vmem:[#allocation14 + $0x668] sm:$0xff] }
 0x65b   :  { %10017 = vmatprep.subr.bf16.mxu0 %v11718_v3  ;;  %10058 = vmatprep.subr.bf16.mxu1 %v11720_v33  ;;  %v11754_v3 = vcombine.high %v8115_v25, %v8131_v40  ;;  %v11756_v33 = vcombine.high %v8116_v1, %v8132_v14  ;;  %v8197_v42 = vld [vmem:[#allocation14 + $0x6e0] sm:$0xff]  ;;  %v8198_v13 = vld [vmem:[#allocation14 + $0x6e8] sm:$0xff] }
 0x65e   :  { %10018 = vmatpush1.bf16.msra.mxu0 %v11717_v9  ;;  %10059 = vmatpush1.bf16.msra.mxu1 %v11719_v39  ;;  %v11753_v9 = vcombine.low %v8115_v25, %v8131_v40  ;;  %v11755_v39 = vcombine.low %v8116_v1, %v8132_v14  ;;  %v8149_v25 = vld [vmem:[#allocation14 + $0x560] sm:$0xff]  ;;  %v8150_v1 = vld [vmem:[#allocation14 + $0x568] sm:$0xff] }
 0x65f   :  { %10019 = vmatprep.subr.bf16.mxu0 %v11686_v26  ;;  %10060 = vmatprep.subr.bf16.mxu1 %v11688_v45  ;;  %v11722_v26 = vcombine.high %v8083_v5, %v8099_v58  ;;  %v11724_v45 = vcombine.high %v8084_v15, %v8100_v27  ;;  %v8165_v40 = vld [vmem:[#allocation14 + $0x5e0] sm:$0xff]  ;;  %v8166_v14 = vld [vmem:[#allocation14 + $0x5e8] sm:$0xff] }
 0x662   :  { %10020 = vmatpush1.bf16.msra.mxu0 %v11685_v32  ;;  %10061 = vmatpush1.bf16.msra.mxu1 %v11687_v11  ;;  %v11721_v32 = vcombine.low %v8083_v5, %v8099_v58  ;;  %v11723_v11 = vcombine.low %v8084_v15, %v8100_v27  ;;  %v8117_v5 = vld [vmem:[#allocation14 + $0x460] sm:$0xff]  ;;  %v8118_v15 = vld [vmem:[#allocation14 + $0x468] sm:$0xff] }
 0x663   :  { %10021 = vmatprep.subr.bf16.mxu0 %v11654_v30  ;;  %10062 = vmatprep.subr.bf16.mxu1 %v11656_v41  ;;  %v11690_v30 = vcombine.high %v8051_v35, %v8067_v60  ;;  %v11692_v41 = vcombine.high %v8052_v23, %v8068_v17  ;;  %v8133_v58 = vld [vmem:[#allocation14 + $0x4e0] sm:$0xff]  ;;  %v8134_v27 = vld [vmem:[#allocation14 + $0x4e8] sm:$0xff] }
 0x666   :  { %10022 = vmatpush1.bf16.msra.mxu0 %v11653_v47  ;;  %10063 = vmatpush1.bf16.msra.mxu1 %v11655_v51  ;;  %v11689_v47 = vcombine.low %v8051_v35, %v8067_v60  ;;  %v11691_v51 = vcombine.low %v8052_v23, %v8068_v17  ;;  %v8085_v35 = vld [vmem:[#allocation14 + $0x360] sm:$0xff]  ;;  %v8086_v23 = vld [vmem:[#allocation14 + $0x368] sm:$0xff] }
 0x667   :  { %10023 = vmatprep.subr.bf16.mxu0 %v11622_v54  ;;  %10064 = vmatprep.subr.bf16.mxu1 %v11624_v46  ;;  %v11658_v54 = vcombine.high %v8019_v20, %v8035_v59  ;;  %v11660_v46 = vcombine.high %v8020_v12, %v8036_v19  ;;  %v8101_v60 = vld [vmem:[#allocation14 + $0x3e0] sm:$0xff]  ;;  %v8102_v17 = vld [vmem:[#allocation14 + $0x3e8] sm:$0xff] }
 0x66a   :  { %10024 = vmatpush1.bf16.msra.mxu0 %v11621_v56  ;;  %10065 = vmatpush1.bf16.msra.mxu1 %v11623_v7  ;;  %v11657_v56 = vcombine.low %v8019_v20, %v8035_v59  ;;  %v11659_v7 = vcombine.low %v8020_v12, %v8036_v19  ;;  %v8053_v20 = vld [vmem:[#allocation14 + $0x260] sm:$0xff]  ;;  %v8054_v12 = vld [vmem:[#allocation14 + $0x268] sm:$0xff] }
 0x66b   :  { %10091 = vmatprep.subr.bf16.mxu0 %v11850_v55  ;;  %10132 = vmatprep.subr.bf16.mxu1 %v11852_v24  ;;  %v11626_v55 = vcombine.high %v7987_v16, %v8003_v37  ;;  %v11628_v24 = vcombine.high %v7988_v44, %v8004_v0  ;;  %v8069_v59 = vld [vmem:[#allocation14 + $0x2e0] sm:$0xff]  ;;  %v8070_v19 = vld [vmem:[#allocation14 + $0x2e8] sm:$0xff] }
 0x66d   :  { %10042 = vmatmul.mubr.bf16.vlgmr.msra.gmra.mxu0 %v14152_v22  ;;  %10083 = vmatmul.mubr.bf16.vlgmr.msra.gmra.mxu1 %v14152_v22 }
 0x66e   :  { %10092 = vmatpush1.bf16.msra.mxu0 %v11849_v4  ;;  %10133 = vmatpush1.bf16.msra.mxu1 %v11851_v28  ;;  %v11625_v4 = vcombine.low %v7987_v16, %v8003_v37  ;;  %v11627_v28 = vcombine.low %v7988_v44, %v8004_v0  ;;  %v8021_v16 = vld [vmem:[#allocation14 + $0x160] sm:$0xff]  ;;  %v8022_v44 = vld [vmem:[#allocation14 + $0x168] sm:$0xff] }
 0x66f   :  { %10093 = vmatprep.subr.bf16.mxu0 %v11818_v2  ;;  %10134 = vmatprep.subr.bf16.mxu1 %v11820_v61  ;;  %v11854_v2 = vcombine.high %v8213_v36, %v8229_v6  ;;  %v11856_v61 = vcombine.high %v8214_v21, %v8230_v63  ;;  %v8037_v37 = vld [vmem:[#allocation14 + $0x1e0] sm:$0xff]  ;;  %v8038_v0 = vld [vmem:[#allocation14 + $0x1e8] sm:$0xff] }
 0x670   :  { %10123 = vmatprep.mubr.bf16.mxu0 %v13708_v50  ;;  %10164 = vmatprep.mubr.bf16.mxu1 %v13708_v50 }
 0x672   :  { %10094 = vmatpush1.bf16.msra.mxu0 %v11817_v18  ;;  %10135 = vmatpush1.bf16.msra.mxu1 %v11819_v10  ;;  %v11853_v18 = vcombine.low %v8213_v36, %v8229_v6  ;;  %v11855_v10 = vcombine.low %v8214_v21, %v8230_v63  ;;  %v7989_v36 = vld [vmem:[#allocation14 + $0x60] sm:$0xff]  ;;  %v7990_v21 = vld [vmem:[#allocation14 + $0x68] sm:$0xff] }
 0x673   :  { %10095 = vmatprep.subr.bf16.mxu0 %v11786_v62  ;;  %10136 = vmatprep.subr.bf16.mxu1 %v11788_v38  ;;  %v11822_v62 = vcombine.high %v8181_v53, %v8197_v42  ;;  %v11824_v38 = vcombine.high %v8182_v8, %v8198_v13  ;;  %v8005_v6 = vld [vmem:[#allocation14 + $0xe0] sm:$0xff]  ;;  %v8006_v63 = vld [vmem:[#allocation14 + $0xe8] sm:$0xff] }
 0x676   :  { %10096 = vmatpush1.bf16.msra.mxu0 %v11785_v48  ;;  %10137 = vmatpush1.bf16.msra.mxu1 %v11787_v31  ;;  %v11821_v48 = vcombine.low %v8181_v53, %v8197_v42  ;;  %v11823_v31 = vcombine.low %v8182_v8, %v8198_v13  ;;  %v8215_v53 = vld [vmem:[#allocation14 + $0x770] sm:$0xff]  ;;  %v8216_v8 = vld [vmem:[#allocation14 + $0x778] sm:$0xff] }
 0x677   :  { %10097 = vmatprep.subr.bf16.mxu0 %v11754_v3  ;;  %10138 = vmatprep.subr.bf16.mxu1 %v11756_v33  ;;  %v11790_v3 = vcombine.high %v8149_v25, %v8165_v40  ;;  %v11792_v33 = vcombine.high %v8150_v1, %v8166_v14  ;;  %v8231_v42 = vld [vmem:[#allocation14 + $0x7f0] sm:$0xff]  ;;  %v8232_v13 = vld [vmem:[#allocation14 + $0x7f8] sm:$0xff] }
 0x67a   :  { %10098 = vmatpush1.bf16.msra.mxu0 %v11753_v9  ;;  %10139 = vmatpush1.bf16.msra.mxu1 %v11755_v39  ;;  %v11789_v9 = vcombine.low %v8149_v25, %v8165_v40  ;;  %v11791_v39 = vcombine.low %v8150_v1, %v8166_v14  ;;  %v14178_v25 = vld [vmem:[#allocation16] sm:$0xff]  ;;  %v8183_v40 = vld [vmem:[#allocation14 + $0x670] sm:$0xff]  ;;  %v8184_v14 = vld [vmem:[#allocation14 + $0x678] sm:$0xff] }
 0x67b   :  { %10099 = vmatprep.subr.bf16.mxu0 %v11722_v26  ;;  %10140 = vmatprep.subr.bf16.mxu1 %v11724_v45  ;;  %v11758_v26 = vcombine.high %v8117_v5, %v8133_v58  ;;  %v11760_v45 = vcombine.high %v8118_v15, %v8134_v27  ;;  %v8199_v1 = vld [vmem:[#allocation14 + $0x6f0] sm:$0xff] }
 0x67e   :  { %10100 = vmatpush1.bf16.msra.mxu0 %v11721_v32  ;;  %10141 = vmatpush1.bf16.msra.mxu1 %v11723_v11  ;;  %v11757_v32 = vcombine.low %v8117_v5, %v8133_v58  ;;  %v11759_v11 = vcombine.low %v8118_v15, %v8134_v27  ;;  %v8252_v5 = vrot.slane %v14178_v25, %v14090_v52  ;;  %v8151_v27 = vld [vmem:[#allocation14 + $0x570] sm:$0xff] }
 0x67f   :  { %10101 = vmatprep.subr.bf16.mxu0 %v11690_v30  ;;  %10142 = vmatprep.subr.bf16.mxu1 %v11692_v41  ;;  %v11726_v30 = vcombine.high %v8085_v35, %v8101_v60  ;;  %v11728_v41 = vcombine.high %v8086_v23, %v8102_v17  ;;  %v11826_v58 = vcombine.high %v8183_v40, %v8199_v1 }
 0x682   :  { %10102 = vmatpush1.bf16.msra.mxu0 %v11689_v47  ;;  %10143 = vmatpush1.bf16.msra.mxu1 %v11691_v51  ;;  %v11725_v47 = vcombine.low %v8085_v35, %v8101_v60  ;;  %v11727_v51 = vcombine.low %v8086_v23, %v8102_v17  ;;  %v8168_v35 = vld [vmem:[#allocation14 + $0x5f8] sm:$0xff]  ;;  %v11825_v17 = vcombine.low %v8183_v40, %v8199_v1  ;;  %v8055_v40 = vld [vmem:[#allocation14 + $0x270] sm:$0xff] }
 0x683   :  { %10103 = vmatprep.subr.bf16.mxu0 %v11658_v54  ;;  %10144 = vmatprep.subr.bf16.mxu1 %v11660_v46  ;;  %v11694_v54 = vcombine.high %v8053_v20, %v8069_v59  ;;  %v11696_v46 = vcombine.high %v8054_v12, %v8070_v19 }
 0x686   :  { %10104 = vmatpush1.bf16.msra.mxu0 %v11657_v56  ;;  %10145 = vmatpush1.bf16.msra.mxu1 %v11659_v7  ;;  %v11693_v56 = vcombine.low %v8053_v20, %v8069_v59  ;;  %v11695_v7 = vcombine.low %v8054_v12, %v8070_v19  ;;  %v8119_v19 = vld [vmem:[#allocation14 + $0x470] sm:$0xff] }
 0x687   :  { %10105 = vmatprep.subr.bf16.mxu0 %v11626_v55  ;;  %10146 = vmatprep.subr.bf16.mxu1 %v11628_v24  ;;  %v11662_v55 = vcombine.high %v8021_v16, %v8037_v37  ;;  %v11664_v24 = vcombine.high %v8022_v44, %v8038_v0 }
 0x68a   :  { %10106 = vmatpush1.bf16.msra.mxu0 %v11625_v4  ;;  %10147 = vmatpush1.bf16.msra.mxu1 %v11627_v28  ;;  %v11661_v4 = vcombine.low %v8021_v16, %v8037_v37  ;;  %v11663_v28 = vcombine.low %v8022_v44, %v8038_v0  ;;  %v8136_v16 = vld [vmem:[#allocation14 + $0x4f8] sm:$0xff] }
 0x68b   :  { %10173 = vmatprep.subr.bf16.mxu0 %v11854_v2  ;;  %10214 = vmatprep.subr.bf16.mxu1 %v11856_v61  ;;  %v11630_v2 = vcombine.high %v7989_v36, %v8005_v6  ;;  %v11632_v61 = vcombine.high %v7990_v21, %v8006_v63 }
 0x68d   :  { %10124 = vmatmul.mubr.bf16.vlgmr.msra.gmra.mxu0 %v14152_v22  ;;  %10165 = vmatmul.mubr.bf16.vlgmr.msra.gmra.mxu1 %v14152_v22 }
 0x68e   :  { %10174 = vmatpush1.bf16.msra.mxu0 %v11853_v18  ;;  %10215 = vmatpush1.bf16.msra.mxu1 %v11855_v10  ;;  %v11629_v18 = vcombine.low %v7989_v36, %v8005_v6  ;;  %v11631_v10 = vcombine.low %v7990_v21, %v8006_v63 }
 0x68f   :  { %10175 = vmatprep.subr.bf16.mxu0 %v11822_v62  ;;  %10216 = vmatprep.subr.bf16.mxu1 %v11824_v38  ;;  %v11858_v62 = vcombine.high %v8215_v53, %v8231_v42  ;;  %v11860_v38 = vcombine.high %v8216_v8, %v8232_v13 }
 0x690   :  { %10205 = vmatprep.mubr.bf16.mxu0 %v13708_v50  ;;  %10246 = vmatprep.mubr.bf16.mxu1 %v13708_v50 }
 0x692   :  { %10176 = vmatpush1.bf16.msra.mxu0 %v11821_v48  ;;  %10217 = vmatpush1.bf16.msra.mxu1 %v11823_v31  ;;  %v8200_v48 = vld [vmem:[#allocation14 + $0x6f8] sm:$0xff]  ;;  %v11857_v31 = vcombine.low %v8215_v53, %v8231_v42 }
 0x693   :  { %10177 = vmatprep.subr.bf16.mxu0 %v11790_v3  ;;  %10218 = vmatprep.subr.bf16.mxu1 %v11792_v33  ;;  %v11859_v3 = vcombine.low %v8216_v8, %v8232_v13  ;;  %v8244_v33 = vrot.slane %v14178_v25, %v13912_v29  ;;  %v11828_v15 = vcombine.high %v8184_v14, %v8200_v48  ;;  %v8088_v53 = vld [vmem:[#allocation14 + $0x378] sm:$0xff] }
 0x694   :  { %v8104_v42 = vld [vmem:[#allocation14 + $0x3f8] sm:$0xff] }
 0x696   :  { %10178 = vmatpush1.bf16.msra.mxu0 %v11789_v9  ;;  %10219 = vmatpush1.bf16.msra.mxu1 %v11791_v39  ;;  %v8248_v9 = vrot.slane %v14178_v25, %v13915_v34  ;;  %v8256_v39 = vrot.slane %v14178_v25, %v14093_v57 }
 0x697   :  { %10179 = vmatprep.subr.bf16.mxu0 %v11758_v26  ;;  %10220 = vmatprep.subr.bf16.mxu1 %v11760_v45  ;;  %v8167_v26 = vld [vmem:[#allocation14 + $0x5f0] sm:$0xff]  ;;  %v8152_v45 = vld [vmem:[#allocation14 + $0x578] sm:$0xff] }
 0x698   :  { %v11794_v59 = vcombine.high %v8151_v27, %v8167_v26  ;;  %v11796_v12 = vcombine.high %v8152_v45, %v8168_v35  ;;  %v11793_v0 = vcombine.low %v8151_v27, %v8167_v26  ;;  %v8039_v27 = vld [vmem:[#allocation14 + $0x1f0] sm:$0xff] }
 0x69a   :  { %10180 = vmatpush1.bf16.msra.mxu0 %v11757_v32  ;;  %10221 = vmatpush1.bf16.msra.mxu1 %v11759_v11 }
 0x69b   :  { %10181 = vmatprep.subr.bf16.mxu0 %v11726_v30  ;;  %10222 = vmatprep.subr.bf16.mxu1 %v11728_v41  ;;  %v11827_v30 = vcombine.low %v8184_v14, %v8200_v48  ;;  %v8071_v14 = vld [vmem:[#allocation14 + $0x2f0] sm:$0xff]  ;;  %v8056_v48 = vld [vmem:[#allocation14 + $0x278] sm:$0xff] }
 0x69c   :  { %v11697_v26 = vcombine.low %v8055_v40, %v8071_v14 }
 0x69e   :  { %10182 = vmatpush1.bf16.msra.mxu0 %v11725_v47  ;;  %10223 = vmatpush1.bf16.msra.mxu1 %v11727_v51 }
 0x69f   :  { %10183 = vmatprep.subr.bf16.mxu0 %v11694_v54  ;;  %10224 = vmatprep.subr.bf16.mxu1 %v11696_v46  ;;  %v8135_v54 = vld [vmem:[#allocation14 + $0x4f0] sm:$0xff]  ;;  %v8120_v46 = vld [vmem:[#allocation14 + $0x478] sm:$0xff] }
 0x6a0   :  { %v11762_v63 = vcombine.high %v8119_v19, %v8135_v54  ;;  %v11761_v8 = vcombine.low %v8119_v19, %v8135_v54  ;;  %v14204_v54 = vsub.s32 5, %v13803_v43 }
 0x6a2   :  { %10184 = vmatpush1.bf16.msra.mxu0 %v11693_v56  ;;  %10225 = vmatpush1.bf16.msra.mxu1 %v11695_v7  ;;  %v11795_v56 = vcombine.low %v8152_v45, %v8168_v35 }
 0x6a3   :  { %10185 = vmatprep.subr.bf16.mxu0 %v11662_v55  ;;  %10226 = vmatprep.subr.bf16.mxu1 %v11664_v24 }
 0x6a6   :  { %10186 = vmatpush1.bf16.msra.mxu0 %v11661_v4  ;;  %10227 = vmatpush1.bf16.msra.mxu1 %v11663_v28  ;;  %v11764_v4 = vcombine.high %v8120_v46, %v8136_v16  ;;  %v8087_v28 = vld [vmem:[#allocation14 + $0x370] sm:$0xff] }
 0x6a7   :  { %10187 = vmatprep.subr.bf16.mxu0 %v11630_v2  ;;  %10228 = vmatprep.subr.bf16.mxu1 %v11632_v61 }
 0x6aa   :  { %10188 = vmatpush1.bf16.msra.mxu0 %v11629_v18  ;;  %10229 = vmatpush1.bf16.msra.mxu1 %v11631_v10  ;;  %v11763_v10 = vcombine.low %v8120_v46, %v8136_v16  ;;  %v14207_v46 = vsub.s32 7, %v13803_v43 }
 0x6ab   :  { %10255 = vmatprep.subr.bf16.mxu0 %v11858_v62  ;;  %10296 = vmatprep.subr.bf16.mxu1 %v11860_v38  ;;  %v11732_v38 = vcombine.high %v8088_v53, %v8104_v42 }
 0x6ad   :  { %10206 = vmatmul.mubr.bf16.vlgmr.msra.gmra.mxu0 %v14152_v22  ;;  %10247 = vmatmul.mubr.bf16.vlgmr.msra.gmra.mxu1 %v14152_v22  ;;  %v9715_v60 = vpop.f32.mrf.mxu0  ;;  %v9756_v23 = vpop.f32.mrf.mxu1 }
 0x6ae   :  { %v9716_v32 = vadd.f32 %v9715_v60, %v8244_v33  ;;  %v9757_v11 = vadd.f32 %v9756_v23, %v8252_v5  ;;  %10256 = vmatpush1.bf16.msra.mxu0 %v11857_v31  ;;  %10297 = vmatpush1.bf16.msra.mxu1 %v11859_v3  ;;  %v8072_v31 = vld [vmem:[#allocation14 + $0x2f8] sm:$0xff]  ;;  %v11731_v33 = vcombine.low %v8088_v53, %v8104_v42  ;;  %v7991_v23 = vld [vmem:[#allocation14 + $0x70] sm:$0xff] }
 0x6af   :  { %v9717_v41 = vpop.f32.mrf.mxu0  ;;  %v9758_v20 = vpop.f32.mrf.mxu1  ;;  %10257 = vmatprep.subr.bf16.mxu0 %v11826_v58  ;;  %10298 = vmatprep.subr.bf16.mxu1 %v11828_v15  ;;  %v11698_v5 = vcombine.high %v8055_v40, %v8071_v14  ;;  %v11700_v58 = vcombine.high %v8056_v48, %v8072_v31  ;;  %v8023_v15 = vld [vmem:[#allocation14 + $0x170] sm:$0xff]  ;;  %v11699_v45 = vcombine.low %v8056_v48, %v8072_v31 }
 0x6b0   :  { %v9718_v47 = vadd.f32 %v9717_v41, %v8248_v9  ;;  %v9759_v51 = vadd.f32 %v9758_v20, %v8256_v39  ;;  %10287 = vmatprep.mubr.bf16.mxu0 %v13708_v50  ;;  %10328 = vmatprep.mubr.bf16.mxu1 %v13708_v50  ;;  %v10337_v7 = vmax.f32 %v9716_v32, 0.0  ;;  %v10339_v55 = vmax.f32 %v9757_v11, 0.0  ;;  %v8103_v50 = vld [vmem:[#allocation14 + $0x3f0] sm:$0xff]  ;;  %v8024_v9 = vld [vmem:[#allocation14 + $0x178] sm:$0xff] }
 0x6b1   :  { %v9719_v37 = vpop.f32.mrf.mxu0  ;;  %v9760_v44 = vpop.f32.mrf.mxu1  ;;  %v11730_v62 = vcombine.high %v8087_v28, %v8103_v50  ;;  %v11729_v3 = vcombine.low %v8087_v28, %v8103_v50  ;;  %v8040_v39 = vld [vmem:[#allocation14 + $0x1f8] sm:$0xff]  ;;  %v11666_v35 = vcombine.high %v8023_v15, %v8039_v27 }
 0x6b2   :  { %v10338_v24 = vmax.f32 %v9718_v47, 0.0  ;;  %v10340_v36 = vmax.f32 %v9759_v51, 0.0  ;;  %10258 = vmatpush1.bf16.msra.mxu0 %v11825_v17  ;;  %10299 = vmatpush1.bf16.msra.mxu1 %v11827_v30  ;;  %v11668_v60 = vcombine.high %v8024_v9, %v8040_v39  ;;  %v8007_v17 = vld [vmem:[#allocation14 + $0xf0] sm:$0xff]  ;;  %v7992_v32 = vld [vmem:[#allocation14 + $0x78] sm:$0xff]  ;;  %v11665_v30 = vcombine.low %v8023_v15, %v8039_v27 }
 0x6b3   :  { %v9720_v6 = vpop.f32.mrf.mxu0  ;;  %v9761_v21 = vpop.f32.mrf.mxu1  ;;  %10259 = vmatprep.subr.bf16.mxu0 %v11794_v59  ;;  %10300 = vmatprep.subr.bf16.mxu1 %v11796_v12  ;;  %v8008_v11 = vld [vmem:[#allocation14 + $0xf8] sm:$0xff]  ;;  %v11667_v41 = vcombine.low %v8024_v9, %v8040_v39  ;;  %v11634_v20 = vcombine.high %v7991_v23, %v8007_v17  ;;  %v11633_v12 = vcombine.low %v7991_v23, %v8007_v17  ;;  %v14198_v47 = vsub.s32 4, %v13803_v43 }
 0x6b4   :  { %v10401_v2 = vcombine.low %v10337_v7, %v10338_v24  ;;  %v10402_v61 = vcombine.low %v10339_v55, %v10340_v36  ;;  %v11636_v59 = vcombine.high %v7992_v32, %v8008_v11  ;;  %v11635_v19 = vcombine.low %v7992_v32, %v8008_v11 }
 0x6b5   :  { %v14201_v51 = vsub.s32 6, %v13803_v43  ;;  %v8260_v16 = vrot.slane %v14178_v25, %v14198_v47  ;;  %v8264_v44 = vrot.slane %v14178_v25, %v14204_v54 }
 0x6b6   :  { %v10409_v13 = vrot.slane %v10401_v2, %v13806_v49  ;;  %v10416_v18 = vrot.slane %v10402_v61, %v13806_v49  ;;  %10260 = vmatpush1.bf16.msra.mxu0 %v11793_v0  ;;  %10301 = vmatpush1.bf16.msra.mxu1 %v11795_v56  ;;  %v8272_v0 = vrot.slane %v14178_v25, %v14207_v46 }
 0x6b7   :  { %10261 = vmatprep.subr.bf16.mxu0 %v11762_v63  ;;  %10302 = vmatprep.subr.bf16.mxu1 %v11764_v4  ;;  %v8268_v37 = vrot.slane %v14178_v25, %v14201_v51 }
 0x6b8   :  { %v10417_v1 = vcombine.low %v10409_v13, %v10416_v18 }
 0x6ba   :  { %10545 = vst [vmem:[%s14294_s10] sm:$0xff] %v10417_v1  ;;  %10262 = vmatpush1.bf16.msra.mxu0 %v11761_v8  ;;  %10303 = vmatpush1.bf16.msra.mxu1 %v11763_v10  ;;  %v8234_v10 = vld [vmem:[#allocation16 + $0x8] sm:$0xff] }
 0x6bb   :  { %10263 = vmatprep.subr.bf16.mxu0 %v11730_v62  ;;  %10304 = vmatprep.subr.bf16.mxu1 %v11732_v38  ;;  %v8276_v62 = vrot.slane %v8234_v10, %v13912_v29  ;;  %v8284_v38 = vrot.slane %v8234_v10, %v14090_v52  ;;  %v8280_v40 = vrot.slane %v8234_v10, %v13915_v34 }
 0x6bc   :  { %v8288_v1 = vrot.slane %v8234_v10, %v14093_v57 }
 0x6be   :  { %10264 = vmatpush1.bf16.msra.mxu0 %v11729_v3  ;;  %10305 = vmatpush1.bf16.msra.mxu1 %v11731_v33 }
 0x6bf   :  { %10265 = vmatprep.subr.bf16.mxu0 %v11698_v5  ;;  %10306 = vmatprep.subr.bf16.mxu1 %v11700_v58 }
 0x6c2   :  { %10266 = vmatpush1.bf16.msra.mxu0 %v11697_v26  ;;  %10307 = vmatpush1.bf16.msra.mxu1 %v11699_v45 }
 0x6c3   :  { %10267 = vmatprep.subr.bf16.mxu0 %v11666_v35  ;;  %10308 = vmatprep.subr.bf16.mxu1 %v11668_v60 }
 0x6c6   :  { %10268 = vmatpush1.bf16.msra.mxu0 %v11665_v30  ;;  %10309 = vmatpush1.bf16.msra.mxu1 %v11667_v41 }
 0x6c7   :  { %10269 = vmatprep.subr.bf16.mxu0 %v11634_v20  ;;  %10310 = vmatprep.subr.bf16.mxu1 %v11636_v59  ;;  %v8292_v20 = vrot.slane %v8234_v10, %v14198_v47  ;;  %v8300_v59 = vrot.slane %v8234_v10, %v14201_v51 }
 0x6ca   :  { %10270 = vmatpush1.bf16.msra.mxu0 %v11633_v12  ;;  %10311 = vmatpush1.bf16.msra.mxu1 %v11635_v19  ;;  %v8296_v12 = vrot.slane %v8234_v10, %v14204_v54  ;;  %v8304_v19 = vrot.slane %v8234_v10, %v14207_v46 }
 0x6cd   :  { %v9797_v56 = vpop.f32.mrf.mxu0  ;;  %v9838_v7 = vpop.f32.mrf.mxu1  ;;  %10288 = vmatmul.mubr.bf16.vlgmr.msra.gmra.mxu0 %v14152_v22  ;;  %10329 = vmatmul.mubr.bf16.vlgmr.msra.gmra.mxu1 %v14152_v22 }
 0x6ce   :  { %v9798_v43 = vadd.f32 %v9797_v56, %v8260_v16  ;;  %v9839_v55 = vadd.f32 %v9838_v7, %v8268_v37 }
 0x6cf   :  { %v9799_v24 = vpop.f32.mrf.mxu0  ;;  %v9840_v36 = vpop.f32.mrf.mxu1 }
 0x6d0   :  { %v9800_v6 = vadd.f32 %v9799_v24, %v8264_v44  ;;  %v9841_v21 = vadd.f32 %v9840_v36, %v8272_v0  ;;  %v10341_v28 = vmax.f32 %v9798_v43, 0.0  ;;  %v10343_v2 = vmax.f32 %v9839_v55, 0.0 }
 0x6d1   :  { %v9801_v63 = vpop.f32.mrf.mxu0  ;;  %v9842_v4 = vpop.f32.mrf.mxu1 }
 0x6d2   :  { %v10342_v61 = vmax.f32 %v9800_v6, 0.0  ;;  %v10344_v50 = vmax.f32 %v9841_v21, 0.0 }
 0x6d3   :  { %v9802_v53 = vpop.f32.mrf.mxu0  ;;  %v9843_v25 = vpop.f32.mrf.mxu1 }
 0x6d4   :  { %v10418_v42 = vcombine.low %v10341_v28, %v10342_v61  ;;  %v10419_v8 = vcombine.low %v10343_v2, %v10344_v50 }
 0x6d6   :  { %v10426_v13 = vrot.slane %v10418_v42, %v13806_v49  ;;  %v10433_v22 = vrot.slane %v10419_v8, %v13806_v49 }
 0x6d8   :  { %v10434_v18 = vcombine.low %v10426_v13, %v10433_v22 }
 0x6da   :  { %10546 = vst [vmem:[%s14294_s10 + $0x8] sm:$0xff] %v10434_v18 }
 0x6ed   :  { %v9879_v14 = vpop.f32.mrf.mxu0  ;;  %v9920_v48 = vpop.f32.mrf.mxu1 }
 0x6ee   :  { %v9880_v31 = vadd.f32 %v9879_v14, %v8276_v62  ;;  %v9921_v3 = vadd.f32 %v9920_v48, %v8284_v38 }
 0x6ef   :  { %v9881_v33 = vpop.f32.mrf.mxu0  ;;  %v9922_v5 = vpop.f32.mrf.mxu1 }
 0x6f0   :  { %v9882_v58 = vadd.f32 %v9881_v33, %v8280_v40  ;;  %v9923_v15 = vadd.f32 %v9922_v5, %v8288_v1  ;;  %v10345_v39 = vmax.f32 %v9880_v31, 0.0  ;;  %v10347_v26 = vmax.f32 %v9921_v3, 0.0 }
 0x6f1   :  { %v9883_v27 = vpop.f32.mrf.mxu0  ;;  %v9924_v9 = vpop.f32.mrf.mxu1 }
 0x6f2   :  { %v10346_v45 = vmax.f32 %v9882_v58, 0.0  ;;  %v10348_v35 = vmax.f32 %v9923_v15, 0.0 }
 0x6f3   :  { %v9884_v60 = vpop.f32.mrf.mxu0  ;;  %v9925_v23 = vpop.f32.mrf.mxu1 }
 0x6f4   :  { %v10435_v17 = vcombine.low %v10345_v39, %v10346_v45  ;;  %v10436_v32 = vcombine.low %v10347_v26, %v10348_v35 }
 0x6f6   :  { %v10443_v11 = vrot.slane %v10435_v17, %v13806_v49  ;;  %v10450_v30 = vrot.slane %v10436_v32, %v13806_v49 }
 0x6f8   :  { %v10451_v41 = vcombine.low %v10443_v11, %v10450_v30 }
 0x6fa   :  { %10547 = vst [vmem:[%s14294_s10 + $0x10] sm:$0xff] %v10451_v41 }
 0x70d   :  { %v9961_v16 = vpop.f32.mrf.mxu0  ;;  %v10002_v37 = vpop.f32.mrf.mxu1 }
 0x70e   :  { %v9962_v44 = vadd.f32 %v9961_v16, %v8292_v20  ;;  %v10003_v0 = vadd.f32 %v10002_v37, %v8300_v59 }
 0x70f   :  { %v9963_v56 = vpop.f32.mrf.mxu0  ;;  %v10004_v7 = vpop.f32.mrf.mxu1 }
 0x710   :  { %v9964_v43 = vadd.f32 %v9963_v56, %v8296_v12  ;;  %v10005_v55 = vadd.f32 %v10004_v7, %v8304_v19  ;;  %v10349_v6 = vmax.f32 %v9962_v44, 0.0  ;;  %v10351_v21 = vmax.f32 %v10003_v0, 0.0 }
 0x711   :  { %v9965_v24 = vpop.f32.mrf.mxu0  ;;  %v10006_v36 = vpop.f32.mrf.mxu1 }
 0x712   :  { %v10350_v63 = vmax.f32 %v9964_v43, 0.0  ;;  %v10352_v4 = vmax.f32 %v10005_v55, 0.0 }
 0x713   :  { %v9966_v28 = vpop.f32.mrf.mxu0  ;;  %v10007_v2 = vpop.f32.mrf.mxu1 }
 0x714   :  { %v10452_v61 = vcombine.low %v10349_v6, %v10350_v63  ;;  %v10453_v50 = vcombine.low %v10351_v21, %v10352_v4 }
 0x716   :  { %v10460_v53 = vrot.slane %v10452_v61, %v13806_v49  ;;  %v10467_v25 = vrot.slane %v10453_v50, %v13806_v49 }
 0x718   :  { %v10468_v42 = vcombine.low %v10460_v53, %v10467_v25 }
 0x71a   :  { %10548 = vst [vmem:[%s14294_s10 + $0x18] sm:$0xff] %v10468_v42 }
 0x71b   :  { %13649 = shalt.err (!%p13646_p7)
}
 0x71c   :  { %10566 = dma.vmem_to_hbm [thread:$0]  %s10564_s25, 32, %s14295_s11, [#allocation4]  }
 0x71d   :  { %s13658_s30 = scalar_lea.vmem %s10574_s27, 32  ;;  %p13663_p9 = scmp.lt.s32.totalorder %s10574_s27, %s10574_s27 }
 0x71e   :  { %p13659_p8 = scmp.ne.s32.totalorder %s10574_s27, %s13658_s30  ;;  %p13664_p10 = scmp.lt.s32.totalorder %s13658_s30, %s13658_s30 }
 0x720   :  { %p13665_p11 = por %p13664_p10, %p13663_p9 }
 0x722   :  { %p13666_p12 = pnand %p13665_p11, %p13659_p8 }
 0x724   :  { %13669 = shalt.err (!%p13666_p12)
}
 0x725   :  { %10576 = dma.vmem_to_hbm [thread:$0]  %s10574_s27, 32, %s14296_s12, [#allocation19]   ;;  %v8235_v8 = vld [vmem:[#allocation16 + $0x10] sm:$0xff]  ;;  %v8236_v50 = vld [vmem:[#allocation16 + $0x18] sm:$0xff] }
 0x726   :  { %v8308_v13 = vrot.slane %v8235_v8, %v13912_v29  ;;  %v8316_v22 = vrot.slane %v8235_v8, %v14090_v52  ;;  %v8312_v18 = vrot.slane %v8235_v8, %v13915_v34  ;;  %v8320_v10 = vrot.slane %v8235_v8, %v14093_v57 }
 0x727   :  { %v8324_v32 = vrot.slane %v8235_v8, %v14198_v47  ;;  %v8332_v11 = vrot.slane %v8235_v8, %v14201_v51  ;;  %v8328_v30 = vrot.slane %v8235_v8, %v14204_v54  ;;  %v8336_v41 = vrot.slane %v8235_v8, %v14207_v46 }
 0x728   :  { %v8340_v53 = vrot.slane %v8236_v50, %v13912_v29  ;;  %v8348_v25 = vrot.slane %v8236_v50, %v14090_v52  ;;  %v8344_v42 = vrot.slane %v8236_v50, %v13915_v34  ;;  %v8352_v8 = vrot.slane %v8236_v50, %v14093_v57 }
 0x72d   :  { %v10043_v62 = vpop.f32.mrf.mxu0  ;;  %v10084_v38 = vpop.f32.mrf.mxu1 }
 0x72e   :  { %v10044_v40 = vadd.f32 %v10043_v62, %v8308_v13  ;;  %v10085_v1 = vadd.f32 %v10084_v38, %v8316_v22 }
 0x72f   :  { %v10045_v14 = vpop.f32.mrf.mxu0  ;;  %v10086_v48 = vpop.f32.mrf.mxu1 }
 0x730   :  { %v10046_v31 = vadd.f32 %v10045_v14, %v8312_v18  ;;  %v10087_v3 = vadd.f32 %v10086_v48, %v8320_v10  ;;  %v10353_v58 = vmax.f32 %v10044_v40, 0.0  ;;  %v10355_v15 = vmax.f32 %v10085_v1, 0.0 }
 0x731   :  { %v10047_v33 = vpop.f32.mrf.mxu0  ;;  %v10088_v5 = vpop.f32.mrf.mxu1 }
 0x732   :  { %v10354_v27 = vmax.f32 %v10046_v31, 0.0  ;;  %v10356_v9 = vmax.f32 %v10087_v3, 0.0 }
 0x733   :  { %v10048_v39 = vpop.f32.mrf.mxu0  ;;  %v10089_v26 = vpop.f32.mrf.mxu1 }
 0x734   :  { %v10469_v45 = vcombine.low %v10353_v58, %v10354_v27  ;;  %v10470_v35 = vcombine.low %v10355_v15, %v10356_v9  ;;  %v8356_v9 = vrot.slane %v8236_v50, %v14198_v47  ;;  %v8364_v39 = vrot.slane %v8236_v50, %v14201_v51 }
 0x735   :  { %v8360_v26 = vrot.slane %v8236_v50, %v14204_v54 }
 0x736   :  { %v10477_v60 = vrot.slane %v10469_v45, %v13806_v49  ;;  %v10484_v23 = vrot.slane %v10470_v35, %v13806_v49  ;;  %v8368_v45 = vrot.slane %v8236_v50, %v14207_v46 }
 0x738   :  { %v10485_v17 = vcombine.low %v10477_v60, %v10484_v23 }
 0x73a   :  { %10549 = vst [vmem:[%s14294_s10 + $0x20] sm:$0xff] %v10485_v17 }
 0x74d   :  { %v10125_v20 = vpop.f32.mrf.mxu0  ;;  %v10166_v59 = vpop.f32.mrf.mxu1 }
 0x74e   :  { %v10126_v12 = vadd.f32 %v10125_v20, %v8324_v32  ;;  %v10167_v19 = vadd.f32 %v10166_v59, %v8332_v11 }
 0x74f   :  { %v10127_v16 = vpop.f32.mrf.mxu0  ;;  %v10168_v37 = vpop.f32.mrf.mxu1 }
 0x750   :  { %v10128_v44 = vadd.f32 %v10127_v16, %v8328_v30  ;;  %v10169_v0 = vadd.f32 %v10168_v37, %v8336_v41  ;;  %v10357_v43 = vmax.f32 %v10126_v12, 0.0  ;;  %v10359_v55 = vmax.f32 %v10167_v19, 0.0 }
 0x751   :  { %v10129_v56 = vpop.f32.mrf.mxu0  ;;  %v10170_v7 = vpop.f32.mrf.mxu1 }
 0x752   :  { %v10358_v24 = vmax.f32 %v10128_v44, 0.0  ;;  %v10360_v36 = vmax.f32 %v10169_v0, 0.0 }
 0x753   :  { %v10130_v6 = vpop.f32.mrf.mxu0  ;;  %v10171_v21 = vpop.f32.mrf.mxu1 }
 0x754   :  { %v10486_v63 = vcombine.low %v10357_v43, %v10358_v24  ;;  %v10487_v4 = vcombine.low %v10359_v55, %v10360_v36 }
 0x756   :  { %v10494_v28 = vrot.slane %v10486_v63, %v13806_v49  ;;  %v10501_v2 = vrot.slane %v10487_v4, %v13806_v49 }
 0x758   :  { %v10502_v61 = vcombine.low %v10494_v28, %v10501_v2 }
 0x75a   :  { %10550 = vst [vmem:[%s14294_s10 + $0x28] sm:$0xff] %v10502_v61 }
 0x76d   :  { %v10207_v13 = vpop.f32.mrf.mxu0  ;;  %v10248_v22 = vpop.f32.mrf.mxu1 }
 0x76e   :  { %v10208_v18 = vadd.f32 %v10207_v13, %v8340_v53  ;;  %v10249_v10 = vadd.f32 %v10248_v22, %v8348_v25 }
 0x76f   :  { %v10209_v62 = vpop.f32.mrf.mxu0  ;;  %v10250_v38 = vpop.f32.mrf.mxu1 }
 0x770   :  { %v10210_v40 = vadd.f32 %v10209_v62, %v8344_v42  ;;  %v10251_v1 = vadd.f32 %v10250_v38, %v8352_v8  ;;  %v10361_v31 = vmax.f32 %v10208_v18, 0.0  ;;  %v10363_v3 = vmax.f32 %v10249_v10, 0.0 }
 0x771   :  { %v10211_v14 = vpop.f32.mrf.mxu0  ;;  %v10252_v48 = vpop.f32.mrf.mxu1 }
 0x772   :  { %v10362_v33 = vmax.f32 %v10210_v40, 0.0  ;;  %v10364_v29 = vmax.f32 %v10251_v1, 0.0 }
 0x773   :  { %v10212_v5 = vpop.f32.mrf.mxu0  ;;  %v10253_v52 = vpop.f32.mrf.mxu1 }
 0x774   :  { %v10503_v58 = vcombine.low %v10361_v31, %v10362_v33  ;;  %v10504_v34 = vcombine.low %v10363_v3, %v10364_v29 }
 0x776   :  { %v10511_v57 = vrot.slane %v10503_v58, %v13806_v49  ;;  %v10518_v15 = vrot.slane %v10504_v34, %v13806_v49 }
 0x778   :  { %v10519_v27 = vcombine.low %v10511_v57, %v10518_v15 }
 0x77a   :  { %10551 = vst [vmem:[%s14294_s10 + $0x30] sm:$0xff] %v10519_v27 }
 0x78d   :  { %v10289_v35 = vpop.f32.mrf.mxu0  ;;  %v10330_v60 = vpop.f32.mrf.mxu1 }
 0x78e   :  { %v10290_v23 = vadd.f32 %v10289_v35, %v8356_v9  ;;  %v10331_v17 = vadd.f32 %v10330_v60, %v8364_v39 }
 0x78f   :  { %v10291_v32 = vpop.f32.mrf.mxu0  ;;  %v10332_v11 = vpop.f32.mrf.mxu1 }
 0x790   :  { %v10292_v30 = vadd.f32 %v10291_v32, %v8360_v26  ;;  %v10333_v41 = vadd.f32 %v10332_v11, %v8368_v45  ;;  %v10365_v12 = vmax.f32 %v10290_v23, 0.0  ;;  %v10367_v19 = vmax.f32 %v10331_v17, 0.0 }
 0x791   :  { %v10293_v20 = vpop.f32.mrf.mxu0  ;;  %v10334_v59 = vpop.f32.mrf.mxu1 }
 0x792   :  { %v10366_v16 = vmax.f32 %v10292_v30, 0.0  ;;  %v10368_v47 = vmax.f32 %v10333_v41, 0.0 }
 0x793   :  { %v10294_v37 = vpop.f32.mrf.mxu0  ;;  %v10335_v51 = vpop.f32.mrf.mxu1 }
 0x794   :  { %v10520_v44 = vcombine.low %v10365_v12, %v10366_v16  ;;  %v10521_v54 = vcombine.low %v10367_v19, %v10368_v47 }
 0x796   :  { %v10528_v46 = vrot.slane %v10520_v44, %v13806_v49  ;;  %v10535_v0 = vrot.slane %v10521_v54, %v13806_v49 }
 0x798   :  { %v10536_v56 = vcombine.low %v10528_v46, %v10535_v0 }
 0x79a   :  { %10552 = vst [vmem:[%s14294_s10 + $0x38] sm:$0xff] %v10536_v56 }
 0x79b   :  { %13688 = dma.done.wait [#allocation4], 32  }
 0x79c   :  { %13689 = vsyncadd [#allocation4], 4294967264 }
 0x79d   :  { %13690 = dma.done.wait [#allocation19], 32  }
 0x79e   :  { %13691 = vsyncadd [#allocation19], 4294967264 }
 0x79f   :  { %10585 = vsyncpa [#allocation3], 1 }
 0x7a0   :  { %10586 = vsyncpa [#allocation6], 1 }
 0x7a1   :  { %10587 = vsyncpa [#allocation9], 1 }
 0x7a2   :  { %10588 = vsyncpa [#allocation12], 1 }
 0x7a3   :  { %10589 = vsyncpa [#allocation15], 1 }
 0x7a4   :  { %10590 = vsyncpa [#allocation4], 1 }
 0x7a5   :  { %10591 = vsyncpa [#allocation19], 1 }

</bundles_post_ra>
